<compile_context>
chip_gen: v5e
topology: v5e:2x2
jax: 0.10.0
libtpu: 0.0.40
codegen_flags: <defaults>
</compile_context>

<pallas_src>
import functools

import jax
import jax.numpy as jnp
from jax.experimental import pallas as pl
from jax.experimental.pallas import tpu as pltpu

_NEG_BIG = -1e30  # behaves like -inf without any inf-inf NaN risk


def _attention_mil_kernel(n_valid, tile_n,
                          x_ref, w1_ref, b1_ref, wa1_ref, ba1_ref,
                          wa2r_ref, ba2_ref, wc_ref, bc_ref,
                          y_ref, a_ref,
                          m_ref, l_ref, acc_ref):
    i = pl.program_id(0)

    @pl.when(i == 0)
    def _init():
        m_ref[...] = jnp.full((1, 1), _NEG_BIG, jnp.float32)
        l_ref[...] = jnp.zeros((1, 1), jnp.float32)
        acc_ref[...] = jnp.zeros(acc_ref.shape, jnp.float32)
        a_ref[...] = jnp.zeros(a_ref.shape, jnp.float32)

    # extractor: Linear(F, 512) -> ReLU -> Dropout(0.2) (identity in eval mode)
    x = x_ref[...]                                                   # (T, F) bf16
    f = jnp.dot(x, w1_ref[...], preferred_element_type=jnp.float32) + b1_ref[...]
    f = jnp.maximum(f, 0.0)                                          # (T, 512) f32

    # attention MLP: Linear(512, 256) -> Tanh -> Linear(256, 1)
    h = jnp.tanh(
        jnp.dot(f.astype(jnp.bfloat16), wa1_ref[...],
                preferred_element_type=jnp.float32) + ba1_ref[...])  # (T, 256) f32
    # single-output-column Linear as VPU multiply + lane reduction (MXU-free)
    logit = jnp.sum(h * wa2r_ref[...], axis=-1, keepdims=True) + ba2_ref[...]  # (T,1)

    # mask padded rows of the (ragged) last tile
    row = i * tile_n + jax.lax.broadcasted_iota(jnp.int32, (tile_n, 1), 0)
    logit = jnp.where(row < n_valid, logit, _NEG_BIG)

    # online softmax update (running max m, denom l, rescaled sum of e*f)
    m_prev = m_ref[...]                                              # (1, 1)
    l_prev = l_ref[...]                                              # (1, 1)
    m_new = jnp.maximum(m_prev, jnp.max(logit, axis=0, keepdims=True))
    corr = jnp.exp(m_prev - m_new)                                   # (1, 1)
    e = jnp.exp(logit - m_new)                                       # (T, 1); pads -> 0
    l_ref[...] = corr * l_prev + jnp.sum(e, axis=0, keepdims=True)
    # weighted aggregation as broadcast-mul + sublane reduce (VPU/XLU, not MXU)
    acc_ref[...] = corr * acc_ref[...] + jnp.sum(e * f, axis=0, keepdims=True)
    m_ref[...] = m_new

    # rescale previously stored (unnormalized) weights, then write this tile's
    # weights lane-dense into the resident (1, N_pad) output.  The sublane->lane
    # move is done with an iota equality mask + sublane reduce (no transpose op).
    ident = (jax.lax.broadcasted_iota(jnp.int32, (tile_n, tile_n), 0)
             == jax.lax.broadcasted_iota(jnp.int32, (tile_n, tile_n), 1))
    e_row = jnp.sum(jnp.where(ident, e, 0.0), axis=0, keepdims=True)  # (1, T)
    a_ref[...] = a_ref[...] * corr
    a_ref[:, pl.ds(pl.multiple_of(i * tile_n, 128), tile_n)] = e_row

    @pl.when(i == pl.num_programs(0) - 1)
    def _finalize():
        inv_l = 1.0 / l_ref[...]                                     # (1, 1)
        a_ref[...] = a_ref[...] * inv_l                              # softmax weights
        m_vec = acc_ref[...] * inv_l                                 # (1, 512) = a @ f
        y_ref[...] = (jnp.dot(m_vec, wc_ref[...],
                              preferred_element_type=jnp.float32) + bc_ref[...])


def attention_mil(x, params, *, tile_n=512):
    """Full AttentionMIL forward (eval mode) in one Pallas call.

    x: (N, F) float32 bag of instances.
    Returns (y, a): y (1, classes), a (1, N) — matching the PyTorch module.
    """
    N, F = x.shape
    w1, b1, wa1, ba1, wa2, ba2, wc, bc = params
    C = wc.shape[1]

    # tile must be a multiple of 128 (lane-dense slice writes, (8,128) rule)
    tile_n = max(128, min(int(tile_n), 2048))
    tile_n = ((tile_n + 127) // 128) * 128
    n_pad = pl.cdiv(N, tile_n) * tile_n
    num_tiles = n_pad // tile_n

    # bf16 MXU operands; pad bag to a whole number of tiles (kernel masks pads)
    xb = jnp.pad(x, ((0, n_pad - N), (0, 0))).astype(jnp.bfloat16)
    w1b = w1.astype(jnp.bfloat16)
    wa1b = wa1.astype(jnp.bfloat16)
    wa2_row = wa2.reshape(1, -1).astype(jnp.float32)                 # (1, 256)

    kernel = functools.partial(_attention_mil_kernel, N, tile_n)

    def const_spec(shape):
        return pl.BlockSpec(shape, lambda i: (0, 0))

    y, a_row = pl.pallas_call(
        kernel,
        grid=(num_tiles,),
        out_shape=(jax.ShapeDtypeStruct((1, C), jnp.float32),
                   jax.ShapeDtypeStruct((1, n_pad), jnp.float32)),
        in_specs=[pl.BlockSpec((tile_n, F), lambda i: (i, 0)),       # streamed x tiles
                  const_spec(w1b.shape), const_spec(b1.shape),       # VMEM-resident
                  const_spec(wa1b.shape), const_spec(ba1.shape),
                  const_spec(wa2_row.shape), const_spec(ba2.shape),
                  const_spec(wc.shape), const_spec(bc.shape)],
        out_specs=(const_spec((1, C)),            # y: written on last tile
                   const_spec((1, n_pad))),       # a: resident accumulator (lane-dense)
        scratch_shapes=[pltpu.VMEM((1, 1), jnp.float32),    # running max
                        pltpu.VMEM((1, 1), jnp.float32),    # running denom
                        pltpu.VMEM((1, 512), jnp.float32)], # running sum(e * f)
        compiler_params=pltpu.CompilerParams(
            dimension_semantics=("arbitrary",)),
    )(xb, w1b, b1, wa1b, ba1, wa2_row, ba2, wc, bc)

    return y, a_row[:, :N]


def init_params(key, feature_size, classes):
    """PyTorch-Linear-style init U(-1/sqrt(fan_in), 1/sqrt(fan_in)); weights (in, out)."""
    dims = [(feature_size, 512),  # extractor Linear
            (512, 256),           # attention Linear 1
            (256, 1),             # attention Linear 2
            (512, classes)]       # classifier Linear
    params = []
    for fan_in, fan_out in dims:
        key, kw, kb = jax.random.split(key, 3)
        bound = 1.0 / jnp.sqrt(float(fan_in))
        w = jax.random.uniform(kw, (fan_in, fan_out), jnp.float32, -bound, bound)
        b = jax.random.uniform(kb, (1, fan_out), jnp.float32, -bound, bound)
        params.extend([w, b])
    return tuple(params)


def reference(x, params, *, use_bf16=False):
    """Pure-JAX reference mirroring the PyTorch forward (eval mode).

    use_bf16=True applies the same bf16-operand / f32-accumulation choice as
    the kernel so the comparison isolates kernel correctness from precision.
    """
    w1, b1, wa1, ba1, wa2, ba2, wc, bc = params
    if use_bf16:
        f = jnp.dot(x.astype(jnp.bfloat16), w1.astype(jnp.bfloat16),
                    preferred_element_type=jnp.float32) + b1
        f = jnp.maximum(f, 0.0)
        h = jnp.tanh(jnp.dot(f.astype(jnp.bfloat16), wa1.astype(jnp.bfloat16),
                             preferred_element_type=jnp.float32) + ba1)
    else:
        f = jnp.maximum(x @ w1 + b1, 0.0)
        h = jnp.tanh(f @ wa1 + ba1)
    logits = h @ wa2 + ba2                              # (N, 1)
    a = jax.nn.softmax(logits.T, axis=1)                # (1, N)
    m = a @ f                                           # (1, 512)
    y = m @ wc + bc                                     # (1, C)
    return y, a


if __name__ == "__main__":
    # Small shapes consistent with the module (internal 512/256/1 dims fixed):
    # a bag of N=600 instances, feature_size=256, classes=3.  tile_n=256 gives
    # 3 N-tiles with a ragged last tile, exercising the online softmax + mask.
    N, FEATURE_SIZE, CLASSES = 600, 256, 3

    key = jax.random.PRNGKey(0)
    key, kx = jax.random.split(key)
    x = jax.random.normal(kx, (N, FEATURE_SIZE), jnp.float32)
    params = init_params(key, FEATURE_SIZE, CLASSES)

    y, a = attention_mil(x, params, tile_n=256)
    y = jax.block_until_ready(y)
    a = jax.block_until_ready(a)

    assert y.shape == (1, CLASSES) and a.shape == (1, N)

    # precision-matched reference (same bf16 operands, f32 accumulation): tight
    y_bf, a_bf = reference(x, params, use_bf16=True)
    assert jnp.allclose(y, y_bf, atol=2e-3, rtol=2e-3), "y mismatch vs bf16 reference"
    assert jnp.allclose(a, a_bf, atol=1e-5, rtol=1e-2), "a mismatch vs bf16 reference"
    assert jnp.allclose(jnp.sum(a), 1.0, atol=1e-4), "attention weights not normalized"

    # full-f32 PyTorch-equivalent reference: loose (bf16 operand rounding only)
    y_f32, a_f32 = reference(x, params, use_bf16=False)
    assert jnp.allclose(y, y_f32, atol=1e-1, rtol=1e-1), "y mismatch vs f32 reference"
    assert jnp.allclose(a, a_f32, atol=5e-3, rtol=1e-1), "a mismatch vs f32 reference"

    print("KERNEL_OK")
</pallas_src>

<mosaic_0001>
module attributes {stable_mosaic.version = 11 : i64} {
  func.func @_attention_mil_kernel(%arg0: i32, %arg1: memref<256x256xbf16, #tpu.memory_space<vmem>>, %arg2: memref<256x512xbf16, #tpu.memory_space<vmem>>, %arg3: memref<1x512xf32, #tpu.memory_space<vmem>>, %arg4: memref<512x256xbf16, #tpu.memory_space<vmem>>, %arg5: memref<1x256xf32, #tpu.memory_space<vmem>>, %arg6: memref<1x256xf32, #tpu.memory_space<vmem>>, %arg7: memref<1x1xf32, #tpu.memory_space<vmem>>, %arg8: memref<512x3xf32, #tpu.memory_space<vmem>>, %arg9: memref<1x3xf32, #tpu.memory_space<vmem>>, %arg10: memref<1x3xf32, #tpu.memory_space<vmem>>, %arg11: memref<1x768xf32, #tpu.memory_space<vmem>>, %arg12: memref<1x1xf32, #tpu.memory_space<vmem>>, %arg13: memref<1x1xf32, #tpu.memory_space<vmem>>, %arg14: memref<1x512xf32, #tpu.memory_space<vmem>>) attributes {dimension_semantics = [#tpu.dimension_semantics<arbitrary>], iteration_bounds = array<i64: 3>, scalar_prefetch = 0 : i64, scratch_operands = 3 : i64, tpu.core_type = #tpu.core_type<tc>, window_params = [{transform_indices = @transform_0, window_bounds = array<i64: 256, 256>}, {pipeline_mode = #tpu.pipeline_mode<synchronous>, transform_indices = @transform_1, window_bounds = array<i64: 256, 512>}, {pipeline_mode = #tpu.pipeline_mode<synchronous>, transform_indices = @transform_2, window_bounds = array<i64: 1, 512>}, {pipeline_mode = #tpu.pipeline_mode<synchronous>, transform_indices = @transform_3, window_bounds = array<i64: 512, 256>}, {pipeline_mode = #tpu.pipeline_mode<synchronous>, transform_indices = @transform_4, window_bounds = array<i64: 1, 256>}, {pipeline_mode = #tpu.pipeline_mode<synchronous>, transform_indices = @transform_5, window_bounds = array<i64: 1, 256>}, {pipeline_mode = #tpu.pipeline_mode<synchronous>, transform_indices = @transform_6, window_bounds = array<i64: 1, 1>}, {pipeline_mode = #tpu.pipeline_mode<synchronous>, transform_indices = @transform_7, window_bounds = array<i64: 512, 3>}, {pipeline_mode = #tpu.pipeline_mode<synchronous>, transform_indices = @transform_8, window_bounds = array<i64: 1, 3>}, {pipeline_mode = #tpu.pipeline_mode<synchronous>, transform_indices = @transform_9, window_bounds = array<i64: 1, 3>}, {pipeline_mode = #tpu.pipeline_mode<synchronous>, transform_indices = @transform_10, window_bounds = array<i64: 1, 768>}]} {
    %c0_i32 = arith.constant 0 : i32
    %0 = arith.cmpi eq, %arg0, %c0_i32 : i32
    %1 = arith.extui %0 : i1 to i32
    %c0_i32_0 = arith.constant 0 : i32
    %2 = arith.cmpi ne, %1, %c0_i32_0 : i32
    scf.if %2 {
      %cst_42 = arith.constant -1.000000e+30 : f32
      %79 = vector.broadcast %cst_42 : f32 to vector<1x1xf32>
      %c0_43 = arith.constant 0 : index
      %c0_44 = arith.constant 0 : index
      %80 = vector.load %arg12[%c0_43, %c0_44] : memref<1x1xf32, #tpu.memory_space<vmem>>, vector<1x1xf32>
      tpu.vector_store %arg12[%c0_43, %c0_44], %79 {strides = array<i32>} : memref<1x1xf32, #tpu.memory_space<vmem>>, vector<1x1xf32>,
      %cst_45 = arith.constant 0.000000e+00 : f32
      %81 = vector.broadcast %cst_45 : f32 to vector<1x1xf32>
      %c0_46 = arith.constant 0 : index
      %c0_47 = arith.constant 0 : index
      %82 = vector.load %arg13[%c0_46, %c0_47] : memref<1x1xf32, #tpu.memory_space<vmem>>, vector<1x1xf32>
      tpu.vector_store %arg13[%c0_46, %c0_47], %81 {strides = array<i32>} : memref<1x1xf32, #tpu.memory_space<vmem>>, vector<1x1xf32>,
      %cst_48 = arith.constant 0.000000e+00 : f32
      %83 = vector.broadcast %cst_48 : f32 to vector<1x512xf32>
      %c0_49 = arith.constant 0 : index
      %c0_50 = arith.constant 0 : index
      %84 = vector.load %arg14[%c0_49, %c0_50] : memref<1x512xf32, #tpu.memory_space<vmem>>, vector<1x512xf32>
      tpu.vector_store %arg14[%c0_49, %c0_50], %83 {strides = array<i32>} : memref<1x512xf32, #tpu.memory_space<vmem>>, vector<1x512xf32>,
      %cst_51 = arith.constant 0.000000e+00 : f32
      %85 = vector.broadcast %cst_51 : f32 to vector<1x768xf32>
      %c0_52 = arith.constant 0 : index
      %c0_53 = arith.constant 0 : index
      %86 = vector.load %arg11[%c0_52, %c0_53] : memref<1x768xf32, #tpu.memory_space<vmem>>, vector<1x768xf32>
      tpu.vector_store %arg11[%c0_52, %c0_53], %85 {strides = array<i32>} : memref<1x768xf32, #tpu.memory_space<vmem>>, vector<1x768xf32>,
    } else {
    }
    %c0 = arith.constant 0 : index
    %c0_1 = arith.constant 0 : index
    %3 = vector.load %arg1[%c0, %c0_1] : memref<256x256xbf16, #tpu.memory_space<vmem>>, vector<256x256xbf16>
    %c0_2 = arith.constant 0 : index
    %c0_3 = arith.constant 0 : index
    %4 = vector.load %arg2[%c0_2, %c0_3] : memref<256x512xbf16, #tpu.memory_space<vmem>>, vector<256x512xbf16>
    %cst = arith.constant dense<0.000000e+00> : vector<256x512xf32>
    %5 = tpu.matmul %3, %4, %cst {dimension_numbers = #tpu.dot_dimension_numbers<[1], [0], [0], [1], [0, 0, 1, 1], [], []>} : vector<256x256xbf16>, vector<256x512xbf16>, vector<256x512xf32> -> vector<256x512xf32>
    %c0_4 = arith.constant 0 : index
    %c0_5 = arith.constant 0 : index
    %6 = vector.load %arg3[%c0_4, %c0_5] : memref<1x512xf32, #tpu.memory_space<vmem>>, vector<1x512xf32>
    %7 = vector.broadcast %6 : vector<1x512xf32> to vector<256x512xf32>
    %8 = arith.addf %5, %7 : vector<256x512xf32>
    %cst_6 = arith.constant 0.000000e+00 : f32
    %9 = vector.broadcast %cst_6 : f32 to vector<256x512xf32>
    %10 = arith.maximumf %8, %9 : vector<256x512xf32>
    %11 = arith.truncf %10 : vector<256x512xf32> to vector<256x512xbf16>
    %c0_7 = arith.constant 0 : index
    %c0_8 = arith.constant 0 : index
    %12 = vector.load %arg4[%c0_7, %c0_8] : memref<512x256xbf16, #tpu.memory_space<vmem>>, vector<512x256xbf16>
    %cst_9 = arith.constant dense<0.000000e+00> : vector<256x256xf32>
    %13 = tpu.matmul %11, %12, %cst_9 {dimension_numbers = #tpu.dot_dimension_numbers<[1], [0], [0], [1], [0, 0, 1, 1], [], []>} : vector<256x512xbf16>, vector<512x256xbf16>, vector<256x256xf32> -> vector<256x256xf32>
    %c0_10 = arith.constant 0 : index
    %c0_11 = arith.constant 0 : index
    %14 = vector.load %arg5[%c0_10, %c0_11] : memref<1x256xf32, #tpu.memory_space<vmem>>, vector<1x256xf32>
    %15 = vector.broadcast %14 : vector<1x256xf32> to vector<256x256xf32>
    %16 = arith.addf %13, %15 : vector<256x256xf32>
    %17 = math.tanh %16 : vector<256x256xf32>
    %c0_12 = arith.constant 0 : index
    %c0_13 = arith.constant 0 : index
    %18 = vector.load %arg6[%c0_12, %c0_13] : memref<1x256xf32, #tpu.memory_space<vmem>>, vector<1x256xf32>
    %19 = vector.broadcast %18 : vector<1x256xf32> to vector<256x256xf32>
    %20 = arith.mulf %17, %19 : vector<256x256xf32>
    %cst_14 = arith.constant dense<0.000000e+00> : vector<256xf32>
    %21 = vector.multi_reduction <add>, %20, %cst_14 [1] : vector<256x256xf32> to vector<256xf32>
    %22 = vector.shape_cast %21 : vector<256xf32> to vector<256x1xf32>
    %c0_15 = arith.constant 0 : index
    %c0_16 = arith.constant 0 : index
    %23 = vector.load %arg7[%c0_15, %c0_16] : memref<1x1xf32, #tpu.memory_space<vmem>>, vector<1x1xf32>
    %24 = vector.broadcast %23 : vector<1x1xf32> to vector<256x1xf32>
    %25 = arith.addf %22, %24 : vector<256x1xf32>
    %c256_i32 = arith.constant 256 : i32
    %26 = arith.muli %arg0, %c256_i32 : i32
    %27 = tpu.iota {dimensions = array<i32: 0>} : vector<256x1xi32>
    %28 = vector.broadcast %26 : i32 to vector<256x1xi32>
    %29 = arith.addi %28, %27 : vector<256x1xi32>
    %c600_i32 = arith.constant 600 : i32
    %30 = vector.broadcast %c600_i32 : i32 to vector<256x1xi32>
    %31 = arith.cmpi slt, %29, %30 : vector<256x1xi32>
    %cst_17 = arith.constant -1.000000e+30 : f32
    %32 = vector.broadcast %cst_17 : f32 to vector<256x1xf32>
    %33 = arith.select %31, %25, %32 : vector<256x1xi1>, vector<256x1xf32>
    %c0_18 = arith.constant 0 : index
    %c0_19 = arith.constant 0 : index
    %34 = vector.load %arg12[%c0_18, %c0_19] : memref<1x1xf32, #tpu.memory_space<vmem>>, vector<1x1xf32>
    %c0_20 = arith.constant 0 : index
    %c0_21 = arith.constant 0 : index
    %35 = vector.load %arg13[%c0_20, %c0_21] : memref<1x1xf32, #tpu.memory_space<vmem>>, vector<1x1xf32>
    %cst_22 = arith.constant dense<0xFF800000> : vector<1xf32>
    %36 = vector.multi_reduction <maximumf>, %33, %cst_22 [0] : vector<256x1xf32> to vector<1xf32>
    %37 = vector.shape_cast %36 : vector<1xf32> to vector<1x1xf32>
    %38 = arith.maximumf %34, %37 : vector<1x1xf32>
    %39 = arith.subf %34, %38 : vector<1x1xf32>
    %40 = math.exp %39 : vector<1x1xf32>
    %41 = vector.broadcast %38 : vector<1x1xf32> to vector<256x1xf32>
    %42 = arith.subf %33, %41 : vector<256x1xf32>
    %43 = math.exp %42 : vector<256x1xf32>
    %44 = arith.mulf %40, %35 : vector<1x1xf32>
    %cst_23 = arith.constant dense<0.000000e+00> : vector<1xf32>
    %45 = vector.multi_reduction <add>, %43, %cst_23 [0] : vector<256x1xf32> to vector<1xf32>
    %46 = vector.shape_cast %45 : vector<1xf32> to vector<1x1xf32>
    %47 = arith.addf %44, %46 : vector<1x1xf32>
    %c0_24 = arith.constant 0 : index
    %c0_25 = arith.constant 0 : index
    %48 = vector.load %arg13[%c0_24, %c0_25] : memref<1x1xf32, #tpu.memory_space<vmem>>, vector<1x1xf32>
    tpu.vector_store %arg13[%c0_24, %c0_25], %47 {strides = array<i32>} : memref<1x1xf32, #tpu.memory_space<vmem>>, vector<1x1xf32>,
    %c0_26 = arith.constant 0 : index
    %c0_27 = arith.constant 0 : index
    %49 = vector.load %arg14[%c0_26, %c0_27] : memref<1x512xf32, #tpu.memory_space<vmem>>, vector<1x512xf32>
    %50 = vector.broadcast %40 : vector<1x1xf32> to vector<1x512xf32>
    %51 = arith.mulf %50, %49 : vector<1x512xf32>
    %52 = vector.broadcast %43 : vector<256x1xf32> to vector<256x512xf32>
    %53 = arith.mulf %52, %10 : vector<256x512xf32>
    %cst_28 = arith.constant dense<0.000000e+00> : vector<512xf32>
    %54 = vector.multi_reduction <add>, %53, %cst_28 [0] : vector<256x512xf32> to vector<512xf32>
    %55 = vector.shape_cast %54 : vector<512xf32> to vector<1x512xf32>
    %56 = arith.addf %51, %55 : vector<1x512xf32>
    %c0_29 = arith.constant 0 : index
    %c0_30 = arith.constant 0 : index
    %57 = vector.load %arg14[%c0_29, %c0_30] : memref<1x512xf32, #tpu.memory_space<vmem>>, vector<1x512xf32>
    tpu.vector_store %arg14[%c0_29, %c0_30], %56 {strides = array<i32>} : memref<1x512xf32, #tpu.memory_space<vmem>>, vector<1x512xf32>,
    %c0_31 = arith.constant 0 : index
    %c0_32 = arith.constant 0 : index
    %58 = vector.load %arg12[%c0_31, %c0_32] : memref<1x1xf32, #tpu.memory_space<vmem>>, vector<1x1xf32>
    tpu.vector_store %arg12[%c0_31, %c0_32], %38 {strides = array<i32>} : memref<1x1xf32, #tpu.memory_space<vmem>>, vector<1x1xf32>,
    %59 = tpu.iota {dimensions = array<i32: 0>} : vector<256x256xi32>
    %60 = tpu.iota {dimensions = array<i32: 1>} : vector<256x256xi32>
    %61 = arith.cmpi eq, %59, %60 : vector<256x256xi32>
    %cst_33 = arith.constant 0.000000e+00 : f32
    %62 = vector.shape_cast %43 : vector<256x1xf32> to vector<256x1xf32>
    %63 = vector.broadcast %62 : vector<256x1xf32> to vector<256x256xf32>
    %64 = vector.broadcast %cst_33 : f32 to vector<256x256xf32>
    %65 = arith.select %61, %63, %64 : vector<256x256xi1>, vector<256x256xf32>
    %cst_34 = arith.constant dense<0.000000e+00> : vector<256xf32>
    %66 = vector.multi_reduction <add>, %65, %cst_34 [0] : vector<256x256xf32> to vector<256xf32>
    %67 = vector.shape_cast %66 : vector<256xf32> to vector<1x256xf32>
    %c0_35 = arith.constant 0 : index
    %c0_36 = arith.constant 0 : index
    %68 = vector.load %arg11[%c0_35, %c0_36] : memref<1x768xf32, #tpu.memory_space<vmem>>, vector<1x768xf32>
    %69 = vector.broadcast %40 : vector<1x1xf32> to vector<1x768xf32>
    %70 = arith.mulf %68, %69 : vector<1x768xf32>
    %c0_37 = arith.constant 0 : index
    %c0_38 = arith.constant 0 : index
    %71 = vector.load %arg11[%c0_37, %c0_38] : memref<1x768xf32, #tpu.memory_space<vmem>>, vector<1x768xf32>
    tpu.vector_store %arg11[%c0_37, %c0_38], %70 {strides = array<i32>} : memref<1x768xf32, #tpu.memory_space<vmem>>, vector<1x768xf32>,
    %c256_i32_39 = arith.constant 256 : i32
    %72 = arith.muli %arg0, %c256_i32_39 : i32
    %73 = tpu.assume_multiple %72, 128 : i32
    %c0_40 = arith.constant 0 : index
    %74 = arith.index_cast %73 : i32 to index
    %75 = vector.load %arg11[%c0_40, %74] : memref<1x768xf32, #tpu.memory_space<vmem>>, vector<1x256xf32>
    tpu.vector_store %arg11[%c0_40, %74], %67 {strides = array<i32>} : memref<1x768xf32, #tpu.memory_space<vmem>>, vector<1x256xf32>,
    %c2_i32 = arith.constant 2 : i32
    %76 = arith.cmpi eq, %arg0, %c2_i32 : i32
    %77 = arith.extui %76 : i1 to i32
    %c0_i32_41 = arith.constant 0 : i32
    %78 = arith.cmpi ne, %77, %c0_i32_41 : i32
    scf.if %78 {
      %c0_42 = arith.constant 0 : index
      %c0_43 = arith.constant 0 : index
      %79 = vector.load %arg13[%c0_42, %c0_43] : memref<1x1xf32, #tpu.memory_space<vmem>>, vector<1x1xf32>
      %cst_44 = arith.constant 1.000000e+00 : f32
      %80 = vector.broadcast %cst_44 : f32 to vector<1x1xf32>
      %81 = arith.divf %80, %79 : vector<1x1xf32>
      %c0_45 = arith.constant 0 : index
      %c0_46 = arith.constant 0 : index
      %82 = vector.load %arg11[%c0_45, %c0_46] : memref<1x768xf32, #tpu.memory_space<vmem>>, vector<1x768xf32>
      %83 = vector.broadcast %81 : vector<1x1xf32> to vector<1x768xf32>
      %84 = arith.mulf %82, %83 : vector<1x768xf32>
      %c0_47 = arith.constant 0 : index
      %c0_48 = arith.constant 0 : index
      %85 = vector.load %arg11[%c0_47, %c0_48] : memref<1x768xf32, #tpu.memory_space<vmem>>, vector<1x768xf32>
      tpu.vector_store %arg11[%c0_47, %c0_48], %84 {strides = array<i32>} : memref<1x768xf32, #tpu.memory_space<vmem>>, vector<1x768xf32>,
      %c0_49 = arith.constant 0 : index
      %c0_50 = arith.constant 0 : index
      %86 = vector.load %arg14[%c0_49, %c0_50] : memref<1x512xf32, #tpu.memory_space<vmem>>, vector<1x512xf32>
      %87 = vector.broadcast %81 : vector<1x1xf32> to vector<1x512xf32>
      %88 = arith.mulf %86, %87 : vector<1x512xf32>
      %c0_51 = arith.constant 0 : index
      %c0_52 = arith.constant 0 : index
      %89 = vector.load %arg8[%c0_51, %c0_52] : memref<512x3xf32, #tpu.memory_space<vmem>>, vector<512x3xf32>
      %cst_53 = arith.constant dense<0.000000e+00> : vector<1x3xf32>
      %90 = tpu.matmul %88, %89, %cst_53 {dimension_numbers = #tpu.dot_dimension_numbers<[1], [0], [0], [1], [0, 0, 1, 1], [], []>} : vector<1x512xf32>, vector<512x3xf32>, vector<1x3xf32> -> vector<1x3xf32>
      %c0_54 = arith.constant 0 : index
      %c0_55 = arith.constant 0 : index
      %91 = vector.load %arg9[%c0_54, %c0_55] : memref<1x3xf32, #tpu.memory_space<vmem>>, vector<1x3xf32>
      %92 = arith.addf %90, %91 : vector<1x3xf32>
      %c0_56 = arith.constant 0 : index
      %c0_57 = arith.constant 0 : index
      %93 = vector.load %arg10[%c0_56, %c0_57] : memref<1x3xf32, #tpu.memory_space<vmem>>, vector<1x3xf32>
      tpu.vector_store %arg10[%c0_56, %c0_57], %92 {strides = array<i32>} : memref<1x3xf32, #tpu.memory_space<vmem>>, vector<1x3xf32>,
    } else {
    }
    return
  }
  func.func @transform_0(%arg0: i32) -> (i32, i32) {
    %c0_i32 = arith.constant 0 : i32
    %c0_i32_0 = arith.constant 0 : i32
    return %arg0, %c0_i32 : i32, i32
  }
  func.func @transform_1(%arg0: i32) -> (i32, i32) {
    %c0_i32 = arith.constant 0 : i32
    %c0_i32_0 = arith.constant 0 : i32
    %c0_i32_1 = arith.constant 0 : i32
    return %c0_i32, %c0_i32_0 : i32, i32
  }
  func.func @transform_2(%arg0: i32) -> (i32, i32) {
    %c0_i32 = arith.constant 0 : i32
    %c0_i32_0 = arith.constant 0 : i32
    %c0_i32_1 = arith.constant 0 : i32
    return %c0_i32, %c0_i32_0 : i32, i32
  }
  func.func @transform_3(%arg0: i32) -> (i32, i32) {
    %c0_i32 = arith.constant 0 : i32
    %c0_i32_0 = arith.constant 0 : i32
    %c0_i32_1 = arith.constant 0 : i32
    return %c0_i32, %c0_i32_0 : i32, i32
  }
  func.func @transform_4(%arg0: i32) -> (i32, i32) {
    %c0_i32 = arith.constant 0 : i32
    %c0_i32_0 = arith.constant 0 : i32
    %c0_i32_1 = arith.constant 0 : i32
    return %c0_i32, %c0_i32_0 : i32, i32
  }
  func.func @transform_5(%arg0: i32) -> (i32, i32) {
    %c0_i32 = arith.constant 0 : i32
    %c0_i32_0 = arith.constant 0 : i32
    %c0_i32_1 = arith.constant 0 : i32
    return %c0_i32, %c0_i32_0 : i32, i32
  }
  func.func @transform_6(%arg0: i32) -> (i32, i32) {
    %c0_i32 = arith.constant 0 : i32
    %c0_i32_0 = arith.constant 0 : i32
    %c0_i32_1 = arith.constant 0 : i32
    return %c0_i32, %c0_i32_0 : i32, i32
  }
  func.func @transform_7(%arg0: i32) -> (i32, i32) {
    %c0_i32 = arith.constant 0 : i32
    %c0_i32_0 = arith.constant 0 : i32
    %c0_i32_1 = arith.constant 0 : i32
    return %c0_i32, %c0_i32_0 : i32, i32
  }
  func.func @transform_8(%arg0: i32) -> (i32, i32) {
    %c0_i32 = arith.constant 0 : i32
    %c0_i32_0 = arith.constant 0 : i32
    %c0_i32_1 = arith.constant 0 : i32
    return %c0_i32, %c0_i32_0 : i32, i32
  }
  func.func @transform_9(%arg0: i32) -> (i32, i32) {
    %c0_i32 = arith.constant 0 : i32
    %c0_i32_0 = arith.constant 0 : i32
    %c0_i32_1 = arith.constant 0 : i32
    return %c0_i32, %c0_i32_0 : i32, i32
  }
  func.func @transform_10(%arg0: i32) -> (i32, i32) {
    %c0_i32 = arith.constant 0 : i32
    %c0_i32_0 = arith.constant 0 : i32
    %c0_i32_1 = arith.constant 0 : i32
    return %c0_i32, %c0_i32_0 : i32, i32
  }
}

</mosaic_0001>

<bundles_post_ra>
// kernel: tpu_custom_call.1
= control target key start
LH: loop header
LB: loop body
LE: loop exit
PB: predicated region body
PF: predicated region fallthrough
CT: control target
= control target key end

     0   :  { %s9144_s0 = inlined_call_operand.hbm [shape: bf16[768,256], index: 0, kind: input, shape index: {}]   ;;  %s9145_s1 = inlined_call_operand.vmem [shape: bf16[256,512], index: 1, kind: input, shape index: {}]   ;;  %s9146_s2 = inlined_call_operand.vmem [shape: f32[1,512], index: 2, kind: input, shape index: {}]   ;;  %s9147_s3 = inlined_call_operand.hbm [shape: bf16[512,256], index: 3, kind: input, shape index: {}]   ;;  %s9148_s4 = inlined_call_operand.vmem [shape: f32[1,256], index: 4, kind: input, shape index: {}]   ;;  %s9149_s5 = inlined_call_operand.vmem [shape: f32[1,256], index: 5, kind: input, shape index: {}]   ;;  %s9150_s6 = inlined_call_operand.<no memory space> [shape: f32[1,1], index: 6, kind: input, shape index: {}]   ;;  %s9151_s7 = inlined_call_operand.vmem [shape: f32[512,3], index: 7, kind: input, shape index: {}]   ;;  %s9152_s8 = inlined_call_operand.vmem [shape: f32[1,3], index: 8, kind: input, shape index: {}]   ;;  %s9153_s9 = inlined_call_operand.hbm [shape: f32[1,3], index: 9, kind: output, shape index: {0}]   ;;  %s9154_s10 = inlined_call_operand.hbm [shape: f32[1,768], index: 10, kind: output, shape index: {1}]  }
   0x1   :  { %9478 = sst [smem:[#allocation180_spill]] %s9147_s3  ;;  %v16_v0 = vstv %s9150_s6 }
   0x2   :  { %9479 = sst [smem:[#allocation181_spill]] %s9154_s10  ;;  %17 = vst [vmem:[#allocation5] sm:$0x1] %v16_v0 }
   0x3   :  { %18 = vsyncpa [#allocation7], 0 }
   0x4   :  { %20 = vsyncpa [#allocation7 + $0x1], 0 }
   0x5   :  { %21 = vsyncpa [#allocation10], 0 }
   0x6   :  { %22 = vsyncpa [#allocation8], 0 }
   0x7   :  { %23 = vsyncpa [#allocation13], 0  ;;  %s5931_s15 = smov 0   ;;  %s5933_s16 = smov 0  }
   0x8   :  { %s5935_s17 = smov 0   ;;  %s5937_s18 = smov 0  }
   0x9 LB: > { %s5950_s6 = sadd.s32 4294967295, %s5862_s18   ;;  %p49_p0 = scmp.ne.s32.totalorder %s5854_s16, %s5850_s15  ;;  %s5862_s18 = sphi %s5937_s18, %s10092_s18   ;;  %s5858_s17 = sphi %s5935_s17, %s10091_s17   ;;  %s5854_s16 = sphi %s5933_s16, %s10090_s16   ;;  %s5850_s15 = sphi %s5931_s15, %s10089_s15  }
   0xa   : > { %p50_p1 = scmp.eq.s32.totalorder %s5950_s6, 0  ;;  %p4608_p2 = scmp.ge.s32.totalorder %s5862_s18, 1 }
   0xb   : > { %p270_p3 = scmp.lt.s32.totalorder %s5862_s18, 4  ;;  %p4609_p4 = scmp.ne.s32.totalorder %s5950_s6, 0 }
   0xc   : > { %p5959_p5 = por %p50_p1, %p49_p0  ;;  %s9481_s3 = sld [smem:[#allocation180_spill]] }
   0xd   : > { %p5966_p6 = pnand %p4608_p2, %p270_p3  ;;  %s5864_s24 = smov [#allocation9]  }
   0xe   : > { %s289_s25 = sshll.u32 %s5864_s24, 4  ;;  %s5975_s26 = sadd.s32 1, %s5862_s18   ;;  %s290_s25 = int_to_ptr.vmem [resolvable:$true] %s289_s25 }
   0xf   : > { %p5443_p7 = pneg %p5966_p6  ;;  %s5865_s27 = smov 128  }
  0x10   : > { %s5866_s28 = smov 8   ;;  %s33_s29 = ssub.s32 %s5862_s18, %s5975_s26 }
  0x11   : > { %p5444_p8 = pnand %p5443_p7, %p50_p1  ;;  %s36_s30 = sadd.s32 1, %s5858_s17 }
  0x12   : > { %s287_s22 = sshll.u32 %s9481_s3, 4  ;;  %p34_p9 = scmp.eq.s32.totalorder %s33_s29, 0  ;;  %s288_s22 = int_to_ptr.hbm [resolvable:$true] %s287_s22 }
  0x13   : > { %5446 = dma.hbm_to_vmem [thread:$0]  (!%p5444_p8), %s288_s22, 8192, %s290_s25, [#allocation10], %s5865_s27, %s5865_s27, %s5866_s28  }
  0x14   : > { %p43_p10 = scmp.ne.s32.totalorder %s5858_s17, %s5854_s16  ;;  %p44_p11 = scmp.eq.s32.totalorder %s5862_s18, 0 }
  0x15   : > { %p5452_p12 = scmp.lt.s32.totalorder %s5862_s18, 3  ;;  %s318_s12 = sand.u32 1, %s5858_s17  }
  0x16   : > { %s5988_s11 = scalar_select %p34_p9, %s5858_s17, %s36_s30  }
  0x17   : > { %p45_p13 = por %p44_p11, %p43_p10  ;;  %s4611_s13 = sshll.u32 %s318_s12, 8 }
  0x18   : > { %s5268_s14 = sshll.u32 %s5862_s18, 8  ;;  %s322_s24 = scalar_lea.vmem [#allocation6], %s4611_s13 }
  0x19   : > { %s328_s21 = scalar_lea.hbm %s9144_s0, %s5268_s14  ;;  %s331_s3 = sshll.u32 %s322_s24, 4  ;;  %s332_s3 = int_to_ptr.vmem [resolvable:$true] %s331_s3 }
  0x1a   : > { %s329_s10 = sshll.u32 %s328_s21, 4  ;;  %p5995_p0 = pnand %p5452_p12, %p45_p13  ;;  %s330_s10 = int_to_ptr.hbm [resolvable:$true] %s329_s10 }
  0x1b   : > { %s319_s25 = scalar_lea.sflag [#allocation7], %s318_s12  ;;  %s5730_s29 = sshra.s32 %s330_s10, 4  ;;  %s5731_s29 = int_to_ptr.hbm [resolvable:$true] %s5730_s29 }
  0x1c   : > { %s5732_s30 = scalar_lea.hbm %s5731_s29, 256  ;;  %p5734_p3 = pneg %p5995_p0 }
  0x1d   : > { %p5733_p2 = scmp.ne.s32.totalorder %s5731_s29, %s5732_s30  ;;  %s5737_s14 = scalar_lea.hbm %s9144_s0, 768 }
  0x1e   : > { %p5738_p9 = scmp.lt.s32.totalorder %s5731_s29, %s9144_s0  ;;  %p5739_p10 = scmp.lt.s32.totalorder %s5737_s14, %s5732_s30 }
  0x1f   : > { %p5735_p7 = pnand %p5734_p3, %p5733_p2 }
  0x20   : > { %p5740_p11 = por %p5739_p10, %p5738_p9 }
  0x21   : > { %p5736_p8 = pneg %p5735_p7 }
  0x23   : > { %p5741_p12 = pnand %p5740_p11, %p5736_p8 }
  0x25   : > { %5744 = shalt.err (!%p5741_p12)
}
  0x26   : > { %5450 = dma.hbm_to_vmem [thread:$0]  (!%p5995_p0), %s330_s10, 4096, %s332_s3, %s319_s25, %s5865_s27, %s5865_s27, %s5866_s28  }
  0x27   : > { %343 = sbr.rel (%p5966_p6) target bundleno = 1950 (0x79e), region = 56 }
  0x2c   : > { %s345_s12 = sand.u32 1, %s5854_s16  }
  0x2d   : > { %s4616_s21 = sshll.u32 %s345_s12, 8  ;;  %s346_s24 = scalar_lea.sflag [#allocation7], %s345_s12 }
  0x2e   : > { %s6015_s18 = scalar_lea.vmem [#allocation6], %s4616_s21 }
  0x2f   : > { %5833 = dma.done.wait (%p5959_p5), %s346_s24, 4096  }
  0x30   : > { %5835 = vsyncadd (%p5959_p5), %s346_s24, 4294963200 }
  0x31   : > { %5837 = dma.done.wait (%p50_p1), [#allocation10], 8192  }
  0x32   : > { %5839 = vsyncadd (%p50_p1), [#allocation10], 4294959104  ;;  %391 = sbr.rel (%p4609_p4) target bundleno = 60 (0x3c), region = 68 }
  0x37   : > { %vm392_vm0 = vcmask 0   ;;  %v395_v1 = vlaneseq  ;;  %v5867_v2 = vmov -1e+30   ;;  %v5868_v3 = vmov 0.0  }
  0x38   : > { %393 = vst.msk [vmem:[#allocation2] sm:$0x1] %vm392_vm0, %v5867_v2 }
  0x39   : > { %394 = vst.msk [vmem:[#allocation3] sm:$0x1] %vm392_vm0, %v5868_v3  ;;  %vm397_vm1 = vcmp.lt.s32.totalorder %v395_v1, 512  ;;  %vm400_vm2 = vcmp.lt.s32.totalorder %v395_v1, 768 }
  0x3a   : > { %399 = vst.msk [vmem:[#allocation4] sm:$0xf] %vm397_vm1, %v5868_v3 }
  0x3b   : > { %402 = vst.msk [vmem:[#allocation12] sm:$0x3f] %vm400_vm2, %v5868_v3 }
  0x3c PF: > { %v4861_v4 = vld [vmem:[%s9145_s1 + $0xe0] sm:$0xf]  ;;  %v5331_v5 = vld [vmem:[%s9145_s1 + $0xec] sm:$0xf0]  ;;  %v5329_v9 = vld [vmem:[%s9145_s1 + $0xe4] sm:$0xf] }
  0x3d   : > { %v4989_v6 = vld [vmem:[%s9145_s1 + $0x1e0] sm:$0xf]  ;;  %v4862_v7 = vor.u32 %v5331_v5, %v4861_v4  ;;  %v5363_v8 = vld [vmem:[%s9145_s1 + $0x1ec] sm:$0xf0]  ;;  %v4863_v10 = vld [vmem:[%s9145_s1 + $0xf0] sm:$0xf0] }
  0x3e   : > { %v4990_v11 = vor.u32 %v5363_v8, %v4989_v6  ;;  %v4866_v12 = vor.u32 %v5329_v9, %v4863_v10  ;;  %v5361_v13 = vld [vmem:[%s9145_s1 + $0x1e4] sm:$0xf]  ;;  %v4991_v14 = vld [vmem:[%s9145_s1 + $0x1f0] sm:$0xf0]  ;;  %v4845_v15 = vld [vmem:[%s9145_s1 + $0xc0] sm:$0xf] }
  0x3f   : > { %989 = vmatpush.bf16.msra.mxu0 %v4862_v7  ;;  %v4994_v16 = vor.u32 %v5361_v13, %v4991_v14  ;;  %v5327_v17 = vld [vmem:[%s9145_s1 + $0xcc] sm:$0xf0]  ;;  %v4973_v18 = vld [vmem:[%s9145_s1 + $0x1c0] sm:$0xf]  ;;  %v5325_v22 = vld [vmem:[%s9145_s1 + $0xc4] sm:$0xf] }
  0x40   : > { %v5359_v19 = vld [vmem:[%s9145_s1 + $0x1cc] sm:$0xf0]  ;;  %1078 = vmatpush.bf16.msra.mxu1 %v4990_v11  ;;  %1167 = vmatpush.bf16.msra.mxu2 %v4866_v12  ;;  %v4846_v20 = vor.u32 %v5327_v17, %v4845_v15  ;;  %v4847_v23 = vld [vmem:[%s9145_s1 + $0xd0] sm:$0xf0]  ;;  %v5357_v24 = vld [vmem:[%s9145_s1 + $0x1c4] sm:$0xf] }
  0x41   : > { %v4974_v21 = vor.u32 %v5359_v19, %v4973_v18  ;;  %1256 = vmatpush.bf16.msra.mxu3 %v4994_v16  ;;  %v4850_v25 = vor.u32 %v5325_v22, %v4847_v23  ;;  %v4975_v26 = vld [vmem:[%s9145_s1 + $0x1d0] sm:$0xf0]  ;;  %v4829_v27 = vld [vmem:[%s9145_s1 + $0xa0] sm:$0xf]  ;;  %v5323_v28 = vld [vmem:[%s9145_s1 + $0xac] sm:$0xf0] }
  0x42   : > { %v4978_v29 = vor.u32 %v5357_v24, %v4975_v26  ;;  %v4957_v30 = vld [vmem:[%s9145_s1 + $0x1a0] sm:$0xf]  ;;  %v5355_v31 = vld [vmem:[%s9145_s1 + $0x1ac] sm:$0xf0]  ;;  %v5321_v32 = vld [vmem:[%s9145_s1 + $0xa4] sm:$0xf]  ;;  %v4830_v33 = vor.u32 %v5323_v28, %v4829_v27 }
  0x43   : > { %990 = vmatpush.bf16.msra.mxu0 %v4846_v20  ;;  %v4831_v34 = vld [vmem:[%s9145_s1 + $0xb0] sm:$0xf0]  ;;  %v5353_v35 = vld [vmem:[%s9145_s1 + $0x1a4] sm:$0xf]  ;;  %v4958_v37 = vor.u32 %v5355_v31, %v4957_v30  ;;  %v4813_v39 = vld [vmem:[%s9145_s1 + $0x80] sm:$0xf] }
  0x44   : > { %v4959_v36 = vld [vmem:[%s9145_s1 + $0x1b0] sm:$0xf0]  ;;  %1079 = vmatpush.bf16.msra.mxu1 %v4974_v21  ;;  %1168 = vmatpush.bf16.msra.mxu2 %v4850_v25  ;;  %v4834_v38 = vor.u32 %v5321_v32, %v4831_v34  ;;  %v5319_v40 = vld [vmem:[%s9145_s1 + $0x8c] sm:$0xf0]  ;;  %v4941_v41 = vld [vmem:[%s9145_s1 + $0x180] sm:$0xf] }
  0x45   : > { %1257 = vmatpush.bf16.msra.mxu3 %v4978_v29  ;;  %v4962_v42 = vor.u32 %v5353_v35, %v4959_v36  ;;  %v5351_v43 = vld [vmem:[%s9145_s1 + $0x18c] sm:$0xf0]  ;;  %v5317_v44 = vld [vmem:[%s9145_s1 + $0x84] sm:$0xf]  ;;  %v4815_v45 = vld [vmem:[%s9145_s1 + $0x90] sm:$0xf0]  ;;  %v4814_v48 = vor.u32 %v5319_v40, %v4813_v39 }
  0x46   : > { %v5349_v46 = vld [vmem:[%s9145_s1 + $0x184] sm:$0xf]  ;;  %v4943_v47 = vld [vmem:[%s9145_s1 + $0x190] sm:$0xf0]  ;;  %v4942_v49 = vor.u32 %v5351_v43, %v4941_v41  ;;  %v4818_v50 = vor.u32 %v5317_v44, %v4815_v45  ;;  %v4797_v51 = vld [vmem:[%s9145_s1 + $0x60] sm:$0xf] }
  0x47   : > { %991 = vmatpush.bf16.msra.mxu0 %v4830_v33  ;;  %v5315_v52 = vld [vmem:[%s9145_s1 + $0x6c] sm:$0xf0]  ;;  %v4925_v53 = vld [vmem:[%s9145_s1 + $0x160] sm:$0xf]  ;;  %v4946_v54 = vor.u32 %v5349_v46, %v4943_v47  ;;  %v5313_v56 = vld [vmem:[%s9145_s1 + $0x64] sm:$0xf] }
  0x48   : > { %1080 = vmatpush.bf16.msra.mxu1 %v4958_v37  ;;  %1169 = vmatpush.bf16.msra.mxu2 %v4834_v38  ;;  %v5347_v55 = vld [vmem:[%s9145_s1 + $0x16c] sm:$0xf0]  ;;  %v4799_v57 = vld [vmem:[%s9145_s1 + $0x70] sm:$0xf0]  ;;  %v5345_v58 = vld [vmem:[%s9145_s1 + $0x164] sm:$0xf]  ;;  %v4798_v60 = vor.u32 %v5315_v52, %v4797_v51 }
  0x49   : > { %1258 = vmatpush.bf16.msra.mxu3 %v4962_v42  ;;  %v4927_v59 = vld [vmem:[%s9145_s1 + $0x170] sm:$0xf0]  ;;  %v4926_v61 = vor.u32 %v5347_v55, %v4925_v53  ;;  %v4802_v62 = vor.u32 %v5313_v56, %v4799_v57  ;;  %v4781_v63 = vld [vmem:[%s9145_s1 + $0x40] sm:$0xf]  ;;  %v5311_v0 = vld [vmem:[%s9145_s1 + $0x4c] sm:$0xf0] }
  0x4a   : > { %v4909_v1 = vld [vmem:[%s9145_s1 + $0x140] sm:$0xf]  ;;  %v4930_v2 = vor.u32 %v5345_v58, %v4927_v59  ;;  %v5343_v3 = vld [vmem:[%s9145_s1 + $0x14c] sm:$0xf0]  ;;  %v5309_v4 = vld [vmem:[%s9145_s1 + $0x44] sm:$0xf]  ;;  %v4782_v8 = vor.u32 %v5311_v0, %v4781_v63 }
  0x4b   : > { %992 = vmatpush.bf16.msra.mxu0 %v4814_v48  ;;  %v4783_v5 = vld [vmem:[%s9145_s1 + $0x50] sm:$0xf0]  ;;  %v5341_v6 = vld [vmem:[%s9145_s1 + $0x144] sm:$0xf]  ;;  %v4910_v9 = vor.u32 %v5343_v3, %v4909_v1  ;;  %v4765_v11 = vld [vmem:[%s9145_s1 + $0x20] sm:$0xf] }
  0x4c   : > { %1081 = vmatpush.bf16.msra.mxu1 %v4942_v49  ;;  %1170 = vmatpush.bf16.msra.mxu2 %v4818_v50  ;;  %v4911_v7 = vld [vmem:[%s9145_s1 + $0x150] sm:$0xf0]  ;;  %v4786_v10 = vor.u32 %v5309_v4, %v4783_v5  ;;  %v5307_v12 = vld [vmem:[%s9145_s1 + $0x2c] sm:$0xf0]  ;;  %v4893_v13 = vld [vmem:[%s9145_s1 + $0x120] sm:$0xf] }
  0x4d   : > { %1259 = vmatpush.bf16.msra.mxu3 %v4946_v54  ;;  %v4914_v14 = vor.u32 %v5341_v6, %v4911_v7  ;;  %v5339_v15 = vld [vmem:[%s9145_s1 + $0x12c] sm:$0xf0]  ;;  %v5305_v16 = vld [vmem:[%s9145_s1 + $0x24] sm:$0xf]  ;;  %v4767_v17 = vld [vmem:[%s9145_s1 + $0x30] sm:$0xf0]  ;;  %v4766_v20 = vor.u32 %v5307_v12, %v4765_v11 }
  0x4e   : > { %v5337_v18 = vld [vmem:[%s9145_s1 + $0x124] sm:$0xf]  ;;  %v4895_v19 = vld [vmem:[%s9145_s1 + $0x130] sm:$0xf0]  ;;  %v4749_v21 = vld [vmem:[%s9145_s1] sm:$0xf]  ;;  %v4894_v24 = vor.u32 %v5339_v15, %v4893_v13  ;;  %v4770_v25 = vor.u32 %v5305_v16, %v4767_v17 }
  0x4f   : > { %993 = vmatpush.bf16.msra.mxu0 %v4798_v60  ;;  %v5303_v22 = vld [vmem:[%s9145_s1 + $0xc] sm:$0xf0]  ;;  %v4877_v23 = vld [vmem:[%s9145_s1 + $0x100] sm:$0xf]  ;;  %v5301_v27 = vld [vmem:[%s9145_s1 + $0x4] sm:$0xf]  ;;  %v4898_v29 = vor.u32 %v5337_v18, %v4895_v19 }
  0x50   : > { %1082 = vmatpush.bf16.msra.mxu1 %v4926_v61  ;;  %1171 = vmatpush.bf16.msra.mxu2 %v4802_v62  ;;  %v5335_v26 = vld [vmem:[%s9145_s1 + $0x10c] sm:$0xf0]  ;;  %v4751_v28 = vld [vmem:[%s9145_s1 + $0x10] sm:$0xf0]  ;;  %v5333_v30 = vld [vmem:[%s9145_s1 + $0x104] sm:$0xf]  ;;  %v4750_v36 = vor.u32 %v5303_v22, %v4749_v21 }
  0x51   : > { %1260 = vmatpush.bf16.msra.mxu3 %v4930_v2  ;;  %v4879_v31 = vld [vmem:[%s9145_s1 + $0x110] sm:$0xf0]  ;;  %v4621_v32 = vld [vmem:[%s6015_s18] sm:$0xf]  ;;  %v5270_v33 = vld [vmem:[%s6015_s18 + $0x4] sm:$0xf0]  ;;  %v4878_v39 = vor.u32 %v5335_v26, %v4877_v23  ;;  %v4754_v40 = vor.u32 %v5301_v27, %v4751_v28 }
  0x52   : > { %v5330_v34 = vld [vmem:[%s9145_s1 + $0xec] sm:$0xf]  ;;  %v4871_v35 = vld [vmem:[%s9145_s1 + $0xf8] sm:$0xf0]  ;;  %v4623_v42 = vld [vmem:[%s6015_s18 + $0x8] sm:$0xf0]  ;;  %v4882_v43 = vor.u32 %v5333_v30, %v4879_v31  ;;  %v6241_v47 = vor.u32 %v5270_v33, %v4621_v32 }
  0x53   : > { %994 = vmatpush.bf16.msra.mxu0 %v4782_v8  ;;  %v5362_v37 = vld [vmem:[%s9145_s1 + $0x1ec] sm:$0xf]  ;;  %v4999_v38 = vld [vmem:[%s9145_s1 + $0x1f8] sm:$0xf0]  ;;  %v4874_v44 = vor.u32 %v5330_v34, %v4871_v35  ;;  %v4869_v45 = vld [vmem:[%s9145_s1 + $0xe8] sm:$0xf] }
  0x54   : > { %1083 = vmatpush.bf16.msra.mxu1 %v4910_v9  ;;  %1172 = vmatpush.bf16.msra.mxu2 %v4786_v10  ;;  %v5269_v41 = vld [vmem:[%s6015_s18 + $0x4] sm:$0xf]  ;;  %v5332_v46 = vld [vmem:[%s9145_s1 + $0xf4] sm:$0xf0]  ;;  %v5002_v48 = vor.u32 %v5362_v37, %v4999_v38  ;;  %v4855_v55 = vld [vmem:[%s9145_s1 + $0xd8] sm:$0xf0] }
  0x55   : > { %1261 = vmatpush.bf16.msra.mxu3 %v4914_v14  ;;  %v4997_v49 = vld [vmem:[%s9145_s1 + $0x1e8] sm:$0xf]  ;;  %v5364_v50 = vld [vmem:[%s9145_s1 + $0x1f4] sm:$0xf0]  ;;  %v6249_v51 = vor.u32 %v5269_v41, %v4623_v42  ;;  %v4870_v52 = vor.u32 %v5332_v46, %v4869_v45  ;;  %v5326_v54 = vld [vmem:[%s9145_s1 + $0xcc] sm:$0xf] }
  0x56   : > { %v4998_v53 = vor.u32 %v5364_v50, %v4997_v49  ;;  %v4853_v56 = vld [vmem:[%s9145_s1 + $0xc8] sm:$0xf]  ;;  %v4858_v57 = vor.u32 %v5326_v54, %v4855_v55  ;;  %v5328_v58 = vld [vmem:[%s9145_s1 + $0xd4] sm:$0xf0]  ;;  %v5358_v59 = vld [vmem:[%s9145_s1 + $0x1cc] sm:$0xf] }
  0x57   : > { %995 = vmatpush.bf16.msra.mxu0 %v4766_v20  ;;  %v4983_v60 = vld [vmem:[%s9145_s1 + $0x1d8] sm:$0xf0]  ;;  %v4854_v61 = vor.u32 %v5328_v58, %v4853_v56  ;;  %v4981_v63 = vld [vmem:[%s9145_s1 + $0x1c8] sm:$0xf]  ;;  %v5360_v0 = vld [vmem:[%s9145_s1 + $0x1d4] sm:$0xf0] }
  0x58   : > { %1084 = vmatpush.bf16.msra.mxu1 %v4894_v24  ;;  %1173 = vmatpush.bf16.msra.mxu2 %v4770_v25  ;;  %v4986_v62 = vor.u32 %v5358_v59, %v4983_v60  ;;  %v4982_v1 = vor.u32 %v5360_v0, %v4981_v63  ;;  %v4629_v2 = vld [vmem:[%s6015_s18 + $0x10] sm:$0xf]  ;;  %v5272_v3 = vld [vmem:[%s6015_s18 + $0x14] sm:$0xf0]  ;;  %v5271_v4 = vld [vmem:[%s6015_s18 + $0x14] sm:$0xf] }
  0x59   : > { %1262 = vmatpush.bf16.msra.mxu3 %v4898_v29  ;;  %v4631_v5 = vld [vmem:[%s6015_s18 + $0x18] sm:$0xf0]  ;;  %v6283_v6 = vor.u32 %v5272_v3, %v4629_v2  ;;  %v4637_v8 = vld [vmem:[%s6015_s18 + $0x20] sm:$0xf]  ;;  %v5274_v9 = vld [vmem:[%s6015_s18 + $0x24] sm:$0xf0] }
  0x5a   : > { %v6285_v7 = vor.u32 %v5271_v4, %v4631_v5  ;;  %v5273_v10 = vld [vmem:[%s6015_s18 + $0x24] sm:$0xf]  ;;  %v4639_v11 = vld [vmem:[%s6015_s18 + $0x28] sm:$0xf0]  ;;  %v6295_v12 = vor.u32 %v5274_v9, %v4637_v8  ;;  %v4839_v15 = vld [vmem:[%s9145_s1 + $0xb8] sm:$0xf0] }
  0x5b   : > { %996 = vmatpush.bf16.msra.mxu0 %v4750_v36  ;;  %v6297_v13 = vor.u32 %v5273_v10, %v4639_v11  ;;  %v5322_v14 = vld [vmem:[%s9145_s1 + $0xac] sm:$0xf]  ;;  %v4837_v16 = vld [vmem:[%s9145_s1 + $0xa8] sm:$0xf]  ;;  %v5324_v18 = vld [vmem:[%s9145_s1 + $0xb4] sm:$0xf0] }
  0x5c   : > { %1085 = vmatpush.bf16.msra.mxu1 %v4878_v39  ;;  %1174 = vmatpush.bf16.msra.mxu2 %v4754_v40  ;;  %v4842_v17 = vor.u32 %v5322_v14, %v4839_v15  ;;  %v5354_v19 = vld [vmem:[%s9145_s1 + $0x1ac] sm:$0xf]  ;;  %v4967_v20 = vld [vmem:[%s9145_s1 + $0x1b8] sm:$0xf0]  ;;  %v4838_v21 = vor.u32 %v5324_v18, %v4837_v16  ;;  %v4965_v23 = vld [vmem:[%s9145_s1 + $0x1a8] sm:$0xf] }
  0x5d   : > { %1263 = vmatpush.bf16.msra.mxu3 %v4882_v43  ;;  %v4970_v22 = vor.u32 %v5354_v19, %v4967_v20  ;;  %v5356_v24 = vld [vmem:[%s9145_s1 + $0x1b4] sm:$0xf0]  ;;  %v5276_v27 = vld [vmem:[%s6015_s18 + $0x34] sm:$0xf0]  ;;  %v4647_v29 = vld [vmem:[%s6015_s18 + $0x38] sm:$0xf0] }
  0x5e   : > { %997 = vmatmul.bf16.vlgmr.msra.gmra.mxu0 %v6241_v47  ;;  %v4966_v25 = vor.u32 %v5356_v24, %v4965_v23  ;;  %v4645_v26 = vld [vmem:[%s6015_s18 + $0x30] sm:$0xf]  ;;  %v5275_v28 = vld [vmem:[%s6015_s18 + $0x34] sm:$0xf]  ;;  %v4653_v32 = vld [vmem:[%s6015_s18 + $0x40] sm:$0xf] }
  0x5f   : > { %1086 = vmatmul.bf16.vlgmr.msra.gmra.mxu1 %v6249_v51  ;;  %1175 = vmatmul.bf16.vlgmr.msra.gmra.mxu2 %v6241_v47  ;;  %v6331_v30 = vor.u32 %v5276_v27, %v4645_v26  ;;  %v6333_v31 = vor.u32 %v5275_v28, %v4647_v29  ;;  %v5278_v33 = vld [vmem:[%s6015_s18 + $0x44] sm:$0xf0]  ;;  %v5277_v34 = vld [vmem:[%s6015_s18 + $0x44] sm:$0xf]  ;;  %v4655_v35 = vld [vmem:[%s6015_s18 + $0x48] sm:$0xf0] }
  0x60   : > { %1523 = vmatpush.bf16.msrb.mxu2 %v4874_v44  ;;  %1264 = vmatmul.bf16.vlgmr.msra.gmra.mxu3 %v6249_v51  ;;  %v6343_v36 = vor.u32 %v5278_v33, %v4653_v32  ;;  %v6345_v37 = vor.u32 %v5277_v34, %v4655_v35  ;;  %v5318_v38 = vld [vmem:[%s9145_s1 + $0x8c] sm:$0xf]  ;;  %v4823_v39 = vld [vmem:[%s9145_s1 + $0x98] sm:$0xf0]  ;;  %v4821_v40 = vld [vmem:[%s9145_s1 + $0x88] sm:$0xf] }
  0x61   : > { %1612 = vmatpush.bf16.msrb.mxu3 %v5002_v48  ;;  %1345 = vmatpush.bf16.msrb.mxu0 %v4870_v52  ;;  %v4826_v41 = vor.u32 %v5318_v38, %v4823_v39  ;;  %v5320_v42 = vld [vmem:[%s9145_s1 + $0x94] sm:$0xf0]  ;;  %v5350_v43 = vld [vmem:[%s9145_s1 + $0x18c] sm:$0xf]  ;;  %v4951_v44 = vld [vmem:[%s9145_s1 + $0x198] sm:$0xf0] }
  0x62   : > { %1434 = vmatpush.bf16.msrb.mxu1 %v4998_v53  ;;  %v4822_v45 = vor.u32 %v5320_v42, %v4821_v40  ;;  %v4954_v46 = vor.u32 %v5350_v43, %v4951_v44  ;;  %v4949_v48 = vld [vmem:[%s9145_s1 + $0x188] sm:$0xf]  ;;  %v5352_v49 = vld [vmem:[%s9145_s1 + $0x194] sm:$0xf0]  ;;  %v5280_v53 = vld [vmem:[%s6015_s18 + $0x54] sm:$0xf0] }
  0x63   : > { %v4950_v50 = vor.u32 %v5352_v49, %v4949_v48  ;;  %v4661_v52 = vld [vmem:[%s6015_s18 + $0x50] sm:$0xf]  ;;  %v5279_v54 = vld [vmem:[%s6015_s18 + $0x54] sm:$0xf]  ;;  %v4663_v55 = vld [vmem:[%s6015_s18 + $0x58] sm:$0xf0] }
  0x64   : > { %1524 = vmatpush.bf16.msrb.mxu2 %v4858_v57  ;;  %v6379_v56 = vor.u32 %v5280_v53, %v4661_v52  ;;  %v6381_v57 = vor.u32 %v5279_v54, %v4663_v55  ;;  %v4669_v58 = vld [vmem:[%s6015_s18 + $0x60] sm:$0xf]  ;;  %v5282_v59 = vld [vmem:[%s6015_s18 + $0x64] sm:$0xf0]  ;;  %v5281_v60 = vld [vmem:[%s6015_s18 + $0x64] sm:$0xf] }
  0x65   : > { %1346 = vmatpush.bf16.msrb.mxu0 %v4854_v61  ;;  %1613 = vmatpush.bf16.msrb.mxu3 %v4986_v62  ;;  %v4671_v61 = vld [vmem:[%s6015_s18 + $0x68] sm:$0xf0]  ;;  %v6391_v62 = vor.u32 %v5282_v59, %v4669_v58  ;;  %v5314_v0 = vld [vmem:[%s9145_s1 + $0x6c] sm:$0xf]  ;;  %v4805_v2 = vld [vmem:[%s9145_s1 + $0x68] sm:$0xf] }
  0x66   : > { %1435 = vmatpush.bf16.msrb.mxu1 %v4982_v1  ;;  %v6393_v63 = vor.u32 %v5281_v60, %v4671_v61  ;;  %v4807_v1 = vld [vmem:[%s9145_s1 + $0x78] sm:$0xf0]  ;;  %v5316_v4 = vld [vmem:[%s9145_s1 + $0x74] sm:$0xf0]  ;;  %v5346_v5 = vld [vmem:[%s9145_s1 + $0x16c] sm:$0xf] }
  0x67   : > { %v4810_v3 = vor.u32 %v5314_v0, %v4807_v1  ;;  %v4935_v8 = vld [vmem:[%s9145_s1 + $0x178] sm:$0xf0]  ;;  %v4806_v9 = vor.u32 %v5316_v4, %v4805_v2  ;;  %v4677_v11 = vld [vmem:[%s6015_s18 + $0x70] sm:$0xf]  ;;  %v4933_v15 = vld [vmem:[%s9145_s1 + $0x168] sm:$0xf] }
  0x68   : > { %1525 = vmatpush.bf16.msrb.mxu2 %v4842_v17  ;;  %v4938_v10 = vor.u32 %v5346_v5, %v4935_v8  ;;  %v5284_v14 = vld [vmem:[%s6015_s18 + $0x74] sm:$0xf0]  ;;  %v5348_v16 = vld [vmem:[%s9145_s1 + $0x174] sm:$0xf0]  ;;  %v4679_v18 = vld [vmem:[%s6015_s18 + $0x78] sm:$0xf0] }
  0x69   : > { %1347 = vmatpush.bf16.msrb.mxu0 %v4838_v21  ;;  %1614 = vmatpush.bf16.msrb.mxu3 %v4970_v22  ;;  %v5283_v17 = vld [vmem:[%s6015_s18 + $0x74] sm:$0xf]  ;;  %v4934_v19 = vor.u32 %v5348_v16, %v4933_v15  ;;  %v6427_v20 = vor.u32 %v5284_v14, %v4677_v11  ;;  %v6438_v22 = vld [vmem:[%s9146_s2] sm:$0xf]  ;;  %v4685_v23 = vld [vmem:[%s6015_s18 + $0x80] sm:$0xf] }
  0x6a   : > { %1436 = vmatpush.bf16.msrb.mxu1 %v4966_v25  ;;  %v6429_v21 = vor.u32 %v5283_v17, %v4679_v18  ;;  %v5286_v24 = vld [vmem:[%s6015_s18 + $0x84] sm:$0xf0]  ;;  %v6443_v25 = vperm.slane %v6438_v22, 0  ;;  %v5285_v26 = vld [vmem:[%s6015_s18 + $0x84] sm:$0xf]  ;;  %v6458_v38 = vperm.slane %v6438_v22, 1 }
  0x6b   : > { %v4687_v27 = vld [vmem:[%s6015_s18 + $0x88] sm:$0xf0]  ;;  %v6447_v28 = vor.u32 %v5286_v24, %v4685_v23  ;;  %v5310_v39 = vld [vmem:[%s9145_s1 + $0x4c] sm:$0xf]  ;;  %v4791_v40 = vld [vmem:[%s9145_s1 + $0x58] sm:$0xf0] }
  0x6c   : > { %1526 = vmatpush.bf16.msrb.mxu2 %v4826_v41  ;;  %v6449_v32 = vor.u32 %v5285_v26, %v4687_v27  ;;  %v4794_v41 = vor.u32 %v5310_v39, %v4791_v40  ;;  %v4789_v42 = vld [vmem:[%s9145_s1 + $0x48] sm:$0xf]  ;;  %v5312_v43 = vld [vmem:[%s9145_s1 + $0x54] sm:$0xf0]  ;;  %v5342_v44 = vld [vmem:[%s9145_s1 + $0x14c] sm:$0xf] }
  0x6d   : > { %1348 = vmatpush.bf16.msrb.mxu0 %v4822_v45  ;;  %1615 = vmatpush.bf16.msrb.mxu3 %v4954_v46  ;;  %v4790_v46 = vor.u32 %v5312_v43, %v4789_v42  ;;  %v4919_v48 = vld [vmem:[%s9145_s1 + $0x158] sm:$0xf0]  ;;  %v4693_v60 = vld [vmem:[%s6015_s18 + $0x90] sm:$0xf]  ;;  %v4917_v0 = vld [vmem:[%s9145_s1 + $0x148] sm:$0xf] }
  0x6e   : > { %1002 = vmatmul.bf16.gmra.mxu0 %v6283_v6  ;;  %1437 = vmatpush.bf16.msrb.mxu1 %v4950_v50  ;;  %v4922_v53 = vor.u32 %v5342_v44, %v4919_v48  ;;  %v5288_v61 = vld [vmem:[%s6015_s18 + $0x94] sm:$0xf0]  ;;  %v5344_v1 = vld [vmem:[%s9145_s1 + $0x154] sm:$0xf0]  ;;  %v4701_v39 = vld [vmem:[%s6015_s18 + $0xa0] sm:$0xf] }
  0x6f   : > { %1091 = vmatmul.bf16.gmra.mxu1 %v6285_v7  ;;  %1180 = vmatmul.bf16.gmra.mxu2 %v6283_v6  ;;  %v5287_v2 = vld [vmem:[%s6015_s18 + $0x94] sm:$0xf]  ;;  %v4918_v4 = vor.u32 %v5344_v1, %v4917_v0  ;;  %v6495_v8 = vor.u32 %v5288_v61, %v4693_v60  ;;  %v5290_v40 = vld [vmem:[%s6015_s18 + $0xa4] sm:$0xf0]  ;;  %v4703_v42 = vld [vmem:[%s6015_s18 + $0xa8] sm:$0xf0] }
  0x70   : > { %1269 = vmatmul.bf16.gmra.mxu3 %v6285_v7  ;;  %1527 = vmatpush.bf16.msrb.mxu2 %v4810_v3  ;;  %v4695_v3 = vld [vmem:[%s6015_s18 + $0x98] sm:$0xf0]  ;;  %v6519_v44 = vor.u32 %v5290_v40, %v4701_v39  ;;  %v4775_v60 = vld [vmem:[%s9145_s1 + $0x38] sm:$0xf0]  ;;  %v4773_v0 = vld [vmem:[%s9145_s1 + $0x28] sm:$0xf] }
  0x71   : > { %1349 = vmatpush.bf16.msrb.mxu0 %v4806_v9  ;;  %1616 = vmatpush.bf16.msrb.mxu3 %v4938_v10  ;;  %v6498_v14 = vor.u32 %v5287_v2, %v4695_v3  ;;  %v5308_v1 = vld [vmem:[%s9145_s1 + $0x34] sm:$0xf0]  ;;  %v5338_v2 = vld [vmem:[%s9145_s1 + $0x12c] sm:$0xf]  ;;  %s5259_s22 = sshll.u32 %s5950_s6, 8  ;;  %vm3394_vm6 = vcmask 7168  }
  0x72   : > { %1438 = vmatpush.bf16.msrb.mxu1 %v4934_v19  ;;  %v5340_v39 = vld [vmem:[%s9145_s1 + $0x134] sm:$0xf0]  ;;  %s4320_s25 = sshra.s32 %s5259_s22, 7  ;;  %p5260_p1 = scmp.ne.s32.totalorder %s5950_s6, 2 }
  0x73   : > { %v5291_v40 = vld [vmem:[%s6015_s18 + $0xb4] sm:$0xf]  ;;  %s4322_s29 = scalar_lea.vmem [#allocation12], %s4320_s25 }
  0x74   : > { %1528 = vmatpush.bf16.msrb.mxu2 %v4794_v41  ;;  %v5289_v41 = vld [vmem:[%s6015_s18 + $0xa4] sm:$0xf] }
  0x75   : > { %1350 = vmatpush.bf16.msrb.mxu0 %v4790_v46  ;;  %1617 = vmatpush.bf16.msrb.mxu3 %v4922_v53 }
  0x76   : > { %1439 = vmatpush.bf16.msrb.mxu1 %v4918_v4  ;;  %v4774_v4 = vor.u32 %v5308_v1, %v4773_v0 }
  0x79   : > { %1351 = vmatpush.bf16.msrb.mxu0 %v4774_v4 }
  0x7e   : > { %1007 = vmatmul.bf16.gmra.mxu0 %v6295_v12 }
  0x7f   : > { %1096 = vmatmul.bf16.gmra.mxu1 %v6297_v13  ;;  %1185 = vmatmul.bf16.gmra.mxu2 %v6295_v12 }
  0x80   : > { %1274 = vmatmul.bf16.gmra.mxu3 %v6297_v13 }
  0x8e   : > { %1012 = vmatmul.bf16.gmra.mxu0 %v6331_v30 }
  0x8f   : > { %1101 = vmatmul.bf16.gmra.mxu1 %v6333_v31  ;;  %1190 = vmatmul.bf16.gmra.mxu2 %v6331_v30 }
  0x90   : > { %1279 = vmatmul.bf16.gmra.mxu3 %v6333_v31 }
  0x9e   : > { %1017 = vmatmul.bf16.gmra.mxu0 %v6343_v36 }
  0x9f   : > { %1106 = vmatmul.bf16.gmra.mxu1 %v6345_v37  ;;  %1195 = vmatmul.bf16.gmra.mxu2 %v6343_v36 }
  0xa0   : > { %1284 = vmatmul.bf16.gmra.mxu3 %v6345_v37 }
  0xae   : > { %1022 = vmatmul.bf16.gmra.mxu0 %v6379_v56 }
  0xaf   : > { %1111 = vmatmul.bf16.gmra.mxu1 %v6381_v57  ;;  %1200 = vmatmul.bf16.gmra.mxu2 %v6379_v56 }
  0xb0   : > { %1289 = vmatmul.bf16.gmra.mxu3 %v6381_v57 }
  0xbe   : > { %1027 = vmatmul.bf16.gmra.mxu0 %v6391_v62 }
  0xbf   : > { %1116 = vmatmul.bf16.gmra.mxu1 %v6393_v63  ;;  %1205 = vmatmul.bf16.gmra.mxu2 %v6391_v62 }
  0xc0   : > { %1294 = vmatmul.bf16.gmra.mxu3 %v6393_v63 }
  0xce   : > { %1032 = vmatmul.bf16.gmra.mxu0 %v6427_v20 }
  0xcf   : > { %1121 = vmatmul.bf16.gmra.mxu1 %v6429_v21  ;;  %1210 = vmatmul.bf16.gmra.mxu2 %v6427_v20 }
  0xd0   : > { %1299 = vmatmul.bf16.gmra.mxu3 %v6429_v21 }
  0xdb   : > { %v998_v29 = vpop.f32.mrf.mxu0 }
  0xdc   : > { %v999_v33 = vadd.f32 %v998_v29, %v6443_v25  ;;  %v1087_v34 = vpop.f32.mrf.mxu1 }
  0xde   : > { %v6452_v35 = vadd.f32 %v1087_v34, %v999_v33  ;;  %1037 = vmatmul.bf16.gmra.mxu0 %v6447_v28 }
  0xdf   : > { %1126 = vmatmul.bf16.gmra.mxu1 %v6449_v32  ;;  %1215 = vmatmul.bf16.gmra.mxu2 %v6447_v28 }
  0xe0   : > { %9484 = vst [vmem:[#allocation18_spill] sm:$0xff] %v6452_v35  ;;  %1304 = vmatmul.bf16.gmra.mxu3 %v6449_v32 }
  0xe2   : > { %v1176_v45 = vpop.f32.mrf.mxu2 }
  0xe3   : > { %v1177_v49 = vadd.f32 %v1176_v45, %v6458_v38  ;;  %v1265_v50 = vpop.f32.mrf.mxu3  ;;  %v1000_v52 = vpop.f32.mrf.mxu0 }
  0xe4   : > { %v1001_v54 = vadd.f32 %v1000_v52, %v6443_v25  ;;  %v1089_v55 = vpop.f32.mrf.mxu1 }
  0xe5   : > { %v6481_v58 = vadd.f32 %v1265_v50, %v1177_v49  ;;  %v6522_v49 = vor.u32 %v5289_v41, %v4703_v42  ;;  %v4711_v41 = vld [vmem:[%s6015_s18 + $0xb8] sm:$0xf0] }
  0xe6   : > { %v6483_v59 = vadd.f32 %v1089_v55, %v1001_v54  ;;  %v5306_v55 = vld [vmem:[%s9145_s1 + $0x2c] sm:$0xf] }
  0xe7   : > { %9485 = vst [vmem:[#allocation19_spill] sm:$0xff] %v6481_v58  ;;  %v4778_v61 = vor.u32 %v5306_v55, %v4775_v60 }
  0xe8   : > { %9486 = vst [vmem:[#allocation20_spill] sm:$0xff] %v6483_v59 }
  0xe9   : > { %1529 = vmatpush.bf16.msrb.mxu2 %v4778_v61 }
  0xea   : > { %v1178_v5 = vpop.f32.mrf.mxu2 }
  0xeb   : > { %v1179_v9 = vadd.f32 %v1178_v5, %v6458_v38  ;;  %v1267_v10 = vpop.f32.mrf.mxu3  ;;  %v1003_v11 = vpop.f32.mrf.mxu0  ;;  %v4903_v5 = vld [vmem:[%s9145_s1 + $0x138] sm:$0xf0] }
  0xec   : > { %v1004_v15 = vadd.f32 %v1003_v11, %v6443_v25  ;;  %v1092_v16 = vpop.f32.mrf.mxu1 }
  0xed   : > { %v6501_v17 = vadd.f32 %v1267_v10, %v1179_v9 }
  0xee   : > { %v6503_v18 = vadd.f32 %v1092_v16, %v1004_v15  ;;  %1042 = vmatmul.bf16.gmra.mxu0 %v6495_v8  ;;  %v4906_v15 = vor.u32 %v5338_v2, %v4903_v5 }
  0xef   : > { %9487 = vst [vmem:[#allocation21_spill] sm:$0xff] %v6501_v17  ;;  %1131 = vmatmul.bf16.gmra.mxu1 %v6498_v14  ;;  %1220 = vmatmul.bf16.gmra.mxu2 %v6495_v8 }
  0xf0   : > { %9488 = vst [vmem:[#allocation22_spill] sm:$0xff] %v6503_v18  ;;  %1309 = vmatmul.bf16.gmra.mxu3 %v6498_v14 }
  0xf1   : > { %1618 = vmatpush.bf16.msrb.mxu3 %v4906_v15  ;;  %v4717_v15 = vld [vmem:[%s6015_s18 + $0xc0] sm:$0xf] }
  0xf2   : > { %v1181_v19 = vpop.f32.mrf.mxu2 }
  0xf3   : > { %v1182_v23 = vadd.f32 %v1181_v19, %v6458_v38  ;;  %v1270_v24 = vpop.f32.mrf.mxu3  ;;  %v1005_v26 = vpop.f32.mrf.mxu0 }
  0xf4   : > { %v1006_v27 = vadd.f32 %v1005_v26, %v6443_v25  ;;  %v1094_v29 = vpop.f32.mrf.mxu1  ;;  %v4709_v26 = vld [vmem:[%s6015_s18 + $0xb0] sm:$0xf] }
  0xf5   : > { %v6511_v33 = vadd.f32 %v1270_v24, %v1182_v23 }
  0xf6   : > { %v6513_v34 = vadd.f32 %v1094_v29, %v1006_v27  ;;  %v5292_v27 = vld [vmem:[%s6015_s18 + $0xb4] sm:$0xf0]  ;;  %v4901_v29 = vld [vmem:[%s9145_s1 + $0x128] sm:$0xf] }
  0xf7   : > { %9489 = vst [vmem:[#allocation23_spill] sm:$0xff] %v6511_v33  ;;  %v4902_v42 = vor.u32 %v5340_v39, %v4901_v29 }
  0xf8   : > { %9490 = vst [vmem:[#allocation24_spill] sm:$0xff] %v6513_v34 }
  0xf9   : > { %1440 = vmatpush.bf16.msrb.mxu1 %v4902_v42 }
  0xfa   : > { %v1183_v43 = vpop.f32.mrf.mxu2 }
  0xfb   : > { %v1184_v45 = vadd.f32 %v1183_v43, %v6458_v38  ;;  %v1272_v46 = vpop.f32.mrf.mxu3  ;;  %v1008_v48 = vpop.f32.mrf.mxu0 }
  0xfc   : > { %v1009_v50 = vadd.f32 %v1008_v48, %v6443_v25  ;;  %v1097_v52 = vpop.f32.mrf.mxu1 }
  0xfd   : > { %v6525_v53 = vadd.f32 %v1272_v46, %v1184_v45  ;;  %v6567_v45 = vor.u32 %v5292_v27, %v4709_v26  ;;  %v4719_v26 = vld [vmem:[%s6015_s18 + $0xc8] sm:$0xf0] }
  0xfe   : > { %v6527_v54 = vadd.f32 %v1097_v52, %v1009_v50  ;;  %1047 = vmatmul.bf16.gmra.mxu0 %v6519_v44  ;;  %v6570_v52 = vor.u32 %v5291_v40, %v4711_v41 }
  0xff   : > { %9491 = vst [vmem:[#allocation25_spill] sm:$0xff] %v6525_v53  ;;  %1136 = vmatmul.bf16.gmra.mxu1 %v6522_v49  ;;  %1225 = vmatmul.bf16.gmra.mxu2 %v6519_v44 }
 0x100   : > { %9492 = vst [vmem:[#allocation26_spill] sm:$0xff] %v6527_v54  ;;  %1314 = vmatmul.bf16.gmra.mxu3 %v6522_v49 }
 0x102   : > { %v1186_v3 = vpop.f32.mrf.mxu2 }
 0x103   : > { %v1187_v9 = vadd.f32 %v1186_v3, %v6458_v38  ;;  %v1275_v10 = vpop.f32.mrf.mxu3  ;;  %v1010_v11 = vpop.f32.mrf.mxu0 }
 0x104   : > { %v1011_v16 = vadd.f32 %v1010_v11, %v6443_v25  ;;  %v1099_v19 = vpop.f32.mrf.mxu1 }
 0x105   : > { %v6553_v23 = vadd.f32 %v1275_v10, %v1187_v9 }
 0x106   : > { %v6555_v24 = vadd.f32 %v1099_v19, %v1011_v16  ;;  %v5294_v16 = vld [vmem:[%s6015_s18 + $0xc4] sm:$0xf0]  ;;  %v5293_v19 = vld [vmem:[%s6015_s18 + $0xc4] sm:$0xf] }
 0x107   : > { %9493 = vst [vmem:[#allocation27_spill] sm:$0xff] %v6553_v23  ;;  %v6591_v29 = vor.u32 %v5294_v16, %v4717_v15  ;;  %v6594_v42 = vor.u32 %v5293_v19, %v4719_v26  ;;  %v4887_v15 = vld [vmem:[%s9145_s1 + $0x118] sm:$0xf0] }
 0x108   : > { %9494 = vst [vmem:[#allocation28_spill] sm:$0xff] %v6555_v24 }
 0x10a   : > { %v1188_v43 = vpop.f32.mrf.mxu2 }
 0x10b   : > { %v1189_v46 = vadd.f32 %v1188_v43, %v6458_v38  ;;  %v1277_v48 = vpop.f32.mrf.mxu3  ;;  %v1013_v50 = vpop.f32.mrf.mxu0 }
 0x10c   : > { %v1014_v55 = vadd.f32 %v1013_v50, %v6443_v25  ;;  %v1102_v60 = vpop.f32.mrf.mxu1 }
 0x10d   : > { %v6573_v61 = vadd.f32 %v1277_v48, %v1189_v46 }
 0x10e   : > { %v6575_v0 = vadd.f32 %v1102_v60, %v1014_v55  ;;  %1052 = vmatmul.bf16.gmra.mxu0 %v6567_v45  ;;  %v5302_v55 = vld [vmem:[%s9145_s1 + $0xc] sm:$0xf]  ;;  %v4759_v60 = vld [vmem:[%s9145_s1 + $0x18] sm:$0xf0] }
 0x10f   : > { %9495 = vst [vmem:[#allocation29_spill] sm:$0xff] %v6573_v61  ;;  %1141 = vmatmul.bf16.gmra.mxu1 %v6570_v52  ;;  %1230 = vmatmul.bf16.gmra.mxu2 %v6567_v45 }
 0x110   : > { %9496 = vst [vmem:[#allocation30_spill] sm:$0xff] %v6575_v0  ;;  %1319 = vmatmul.bf16.gmra.mxu3 %v6570_v52  ;;  %v5396_v0 = vld [vmem:[#allocation9 + $0xf4] sm:$0xf0] }
 0x112   : > { %v1191_v1 = vpop.f32.mrf.mxu2 }
 0x113   : > { %v1192_v2 = vadd.f32 %v1191_v1, %v6458_v38  ;;  %v1280_v3 = vpop.f32.mrf.mxu3  ;;  %v1015_v4 = vpop.f32.mrf.mxu0  ;;  %v4762_v1 = vor.u32 %v5302_v55, %v4759_v60  ;;  %v5296_v55 = vld [vmem:[%s6015_s18 + $0xd4] sm:$0xf0]  ;;  %v4885_v60 = vld [vmem:[%s9145_s1 + $0x108] sm:$0xf] }
 0x114   : > { %v1016_v5 = vadd.f32 %v1015_v4, %v6443_v25  ;;  %v1104_v9 = vpop.f32.mrf.mxu1  ;;  %v5334_v4 = vld [vmem:[%s9145_s1 + $0x10c] sm:$0xf] }
 0x115   : > { %v6583_v10 = vadd.f32 %v1280_v3, %v1192_v2  ;;  %v4757_v2 = vld [vmem:[%s9145_s1 + $0x8] sm:$0xf]  ;;  %v5304_v3 = vld [vmem:[%s9145_s1 + $0x14] sm:$0xf0]  ;;  %1530 = vmatpush.bf16.msrb.mxu2 %v4762_v1 }
 0x116   : > { %v6585_v11 = vadd.f32 %v1104_v9, %v1016_v5  ;;  %v4758_v9 = vor.u32 %v5304_v3, %v4757_v2  ;;  %v5336_v1 = vld [vmem:[%s9145_s1 + $0x114] sm:$0xf0]  ;;  %v4727_v3 = vld [vmem:[%s6015_s18 + $0xd8] sm:$0xf0] }
 0x117   : > { %9497 = vst [vmem:[#allocation31_spill] sm:$0xff] %v6583_v10  ;;  %v5295_v2 = vld [vmem:[%s6015_s18 + $0xd4] sm:$0xf] }
 0x118   : > { %9498 = vst [vmem:[#allocation32_spill] sm:$0xff] %v6585_v11  ;;  %1352 = vmatpush.bf16.msrb.mxu0 %v4758_v9 }
 0x11a   : > { %v1193_v27 = vpop.f32.mrf.mxu2 }
 0x11b   : > { %v1194_v39 = vadd.f32 %v1193_v27, %v6458_v38  ;;  %v1282_v40 = vpop.f32.mrf.mxu3  ;;  %v1018_v41 = vpop.f32.mrf.mxu0  ;;  %v4890_v27 = vor.u32 %v5334_v4, %v4887_v15  ;;  %v4886_v4 = vor.u32 %v5336_v1, %v4885_v60 }
 0x11c   : > { %v1019_v43 = vadd.f32 %v1018_v41, %v6443_v25  ;;  %v1107_v46 = vpop.f32.mrf.mxu1 }
 0x11d   : > { %v6597_v48 = vadd.f32 %v1282_v40, %v1194_v39  ;;  %1619 = vmatpush.bf16.msrb.mxu3 %v4890_v27  ;;  %1441 = vmatpush.bf16.msrb.mxu1 %v4886_v4 }
 0x11e   : > { %v6599_v50 = vadd.f32 %v1107_v46, %v1019_v43  ;;  %1057 = vmatmul.bf16.gmra.mxu0 %v6591_v29  ;;  %v4725_v46 = vld [vmem:[%s6015_s18 + $0xd0] sm:$0xf] }
 0x11f   : > { %9499 = vst [vmem:[#allocation33_spill] sm:$0xff] %v6597_v48  ;;  %1146 = vmatmul.bf16.gmra.mxu1 %v6594_v42  ;;  %1235 = vmatmul.bf16.gmra.mxu2 %v6591_v29  ;;  %v6639_v9 = vor.u32 %v5296_v55, %v4725_v46  ;;  %v5299_v48 = vld [vmem:[%s6015_s18 + $0xf4] sm:$0xf] }
 0x120   : > { %9500 = vst [vmem:[#allocation34_spill] sm:$0xff] %v6599_v50  ;;  %1324 = vmatmul.bf16.gmra.mxu3 %v6594_v42 }
 0x122   : > { %v1196_v5 = vpop.f32.mrf.mxu2 }
 0x123   : > { %v1197_v16 = vadd.f32 %v1196_v5, %v6458_v38  ;;  %v1285_v19 = vpop.f32.mrf.mxu3  ;;  %v1020_v26 = vpop.f32.mrf.mxu0 }
 0x124   : > { %v1021_v39 = vadd.f32 %v1020_v26, %v6443_v25  ;;  %v1109_v40 = vpop.f32.mrf.mxu1  ;;  %v6642_v26 = vor.u32 %v5295_v2, %v4727_v3 }
 0x125   : > { %v6625_v41 = vadd.f32 %v1285_v19, %v1197_v16 }
 0x126   : > { %v6627_v43 = vadd.f32 %v1109_v40, %v1021_v39 }
 0x127   : > { %9501 = vst [vmem:[#allocation35_spill] sm:$0xff] %v6625_v41 }
 0x128   : > { %9502 = vst [vmem:[#allocation36_spill] sm:$0xff] %v6627_v43 }
 0x12a   : > { %v1198_v5 = vpop.f32.mrf.mxu2 }
 0x12b   : > { %v1199_v15 = vadd.f32 %v1198_v5, %v6458_v38  ;;  %v1287_v16 = vpop.f32.mrf.mxu3  ;;  %v1023_v19 = vpop.f32.mrf.mxu0 }
 0x12c   : > { %v1024_v27 = vadd.f32 %v1023_v19, %v6443_v25  ;;  %v1112_v39 = vpop.f32.mrf.mxu1  ;;  %v5297_v19 = vld [vmem:[%s6015_s18 + $0xe4] sm:$0xf] }
 0x12d   : > { %v6645_v40 = vadd.f32 %v1287_v16, %v1199_v15  ;;  %v4733_v15 = vld [vmem:[%s6015_s18 + $0xe0] sm:$0xf]  ;;  %v5298_v16 = vld [vmem:[%s6015_s18 + $0xe4] sm:$0xf0] }
 0x12e   : > { %v6647_v41 = vadd.f32 %v1112_v39, %v1024_v27  ;;  %1062 = vmatmul.bf16.gmra.mxu0 %v6639_v9  ;;  %v4735_v27 = vld [vmem:[%s6015_s18 + $0xe8] sm:$0xf0] }
 0x12f   : > { %9503 = vst [vmem:[#allocation37_spill] sm:$0xff] %v6645_v40  ;;  %1151 = vmatmul.bf16.gmra.mxu1 %v6642_v26  ;;  %1240 = vmatmul.bf16.gmra.mxu2 %v6639_v9  ;;  %v6666_v43 = vor.u32 %v5297_v19, %v4735_v27  ;;  %v5380_v19 = vld [vmem:[#allocation9 + $0x74] sm:$0xf0]  ;;  %v5253_v27 = vld [vmem:[#allocation9 + $0x1f0] sm:$0xf] }
 0x130   : > { %9504 = vst [vmem:[#allocation38_spill] sm:$0xff] %v6647_v41  ;;  %1329 = vmatmul.bf16.gmra.mxu3 %v6642_v26  ;;  %v6663_v41 = vor.u32 %v5298_v16, %v4733_v15  ;;  %v5061_v16 = vld [vmem:[#allocation9 + $0x70] sm:$0xf] }
 0x132   : > { %v1201_v46 = vpop.f32.mrf.mxu2 }
 0x133   : > { %v1202_v55 = vadd.f32 %v1201_v46, %v6458_v38  ;;  %v1290_v60 = vpop.f32.mrf.mxu3  ;;  %v1025_v1 = vpop.f32.mrf.mxu0 }
 0x134   : > { %v1026_v2 = vadd.f32 %v1025_v1, %v6443_v25  ;;  %v1114_v3 = vpop.f32.mrf.mxu1 }
 0x135   : > { %v6655_v4 = vadd.f32 %v1290_v60, %v1202_v55 }
 0x136   : > { %v6657_v5 = vadd.f32 %v1114_v3, %v1026_v2  ;;  %v5189_v2 = vld [vmem:[#allocation9 + $0x170] sm:$0xf]  ;;  %v5412_v3 = vld [vmem:[#allocation9 + $0x174] sm:$0xf0] }
 0x137   : > { %9505 = vst [vmem:[#allocation39_spill] sm:$0xff] %v6655_v4  ;;  %v5190_v15 = vor.u32 %v5412_v3, %v5189_v2 }
 0x138   : > { %9506 = vst [vmem:[#allocation40_spill] sm:$0xff] %v6657_v5  ;;  %v4741_v5 = vld [vmem:[%s6015_s18 + $0xf0] sm:$0xf] }
 0x139   : > { %2461 = vmatpush.bf16.msra.mxu2 %v5190_v15 }
 0x13a   : > { %v1203_v39 = vpop.f32.mrf.mxu2 }
 0x13b   : > { %v1204_v50 = vadd.f32 %v1203_v39, %v6458_v38  ;;  %v1292_v40 = vpop.f32.mrf.mxu3  ;;  %v1028_v46 = vpop.f32.mrf.mxu0 }
 0x13c   : > { %v1029_v1 = vadd.f32 %v1028_v46, %v6443_v25  ;;  %v1117_v10 = vpop.f32.mrf.mxu1 }
 0x13d   : > { %v6669_v55 = vadd.f32 %v1292_v40, %v1204_v50  ;;  %v5062_v40 = vor.u32 %v5380_v19, %v5061_v16  ;;  %v5300_v16 = vld [vmem:[%s6015_s18 + $0xf4] sm:$0xf0]  ;;  %v5125_v19 = vld [vmem:[#allocation9 + $0xf0] sm:$0xf] }
 0x13e   : > { %v6671_v60 = vadd.f32 %v1117_v10, %v1029_v1  ;;  %1067 = vmatmul.bf16.gmra.mxu0 %v6663_v41  ;;  %v5428_v10 = vld [vmem:[#allocation9 + $0x1f4] sm:$0xf0]  ;;  %v5126_v11 = vor.u32 %v5396_v0, %v5125_v19  ;;  %v6687_v54 = vor.u32 %v5300_v16, %v4741_v5 }
 0x13f   : > { %9507 = vst [vmem:[#allocation41_spill] sm:$0xff] %v6669_v55  ;;  %1156 = vmatmul.bf16.gmra.mxu1 %v6666_v43  ;;  %1245 = vmatmul.bf16.gmra.mxu2 %v6663_v41 }
 0x140   : > { %9508 = vst [vmem:[#allocation42_spill] sm:$0xff] %v6671_v60  ;;  %1334 = vmatmul.bf16.gmra.mxu3 %v6666_v43  ;;  %v5254_v60 = vor.u32 %v5428_v10, %v5253_v27  ;;  %2283 = vmatpush.bf16.msra.mxu0 %v5062_v40 }
 0x141   : > { %2372 = vmatpush.bf16.msra.mxu1 %v5126_v11 }
 0x142   : > { %v1206_v50 = vpop.f32.mrf.mxu2  ;;  %2550 = vmatpush.bf16.msra.mxu3 %v5254_v60 }
 0x143   : > { %v1207_v39 = vadd.f32 %v1206_v50, %v6458_v38  ;;  %v1295_v46 = vpop.f32.mrf.mxu3  ;;  %v1030_v1 = vpop.f32.mrf.mxu0  ;;  %v4743_v50 = vld [vmem:[%s6015_s18 + $0xf8] sm:$0xf0] }
 0x144   : > { %v1031_v4 = vadd.f32 %v1030_v1, %v6443_v25  ;;  %v1119_v55 = vpop.f32.mrf.mxu1  ;;  %v6690_v10 = vor.u32 %v5299_v48, %v4743_v50 }
 0x145   : > { %v6679_v2 = vadd.f32 %v1295_v46, %v1207_v39 }
 0x146   : > { %v6681_v3 = vadd.f32 %v1119_v55, %v1031_v4 }
 0x147   : > { %9509 = vst [vmem:[#allocation43_spill] sm:$0xff] %v6679_v2 }
 0x148   : > { %9510 = vst [vmem:[#allocation44_spill] sm:$0xff] %v6681_v3 }
 0x14a   : > { %v1208_v23 = vpop.f32.mrf.mxu2 }
 0x14b   : > { %v1209_v15 = vadd.f32 %v1208_v23, %v6458_v38  ;;  %v1297_v27 = vpop.f32.mrf.mxu3  ;;  %v1033_v40 = vpop.f32.mrf.mxu0 }
 0x14c   : > { %v1034_v4 = vadd.f32 %v1033_v40, %v6443_v25  ;;  %v1122_v55 = vpop.f32.mrf.mxu1 }
 0x14d   : > { %v6693_v60 = vadd.f32 %v1297_v27, %v1209_v15 }
 0x14e   : > { %v6695_v39 = vadd.f32 %v1122_v55, %v1034_v4  ;;  %1072 = vmatmul.bf16.gmra.mxu0 %v6687_v54 }
 0x14f   : > { %9511 = vst [vmem:[#allocation45_spill] sm:$0xff] %v6693_v60  ;;  %1161 = vmatmul.bf16.gmra.mxu1 %v6690_v10  ;;  %1250 = vmatmul.bf16.gmra.mxu2 %v6687_v54 }
 0x150   : > { %9512 = vst [vmem:[#allocation46_spill] sm:$0xff] %v6695_v39  ;;  %1339 = vmatmul.bf16.gmra.mxu3 %v6690_v10 }
 0x152   : > { %v1211_v23 = vpop.f32.mrf.mxu2 }
 0x153   : > { %v1212_v0 = vadd.f32 %v1211_v23, %v6458_v38  ;;  %v1300_v11 = vpop.f32.mrf.mxu3  ;;  %v1035_v48 = vpop.f32.mrf.mxu0 }
 0x154   : > { %v1036_v5 = vadd.f32 %v1035_v48, %v6443_v25  ;;  %v1124_v46 = vpop.f32.mrf.mxu1 }
 0x155   : > { %v6703_v1 = vadd.f32 %v1300_v11, %v1212_v0  ;;  %v5181_v0 = vld [vmem:[#allocation9 + $0x160] sm:$0xf]  ;;  %v5410_v11 = vld [vmem:[#allocation9 + $0x164] sm:$0xf0] }
 0x156   : > { %v6705_v16 = vadd.f32 %v1124_v46, %v1036_v5  ;;  %v5182_v48 = vor.u32 %v5410_v11, %v5181_v0  ;;  %v5053_v5 = vld [vmem:[#allocation9 + $0x60] sm:$0xf]  ;;  %v5378_v46 = vld [vmem:[#allocation9 + $0x64] sm:$0xf0] }
 0x157   : > { %9513 = vst [vmem:[#allocation47_spill] sm:$0xff] %v6703_v1  ;;  %v5054_v1 = vor.u32 %v5378_v46, %v5053_v5  ;;  %v5117_v11 = vld [vmem:[#allocation9 + $0xe0] sm:$0xf] }
 0x158   : > { %9514 = vst [vmem:[#allocation48_spill] sm:$0xff] %v6705_v16  ;;  %2462 = vmatpush.bf16.msra.mxu2 %v5182_v48 }
 0x159   : > { %2284 = vmatpush.bf16.msra.mxu0 %v5054_v1 }
 0x15a   : > { %v1213_v19 = vpop.f32.mrf.mxu2 }
 0x15b   : > { %v1214_v50 = vadd.f32 %v1213_v19, %v6458_v38  ;;  %v1302_v15 = vpop.f32.mrf.mxu3  ;;  %v1038_v27 = vpop.f32.mrf.mxu0  ;;  %v5245_v19 = vld [vmem:[#allocation9 + $0x1e0] sm:$0xf] }
 0x15c   : > { %v1039_v40 = vadd.f32 %v1038_v27, %v6443_v25  ;;  %v1127_v4 = vpop.f32.mrf.mxu1 }
 0x15d   : > { %v6709_v55 = vadd.f32 %v1302_v15, %v1214_v50  ;;  %v5426_v50 = vld [vmem:[#allocation9 + $0x1e4] sm:$0xf0] }
 0x15e   : > { %v6711_v23 = vadd.f32 %v1127_v4, %v1039_v40  ;;  %1353 = vmatmul.bf16.vlgmr.msrb.gmra.mxu0 %v6241_v47 }
 0x15f   : > { %9515 = vst [vmem:[#allocation49_spill] sm:$0xff] %v6709_v55  ;;  %1442 = vmatmul.bf16.vlgmr.msrb.gmra.mxu1 %v6249_v51  ;;  %1531 = vmatmul.bf16.vlgmr.msrb.gmra.mxu2 %v6241_v47  ;;  %v5394_v55 = vld [vmem:[#allocation9 + $0xe4] sm:$0xf0] }
 0x160   : > { %9516 = vst [vmem:[#allocation50_spill] sm:$0xff] %v6711_v23  ;;  %1620 = vmatmul.bf16.vlgmr.msrb.gmra.mxu3 %v6249_v51  ;;  %v5246_v23 = vor.u32 %v5426_v50, %v5245_v19  ;;  %v5118_v16 = vor.u32 %v5394_v55, %v5117_v11 }
 0x162   : > { %v1216_v27 = vpop.f32.mrf.mxu2  ;;  %2551 = vmatpush.bf16.msra.mxu3 %v5246_v23  ;;  %2373 = vmatpush.bf16.msra.mxu1 %v5118_v16 }
 0x163   : > { %v1217_v15 = vadd.f32 %v1216_v27, %v6458_v38  ;;  %v1305_v40 = vpop.f32.mrf.mxu3  ;;  %v1040_v4 = vpop.f32.mrf.mxu0 }
 0x164   : > { %v1041_v39 = vadd.f32 %v1040_v4, %v6443_v25  ;;  %v1129_v47 = vpop.f32.mrf.mxu1 }
 0x165   : > { %v6719_v51 = vadd.f32 %v1305_v40, %v1217_v15 }
 0x166   : > { %v6721_v0 = vadd.f32 %v1129_v47, %v1041_v39 }
 0x167   : > { %9517 = vst [vmem:[#allocation51_spill] sm:$0xff] %v6719_v51 }
 0x168   : > { %9518 = vst [vmem:[#allocation52_spill] sm:$0xff] %v6721_v0 }
 0x16a   : > { %v1218_v5 = vpop.f32.mrf.mxu2 }
 0x16b   : > { %v1219_v46 = vadd.f32 %v1218_v5, %v6458_v38  ;;  %v1307_v27 = vpop.f32.mrf.mxu3  ;;  %v1043_v2 = vpop.f32.mrf.mxu0 }
 0x16c   : > { %v1044_v48 = vadd.f32 %v1043_v2, %v6443_v25  ;;  %v1132_v19 = vpop.f32.mrf.mxu1 }
 0x16d   : > { %v6725_v50 = vadd.f32 %v1307_v27, %v1219_v46 }
 0x16e   : > { %v6727_v1 = vadd.f32 %v1132_v19, %v1044_v48  ;;  %1358 = vmatmul.bf16.gmra.mxu0 %v6283_v6  ;;  %v5173_v19 = vld [vmem:[#allocation9 + $0x150] sm:$0xf] }
 0x16f   : > { %9519 = vst [vmem:[#allocation53_spill] sm:$0xff] %v6725_v50  ;;  %1447 = vmatmul.bf16.gmra.mxu1 %v6285_v7  ;;  %1536 = vmatmul.bf16.gmra.mxu2 %v6283_v6 }
 0x170   : > { %9520 = vst [vmem:[#allocation54_spill] sm:$0xff] %v6727_v1  ;;  %1625 = vmatmul.bf16.gmra.mxu3 %v6285_v7 }
 0x172   : > { %v1221_v39 = vpop.f32.mrf.mxu2 }
 0x173   : > { %v1222_v16 = vadd.f32 %v1221_v39, %v6458_v38  ;;  %v1310_v55 = vpop.f32.mrf.mxu3  ;;  %v1045_v23 = vpop.f32.mrf.mxu0  ;;  %v5408_v39 = vld [vmem:[#allocation9 + $0x154] sm:$0xf0] }
 0x174   : > { %v1046_v2 = vadd.f32 %v1045_v23, %v6443_v25  ;;  %v1134_v15 = vpop.f32.mrf.mxu1  ;;  %v5376_v23 = vld [vmem:[#allocation9 + $0x54] sm:$0xf0] }
 0x175   : > { %v6735_v40 = vadd.f32 %v1310_v55, %v1222_v16  ;;  %v5174_v16 = vor.u32 %v5408_v39, %v5173_v19  ;;  %v5045_v55 = vld [vmem:[#allocation9 + $0x50] sm:$0xf] }
 0x176   : > { %v6737_v4 = vadd.f32 %v1134_v15, %v1046_v2  ;;  %v5237_v2 = vld [vmem:[#allocation9 + $0x1d0] sm:$0xf] }
 0x177   : > { %9521 = vst [vmem:[#allocation55_spill] sm:$0xff] %v6735_v40  ;;  %2463 = vmatpush.bf16.msra.mxu2 %v5174_v16  ;;  %v5109_v39 = vld [vmem:[#allocation9 + $0xd0] sm:$0xf]  ;;  %v5392_v40 = vld [vmem:[#allocation9 + $0xd4] sm:$0xf0] }
 0x178   : > { %9522 = vst [vmem:[#allocation56_spill] sm:$0xff] %v6737_v4  ;;  %v5110_v1 = vor.u32 %v5392_v40, %v5109_v39 }
 0x17a   : > { %v1223_v47 = vpop.f32.mrf.mxu2  ;;  %2374 = vmatpush.bf16.msra.mxu1 %v5110_v1 }
 0x17b   : > { %v1224_v11 = vadd.f32 %v1223_v47, %v6458_v38  ;;  %v1312_v5 = vpop.f32.mrf.mxu3  ;;  %v1048_v46 = vpop.f32.mrf.mxu0  ;;  %v5046_v47 = vor.u32 %v5376_v23, %v5045_v55 }
 0x17c   : > { %v1049_v6 = vadd.f32 %v1048_v46, %v6443_v25  ;;  %v1137_v7 = vpop.f32.mrf.mxu1 }
 0x17d   : > { %v6741_v27 = vadd.f32 %v1312_v5, %v1224_v11  ;;  %v5424_v11 = vld [vmem:[#allocation9 + $0x1d4] sm:$0xf0]  ;;  %2285 = vmatpush.bf16.msra.mxu0 %v5046_v47 }
 0x17e   : > { %v6743_v48 = vadd.f32 %v1137_v7, %v1049_v6  ;;  %1363 = vmatmul.bf16.gmra.mxu0 %v6295_v12  ;;  %v5238_v7 = vor.u32 %v5424_v11, %v5237_v2 }
 0x17f   : > { %9523 = vst [vmem:[#allocation57_spill] sm:$0xff] %v6741_v27  ;;  %1452 = vmatmul.bf16.gmra.mxu1 %v6297_v13  ;;  %1541 = vmatmul.bf16.gmra.mxu2 %v6295_v12 }
 0x180   : > { %9524 = vst [vmem:[#allocation58_spill] sm:$0xff] %v6743_v48  ;;  %1630 = vmatmul.bf16.gmra.mxu3 %v6297_v13 }
 0x181   : > { %2552 = vmatpush.bf16.msra.mxu3 %v5238_v7 }
 0x182   : > { %v1226_v15 = vpop.f32.mrf.mxu2 }
 0x183   : > { %v1227_v5 = vadd.f32 %v1226_v15, %v6458_v38  ;;  %v1315_v46 = vpop.f32.mrf.mxu3  ;;  %v1050_v6 = vpop.f32.mrf.mxu0 }
 0x184   : > { %v1051_v48 = vadd.f32 %v1050_v6, %v6443_v25  ;;  %v1139_v12 = vpop.f32.mrf.mxu1 }
 0x185   : > { %v6751_v13 = vadd.f32 %v1315_v46, %v1227_v5 }
 0x186   : > { %v6753_v19 = vadd.f32 %v1139_v12, %v1051_v48 }
 0x187   : > { %9525 = vst [vmem:[#allocation59_spill] sm:$0xff] %v6751_v13  ;;  %v5127_v13 = vld [vmem:[#allocation9 + $0xf8] sm:$0xf0] }
 0x188   : > { %9526 = vst [vmem:[#allocation60_spill] sm:$0xff] %v6753_v19 }
 0x18a   : > { %v1228_v55 = vpop.f32.mrf.mxu2 }
 0x18b   : > { %v1229_v23 = vadd.f32 %v1228_v55, %v6458_v38  ;;  %v1317_v15 = vpop.f32.mrf.mxu3  ;;  %v1053_v27 = vpop.f32.mrf.mxu0 }
 0x18c   : > { %v1054_v16 = vadd.f32 %v1053_v27, %v6443_v25  ;;  %v1142_v2 = vpop.f32.mrf.mxu1 }
 0x18d   : > { %v6757_v11 = vadd.f32 %v1317_v15, %v1229_v23 }
 0x18e   : > { %v6759_v47 = vadd.f32 %v1142_v2, %v1054_v16  ;;  %1368 = vmatmul.bf16.gmra.mxu0 %v6331_v30  ;;  %v5165_v2 = vld [vmem:[#allocation9 + $0x140] sm:$0xf] }
 0x18f   : > { %9527 = vst [vmem:[#allocation61_spill] sm:$0xff] %v6757_v11  ;;  %1457 = vmatmul.bf16.gmra.mxu1 %v6333_v31  ;;  %1546 = vmatmul.bf16.gmra.mxu2 %v6331_v30 }
 0x190   : > { %9528 = vst [vmem:[#allocation62_spill] sm:$0xff] %v6759_v47  ;;  %1635 = vmatmul.bf16.gmra.mxu3 %v6333_v31 }
 0x192   : > { %v1231_v1 = vpop.f32.mrf.mxu2 }
 0x193   : > { %v1232_v40 = vadd.f32 %v1231_v1, %v6458_v38  ;;  %v1320_v48 = vpop.f32.mrf.mxu3  ;;  %v1055_v5 = vpop.f32.mrf.mxu0  ;;  %v5406_v1 = vld [vmem:[#allocation9 + $0x144] sm:$0xf0] }
 0x194   : > { %v1056_v27 = vadd.f32 %v1055_v5, %v6443_v25  ;;  %v1144_v46 = vpop.f32.mrf.mxu1  ;;  %v5374_v5 = vld [vmem:[#allocation9 + $0x44] sm:$0xf0] }
 0x195   : > { %v6767_v6 = vadd.f32 %v1320_v48, %v1232_v40  ;;  %v5166_v40 = vor.u32 %v5406_v1, %v5165_v2  ;;  %v5037_v48 = vld [vmem:[#allocation9 + $0x40] sm:$0xf] }
 0x196   : > { %v6769_v7 = vadd.f32 %v1144_v46, %v1056_v27  ;;  %v5229_v27 = vld [vmem:[#allocation9 + $0x1c0] sm:$0xf] }
 0x197   : > { %9529 = vst [vmem:[#allocation63_spill] sm:$0xff] %v6767_v6  ;;  %2464 = vmatpush.bf16.msra.mxu2 %v5166_v40  ;;  %v5101_v1 = vld [vmem:[#allocation9 + $0xc0] sm:$0xf]  ;;  %v5390_v6 = vld [vmem:[#allocation9 + $0xc4] sm:$0xf0] }
 0x198   : > { %9530 = vst [vmem:[#allocation64_spill] sm:$0xff] %v6769_v7  ;;  %v5102_v47 = vor.u32 %v5390_v6, %v5101_v1 }
 0x19a   : > { %v1233_v12 = vpop.f32.mrf.mxu2  ;;  %2375 = vmatpush.bf16.msra.mxu1 %v5102_v47 }
 0x19b   : > { %v1234_v39 = vadd.f32 %v1233_v12, %v6458_v38  ;;  %v1322_v55 = vpop.f32.mrf.mxu3  ;;  %v1058_v23 = vpop.f32.mrf.mxu0  ;;  %v5038_v12 = vor.u32 %v5374_v5, %v5037_v48 }
 0x19c   : > { %v1059_v30 = vadd.f32 %v1058_v23, %v6443_v25  ;;  %v1147_v31 = vpop.f32.mrf.mxu1 }
 0x19d   : > { %v6773_v15 = vadd.f32 %v1322_v55, %v1234_v39  ;;  %v5422_v39 = vld [vmem:[#allocation9 + $0x1c4] sm:$0xf0]  ;;  %2286 = vmatpush.bf16.msra.mxu0 %v5038_v12 }
 0x19e   : > { %v6775_v16 = vadd.f32 %v1147_v31, %v1059_v30  ;;  %1373 = vmatmul.bf16.gmra.mxu0 %v6343_v36  ;;  %v5230_v31 = vor.u32 %v5422_v39, %v5229_v27 }
 0x19f   : > { %9531 = vst [vmem:[#allocation65_spill] sm:$0xff] %v6773_v15  ;;  %1462 = vmatmul.bf16.gmra.mxu1 %v6345_v37  ;;  %1551 = vmatmul.bf16.gmra.mxu2 %v6343_v36 }
 0x1a0   : > { %9532 = vst [vmem:[#allocation66_spill] sm:$0xff] %v6775_v16  ;;  %1640 = vmatmul.bf16.gmra.mxu3 %v6345_v37 }
 0x1a1   : > { %2553 = vmatpush.bf16.msra.mxu3 %v5230_v31 }
 0x1a2   : > { %v1236_v46 = vpop.f32.mrf.mxu2 }
 0x1a3   : > { %v1237_v55 = vadd.f32 %v1236_v46, %v6458_v38  ;;  %v1325_v23 = vpop.f32.mrf.mxu3  ;;  %v1060_v30 = vpop.f32.mrf.mxu0 }
 0x1a4   : > { %v1061_v16 = vadd.f32 %v1060_v30, %v6443_v25  ;;  %v1149_v36 = vpop.f32.mrf.mxu1 }
 0x1a5   : > { %v6783_v37 = vadd.f32 %v1325_v23, %v1237_v55 }
 0x1a6   : > { %v6785_v2 = vadd.f32 %v1149_v36, %v1061_v16 }
 0x1a7   : > { %9533 = vst [vmem:[#allocation67_spill] sm:$0xff] %v6783_v37  ;;  %v5382_v37 = vld [vmem:[#allocation9 + $0x84] sm:$0xf0] }
 0x1a8   : > { %9534 = vst [vmem:[#allocation68_spill] sm:$0xff] %v6785_v2 }
 0x1aa   : > { %v1238_v48 = vpop.f32.mrf.mxu2 }
 0x1ab   : > { %v1239_v5 = vadd.f32 %v1238_v48, %v6458_v38  ;;  %v1327_v46 = vpop.f32.mrf.mxu3  ;;  %v1063_v15 = vpop.f32.mrf.mxu0 }
 0x1ac   : > { %v1064_v40 = vadd.f32 %v1063_v15, %v6443_v25  ;;  %v1152_v27 = vpop.f32.mrf.mxu1 }
 0x1ad   : > { %v6789_v39 = vadd.f32 %v1327_v46, %v1239_v5 }
 0x1ae   : > { %v6791_v12 = vadd.f32 %v1152_v27, %v1064_v40  ;;  %1378 = vmatmul.bf16.gmra.mxu0 %v6379_v56  ;;  %v5157_v27 = vld [vmem:[#allocation9 + $0x130] sm:$0xf] }
 0x1af   : > { %9535 = vst [vmem:[#allocation69_spill] sm:$0xff] %v6789_v39  ;;  %1467 = vmatmul.bf16.gmra.mxu1 %v6381_v57  ;;  %1556 = vmatmul.bf16.gmra.mxu2 %v6379_v56 }
 0x1b0   : > { %9536 = vst [vmem:[#allocation70_spill] sm:$0xff] %v6791_v12  ;;  %1645 = vmatmul.bf16.gmra.mxu3 %v6381_v57 }
 0x1b2   : > { %v1241_v47 = vpop.f32.mrf.mxu2 }
 0x1b3   : > { %v1242_v6 = vadd.f32 %v1241_v47, %v6458_v38  ;;  %v1330_v16 = vpop.f32.mrf.mxu3  ;;  %v1065_v55 = vpop.f32.mrf.mxu0  ;;  %v5404_v47 = vld [vmem:[#allocation9 + $0x134] sm:$0xf0] }
 0x1b4   : > { %v1066_v15 = vadd.f32 %v1065_v55, %v6443_v25  ;;  %v1154_v23 = vpop.f32.mrf.mxu1  ;;  %v5372_v55 = vld [vmem:[#allocation9 + $0x34] sm:$0xf0] }
 0x1b5   : > { %v6799_v30 = vadd.f32 %v1330_v16, %v1242_v6  ;;  %v5158_v6 = vor.u32 %v5404_v47, %v5157_v27  ;;  %v5029_v16 = vld [vmem:[#allocation9 + $0x30] sm:$0xf] }
 0x1b6   : > { %v6801_v31 = vadd.f32 %v1154_v23, %v1066_v15  ;;  %v5221_v15 = vld [vmem:[#allocation9 + $0x1b0] sm:$0xf] }
 0x1b7   : > { %9537 = vst [vmem:[#allocation71_spill] sm:$0xff] %v6799_v30  ;;  %2465 = vmatpush.bf16.msra.mxu2 %v5158_v6  ;;  %v5093_v47 = vld [vmem:[#allocation9 + $0xb0] sm:$0xf]  ;;  %v5388_v30 = vld [vmem:[#allocation9 + $0xb4] sm:$0xf0] }
 0x1b8   : > { %9538 = vst [vmem:[#allocation72_spill] sm:$0xff] %v6801_v31  ;;  %v5094_v12 = vor.u32 %v5388_v30, %v5093_v47 }
 0x1ba   : > { %v1243_v36 = vpop.f32.mrf.mxu2  ;;  %2376 = vmatpush.bf16.msra.mxu1 %v5094_v12 }
 0x1bb   : > { %v1244_v1 = vadd.f32 %v1243_v36, %v6458_v38  ;;  %v1332_v48 = vpop.f32.mrf.mxu3  ;;  %v1068_v5 = vpop.f32.mrf.mxu0  ;;  %v5030_v36 = vor.u32 %v5372_v55, %v5029_v16 }
 0x1bc   : > { %v1069_v56 = vadd.f32 %v1068_v5, %v6443_v25  ;;  %v1157_v57 = vpop.f32.mrf.mxu1 }
 0x1bd   : > { %v6805_v46 = vadd.f32 %v1332_v48, %v1244_v1  ;;  %v5420_v1 = vld [vmem:[#allocation9 + $0x1b4] sm:$0xf0]  ;;  %2287 = vmatpush.bf16.msra.mxu0 %v5030_v36 }
 0x1be   : > { %v6807_v40 = vadd.f32 %v1157_v57, %v1069_v56  ;;  %1383 = vmatmul.bf16.gmra.mxu0 %v6391_v62  ;;  %v5222_v57 = vor.u32 %v5420_v1, %v5221_v15 }
 0x1bf   : > { %9539 = vst [vmem:[#allocation73_spill] sm:$0xff] %v6805_v46  ;;  %1472 = vmatmul.bf16.gmra.mxu1 %v6393_v63  ;;  %1561 = vmatmul.bf16.gmra.mxu2 %v6391_v62 }
 0x1c0   : > { %9540 = vst [vmem:[#allocation74_spill] sm:$0xff] %v6807_v40  ;;  %1650 = vmatmul.bf16.gmra.mxu3 %v6393_v63 }
 0x1c1   : > { %2554 = vmatpush.bf16.msra.mxu3 %v5222_v57 }
 0x1c2   : > { %v1246_v23 = vpop.f32.mrf.mxu2 }
 0x1c3   : > { %v1247_v48 = vadd.f32 %v1246_v23, %v6458_v38  ;;  %v1335_v5 = vpop.f32.mrf.mxu3  ;;  %v1070_v56 = vpop.f32.mrf.mxu0 }
 0x1c4   : > { %v1071_v40 = vadd.f32 %v1070_v56, %v6443_v25  ;;  %v1159_v62 = vpop.f32.mrf.mxu1 }
 0x1c5   : > { %v6815_v63 = vadd.f32 %v1335_v5, %v1247_v48 }
 0x1c6   : > { %v6817_v27 = vadd.f32 %v1159_v62, %v1071_v40  ;;  %v6836_v62 = vperm.slane %v6438_v22, 2 }
 0x1c7   : > { %9541 = vst [vmem:[#allocation75_spill] sm:$0xff] %v6815_v63  ;;  %v5384_v63 = vld [vmem:[#allocation9 + $0x94] sm:$0xf0] }
 0x1c8   : > { %9542 = vst [vmem:[#allocation76_spill] sm:$0xff] %v6817_v27 }
 0x1ca   : > { %v1248_v16 = vpop.f32.mrf.mxu2 }
 0x1cb   : > { %v1249_v55 = vadd.f32 %v1248_v16, %v6458_v38  ;;  %v1337_v23 = vpop.f32.mrf.mxu3  ;;  %v1073_v46 = vpop.f32.mrf.mxu0 }
 0x1cc   : > { %v1074_v6 = vadd.f32 %v1073_v46, %v6443_v25  ;;  %v1162_v15 = vpop.f32.mrf.mxu1 }
 0x1cd   : > { %v6821_v1 = vadd.f32 %v1337_v23, %v1249_v55 }
 0x1ce   : > { %v6823_v36 = vadd.f32 %v1162_v15, %v1074_v6  ;;  %1388 = vmatmul.bf16.gmra.mxu0 %v6427_v20 }
 0x1cf   : > { %9543 = vst [vmem:[#allocation77_spill] sm:$0xff] %v6821_v1  ;;  %1477 = vmatmul.bf16.gmra.mxu1 %v6429_v21  ;;  %1566 = vmatmul.bf16.gmra.mxu2 %v6427_v20 }
 0x1d0   : > { %9544 = vst [vmem:[#allocation78_spill] sm:$0xff] %v6823_v36  ;;  %1655 = vmatmul.bf16.gmra.mxu3 %v6429_v21 }
 0x1d2   : > { %v1251_v12 = vpop.f32.mrf.mxu2 }
 0x1d3   : > { %v1252_v30 = vadd.f32 %v1251_v12, %v6458_v38  ;;  %v1340_v40 = vpop.f32.mrf.mxu3  ;;  %v1075_v48 = vpop.f32.mrf.mxu0  ;;  %v5402_v12 = vld [vmem:[#allocation9 + $0x124] sm:$0xf0] }
 0x1d4   : > { %v1076_v46 = vadd.f32 %v1075_v48, %v6443_v25  ;;  %v1164_v5 = vpop.f32.mrf.mxu1  ;;  %v6848_v25 = vperm.slane %v6438_v22, 3  ;;  %v5370_v48 = vld [vmem:[#allocation9 + $0x24] sm:$0xf0] }
 0x1d5   : > { %v6831_v56 = vadd.f32 %v1340_v40, %v1252_v30  ;;  %v5021_v40 = vld [vmem:[#allocation9 + $0x20] sm:$0xf] }
 0x1d6   : > { %v6833_v57 = vadd.f32 %v1164_v5, %v1076_v46  ;;  %v5213_v46 = vld [vmem:[#allocation9 + $0x1a0] sm:$0xf] }
 0x1d7   : > { %9545 = vst [vmem:[#allocation79_spill] sm:$0xff] %v6831_v56  ;;  %v5386_v56 = vld [vmem:[#allocation9 + $0xa4] sm:$0xf0] }
 0x1d8   : > { %9546 = vst [vmem:[#allocation80_spill] sm:$0xff] %v6833_v57 }
 0x1da   : > { %v1253_v47 = vpop.f32.mrf.mxu2 }
 0x1db   : > { %v1254_v20 = vadd.f32 %v1253_v47, %v6458_v38  ;;  %v1342_v16 = vpop.f32.mrf.mxu3  ;;  %v1354_v21 = vpop.f32.mrf.mxu0  ;;  %v5149_v38 = vld [vmem:[#allocation9 + $0x120] sm:$0xf]  ;;  %v5022_v47 = vor.u32 %v5370_v48, %v5021_v40 }
 0x1dc   : > { %v1355_v55 = vadd.f32 %v1354_v21, %v6836_v62  ;;  %v1443_v23 = vpop.f32.mrf.mxu1  ;;  %v5150_v30 = vor.u32 %v5402_v12, %v5149_v38  ;;  %v5085_v12 = vld [vmem:[#allocation9 + $0xa0] sm:$0xf] }
 0x1dd   : > { %v6840_v6 = vadd.f32 %v1342_v16, %v1254_v20  ;;  %v5418_v20 = vld [vmem:[#allocation9 + $0x1a4] sm:$0xf0]  ;;  %2288 = vmatpush.bf16.msra.mxu0 %v5022_v47  ;;  %v5086_v36 = vor.u32 %v5386_v56, %v5085_v12 }
 0x1de   : > { %v6842_v15 = vadd.f32 %v1443_v23, %v1355_v55  ;;  %1393 = vmatmul.bf16.gmra.mxu0 %v6447_v28  ;;  %2466 = vmatpush.bf16.msra.mxu2 %v5150_v30 }
 0x1df   : > { %9547 = vst [vmem:[#allocation81_spill] sm:$0xff] %v6840_v6  ;;  %1482 = vmatmul.bf16.gmra.mxu1 %v6449_v32  ;;  %1571 = vmatmul.bf16.gmra.mxu2 %v6447_v28  ;;  %v5214_v28 = vor.u32 %v5418_v20, %v5213_v46 }
 0x1e0   : > { %9548 = vst [vmem:[#allocation82_spill] sm:$0xff] %v6842_v15  ;;  %1660 = vmatmul.bf16.gmra.mxu3 %v6449_v32  ;;  %2377 = vmatpush.bf16.msra.mxu1 %v5086_v36 }
 0x1e1   : > { %2555 = vmatpush.bf16.msra.mxu3 %v5214_v28 }
 0x1e2   : > { %v1532_v5 = vpop.f32.mrf.mxu2 }
 0x1e3   : > { %v1533_v16 = vadd.f32 %v1532_v5, %v6848_v25  ;;  %v1621_v21 = vpop.f32.mrf.mxu3  ;;  %v1356_v55 = vpop.f32.mrf.mxu0 }
 0x1e4   : > { %v1357_v22 = vadd.f32 %v1356_v55, %v6836_v62  ;;  %v1445_v23 = vpop.f32.mrf.mxu1 }
 0x1e5   : > { %v6853_v32 = vadd.f32 %v1621_v21, %v1533_v16 }
 0x1e6   : > { %v6855_v38 = vadd.f32 %v1445_v23, %v1357_v22 }
 0x1e7   : > { %9549 = vst [vmem:[#allocation83_spill] sm:$0xff] %v6853_v32 }
 0x1e8   : > { %9550 = vst [vmem:[#allocation84_spill] sm:$0xff] %v6855_v38 }
 0x1ea   : > { %v1534_v40 = vpop.f32.mrf.mxu2 }
 0x1eb   : > { %v1535_v48 = vadd.f32 %v1534_v40, %v6848_v25  ;;  %v1623_v5 = vpop.f32.mrf.mxu3  ;;  %v1359_v6 = vpop.f32.mrf.mxu0 }
 0x1ec   : > { %v1360_v30 = vadd.f32 %v1359_v6, %v6836_v62  ;;  %v1448_v46 = vpop.f32.mrf.mxu1 }
 0x1ed   : > { %v6859_v20 = vadd.f32 %v1623_v5, %v1535_v48 }
 0x1ee   : > { %v6861_v47 = vadd.f32 %v1448_v46, %v1360_v30  ;;  %1398 = vmatmul.bf16.gmra.mxu0 %v6495_v8  ;;  %v5141_v46 = vld [vmem:[#allocation9 + $0x110] sm:$0xf] }
 0x1ef   : > { %9551 = vst [vmem:[#allocation85_spill] sm:$0xff] %v6859_v20  ;;  %1487 = vmatmul.bf16.gmra.mxu1 %v6498_v14  ;;  %1576 = vmatmul.bf16.gmra.mxu2 %v6495_v8 }
 0x1f0   : > { %9552 = vst [vmem:[#allocation86_spill] sm:$0xff] %v6861_v47  ;;  %1665 = vmatmul.bf16.gmra.mxu3 %v6498_v14 }
 0x1f2   : > { %v1537_v36 = vpop.f32.mrf.mxu2 }
 0x1f3   : > { %v1538_v56 = vadd.f32 %v1537_v36, %v6848_v25  ;;  %v1626_v16 = vpop.f32.mrf.mxu3  ;;  %v1361_v21 = vpop.f32.mrf.mxu0  ;;  %v5400_v36 = vld [vmem:[#allocation9 + $0x114] sm:$0xf0] }
 0x1f4   : > { %v1362_v6 = vadd.f32 %v1361_v21, %v6836_v62  ;;  %v1450_v55 = vpop.f32.mrf.mxu1  ;;  %v5368_v21 = vld [vmem:[#allocation9 + $0x14] sm:$0xf0] }
 0x1f5   : > { %v6869_v28 = vadd.f32 %v1626_v16, %v1538_v56  ;;  %v5142_v56 = vor.u32 %v5400_v36, %v5141_v46  ;;  %v5013_v16 = vld [vmem:[#allocation9 + $0x10] sm:$0xf] }
 0x1f6   : > { %v6871_v22 = vadd.f32 %v1450_v55, %v1362_v6  ;;  %v5205_v6 = vld [vmem:[#allocation9 + $0x190] sm:$0xf] }
 0x1f7   : > { %9553 = vst [vmem:[#allocation87_spill] sm:$0xff] %v6869_v28  ;;  %2467 = vmatpush.bf16.msra.mxu2 %v5142_v56  ;;  %v5077_v36 = vld [vmem:[#allocation9 + $0x90] sm:$0xf] }
 0x1f8   : > { %9554 = vst [vmem:[#allocation88_spill] sm:$0xff] %v6871_v22  ;;  %v5078_v1 = vor.u32 %v5384_v63, %v5077_v36 }
 0x1fa   : > { %v1539_v23 = vpop.f32.mrf.mxu2  ;;  %2378 = vmatpush.bf16.msra.mxu1 %v5078_v1 }
 0x1fb   : > { %v1540_v12 = vadd.f32 %v1539_v23, %v6848_v25  ;;  %v1628_v40 = vpop.f32.mrf.mxu3  ;;  %v1364_v48 = vpop.f32.mrf.mxu0  ;;  %v5014_v23 = vor.u32 %v5368_v21, %v5013_v16 }
 0x1fc   : > { %v1365_v8 = vadd.f32 %v1364_v48, %v6836_v62  ;;  %v1453_v14 = vpop.f32.mrf.mxu1 }
 0x1fd   : > { %v6875_v5 = vadd.f32 %v1628_v40, %v1540_v12  ;;  %v5416_v12 = vld [vmem:[#allocation9 + $0x194] sm:$0xf0]  ;;  %2289 = vmatpush.bf16.msra.mxu0 %v5014_v23 }
 0x1fe   : > { %v6877_v30 = vadd.f32 %v1453_v14, %v1365_v8  ;;  %1403 = vmatmul.bf16.gmra.mxu0 %v6519_v44  ;;  %v5206_v14 = vor.u32 %v5416_v12, %v5205_v6 }
 0x1ff   : > { %9555 = vst [vmem:[#allocation89_spill] sm:$0xff] %v6875_v5  ;;  %1492 = vmatmul.bf16.gmra.mxu1 %v6522_v49  ;;  %1581 = vmatmul.bf16.gmra.mxu2 %v6519_v44 }
 0x200   : > { %9556 = vst [vmem:[#allocation90_spill] sm:$0xff] %v6877_v30  ;;  %1670 = vmatmul.bf16.gmra.mxu3 %v6522_v49 }
 0x201   : > { %2556 = vmatpush.bf16.msra.mxu3 %v5206_v14 }
 0x202   : > { %v1542_v55 = vpop.f32.mrf.mxu2 }
 0x203   : > { %v1543_v40 = vadd.f32 %v1542_v55, %v6848_v25  ;;  %v1631_v48 = vpop.f32.mrf.mxu3  ;;  %v1366_v8 = vpop.f32.mrf.mxu0 }
 0x204   : > { %v1367_v57 = vadd.f32 %v1366_v8, %v6836_v62  ;;  %v1455_v44 = vpop.f32.mrf.mxu1 }
 0x205   : > { %v6885_v49 = vadd.f32 %v1631_v48, %v1543_v40 }
 0x206   : > { %v6887_v46 = vadd.f32 %v1455_v44, %v1367_v57 }
 0x207   : > { %9557 = vst [vmem:[#allocation91_spill] sm:$0xff] %v6885_v49 }
 0x208   : > { %9558 = vst [vmem:[#allocation92_spill] sm:$0xff] %v6887_v46 }
 0x20a   : > { %v1544_v16 = vpop.f32.mrf.mxu2 }
 0x20b   : > { %v1545_v21 = vadd.f32 %v1544_v16, %v6848_v25  ;;  %v1633_v55 = vpop.f32.mrf.mxu3  ;;  %v1369_v27 = vpop.f32.mrf.mxu0 }
 0x20c   : > { %v1370_v56 = vadd.f32 %v1369_v27, %v6836_v62  ;;  %v1458_v6 = vpop.f32.mrf.mxu1 }
 0x20d   : > { %v6891_v12 = vadd.f32 %v1633_v55, %v1545_v21 }
 0x20e   : > { %v6893_v23 = vadd.f32 %v1458_v6, %v1370_v56  ;;  %1408 = vmatmul.bf16.gmra.mxu0 %v6567_v45  ;;  %v5133_v6 = vld [vmem:[#allocation9 + $0x100] sm:$0xf] }
 0x20f   : > { %9559 = vst [vmem:[#allocation93_spill] sm:$0xff] %v6891_v12  ;;  %1497 = vmatmul.bf16.gmra.mxu1 %v6570_v52  ;;  %1586 = vmatmul.bf16.gmra.mxu2 %v6567_v45 }
 0x210   : > { %9560 = vst [vmem:[#allocation94_spill] sm:$0xff] %v6893_v23  ;;  %1675 = vmatmul.bf16.gmra.mxu3 %v6570_v52 }
 0x212   : > { %v1547_v63 = vpop.f32.mrf.mxu2 }
 0x213   : > { %v1548_v1 = vadd.f32 %v1547_v63, %v6848_v25  ;;  %v1636_v57 = vpop.f32.mrf.mxu3  ;;  %v1371_v40 = vpop.f32.mrf.mxu0  ;;  %v5398_v63 = vld [vmem:[#allocation9 + $0x104] sm:$0xf0] }
 0x214   : > { %v1372_v27 = vadd.f32 %v1371_v40, %v6836_v62  ;;  %v1460_v48 = vpop.f32.mrf.mxu1  ;;  %v5366_v40 = vld [vmem:[#allocation9 + $0x4] sm:$0xf0] }
 0x215   : > { %v6901_v8 = vadd.f32 %v1636_v57, %v1548_v1  ;;  %v5134_v1 = vor.u32 %v5398_v63, %v5133_v6  ;;  %v5005_v57 = vld [vmem:[#allocation9] sm:$0xf] }
 0x216   : > { %v6903_v14 = vadd.f32 %v1460_v48, %v1372_v27  ;;  %v5197_v27 = vld [vmem:[#allocation9 + $0x180] sm:$0xf] }
 0x217   : > { %9561 = vst [vmem:[#allocation95_spill] sm:$0xff] %v6901_v8  ;;  %2468 = vmatpush.bf16.msra.mxu2 %v5134_v1  ;;  %v5069_v63 = vld [vmem:[#allocation9 + $0x80] sm:$0xf] }
 0x218   : > { %9562 = vst [vmem:[#allocation96_spill] sm:$0xff] %v6903_v14  ;;  %v5070_v39 = vor.u32 %v5382_v37, %v5069_v63 }
 0x21a   : > { %v1549_v44 = vpop.f32.mrf.mxu2  ;;  %2379 = vmatpush.bf16.msra.mxu1 %v5070_v39 }
 0x21b   : > { %v1550_v36 = vadd.f32 %v1549_v44, %v6848_v25  ;;  %v1638_v16 = vpop.f32.mrf.mxu3  ;;  %v1374_v21 = vpop.f32.mrf.mxu0  ;;  %v5006_v44 = vor.u32 %v5366_v40, %v5005_v57 }
 0x21c   : > { %v1375_v45 = vadd.f32 %v1374_v21, %v6836_v62  ;;  %v1463_v52 = vpop.f32.mrf.mxu1 }
 0x21d   : > { %v6907_v55 = vadd.f32 %v1638_v16, %v1550_v36  ;;  %v5414_v36 = vld [vmem:[#allocation9 + $0x184] sm:$0xf0]  ;;  %2290 = vmatpush.bf16.msra.mxu0 %v5006_v44 }
 0x21e   : > { %v6909_v56 = vadd.f32 %v1463_v52, %v1375_v45  ;;  %1413 = vmatmul.bf16.gmra.mxu0 %v6591_v29  ;;  %v5198_v52 = vor.u32 %v5414_v36, %v5197_v27 }
 0x21f   : > { %9563 = vst [vmem:[#allocation97_spill] sm:$0xff] %v6907_v55  ;;  %1502 = vmatmul.bf16.gmra.mxu1 %v6594_v42  ;;  %1591 = vmatmul.bf16.gmra.mxu2 %v6591_v29 }
 0x220   : > { %9564 = vst [vmem:[#allocation98_spill] sm:$0xff] %v6909_v56  ;;  %1680 = vmatmul.bf16.gmra.mxu3 %v6594_v42 }
 0x221   : > { %2557 = vmatpush.bf16.msra.mxu3 %v5198_v52 }
 0x222   : > { %v1552_v48 = vpop.f32.mrf.mxu2 }
 0x223   : > { %v1553_v16 = vadd.f32 %v1552_v48, %v6848_v25  ;;  %v1641_v21 = vpop.f32.mrf.mxu3  ;;  %v1376_v45 = vpop.f32.mrf.mxu0 }
 0x224   : > { %v1377_v31 = vadd.f32 %v1376_v45, %v6836_v62  ;;  %v1465_v29 = vpop.f32.mrf.mxu1 }
 0x225   : > { %v6917_v42 = vadd.f32 %v1641_v21, %v1553_v16 }
 0x226   : > { %v6919_v6 = vadd.f32 %v1465_v29, %v1377_v31 }
 0x227   : > { %9565 = vst [vmem:[#allocation99_spill] sm:$0xff] %v6917_v42 }
 0x228   : > { %9566 = vst [vmem:[#allocation100_spill] sm:$0xff] %v6919_v6 }
 0x22a   : > { %v1554_v57 = vpop.f32.mrf.mxu2 }
 0x22b   : > { %v1555_v40 = vadd.f32 %v1554_v57, %v6848_v25  ;;  %v1643_v48 = vpop.f32.mrf.mxu3  ;;  %v1379_v2 = vpop.f32.mrf.mxu0 }
 0x22c   : > { %v1380_v1 = vadd.f32 %v1379_v2, %v6836_v62  ;;  %v1468_v27 = vpop.f32.mrf.mxu1 }
 0x22d   : > { %v6923_v36 = vadd.f32 %v1643_v48, %v1555_v40 }
 0x22e   : > { %v6925_v44 = vadd.f32 %v1468_v27, %v1380_v1  ;;  %1418 = vmatmul.bf16.gmra.mxu0 %v6639_v9  ;;  %v5411_v27 = vld [vmem:[#allocation9 + $0x174] sm:$0xf] }
 0x22f   : > { %9567 = vst [vmem:[#allocation101_spill] sm:$0xff] %v6923_v36  ;;  %1507 = vmatmul.bf16.gmra.mxu1 %v6642_v26  ;;  %1596 = vmatmul.bf16.gmra.mxu2 %v6639_v9 }
 0x230   : > { %9568 = vst [vmem:[#allocation102_spill] sm:$0xff] %v6925_v44  ;;  %1685 = vmatmul.bf16.gmra.mxu3 %v6642_v26 }
 0x232   : > { %v1557_v37 = vpop.f32.mrf.mxu2 }
 0x233   : > { %v1558_v39 = vadd.f32 %v1557_v37, %v6848_v25  ;;  %v1646_v31 = vpop.f32.mrf.mxu3  ;;  %v1381_v16 = vpop.f32.mrf.mxu0  ;;  %v5191_v37 = vld [vmem:[#allocation9 + $0x178] sm:$0xf0] }
 0x234   : > { %v1382_v2 = vadd.f32 %v1381_v16, %v6836_v62  ;;  %v1470_v21 = vpop.f32.mrf.mxu1  ;;  %v5063_v16 = vld [vmem:[#allocation9 + $0x78] sm:$0xf0] }
 0x235   : > { %v6933_v45 = vadd.f32 %v1646_v31, %v1558_v39  ;;  %v5194_v39 = vor.u32 %v5411_v27, %v5191_v37  ;;  %v5379_v31 = vld [vmem:[#allocation9 + $0x74] sm:$0xf] }
 0x236   : > { %v6935_v52 = vadd.f32 %v1470_v21, %v1382_v2  ;;  %v5427_v2 = vld [vmem:[#allocation9 + $0x1f4] sm:$0xf] }
 0x237   : > { %9569 = vst [vmem:[#allocation103_spill] sm:$0xff] %v6933_v45  ;;  %2817 = vmatpush.bf16.msrb.mxu2 %v5194_v39  ;;  %v5395_v37 = vld [vmem:[#allocation9 + $0xf4] sm:$0xf] }
 0x238   : > { %9570 = vst [vmem:[#allocation104_spill] sm:$0xff] %v6935_v52  ;;  %v5130_v11 = vor.u32 %v5395_v37, %v5127_v13  ;;  %v9209_v37 = vmax.f32 %v6501_v17, 0.0 }
 0x23a   : > { %v1559_v29 = vpop.f32.mrf.mxu2  ;;  %2728 = vmatpush.bf16.msrb.mxu1 %v5130_v11 }
 0x23b   : > { %v1560_v63 = vadd.f32 %v1559_v29, %v6848_v25  ;;  %v1648_v57 = vpop.f32.mrf.mxu3  ;;  %v1384_v40 = vpop.f32.mrf.mxu0  ;;  %v5066_v29 = vor.u32 %v5379_v31, %v5063_v16 }
 0x23c   : > { %v1385_v9 = vadd.f32 %v1384_v40, %v6836_v62  ;;  %v1473_v26 = vpop.f32.mrf.mxu1 }
 0x23d   : > { %v6939_v48 = vadd.f32 %v1648_v57, %v1560_v63  ;;  %v5255_v63 = vld [vmem:[#allocation9 + $0x1f8] sm:$0xf0]  ;;  %2639 = vmatpush.bf16.msrb.mxu0 %v5066_v29 }
 0x23e   : > { %v6941_v1 = vadd.f32 %v1473_v26, %v1385_v9  ;;  %1423 = vmatmul.bf16.gmra.mxu0 %v6663_v41  ;;  %v5258_v26 = vor.u32 %v5427_v2, %v5255_v63 }
 0x23f   : > { %9571 = vst [vmem:[#allocation105_spill] sm:$0xff] %v6939_v48  ;;  %1512 = vmatmul.bf16.gmra.mxu1 %v6666_v43  ;;  %1601 = vmatmul.bf16.gmra.mxu2 %v6663_v41 }
 0x240   : > { %9572 = vst [vmem:[#allocation106_spill] sm:$0xff] %v6941_v1  ;;  %1690 = vmatmul.bf16.gmra.mxu3 %v6666_v43 }
 0x241   : > { %2906 = vmatpush.bf16.msrb.mxu3 %v5258_v26 }
 0x242   : > { %v1562_v21 = vpop.f32.mrf.mxu2 }
 0x243   : > { %v1563_v57 = vadd.f32 %v1562_v21, %v6848_v25  ;;  %v1651_v40 = vpop.f32.mrf.mxu3  ;;  %v1386_v9 = vpop.f32.mrf.mxu0 }
 0x244   : > { %v1387_v7 = vadd.f32 %v1386_v9, %v6836_v62  ;;  %v1475_v41 = vpop.f32.mrf.mxu1 }
 0x245   : > { %v6949_v43 = vadd.f32 %v1651_v40, %v1563_v57 }
 0x246   : > { %v6951_v27 = vadd.f32 %v1475_v41, %v1387_v7  ;;  %v9205_v41 = vmax.f32 %v6483_v59, 0.0  ;;  %v5119_v59 = vld [vmem:[#allocation9 + $0xe8] sm:$0xf0] }
 0x247   : > { %9573 = vst [vmem:[#allocation107_spill] sm:$0xff] %v6949_v43 }
 0x248   : > { %9574 = vst [vmem:[#allocation108_spill] sm:$0xff] %v6951_v27 }
 0x24a   : > { %v1564_v31 = vpop.f32.mrf.mxu2 }
 0x24b   : > { %v1565_v16 = vadd.f32 %v1564_v31, %v6848_v25  ;;  %v1653_v21 = vpop.f32.mrf.mxu3  ;;  %v1389_v19 = vpop.f32.mrf.mxu0 }
 0x24c   : > { %v1390_v39 = vadd.f32 %v1389_v19, %v6836_v62  ;;  %v1478_v2 = vpop.f32.mrf.mxu1 }
 0x24d   : > { %v6955_v63 = vadd.f32 %v1653_v21, %v1565_v16  ;;  %v9207_v21 = vmax.f32 %v6481_v58, 0.0 }
 0x24e   : > { %v6957_v29 = vadd.f32 %v1478_v2, %v1390_v39  ;;  %1428 = vmatmul.bf16.gmra.mxu0 %v6687_v54  ;;  %v9206_v39 = vmax.f32 %v6842_v15, 0.0 }
 0x24f   : > { %9575 = vst [vmem:[#allocation109_spill] sm:$0xff] %v6955_v63  ;;  %1517 = vmatmul.bf16.gmra.mxu1 %v6690_v10  ;;  %1606 = vmatmul.bf16.gmra.mxu2 %v6687_v54  ;;  %v9208_v54 = vmax.f32 %v6855_v38, 0.0  ;;  %v6989_v31 = vpack.c.bf16 %v9209_v37, %v9207_v21  ;;  %v5183_v21 = vld [vmem:[#allocation9 + $0x168] sm:$0xf0]  ;;  %v5425_v37 = vld [vmem:[#allocation9 + $0x1e4] sm:$0xf] }
 0x250   : > { %9576 = vst [vmem:[#allocation110_spill] sm:$0xff] %v6957_v29  ;;  %1695 = vmatmul.bf16.gmra.mxu3 %v6690_v10  ;;  %v9204_v10 = vmax.f32 %v6452_v35, 0.0 }
 0x252   : > { %v1567_v13 = vpop.f32.mrf.mxu2 }
 0x253   : > { %v1568_v11 = vadd.f32 %v1567_v13, %v6848_v25  ;;  %v1656_v7 = vpop.f32.mrf.mxu3  ;;  %v1391_v57 = vpop.f32.mrf.mxu0 }
 0x254   : > { %v1392_v19 = vadd.f32 %v1391_v57, %v6836_v62  ;;  %v1480_v40 = vpop.f32.mrf.mxu1  ;;  %v9212_v57 = vmax.f32 %v6853_v32, 0.0 }
 0x255   : > { %v6965_v9 = vadd.f32 %v1656_v7, %v1568_v11  ;;  %v6981_v7 = vpack.c.bf16 %v9205_v41, %v9204_v10  ;;  %v9580_v10 = vmax.f32 %v6859_v20, 0.0 }
 0x256   : > { %v6967_v26 = vadd.f32 %v1480_v40, %v1392_v19 }
 0x257   : > { %9577 = vst [vmem:[#allocation111_spill] sm:$0xff] %v6965_v9 }
 0x258   : > { %9578 = vst [vmem:[#allocation112_spill] sm:$0xff] %v6967_v26 }
 0x25a   : > { %v1569_v16 = vpop.f32.mrf.mxu2 }
 0x25b   : > { %v1570_v2 = vadd.f32 %v1569_v16, %v6848_v25  ;;  %v1658_v13 = vpop.f32.mrf.mxu3  ;;  %v1394_v11 = vpop.f32.mrf.mxu0  ;;  %v6995_v16 = vpack.c.bf16 %v9208_v54, %v9206_v39  ;;  %v5409_v39 = vld [vmem:[#allocation9 + $0x164] sm:$0xf]  ;;  %v5055_v54 = vld [vmem:[#allocation9 + $0x68] sm:$0xf0] }
 0x25c   : > { %v1395_v19 = vadd.f32 %v1394_v11, %v6836_v62  ;;  %v1483_v40 = vpop.f32.mrf.mxu1  ;;  %v7003_v11 = vpack.c.bf16 %v9580_v10, %v9212_v57  ;;  %v5247_v10 = vld [vmem:[#allocation9 + $0x1e8] sm:$0xf0] }
 0x25d   : > { %v6997_v35 = vadd.f32 %v1658_v13, %v1570_v2  ;;  %v5186_v2 = vor.u32 %v5409_v39, %v5183_v21  ;;  %v5377_v13 = vld [vmem:[#allocation9 + $0x64] sm:$0xf]  ;;  %v5250_v58 = vor.u32 %v5425_v37, %v5247_v10  ;;  %v9224_v37 = vmax.f32 %v6503_v18, 0.0 }
 0x25e   : > { %9581 = vst [vmem:[#allocation114_spill] sm:$0xff] %v7003_v11  ;;  %v7005_v41 = vadd.f32 %v1483_v40, %v1395_v19  ;;  %2291 = vmatmul.bf16.vlgmr.msra.gmra.mxu0 %v6981_v7  ;;  %v5058_v15 = vor.u32 %v5377_v13, %v5055_v54  ;;  %v5393_v39 = vld [vmem:[#allocation9 + $0xe4] sm:$0xf]  ;;  %v9221_v54 = vmax.f32 %v6513_v34, 0.0  ;;  %v9598_v18 = vmax.f32 %v6877_v30, 0.0 }
 0x25f   : > { %9579 = vst [vmem:[#allocation113_spill] sm:$0xff] %v6997_v35  ;;  %2380 = vmatmul.bf16.vlgmr.msra.gmra.mxu1 %v6989_v31  ;;  %2469 = vmatmul.bf16.vlgmr.msra.gmra.mxu2 %v6995_v16  ;;  %v5122_v13 = vor.u32 %v5393_v39, %v5119_v59  ;;  %v9225_v59 = vmax.f32 %v6869_v28, 0.0  ;;  %v9592_v28 = vld [vmem:[#allocation27_spill] sm:$0xff] }
 0x260   : > { %9582 = vst [vmem:[#allocation115_spill] sm:$0xff] %v7005_v41  ;;  %2558 = vmatmul.bf16.vlgmr.msra.gmra.mxu3 %v7003_v11  ;;  %2818 = vmatpush.bf16.msrb.mxu2 %v5186_v2  ;;  %v9220_v11 = vmax.f32 %v6871_v22, 0.0  ;;  %v7031_v39 = vpack.c.bf16 %v9221_v54, %v9224_v37  ;;  %v9591_v22 = vld [vmem:[#allocation26_spill] sm:$0xff] }
 0x261   : > { %2640 = vmatpush.bf16.msrb.mxu0 %v5058_v15  ;;  %2907 = vmatpush.bf16.msrb.mxu3 %v5250_v58  ;;  %v9223_v15 = vmax.f32 %v6511_v33, 0.0  ;;  %v9222_v58 = vmax.f32 %v6861_v47, 0.0  ;;  %v9235_v47 = vmax.f32 %v9592_v28, 0.0 }
 0x262   : > { %v1572_v32 = vpop.f32.mrf.mxu2  ;;  %2729 = vmatpush.bf16.msrb.mxu1 %v5122_v13 }
 0x263   : > { %v1573_v19 = vadd.f32 %v1572_v32, %v6848_v25  ;;  %v1661_v40 = vpop.f32.mrf.mxu3  ;;  %v1396_v57 = vpop.f32.mrf.mxu0  ;;  %v9219_v32 = vmax.f32 %v6525_v53, 0.0  ;;  %v9236_v53 = vmax.f32 %v9591_v22, 0.0  ;;  %v5111_v22 = vld [vmem:[#allocation9 + $0xd8] sm:$0xf0] }
 0x264   : > { %v1397_v20 = vadd.f32 %v1396_v57, %v6836_v62  ;;  %v1485_v38 = vpop.f32.mrf.mxu1 }
 0x265   : > { %v7013_v17 = vadd.f32 %v1661_v40, %v1573_v19 }
 0x266   : > { %v7015_v21 = vadd.f32 %v1485_v38, %v1397_v20 }
 0x267   : > { %9583 = vst [vmem:[#allocation116_spill] sm:$0xff] %v7013_v17 }
 0x268   : > { %9584 = vst [vmem:[#allocation117_spill] sm:$0xff] %v7015_v21 }
 0x26a   : > { %v1574_v2 = vpop.f32.mrf.mxu2 }
 0x26b   : > { %v1575_v38 = vadd.f32 %v1574_v2, %v6848_v25  ;;  %v1663_v20 = vpop.f32.mrf.mxu3  ;;  %v1399_v10 = vpop.f32.mrf.mxu0  ;;  %v7039_v2 = vpack.c.bf16 %v9219_v32, %v9223_v15 }
 0x26c   : > { %v1400_v19 = vadd.f32 %v1399_v10, %v6836_v62  ;;  %v1488_v40 = vpop.f32.mrf.mxu1  ;;  %v7045_v10 = vpack.c.bf16 %v9220_v11, %v9222_v58 }
 0x26d   : > { %v7033_v13 = vadd.f32 %v1663_v20, %v1575_v38  ;;  %v9587_v38 = vmax.f32 %v6875_v5, 0.0  ;;  %v9593_v5 = vmax.f32 %v6555_v24, 0.0 }
 0x26e   : > { %v7047_v57 = vadd.f32 %v1488_v40, %v1400_v19  ;;  %2296 = vmatmul.bf16.gmra.mxu0 %v7031_v39 }
 0x26f   : > { %9585 = vst [vmem:[#allocation118_spill] sm:$0xff] %v7033_v13  ;;  %v7054_v20 = vpack.c.bf16 %v9587_v38, %v9225_v59  ;;  %2385 = vmatmul.bf16.gmra.mxu1 %v7039_v2  ;;  %2474 = vmatmul.bf16.gmra.mxu2 %v7045_v10  ;;  %v7079_v33 = vpack.c.bf16 %v9593_v5, %v9236_v53  ;;  %v9602_v5 = vmax.f32 %v6885_v49, 0.0 }
 0x270   : > { %9586 = vst [vmem:[#allocation119_spill] sm:$0xff] %v7047_v57 }
 0x271   : > { %9588 = vst [vmem:[#allocation120_spill] sm:$0xff] %v7054_v20  ;;  %2563 = vmatmul.bf16.gmra.mxu3 %v7054_v20 }
 0x272   : > { %v1577_v32 = vpop.f32.mrf.mxu2  ;;  %9594 = vst [vmem:[#allocation123_spill] sm:$0xff] %v7079_v33 }
 0x273   : > { %v1578_v11 = vadd.f32 %v1577_v32, %v6848_v25  ;;  %v1666_v54 = vpop.f32.mrf.mxu3  ;;  %v1401_v19 = vpop.f32.mrf.mxu0 }
 0x274   : > { %v1402_v40 = vadd.f32 %v1401_v19, %v6836_v62  ;;  %v1490_v58 = vpop.f32.mrf.mxu1  ;;  %v9596_v19 = vmax.f32 %v6573_v61, 0.0  ;;  %v5239_v61 = vld [vmem:[#allocation9 + $0x1d8] sm:$0xf0] }
 0x275   : > { %v7061_v15 = vadd.f32 %v1666_v54, %v1578_v11 }
 0x276   : > { %v7063_v37 = vadd.f32 %v1490_v58, %v1402_v40  ;;  %v9599_v40 = vmax.f32 %v6887_v46, 0.0 }
 0x277   : > { %9589 = vst [vmem:[#allocation121_spill] sm:$0xff] %v7061_v15 }
 0x278   : > { %9590 = vst [vmem:[#allocation122_spill] sm:$0xff] %v7063_v37 }
 0x27a   : > { %v1579_v32 = vpop.f32.mrf.mxu2 }
 0x27b   : > { %v1580_v11 = vadd.f32 %v1579_v32, %v6848_v25  ;;  %v1668_v54 = vpop.f32.mrf.mxu3  ;;  %v1404_v58 = vpop.f32.mrf.mxu0  ;;  %v7087_v32 = vpack.c.bf16 %v9596_v19, %v9235_v47  ;;  %v5407_v19 = vld [vmem:[#allocation9 + $0x154] sm:$0xf]  ;;  %v5175_v47 = vld [vmem:[#allocation9 + $0x158] sm:$0xf0] }
 0x27c   : > { %v1405_v38 = vadd.f32 %v1404_v58, %v6836_v62  ;;  %v1493_v59 = vpop.f32.mrf.mxu1  ;;  %v7093_v58 = vpack.c.bf16 %v9599_v40, %v9598_v18  ;;  %v5178_v18 = vor.u32 %v5407_v19, %v5175_v47  ;;  %v5375_v40 = vld [vmem:[#allocation9 + $0x54] sm:$0xf] }
 0x27d   : > { %v7081_v34 = vadd.f32 %v1668_v54, %v1580_v11  ;;  %9597 = vst [vmem:[#allocation125_spill] sm:$0xff] %v7087_v32  ;;  %v9603_v11 = vmax.f32 %v6891_v12, 0.0  ;;  %v5391_v19 = vld [vmem:[#allocation9 + $0xd4] sm:$0xf] }
 0x27e   : > { %9600 = vst [vmem:[#allocation126_spill] sm:$0xff] %v7093_v58  ;;  %v7095_v20 = vadd.f32 %v1493_v59, %v1405_v38  ;;  %2301 = vmatmul.bf16.gmra.mxu0 %v7079_v33  ;;  %v5047_v59 = vld [vmem:[#allocation9 + $0x58] sm:$0xf0]  ;;  %v5423_v38 = vld [vmem:[#allocation9 + $0x1d4] sm:$0xf]  ;;  %2819 = vmatpush.bf16.msrb.mxu2 %v5178_v18  ;;  %v9609_v18 = vld [vmem:[#allocation30_spill] sm:$0xff] }
 0x27f   : > { %9595 = vst [vmem:[#allocation124_spill] sm:$0xff] %v7081_v34  ;;  %v7102_v54 = vpack.c.bf16 %v9603_v11, %v9602_v5  ;;  %2390 = vmatmul.bf16.gmra.mxu1 %v7087_v32  ;;  %2479 = vmatmul.bf16.gmra.mxu2 %v7093_v58  ;;  %v5050_v46 = vor.u32 %v5375_v40, %v5047_v59  ;;  %v9608_v58 = vld [vmem:[#allocation33_spill] sm:$0xff] }
 0x280   : > { %9601 = vst [vmem:[#allocation127_spill] sm:$0xff] %v7095_v20  ;;  %v5242_v11 = vor.u32 %v5423_v38, %v5239_v61  ;;  %v5114_v59 = vor.u32 %v5391_v19, %v5111_v22  ;;  %v9252_v61 = vmax.f32 %v9609_v18, 0.0  ;;  %v9613_v32 = vmax.f32 %v9608_v58, 0.0  ;;  %v9626_v18 = vld [vmem:[#allocation35_spill] sm:$0xff] }
 0x281   : > { %9604 = vst [vmem:[#allocation128_spill] sm:$0xff] %v7102_v54  ;;  %2568 = vmatmul.bf16.gmra.mxu3 %v7102_v54  ;;  %2641 = vmatpush.bf16.msrb.mxu0 %v5050_v46  ;;  %v9607_v54 = vld [vmem:[#allocation32_spill] sm:$0xff]  ;;  %v9615_v22 = vmax.f32 %v6903_v14, 0.0 }
 0x282   : > { %v1582_v53 = vpop.f32.mrf.mxu2  ;;  %2908 = vmatpush.bf16.msrb.mxu3 %v5242_v11  ;;  %v9249_v40 = vmax.f32 %v9607_v54, 0.0  ;;  %2730 = vmatpush.bf16.msrb.mxu1 %v5114_v59 }
 0x283   : > { %v1583_v24 = vadd.f32 %v1582_v53, %v6848_v25  ;;  %v1671_v12 = vpop.f32.mrf.mxu3  ;;  %v1406_v5 = vpop.f32.mrf.mxu0 }
 0x284   : > { %v1407_v49 = vadd.f32 %v1406_v5, %v6836_v62  ;;  %v1495_v30 = vpop.f32.mrf.mxu1  ;;  %v7127_v38 = vpack.c.bf16 %v9249_v40, %v9252_v61  ;;  %v9618_v40 = vmax.f32 %v6901_v8, 0.0  ;;  %v9625_v8 = vld [vmem:[#allocation34_spill] sm:$0xff] }
 0x285   : > { %v7109_v28 = vadd.f32 %v1671_v12, %v1583_v24  ;;  %v9610_v24 = vld [vmem:[#allocation31_spill] sm:$0xff] }
 0x286   : > { %v7111_v47 = vadd.f32 %v1495_v30, %v1407_v49  ;;  %v9251_v46 = vmax.f32 %v9610_v24, 0.0  ;;  %v9250_v30 = vmax.f32 %v6893_v23, 0.0  ;;  %9611 = vst [vmem:[#allocation131_spill] sm:$0xff] %v7127_v38  ;;  %v9266_v23 = vmax.f32 %v9625_v8, 0.0 }
 0x287   : > { %9605 = vst [vmem:[#allocation129_spill] sm:$0xff] %v7109_v28 }
 0x288   : > { %9606 = vst [vmem:[#allocation130_spill] sm:$0xff] %v7111_v47 }
 0x28a   : > { %v1584_v5 = vpop.f32.mrf.mxu2 }
 0x28b   : > { %v1585_v49 = vadd.f32 %v1584_v5, %v6848_v25  ;;  %v1673_v12 = vpop.f32.mrf.mxu3  ;;  %v1409_v11 = vpop.f32.mrf.mxu0  ;;  %v7135_v5 = vpack.c.bf16 %v9613_v32, %v9251_v46 }
 0x28c   : > { %v1410_v19 = vadd.f32 %v1409_v11, %v6836_v62  ;;  %v1498_v53 = vpop.f32.mrf.mxu1  ;;  %v7141_v11 = vpack.c.bf16 %v9615_v22, %v9250_v30 }
 0x28d   : > { %v7129_v59 = vadd.f32 %v1673_v12, %v1585_v49  ;;  %9614 = vst [vmem:[#allocation133_spill] sm:$0xff] %v7135_v5  ;;  %v9619_v49 = vmax.f32 %v6907_v55, 0.0  ;;  %v9624_v55 = vld [vmem:[#allocation37_spill] sm:$0xff] }
 0x28e   : > { %9616 = vst [vmem:[#allocation134_spill] sm:$0xff] %v7141_v11  ;;  %v7143_v33 = vadd.f32 %v1498_v53, %v1410_v19  ;;  %2306 = vmatmul.bf16.gmra.mxu0 %v7127_v38 }
 0x28f   : > { %9612 = vst [vmem:[#allocation132_spill] sm:$0xff] %v7129_v59  ;;  %v7150_v12 = vpack.c.bf16 %v9619_v49, %v9618_v40  ;;  %2395 = vmatmul.bf16.gmra.mxu1 %v7135_v5  ;;  %2484 = vmatmul.bf16.gmra.mxu2 %v7141_v11  ;;  %v9623_v40 = vld [vmem:[#allocation36_spill] sm:$0xff]  ;;  %v9632_v5 = vmax.f32 %v6909_v56, 0.0 }
 0x290   : > { %9617 = vst [vmem:[#allocation135_spill] sm:$0xff] %v7143_v33  ;;  %v9627_v54 = vmax.f32 %v9623_v40, 0.0  ;;  %v5103_v40 = vld [vmem:[#allocation9 + $0xc8] sm:$0xf0] }
 0x291   : > { %9620 = vst [vmem:[#allocation136_spill] sm:$0xff] %v7150_v12  ;;  %2573 = vmatmul.bf16.gmra.mxu3 %v7150_v12  ;;  %v9265_v12 = vmax.f32 %v9626_v18, 0.0  ;;  %v5231_v18 = vld [vmem:[#allocation9 + $0x1c8] sm:$0xf0] }
 0x292   : > { %v1587_v32 = vpop.f32.mrf.mxu2  ;;  %v7175_v11 = vpack.c.bf16 %v9627_v54, %v9266_v23  ;;  %v9636_v54 = vmax.f32 %v6917_v42, 0.0 }
 0x293   : > { %v1588_v22 = vadd.f32 %v1587_v32, %v6848_v25  ;;  %v1676_v30 = vpop.f32.mrf.mxu3  ;;  %v1411_v53 = vpop.f32.mrf.mxu0 }
 0x294   : > { %v1412_v19 = vadd.f32 %v1411_v53, %v6836_v62  ;;  %v1500_v46 = vpop.f32.mrf.mxu1  ;;  %9628 = vst [vmem:[#allocation139_spill] sm:$0xff] %v7175_v11  ;;  %v9630_v53 = vmax.f32 %v9624_v55, 0.0 }
 0x295   : > { %v7157_v61 = vadd.f32 %v1676_v30, %v1588_v22 }
 0x296   : > { %v7159_v14 = vadd.f32 %v1500_v46, %v1412_v19  ;;  %v9633_v19 = vmax.f32 %v6919_v6, 0.0 }
 0x297   : > { %9621 = vst [vmem:[#allocation137_spill] sm:$0xff] %v7157_v61 }
 0x298   : > { %9622 = vst [vmem:[#allocation138_spill] sm:$0xff] %v7159_v14 }
 0x29a   : > { %v1589_v32 = vpop.f32.mrf.mxu2 }
 0x29b   : > { %v1590_v30 = vadd.f32 %v1589_v32, %v6848_v25  ;;  %v1678_v22 = vpop.f32.mrf.mxu3  ;;  %v1414_v46 = vpop.f32.mrf.mxu0  ;;  %v7183_v32 = vpack.c.bf16 %v9630_v53, %v9265_v12  ;;  %v5405_v53 = vld [vmem:[#allocation9 + $0x144] sm:$0xf]  ;;  %v5167_v12 = vld [vmem:[#allocation9 + $0x148] sm:$0xf0] }
 0x29c   : > { %v1415_v49 = vadd.f32 %v1414_v46, %v6836_v62  ;;  %v1503_v58 = vpop.f32.mrf.mxu1  ;;  %v7189_v46 = vpack.c.bf16 %v9633_v19, %v9632_v5  ;;  %v5170_v5 = vor.u32 %v5405_v53, %v5167_v12  ;;  %v5373_v19 = vld [vmem:[#allocation9 + $0x44] sm:$0xf] }
 0x29d   : > { %v7177_v24 = vadd.f32 %v1678_v22, %v1590_v30  ;;  %9631 = vst [vmem:[#allocation141_spill] sm:$0xff] %v7183_v32  ;;  %v9637_v30 = vmax.f32 %v6923_v36, 0.0  ;;  %v5389_v53 = vld [vmem:[#allocation9 + $0xc4] sm:$0xf] }
 0x29e   : > { %9634 = vst [vmem:[#allocation142_spill] sm:$0xff] %v7189_v46  ;;  %v7191_v38 = vadd.f32 %v1503_v58, %v1415_v49  ;;  %2311 = vmatmul.bf16.gmra.mxu0 %v7175_v11  ;;  %v5039_v58 = vld [vmem:[#allocation9 + $0x48] sm:$0xf0]  ;;  %v5421_v49 = vld [vmem:[#allocation9 + $0x1c4] sm:$0xf]  ;;  %2820 = vmatpush.bf16.msrb.mxu2 %v5170_v5 }
 0x29f   : > { %9629 = vst [vmem:[#allocation140_spill] sm:$0xff] %v7177_v24  ;;  %v7198_v22 = vpack.c.bf16 %v9637_v30, %v9636_v54  ;;  %2400 = vmatmul.bf16.gmra.mxu1 %v7183_v32  ;;  %2489 = vmatmul.bf16.gmra.mxu2 %v7189_v46  ;;  %v5042_v56 = vor.u32 %v5373_v19, %v5039_v58  ;;  %v9642_v46 = vld [vmem:[#allocation41_spill] sm:$0xff]  ;;  %v9643_v5 = vld [vmem:[#allocation38_spill] sm:$0xff] }
 0x2a0   : > { %9635 = vst [vmem:[#allocation143_spill] sm:$0xff] %v7191_v38  ;;  %v5234_v30 = vor.u32 %v5421_v49, %v5231_v18  ;;  %v5106_v58 = vor.u32 %v5389_v53, %v5103_v40  ;;  %v9282_v18 = vmax.f32 %v9643_v5, 0.0  ;;  %v9646_v32 = vmax.f32 %v9642_v46, 0.0  ;;  %v9655_v46 = vld [vmem:[#allocation42_spill] sm:$0xff] }
 0x2a1   : > { %9638 = vst [vmem:[#allocation144_spill] sm:$0xff] %v7198_v22  ;;  %2578 = vmatmul.bf16.gmra.mxu3 %v7198_v22  ;;  %2642 = vmatpush.bf16.msrb.mxu0 %v5042_v56  ;;  %v9641_v22 = vld [vmem:[#allocation40_spill] sm:$0xff]  ;;  %v9647_v40 = vmax.f32 %v6935_v52, 0.0 }
 0x2a2   : > { %v1592_v23 = vpop.f32.mrf.mxu2  ;;  %2909 = vmatpush.bf16.msrb.mxu3 %v5234_v30  ;;  %v9279_v19 = vmax.f32 %v9641_v22, 0.0  ;;  %2731 = vmatpush.bf16.msrb.mxu1 %v5106_v58  ;;  %v9294_v22 = vmax.f32 %v9655_v46, 0.0  ;;  %v5095_v46 = vld [vmem:[#allocation9 + $0xb8] sm:$0xf0] }
 0x2a3   : > { %v1593_v42 = vadd.f32 %v1592_v23, %v6848_v25  ;;  %v1681_v8 = vpop.f32.mrf.mxu3  ;;  %v1416_v54 = vpop.f32.mrf.mxu0 }
 0x2a4   : > { %v1417_v36 = vadd.f32 %v1416_v54, %v6836_v62  ;;  %v1505_v6 = vpop.f32.mrf.mxu1  ;;  %v7223_v49 = vpack.c.bf16 %v9279_v19, %v9282_v18  ;;  %v9650_v19 = vmax.f32 %v6933_v45, 0.0 }
 0x2a5   : > { %v7205_v55 = vadd.f32 %v1681_v8, %v1593_v42  ;;  %v9644_v8 = vld [vmem:[#allocation39_spill] sm:$0xff]  ;;  %v9280_v42 = vmax.f32 %v6925_v44, 0.0 }
 0x2a6   : > { %v7207_v12 = vadd.f32 %v1505_v6, %v1417_v36  ;;  %v9281_v56 = vmax.f32 %v9644_v8, 0.0  ;;  %v9656_v44 = vld [vmem:[#allocation43_spill] sm:$0xff] }
 0x2a7   : > { %9639 = vst [vmem:[#allocation145_spill] sm:$0xff] %v7205_v55  ;;  %v9293_v8 = vmax.f32 %v9656_v44, 0.0 }
 0x2a8   : > { %9640 = vst [vmem:[#allocation146_spill] sm:$0xff] %v7207_v12 }
 0x2aa   : > { %v1594_v54 = vpop.f32.mrf.mxu2 }
 0x2ab   : > { %v1595_v6 = vadd.f32 %v1594_v54, %v6848_v25  ;;  %v1683_v36 = vpop.f32.mrf.mxu3  ;;  %v1419_v30 = vpop.f32.mrf.mxu0  ;;  %v7231_v54 = vpack.c.bf16 %v9646_v32, %v9281_v56 }
 0x2ac   : > { %v1420_v53 = vadd.f32 %v1419_v30, %v6836_v62  ;;  %v1508_v23 = vpop.f32.mrf.mxu1  ;;  %v7237_v30 = vpack.c.bf16 %v9647_v40, %v9280_v42 }
 0x2ad   : > { %v7225_v58 = vadd.f32 %v1683_v36, %v1595_v6  ;;  %v9651_v6 = vmax.f32 %v6939_v48, 0.0  ;;  %v9657_v48 = vmax.f32 %v6681_v3, 0.0 }
 0x2ae   : > { %9648 = vst [vmem:[#allocation148_spill] sm:$0xff] %v7237_v30  ;;  %v7239_v11 = vadd.f32 %v1508_v23, %v1420_v53  ;;  %2316 = vmatmul.bf16.gmra.mxu0 %v7223_v49 }
 0x2af   : > { %9645 = vst [vmem:[#allocation147_spill] sm:$0xff] %v7225_v58  ;;  %v7246_v36 = vpack.c.bf16 %v9651_v6, %v9650_v19  ;;  %2405 = vmatmul.bf16.gmra.mxu1 %v7231_v54  ;;  %2494 = vmatmul.bf16.gmra.mxu2 %v7237_v30  ;;  %v7271_v5 = vpack.c.bf16 %v9657_v48, %v9294_v22  ;;  %v9666_v48 = vmax.f32 %v6949_v43, 0.0 }
 0x2b0   : > { %9649 = vst [vmem:[#allocation149_spill] sm:$0xff] %v7239_v11 }
 0x2b1   : > { %9652 = vst [vmem:[#allocation150_spill] sm:$0xff] %v7246_v36  ;;  %2583 = vmatmul.bf16.gmra.mxu3 %v7246_v36  ;;  %v9662_v36 = vmax.f32 %v6941_v1, 0.0 }
 0x2b2   : > { %v1597_v32 = vpop.f32.mrf.mxu2  ;;  %9658 = vst [vmem:[#allocation153_spill] sm:$0xff] %v7271_v5 }
 0x2b3   : > { %v1598_v40 = vadd.f32 %v1597_v32, %v6848_v25  ;;  %v1686_v42 = vpop.f32.mrf.mxu3  ;;  %v1421_v23 = vpop.f32.mrf.mxu0 }
 0x2b4   : > { %v1422_v53 = vadd.f32 %v1421_v23, %v6836_v62  ;;  %v1510_v56 = vpop.f32.mrf.mxu1  ;;  %v9660_v23 = vmax.f32 %v6693_v60, 0.0  ;;  %v5223_v60 = vld [vmem:[#allocation9 + $0x1b8] sm:$0xf0] }
 0x2b5   : > { %v7253_v18 = vadd.f32 %v1686_v42, %v1598_v40 }
 0x2b6   : > { %v7255_v52 = vadd.f32 %v1510_v56, %v1422_v53  ;;  %v9663_v53 = vmax.f32 %v6951_v27, 0.0 }
 0x2b7   : > { %9653 = vst [vmem:[#allocation151_spill] sm:$0xff] %v7253_v18 }
 0x2b8   : > { %9654 = vst [vmem:[#allocation152_spill] sm:$0xff] %v7255_v52 }
 0x2ba   : > { %v1599_v32 = vpop.f32.mrf.mxu2 }
 0x2bb   : > { %v1600_v42 = vadd.f32 %v1599_v32, %v6848_v25  ;;  %v1688_v40 = vpop.f32.mrf.mxu3  ;;  %v1424_v56 = vpop.f32.mrf.mxu0  ;;  %v7279_v32 = vpack.c.bf16 %v9660_v23, %v9293_v8  ;;  %v5403_v23 = vld [vmem:[#allocation9 + $0x134] sm:$0xf]  ;;  %v5159_v8 = vld [vmem:[#allocation9 + $0x138] sm:$0xf0] }
 0x2bc   : > { %v1425_v19 = vadd.f32 %v1424_v56, %v6836_v62  ;;  %v1513_v6 = vpop.f32.mrf.mxu1  ;;  %v7285_v56 = vpack.c.bf16 %v9663_v53, %v9662_v36  ;;  %v5162_v36 = vor.u32 %v5403_v23, %v5159_v8  ;;  %v5371_v53 = vld [vmem:[#allocation9 + $0x34] sm:$0xf] }
 0x2bd   : > { %v7273_v45 = vadd.f32 %v1688_v40, %v1600_v42  ;;  %9661 = vst [vmem:[#allocation155_spill] sm:$0xff] %v7279_v32  ;;  %v9667_v42 = vmax.f32 %v6955_v63, 0.0  ;;  %v5387_v23 = vld [vmem:[#allocation9 + $0xb4] sm:$0xf] }
 0x2be   : > { %9664 = vst [vmem:[#allocation156_spill] sm:$0xff] %v7285_v56  ;;  %v7287_v30 = vadd.f32 %v1513_v6, %v1425_v19  ;;  %2321 = vmatmul.bf16.gmra.mxu0 %v7271_v5  ;;  %v5031_v19 = vld [vmem:[#allocation9 + $0x38] sm:$0xf0]  ;;  %v5419_v6 = vld [vmem:[#allocation9 + $0x1b4] sm:$0xf]  ;;  %2821 = vmatpush.bf16.msrb.mxu2 %v5162_v36  ;;  %v9673_v36 = vld [vmem:[#allocation46_spill] sm:$0xff] }
 0x2bf   : > { %9659 = vst [vmem:[#allocation154_spill] sm:$0xff] %v7273_v45  ;;  %v7294_v40 = vpack.c.bf16 %v9667_v42, %v9666_v48  ;;  %2410 = vmatmul.bf16.gmra.mxu1 %v7279_v32  ;;  %2499 = vmatmul.bf16.gmra.mxu2 %v7285_v56  ;;  %v5034_v27 = vor.u32 %v5371_v53, %v5031_v19  ;;  %v9672_v56 = vld [vmem:[#allocation49_spill] sm:$0xff] }
 0x2c0   : > { %9665 = vst [vmem:[#allocation157_spill] sm:$0xff] %v7287_v30  ;;  %v5226_v42 = vor.u32 %v5419_v6, %v5223_v60  ;;  %v5098_v19 = vor.u32 %v5387_v23, %v5095_v46  ;;  %v9307_v60 = vmax.f32 %v9673_v36, 0.0  ;;  %v9676_v32 = vmax.f32 %v9672_v56, 0.0 }
 0x2c1   : > { %9668 = vst [vmem:[#allocation158_spill] sm:$0xff] %v7294_v40  ;;  %2588 = vmatmul.bf16.gmra.mxu3 %v7294_v40  ;;  %2643 = vmatpush.bf16.msrb.mxu0 %v5034_v27  ;;  %v9671_v40 = vld [vmem:[#allocation48_spill] sm:$0xff]  ;;  %v9677_v46 = vmax.f32 %v6967_v26, 0.0  ;;  %v9320_v36 = vmax.f32 %v6719_v51, 0.0  ;;  %v9690_v26 = vmax.f32 %v7015_v21, 0.0 }
 0x2c2   : > { %v1602_v22 = vpop.f32.mrf.mxu2  ;;  %2910 = vmatpush.bf16.msrb.mxu3 %v5226_v42  ;;  %v9310_v53 = vmax.f32 %v9671_v40, 0.0  ;;  %2732 = vmatpush.bf16.msrb.mxu1 %v5098_v19 }
 0x2c3   : > { %v1603_v3 = vadd.f32 %v1602_v22, %v6848_v25  ;;  %v1691_v63 = vpop.f32.mrf.mxu3  ;;  %v1426_v48 = vpop.f32.mrf.mxu0 }
 0x2c4   : > { %v1427_v43 = vadd.f32 %v1426_v48, %v6836_v62  ;;  %v1515_v1 = vpop.f32.mrf.mxu1  ;;  %v7319_v6 = vpack.c.bf16 %v9310_v53, %v9307_v60  ;;  %v9679_v60 = vmax.f32 %v6965_v9, 0.0 }
 0x2c5   : > { %v7301_v44 = vadd.f32 %v1691_v63, %v1603_v3  ;;  %v9674_v3 = vld [vmem:[#allocation47_spill] sm:$0xff] }
 0x2c6   : > { %v7303_v8 = vadd.f32 %v1515_v1, %v1427_v43  ;;  %v9309_v27 = vmax.f32 %v9674_v3, 0.0  ;;  %v9308_v1 = vmax.f32 %v6957_v29, 0.0  ;;  %v9685_v3 = vmax.f32 %v6721_v0, 0.0 }
 0x2c7   : > { %9669 = vst [vmem:[#allocation159_spill] sm:$0xff] %v7301_v44 }
 0x2c8   : > { %9670 = vst [vmem:[#allocation160_spill] sm:$0xff] %v7303_v8 }
 0x2ca   : > { %v1604_v48 = vpop.f32.mrf.mxu2 }
 0x2cb   : > { %v1605_v43 = vadd.f32 %v1604_v48, %v6848_v25  ;;  %v1693_v63 = vpop.f32.mrf.mxu3  ;;  %v1429_v42 = vpop.f32.mrf.mxu0  ;;  %v7327_v48 = vpack.c.bf16 %v9676_v32, %v9309_v27 }
 0x2cc   : > { %v1430_v23 = vadd.f32 %v1429_v42, %v6836_v62  ;;  %v1518_v22 = vpop.f32.mrf.mxu1  ;;  %v7333_v42 = vpack.c.bf16 %v9677_v46, %v9308_v1 }
 0x2cd   : > { %v7321_v19 = vadd.f32 %v1693_v63, %v1605_v43  ;;  %v9680_v43 = vmax.f32 %v6997_v35, 0.0  ;;  %v9687_v35 = vmax.f32 %v6725_v50, 0.0 }
 0x2ce   : > { %v7335_v5 = vadd.f32 %v1518_v22, %v1430_v23  ;;  %2326 = vmatmul.bf16.gmra.mxu0 %v7319_v6 }
 0x2cf   : > { %9675 = vst [vmem:[#allocation161_spill] sm:$0xff] %v7321_v19  ;;  %v7342_v63 = vpack.c.bf16 %v9680_v43, %v9679_v60  ;;  %2415 = vmatmul.bf16.gmra.mxu1 %v7327_v48  ;;  %2504 = vmatmul.bf16.gmra.mxu2 %v7333_v42  ;;  %v7354_v60 = vld [vmem:[%s9148_s4] sm:$0x3] }
 0x2d0   : > { %9678 = vst [vmem:[#allocation162_spill] sm:$0xff] %v7335_v5  ;;  %v7360_v29 = vperm.slane %v7354_v60, 0 }
 0x2d1   : > { %2593 = vmatmul.bf16.gmra.mxu3 %v7342_v63  ;;  %9682 = vst [vmem:[#allocation164_spill] sm:$0xff] %v7354_v60 }
 0x2d2   : > { %v1607_v32 = vpop.f32.mrf.mxu2 }
 0x2d3   : > { %v1608_v46 = vadd.f32 %v1607_v32, %v6848_v25  ;;  %v1696_v1 = vpop.f32.mrf.mxu3  ;;  %v1431_v22 = vpop.f32.mrf.mxu0 }
 0x2d4   : > { %v1432_v23 = vadd.f32 %v1431_v22, %v6836_v62  ;;  %v1520_v27 = vpop.f32.mrf.mxu1  ;;  %v9684_v62 = vld [vmem:[#allocation50_spill] sm:$0xff] }
 0x2d5   : > { %v7349_v53 = vadd.f32 %v1696_v1, %v1608_v46  ;;  %v9321_v22 = vmax.f32 %v9684_v62, 0.0 }
 0x2d6   : > { %v7356_v43 = vadd.f32 %v1520_v27, %v1432_v23 }
 0x2d7   : > { %9681 = vst [vmem:[#allocation163_spill] sm:$0xff] %v7349_v53  ;;  %v7375_v40 = vpack.c.bf16 %v9685_v3, %v9321_v22  ;;  %v9692_v3 = vmax.f32 %v7013_v17, 0.0  ;;  %v5369_v22 = vld [vmem:[#allocation9 + $0x24] sm:$0xf] }
 0x2d8   : > { %9683 = vst [vmem:[#allocation165_spill] sm:$0xff] %v7356_v43 }
 0x2da   : > { %v1609_v46 = vpop.f32.mrf.mxu2 }
 0x2db   : > { %v1610_v27 = vadd.f32 %v1609_v46, %v6848_v25  ;;  %v1698_v23 = vpop.f32.mrf.mxu3  ;;  %v2292_v9 = vpop.f32.mrf.mxu0  ;;  %v7383_v25 = vpack.c.bf16 %v9687_v35, %v9320_v36  ;;  %v9689_v46 = vmax.f32 %v7005_v41, 0.0  ;;  %v5401_v35 = vld [vmem:[#allocation9 + $0x124] sm:$0xf]  ;;  %v5151_v36 = vld [vmem:[#allocation9 + $0x128] sm:$0xf0] }
 0x2dc   : > { %v2293_v56 = vadd.f32 %v2292_v9, %v7360_v29  ;;  %v2381_v32 = vpop.f32.mrf.mxu1 }
 0x2dd   : > { %v7377_v1 = vadd.f32 %v1698_v23, %v1610_v27  ;;  %9688 = vst [vmem:[#allocation167_spill] sm:$0xff] %v7383_v25  ;;  %v7389_v9 = vpack.c.bf16 %v9690_v26, %v9689_v46  ;;  %v9693_v27 = vmax.f32 %v7033_v13, 0.0  ;;  %v5154_v26 = vor.u32 %v5401_v35, %v5151_v36  ;;  %v5023_v46 = vld [vmem:[#allocation9 + $0x28] sm:$0xf0] }
 0x2de   : > { %v2382_v60 = vadd.f32 %v2381_v32, %v2293_v56  ;;  %2331 = vmatmul.bf16.gmra.mxu0 %v7375_v40  ;;  %v5417_v56 = vld [vmem:[#allocation9 + $0x1a4] sm:$0xf]  ;;  %v5215_v32 = vld [vmem:[#allocation9 + $0x1a8] sm:$0xf0]  ;;  %v5026_v50 = vor.u32 %v5369_v22, %v5023_v46  ;;  %v9334_v35 = vmax.f32 %v6737_v4, 0.0 }
 0x2df   : > { %9686 = vst [vmem:[#allocation166_spill] sm:$0xff] %v7377_v1  ;;  %v7396_v23 = vpack.c.bf16 %v9693_v27, %v9692_v3  ;;  %2420 = vmatmul.bf16.gmra.mxu1 %v7383_v25  ;;  %2509 = vmatmul.bf16.gmra.mxu2 %v7389_v9  ;;  %v5218_v0 = vor.u32 %v5417_v56, %v5215_v32  ;;  %v5087_v36 = vld [vmem:[#allocation9 + $0xa8] sm:$0xf0]  ;;  %v9695_v25 = vld [vmem:[#allocation57_spill] sm:$0xff] }
 0x2e0   : > { %9691 = vst [vmem:[#allocation168_spill] sm:$0xff] %v7389_v9  ;;  %2822 = vmatpush.bf16.msrb.mxu2 %v5154_v26  ;;  %2644 = vmatpush.bf16.msrb.mxu0 %v5026_v50  ;;  %v9333_v22 = vmax.f32 %v9695_v25, 0.0  ;;  %v9697_v50 = vld [vmem:[#allocation55_spill] sm:$0xff]  ;;  %v9701_v25 = vld [vmem:[#allocation58_spill] sm:$0xff] }
 0x2e1   : > { %9694 = vst [vmem:[#allocation169_spill] sm:$0xff] %v7396_v23  ;;  %2598 = vmatmul.bf16.gmra.mxu3 %v7396_v23  ;;  %v5385_v23 = vld [vmem:[#allocation9 + $0xa4] sm:$0xf]  ;;  %v9348_v4 = vmax.f32 %v9701_v25, 0.0 }
 0x2e2   : > { %v2470_v21 = vpop.f32.mrf.mxu2  ;;  %2911 = vmatpush.bf16.msrb.mxu3 %v5218_v0  ;;  %v5090_v9 = vor.u32 %v5385_v23, %v5087_v36  ;;  %v9337_v0 = vmax.f32 %v9697_v50, 0.0  ;;  %v9352_v50 = vmax.f32 %v7095_v20, 0.0 }
 0x2e3   : > { %v2471_v17 = vadd.f32 %v2470_v21, %v2382_v60  ;;  %v2559_v13 = vpop.f32.mrf.mxu3  ;;  %v2294_v3 = vpop.f32.mrf.mxu0  ;;  %v9335_v21 = vmax.f32 %v7063_v37, 0.0  ;;  %v9696_v60 = vld [vmem:[#allocation54_spill] sm:$0xff] }
 0x2e4   : > { %v2295_v27 = vadd.f32 %v2294_v3, %v7360_v29  ;;  %v2383_v41 = vpop.f32.mrf.mxu1  ;;  %v9338_v46 = vmax.f32 %v9696_v60, 0.0  ;;  %2733 = vmatpush.bf16.msrb.mxu1 %v5090_v9  ;;  %v9340_v3 = vmax.f32 %v7061_v15, 0.0 }
 0x2e5   : > { %v7402_v51 = vadd.f32 %v2559_v13, %v2471_v17  ;;  %v9336_v17 = vmax.f32 %v7047_v57, 0.0 }
 0x2e6   : > { %v2384_v62 = vadd.f32 %v2383_v41, %v2295_v27  ;;  %v7417_v36 = vpack.c.bf16 %v9334_v35, %v9338_v46  ;;  %v9699_v46 = vld [vmem:[#allocation60_spill] sm:$0xff] }
 0x2e7   : > { %v7431_v9 = vpack.c.bf16 %v9335_v21, %v9336_v17  ;;  %5503 = vtanh.f32 %v7402_v51 }
 0x2ea   : > { %v2472_v56 = vpop.f32.mrf.mxu2 }
 0x2eb   : > { %v2473_v41 = vadd.f32 %v2472_v56, %v2384_v62  ;;  %v2561_v13 = vpop.f32.mrf.mxu3  ;;  %v2297_v32 = vpop.f32.mrf.mxu0  ;;  %v7425_v62 = vpack.c.bf16 %v9333_v22, %v9337_v0 }
 0x2ec   : > { %v2298_v23 = vadd.f32 %v2297_v32, %v7360_v29  ;;  %v2386_v27 = vpop.f32.mrf.mxu1 }
 0x2ed   : > { %v7419_v26 = vadd.f32 %v2561_v13, %v2473_v41  ;;  %v9698_v41 = vmax.f32 %v7081_v34, 0.0  ;;  %v9351_v34 = vmax.f32 %v9699_v46, 0.0 }
 0x2ee   : > { %v2387_v56 = vadd.f32 %v2386_v27, %v2298_v23  ;;  %2336 = vmatmul.bf16.gmra.mxu0 %v7417_v36 }
 0x2ef   : > { %v7438_v13 = vpack.c.bf16 %v9698_v41, %v9340_v3  ;;  %2425 = vmatmul.bf16.gmra.mxu1 %v7425_v62  ;;  %2514 = vmatmul.bf16.gmra.mxu2 %v7431_v9  ;;  %v9700_v41 = vld [vmem:[#allocation61_spill] sm:$0xff]  ;;  %v7459_v37 = vpack.c.bf16 %v9351_v34, %v9348_v4  ;;  %v9707_v4 = vmax.f32 %v7109_v28, 0.0  ;;  %v5367_v34 = vld [vmem:[#allocation9 + $0x14] sm:$0xf] }
 0x2f0   : > { %v9350_v3 = vmax.f32 %v9700_v41, 0.0 }
 0x2f1   : > { %2603 = vmatmul.bf16.gmra.mxu3 %v7438_v13  ;;  %9703 = vst [vmem:[#allocation170_spill] sm:$0xff] %v7459_v37 }
 0x2f2   : > { %v2475_v32 = vpop.f32.mrf.mxu2 }
 0x2f3   : > { %v2476_v22 = vadd.f32 %v2475_v32, %v2387_v56  ;;  %v2299_v21 = vpop.f32.mrf.mxu0  ;;  %v9702_v56 = vld [vmem:[#allocation59_spill] sm:$0xff] }
 0x2f4   : > { %v2564_v35 = vpop.f32.mrf.mxu3  ;;  %v2300_v23 = vadd.f32 %v2299_v21, %v7360_v29  ;;  %v2388_v27 = vpop.f32.mrf.mxu1  ;;  %v9349_v32 = vmax.f32 %v9702_v56, 0.0 }
 0x2f5   : > { %v7444_v17 = vadd.f32 %v2564_v35, %v2476_v22 }
 0x2f6   : > { %v2389_v0 = vadd.f32 %v2388_v27, %v2300_v23 }
 0x2fa   : > { %v2477_v57 = vpop.f32.mrf.mxu2 }
 0x2fb   : > { %v2478_v21 = vadd.f32 %v2477_v57, %v2389_v0  ;;  %v2302_v35 = vpop.f32.mrf.mxu0  ;;  %v7467_v57 = vpack.c.bf16 %v9350_v3, %v9349_v32  ;;  %v9705_v0 = vmax.f32 %v7111_v47, 0.0  ;;  %v5399_v32 = vld [vmem:[#allocation9 + $0x114] sm:$0xf]  ;;  %v5143_v3 = vld [vmem:[#allocation9 + $0x118] sm:$0xf0] }
 0x2fc   : > { %v2566_v60 = vpop.f32.mrf.mxu3  ;;  %v2303_v23 = vadd.f32 %v2302_v35, %v7360_v29  ;;  %v2391_v27 = vpop.f32.mrf.mxu1 }
 0x2fd   : > { %v7461_v15 = vadd.f32 %v2566_v60, %v2478_v21  ;;  %9704 = vst [vmem:[#allocation171_spill] sm:$0xff] %v7467_v57  ;;  %v7473_v35 = vpack.c.bf16 %v9705_v0, %v9352_v50  ;;  %v9708_v60 = vmax.f32 %v7129_v59, 0.0  ;;  %v5146_v0 = vor.u32 %v5399_v32, %v5143_v3  ;;  %v5015_v50 = vld [vmem:[#allocation9 + $0x18] sm:$0xf0] }
 0x2fe   : > { %v2392_v22 = vadd.f32 %v2391_v27, %v2303_v23  ;;  %2341 = vmatmul.bf16.gmra.mxu0 %v7459_v37  ;;  %v5415_v23 = vld [vmem:[#allocation9 + $0x194] sm:$0xf]  ;;  %v5207_v27 = vld [vmem:[#allocation9 + $0x198] sm:$0xf0]  ;;  %v5018_v56 = vor.u32 %v5367_v34, %v5015_v50  ;;  %v9711_v37 = vld [vmem:[#allocation65_spill] sm:$0xff] }
 0x2ff   : > { %9706 = vst [vmem:[#allocation172_spill] sm:$0xff] %v7473_v35  ;;  %v7480_v21 = vpack.c.bf16 %v9708_v60, %v9707_v4  ;;  %2430 = vmatmul.bf16.gmra.mxu1 %v7467_v57  ;;  %2519 = vmatmul.bf16.gmra.mxu2 %v7473_v35  ;;  %v5210_v28 = vor.u32 %v5415_v23, %v5207_v27  ;;  %v5079_v3 = vld [vmem:[#allocation9 + $0x98] sm:$0xf0]  ;;  %v9365_v34 = vmax.f32 %v9711_v37, 0.0  ;;  %v9712_v50 = vld [vmem:[#allocation62_spill] sm:$0xff] }
 0x300   : > { %2823 = vmatpush.bf16.msrb.mxu2 %v5146_v0  ;;  %2645 = vmatpush.bf16.msrb.mxu0 %v5018_v56  ;;  %v9710_v32 = vld [vmem:[#allocation64_spill] sm:$0xff]  ;;  %v9713_v56 = vld [vmem:[#allocation63_spill] sm:$0xff]  ;;  %v9717_v37 = vld [vmem:[#allocation66_spill] sm:$0xff] }
 0x301   : > { %9709 = vst [vmem:[#allocation173_spill] sm:$0xff] %v7480_v21  ;;  %2608 = vmatmul.bf16.gmra.mxu3 %v7480_v21  ;;  %v5383_v21 = vld [vmem:[#allocation9 + $0x94] sm:$0xf]  ;;  %v9366_v35 = vmax.f32 %v9710_v32, 0.0  ;;  %v9383_v32 = vmax.f32 %v9717_v37, 0.0 }
 0x302   : > { %v2480_v20 = vpop.f32.mrf.mxu2  ;;  %2912 = vmatpush.bf16.msrb.mxu3 %v5210_v28  ;;  %v5082_v57 = vor.u32 %v5383_v21, %v5079_v3  ;;  %v9369_v28 = vmax.f32 %v9713_v56, 0.0  ;;  %v9384_v56 = vmax.f32 %v7191_v38, 0.0 }
 0x303   : > { %v2481_v25 = vadd.f32 %v2480_v20, %v2392_v22  ;;  %v2304_v4 = vpop.f32.mrf.mxu0  ;;  %v9367_v20 = vmax.f32 %v7159_v14, 0.0  ;;  %v9370_v22 = vmax.f32 %v9712_v50, 0.0 }
 0x304   : > { %v2569_v59 = vpop.f32.mrf.mxu3  ;;  %v2305_v60 = vadd.f32 %v2304_v4, %v7360_v29  ;;  %v2393_v47 = vpop.f32.mrf.mxu1  ;;  %2734 = vmatpush.bf16.msrb.mxu1 %v5082_v57  ;;  %v9372_v4 = vmax.f32 %v7157_v61, 0.0 }
 0x305   : > { %v7486_v41 = vadd.f32 %v2569_v59, %v2481_v25  ;;  %v9368_v59 = vmax.f32 %v7143_v33, 0.0  ;;  %v7501_v3 = vpack.c.bf16 %v9366_v35, %v9370_v22  ;;  %v9715_v22 = vld [vmem:[#allocation68_spill] sm:$0xff] }
 0x306   : > { %v2394_v46 = vadd.f32 %v2393_v47, %v2305_v60 }
 0x307   : > { %v7515_v57 = vpack.c.bf16 %v9367_v20, %v9368_v59 }
 0x30a   : > { %v2482_v23 = vpop.f32.mrf.mxu2 }
 0x30b   : > { %v2483_v47 = vadd.f32 %v2482_v23, %v2394_v46  ;;  %v2307_v27 = vpop.f32.mrf.mxu0  ;;  %v7509_v46 = vpack.c.bf16 %v9365_v34, %v9369_v28 }
 0x30c   : > { %v2571_v25 = vpop.f32.mrf.mxu3  ;;  %v2308_v21 = vadd.f32 %v2307_v27, %v7360_v29  ;;  %v2396_v60 = vpop.f32.mrf.mxu1 }
 0x30d   : > { %v7503_v0 = vadd.f32 %v2571_v25, %v2483_v47  ;;  %v9714_v47 = vmax.f32 %v7177_v24, 0.0  ;;  %v9380_v24 = vmax.f32 %v9715_v22, 0.0 }
 0x30e   : > { %v2397_v23 = vadd.f32 %v2396_v60, %v2308_v21  ;;  %2346 = vmatmul.bf16.gmra.mxu0 %v7501_v3 }
 0x30f   : > { %v7522_v25 = vpack.c.bf16 %v9714_v47, %v9372_v4  ;;  %2435 = vmatmul.bf16.gmra.mxu1 %v7509_v46  ;;  %2524 = vmatmul.bf16.gmra.mxu2 %v7515_v57  ;;  %v9716_v47 = vld [vmem:[#allocation69_spill] sm:$0xff]  ;;  %v7543_v14 = vpack.c.bf16 %v9380_v24, %v9383_v32  ;;  %v9723_v24 = vmax.f32 %v7205_v55, 0.0 }
 0x310   : > { %v9381_v4 = vmax.f32 %v9716_v47, 0.0  ;;  %v5365_v32 = vld [vmem:[#allocation9 + $0x4] sm:$0xf] }
 0x311   : > { %2613 = vmatmul.bf16.gmra.mxu3 %v7522_v25  ;;  %9719 = vst [vmem:[#allocation174_spill] sm:$0xff] %v7543_v14 }
 0x312   : > { %v2485_v27 = vpop.f32.mrf.mxu2 }
 0x313   : > { %v2486_v34 = vadd.f32 %v2485_v27, %v2397_v23  ;;  %v2309_v20 = vpop.f32.mrf.mxu0  ;;  %v9718_v23 = vld [vmem:[#allocation67_spill] sm:$0xff] }
 0x314   : > { %v2574_v35 = vpop.f32.mrf.mxu3  ;;  %v2310_v21 = vadd.f32 %v2309_v20, %v7360_v29  ;;  %v2398_v60 = vpop.f32.mrf.mxu1  ;;  %v9382_v27 = vmax.f32 %v9718_v23, 0.0 }
 0x315   : > { %v7528_v59 = vadd.f32 %v2574_v35, %v2486_v34 }
 0x316   : > { %v2399_v28 = vadd.f32 %v2398_v60, %v2310_v21 }
 0x31a   : > { %v2487_v33 = vpop.f32.mrf.mxu2 }
 0x31b   : > { %v2488_v20 = vadd.f32 %v2487_v33, %v2399_v28  ;;  %v2312_v35 = vpop.f32.mrf.mxu0  ;;  %v7551_v33 = vpack.c.bf16 %v9381_v4, %v9382_v27  ;;  %v9721_v28 = vmax.f32 %v7207_v12, 0.0  ;;  %v5397_v4 = vld [vmem:[#allocation9 + $0x104] sm:$0xf]  ;;  %v5135_v27 = vld [vmem:[#allocation9 + $0x108] sm:$0xf0] }
 0x31c   : > { %v2576_v50 = vpop.f32.mrf.mxu3  ;;  %v2313_v21 = vadd.f32 %v2312_v35, %v7360_v29  ;;  %v2401_v60 = vpop.f32.mrf.mxu1 }
 0x31d   : > { %v7545_v61 = vadd.f32 %v2576_v50, %v2488_v20  ;;  %9720 = vst [vmem:[#allocation175_spill] sm:$0xff] %v7551_v33  ;;  %v7557_v35 = vpack.c.bf16 %v9721_v28, %v9384_v56  ;;  %v9724_v50 = vmax.f32 %v7225_v58, 0.0  ;;  %v5138_v28 = vor.u32 %v5397_v4, %v5135_v27  ;;  %v5007_v56 = vld [vmem:[#allocation9 + $0x8] sm:$0xf0]  ;;  %v9726_v27 = vld [vmem:[#allocation72_spill] sm:$0xff] }
 0x31e   : > { %v2402_v34 = vadd.f32 %v2401_v60, %v2313_v21  ;;  %2351 = vmatmul.bf16.gmra.mxu0 %v7543_v14  ;;  %v5413_v21 = vld [vmem:[#allocation9 + $0x184] sm:$0xf]  ;;  %v5199_v60 = vld [vmem:[#allocation9 + $0x188] sm:$0xf0]  ;;  %v5010_v47 = vor.u32 %v5365_v32, %v5007_v56 }
 0x31f   : > { %9722 = vst [vmem:[#allocation176_spill] sm:$0xff] %v7557_v35  ;;  %v7564_v20 = vpack.c.bf16 %v9724_v50, %v9723_v24  ;;  %2440 = vmatmul.bf16.gmra.mxu1 %v7551_v33  ;;  %2529 = vmatmul.bf16.gmra.mxu2 %v7557_v35  ;;  %v5202_v22 = vor.u32 %v5413_v21, %v5199_v60  ;;  %v5071_v4 = vld [vmem:[#allocation9 + $0x88] sm:$0xf0]  ;;  %v9402_v35 = vmax.f32 %v9726_v27, 0.0  ;;  %v9727_v14 = vld [vmem:[#allocation73_spill] sm:$0xff] }
 0x320   : > { %2824 = vmatpush.bf16.msrb.mxu2 %v5138_v28  ;;  %2646 = vmatpush.bf16.msrb.mxu0 %v5010_v47  ;;  %v9401_v32 = vmax.f32 %v9727_v14, 0.0  ;;  %v9728_v56 = vld [vmem:[#allocation70_spill] sm:$0xff]  ;;  %v9729_v47 = vld [vmem:[#allocation71_spill] sm:$0xff]  ;;  %v9416_v14 = vmax.f32 %v7287_v30, 0.0 }
 0x321   : > { %9725 = vst [vmem:[#allocation177_spill] sm:$0xff] %v7564_v20  ;;  %2618 = vmatmul.bf16.gmra.mxu3 %v7564_v20  ;;  %v5381_v20 = vld [vmem:[#allocation9 + $0x84] sm:$0xf] }
 0x322   : > { %v2490_v12 = vpop.f32.mrf.mxu2  ;;  %2913 = vmatpush.bf16.msrb.mxu3 %v5202_v22  ;;  %v5074_v33 = vor.u32 %v5381_v20, %v5071_v4  ;;  %v9397_v22 = vmax.f32 %v9729_v47, 0.0  ;;  %v9733_v47 = vld [vmem:[#allocation74_spill] sm:$0xff] }
 0x323   : > { %v2491_v55 = vadd.f32 %v2490_v12, %v2402_v34  ;;  %v2314_v24 = vpop.f32.mrf.mxu0  ;;  %v9400_v12 = vmax.f32 %v7255_v52, 0.0  ;;  %v9398_v34 = vmax.f32 %v9728_v56, 0.0  ;;  %v9415_v56 = vmax.f32 %v9733_v47, 0.0 }
 0x324   : > { %v2579_v58 = vpop.f32.mrf.mxu3  ;;  %v2315_v50 = vadd.f32 %v2314_v24, %v7360_v29  ;;  %v2403_v38 = vpop.f32.mrf.mxu1  ;;  %2735 = vmatpush.bf16.msrb.mxu1 %v5074_v33  ;;  %v9404_v24 = vmax.f32 %v7253_v18, 0.0 }
 0x325   : > { %v7570_v23 = vadd.f32 %v2579_v58, %v2491_v55  ;;  %v9399_v55 = vmax.f32 %v7239_v11, 0.0  ;;  %v7585_v4 = vpack.c.bf16 %v9402_v35, %v9398_v34  ;;  %v9731_v35 = vld [vmem:[#allocation76_spill] sm:$0xff] }
 0x326   : > { %v2404_v37 = vadd.f32 %v2403_v38, %v2315_v50  ;;  %v9412_v18 = vmax.f32 %v9731_v35, 0.0 }
 0x327   : > { %v7599_v33 = vpack.c.bf16 %v9400_v12, %v9399_v55 }
 0x328   : > { %v7627_v11 = vpack.c.bf16 %v9412_v18, %v9415_v56  ;;  %v9737_v18 = vmax.f32 %v7301_v44, 0.0  ;;  %v9742_v44 = vld [vmem:[#allocation78_spill] sm:$0xff] }
 0x329   : > { %v9430_v30 = vmax.f32 %v9742_v44, 0.0  ;;  %v9755_v44 = vld [vmem:[#allocation131_spill] sm:$0xff] }
 0x32a   : > { %v2492_v21 = vpop.f32.mrf.mxu2 }
 0x32b   : > { %v2493_v38 = vadd.f32 %v2492_v21, %v2404_v37  ;;  %v2317_v60 = vpop.f32.mrf.mxu0  ;;  %v7593_v37 = vpack.c.bf16 %v9401_v32, %v9397_v22 }
 0x32c   : > { %v2581_v58 = vpop.f32.mrf.mxu3  ;;  %v2318_v20 = vadd.f32 %v2317_v60, %v7360_v29  ;;  %v2406_v50 = vpop.f32.mrf.mxu1 }
 0x32d   : > { %v7587_v28 = vadd.f32 %v2581_v58, %v2493_v38  ;;  %v9730_v38 = vmax.f32 %v7273_v45, 0.0 }
 0x32e   : > { %v2407_v21 = vadd.f32 %v2406_v50, %v2318_v20  ;;  %2356 = vmatmul.bf16.gmra.mxu0 %v7585_v4 }
 0x32f   : > { %v7606_v58 = vpack.c.bf16 %v9730_v38, %v9404_v24  ;;  %2445 = vmatmul.bf16.gmra.mxu1 %v7593_v37  ;;  %2534 = vmatmul.bf16.gmra.mxu2 %v7599_v33  ;;  %v9732_v38 = vld [vmem:[#allocation77_spill] sm:$0xff] }
 0x330   : > { %v9413_v24 = vmax.f32 %v9732_v38, 0.0  ;;  %v9740_v38 = vld [vmem:[#allocation80_spill] sm:$0xff] }
 0x331   : > { %2623 = vmatmul.bf16.gmra.mxu3 %v7606_v58 }
 0x332   : > { %v2495_v60 = vpop.f32.mrf.mxu2 }
 0x333   : > { %v2496_v22 = vadd.f32 %v2495_v60, %v2407_v21  ;;  %v2319_v55 = vpop.f32.mrf.mxu0  ;;  %v9734_v21 = vld [vmem:[#allocation75_spill] sm:$0xff] }
 0x334   : > { %v2584_v34 = vpop.f32.mrf.mxu3  ;;  %v2320_v20 = vadd.f32 %v2319_v55, %v7360_v29  ;;  %v2408_v50 = vpop.f32.mrf.mxu1  ;;  %v9414_v60 = vmax.f32 %v9734_v21, 0.0 }
 0x335   : > { %v7612_v12 = vadd.f32 %v2584_v34, %v2496_v22 }
 0x336   : > { %v2409_v32 = vadd.f32 %v2408_v50, %v2320_v20 }
 0x33a   : > { %v2497_v52 = vpop.f32.mrf.mxu2 }
 0x33b   : > { %v2498_v55 = vadd.f32 %v2497_v52, %v2409_v32  ;;  %v2322_v34 = vpop.f32.mrf.mxu0  ;;  %v7635_v52 = vpack.c.bf16 %v9413_v24, %v9414_v60  ;;  %v9735_v32 = vmax.f32 %v7303_v8, 0.0 }
 0x33c   : > { %v2586_v27 = vpop.f32.mrf.mxu3  ;;  %v2323_v20 = vadd.f32 %v2322_v34, %v7360_v29  ;;  %v2411_v50 = vpop.f32.mrf.mxu1 }
 0x33d   : > { %v7629_v45 = vadd.f32 %v2586_v27, %v2498_v55  ;;  %v7641_v34 = vpack.c.bf16 %v9735_v32, %v9416_v14  ;;  %v9738_v27 = vmax.f32 %v7321_v19, 0.0  ;;  %v9427_v19 = vmax.f32 %v9740_v38, 0.0 }
 0x33e   : > { %v2412_v22 = vadd.f32 %v2411_v50, %v2323_v20  ;;  %2361 = vmatmul.bf16.gmra.mxu0 %v7627_v11 }
 0x33f   : > { %9736 = vst [vmem:[#allocation178_spill] sm:$0xff] %v7641_v34  ;;  %v7648_v55 = vpack.c.bf16 %v9738_v27, %v9737_v18  ;;  %2450 = vmatmul.bf16.gmra.mxu1 %v7635_v52  ;;  %2539 = vmatmul.bf16.gmra.mxu2 %v7641_v34  ;;  %v9741_v18 = vld [vmem:[#allocation81_spill] sm:$0xff]  ;;  %v7669_v35 = vpack.c.bf16 %v9427_v19, %v9430_v30  ;;  %v9745_v19 = vmax.f32 %v7349_v53, 0.0 }
 0x340   : > { %v9428_v27 = vmax.f32 %v9741_v18, 0.0 }
 0x341   : > { %9739 = vst [vmem:[#allocation179_spill] sm:$0xff] %v7648_v55  ;;  %2628 = vmatmul.bf16.gmra.mxu3 %v7648_v55  ;;  %v9431_v55 = vmax.f32 %v7335_v5, 0.0 }
 0x342   : > { %v2500_v24 = vpop.f32.mrf.mxu2 }
 0x343   : > { %v2501_v60 = vadd.f32 %v2500_v24, %v2412_v22  ;;  %v2324_v32 = vpop.f32.mrf.mxu0  ;;  %v9743_v24 = vld [vmem:[#allocation79_spill] sm:$0xff] }
 0x344   : > { %v2589_v56 = vpop.f32.mrf.mxu3  ;;  %v2325_v20 = vadd.f32 %v2324_v32, %v7360_v29  ;;  %v2413_v50 = vpop.f32.mrf.mxu1  ;;  %v9429_v22 = vmax.f32 %v9743_v24, 0.0 }
 0x345   : > { %v7654_v14 = vadd.f32 %v2589_v56, %v2501_v60 }
 0x346   : > { %v2414_v8 = vadd.f32 %v2413_v50, %v2325_v20 }
 0x34a   : > { %v2502_v47 = vpop.f32.mrf.mxu2 }
 0x34b   : > { %v2503_v32 = vadd.f32 %v2502_v47, %v2414_v8  ;;  %v2327_v56 = vpop.f32.mrf.mxu0  ;;  %v7677_v8 = vpack.c.bf16 %v9428_v27, %v9429_v22  ;;  %v9744_v47 = vmax.f32 %v7356_v43, 0.0 }
 0x34c   : > { %v2591_v34 = vpop.f32.mrf.mxu3  ;;  %v2328_v20 = vadd.f32 %v2327_v56, %v7360_v29  ;;  %v2416_v50 = vpop.f32.mrf.mxu1 }
 0x34d   : > { %v7671_v21 = vadd.f32 %v2591_v34, %v2503_v32  ;;  %v7683_v56 = vpack.c.bf16 %v9744_v47, %v9431_v55  ;;  %v9746_v34 = vmax.f32 %v7377_v1, 0.0 }
 0x34e   : > { %v2417_v60 = vadd.f32 %v2416_v50, %v2328_v20  ;;  %2366 = vmatmul.bf16.gmra.mxu0 %v7669_v35 }
 0x34f   : > { %v7690_v32 = vpack.c.bf16 %v9746_v34, %v9745_v19  ;;  %2455 = vmatmul.bf16.gmra.mxu1 %v7677_v8  ;;  %2544 = vmatmul.bf16.gmra.mxu2 %v7683_v56 }
 0x351   : > { %2633 = vmatmul.bf16.gmra.mxu3 %v7690_v32 }
 0x352   : > { %v2505_v27 = vpop.f32.mrf.mxu2 }
 0x353   : > { %v2506_v22 = vadd.f32 %v2505_v27, %v2417_v60  ;;  %v2329_v47 = vpop.f32.mrf.mxu0  ;;  %v9747_v27 = vld [vmem:[#allocation114_spill] sm:$0xff] }
 0x354   : > { %v2594_v30 = vpop.f32.mrf.mxu3  ;;  %v2330_v20 = vadd.f32 %v2329_v47, %v7360_v29  ;;  %v2418_v50 = vpop.f32.mrf.mxu1 }
 0x355   : > { %v7696_v55 = vadd.f32 %v2594_v30, %v2506_v22 }
 0x356   : > { %v2419_v43 = vadd.f32 %v2418_v50, %v2330_v20 }
 0x35a   : > { %v2507_v18 = vpop.f32.mrf.mxu2 }
 0x35b   : > { %v2508_v1 = vadd.f32 %v2507_v18, %v2419_v43  ;;  %v2332_v34 = vpop.f32.mrf.mxu0 }
 0x35c   : > { %v2596_v19 = vpop.f32.mrf.mxu3  ;;  %v2333_v38 = vadd.f32 %v2332_v34, %v7360_v29  ;;  %v2421_v53 = vpop.f32.mrf.mxu1 }
 0x35d   : > { %v7699_v5 = vadd.f32 %v2596_v19, %v2508_v1 }
 0x35e   : > { %v2422_v24 = vadd.f32 %v2421_v53, %v2333_v38  ;;  %2647 = vmatmul.bf16.vlgmr.msrb.gmra.mxu0 %v6981_v7 }
 0x35f   : > { %2736 = vmatmul.bf16.vlgmr.msrb.gmra.mxu1 %v6989_v31  ;;  %2825 = vmatmul.bf16.vlgmr.msrb.gmra.mxu2 %v6995_v16 }
 0x361   : > { %2914 = vmatmul.bf16.vlgmr.msrb.gmra.mxu3 %v9747_v27 }
 0x362   : > { %v2510_v30 = vpop.f32.mrf.mxu2 }
 0x363   : > { %v2511_v22 = vadd.f32 %v2510_v30, %v2422_v24  ;;  %v2334_v43 = vpop.f32.mrf.mxu0  ;;  %v9748_v24 = vld [vmem:[#allocation120_spill] sm:$0xff] }
 0x364   : > { %v2599_v60 = vpop.f32.mrf.mxu3  ;;  %v2335_v18 = vadd.f32 %v2334_v43, %v7360_v29  ;;  %v2423_v47 = vpop.f32.mrf.mxu1 }
 0x365   : > { %v7706_v20 = vadd.f32 %v2599_v60, %v2511_v22 }
 0x366   : > { %v2424_v1 = vadd.f32 %v2423_v47, %v2335_v18 }
 0x36a   : > { %v2512_v50 = vpop.f32.mrf.mxu2 }
 0x36b   : > { %v2513_v53 = vadd.f32 %v2512_v50, %v2424_v1  ;;  %v2337_v7 = vpop.f32.mrf.mxu0 }
 0x36c   : > { %v2601_v38 = vpop.f32.mrf.mxu3  ;;  %v2338_v31 = vadd.f32 %v2337_v7, %v7360_v29  ;;  %v2426_v19 = vpop.f32.mrf.mxu1 }
 0x36d   : > { %v7709_v16 = vadd.f32 %v2601_v38, %v2513_v53 }
 0x36e   : > { %v2427_v34 = vadd.f32 %v2426_v19, %v2338_v31  ;;  %2652 = vmatmul.bf16.gmra.mxu0 %v7031_v39  ;;  %v9749_v19 = vld [vmem:[#allocation123_spill] sm:$0xff] }
 0x36f   : > { %2741 = vmatmul.bf16.gmra.mxu1 %v7039_v2  ;;  %2830 = vmatmul.bf16.gmra.mxu2 %v7045_v10 }
 0x371   : > { %2919 = vmatmul.bf16.gmra.mxu3 %v9748_v24  ;;  %v9751_v24 = vld [vmem:[#allocation126_spill] sm:$0xff] }
 0x372   : > { %v2515_v27 = vpop.f32.mrf.mxu2 }
 0x373   : > { %v2516_v30 = vadd.f32 %v2515_v27, %v2427_v34  ;;  %v2339_v60 = vpop.f32.mrf.mxu0  ;;  %v9750_v34 = vld [vmem:[#allocation125_spill] sm:$0xff]  ;;  %v9752_v27 = vld [vmem:[#allocation128_spill] sm:$0xff] }
 0x374   : > { %v2604_v22 = vpop.f32.mrf.mxu3  ;;  %v2340_v43 = vadd.f32 %v2339_v60, %v7360_v29  ;;  %v2428_v18 = vpop.f32.mrf.mxu1 }
 0x375   : > { %v7716_v47 = vadd.f32 %v2604_v22, %v2516_v30 }
 0x376   : > { %v2429_v1 = vadd.f32 %v2428_v18, %v2340_v43 }
 0x37a   : > { %v2517_v50 = vpop.f32.mrf.mxu2 }
 0x37b   : > { %v2518_v53 = vadd.f32 %v2517_v50, %v2429_v1  ;;  %v2342_v39 = vpop.f32.mrf.mxu0 }
 0x37c   : > { %v2606_v38 = vpop.f32.mrf.mxu3  ;;  %v2343_v2 = vadd.f32 %v2342_v39, %v7360_v29  ;;  %v2431_v7 = vpop.f32.mrf.mxu1 }
 0x37d   : > { %v7719_v10 = vadd.f32 %v2606_v38, %v2518_v53 }
 0x37e   : > { %v2432_v31 = vadd.f32 %v2431_v7, %v2343_v2  ;;  %2657 = vmatmul.bf16.gmra.mxu0 %v9749_v19 }
 0x37f   : > { %2746 = vmatmul.bf16.gmra.mxu1 %v9750_v34  ;;  %2835 = vmatmul.bf16.gmra.mxu2 %v9751_v24 }
 0x381   : > { %2924 = vmatmul.bf16.gmra.mxu3 %v9752_v27 }
 0x382   : > { %v2520_v30 = vpop.f32.mrf.mxu2 }
 0x383   : > { %v2521_v22 = vadd.f32 %v2520_v30, %v2432_v31  ;;  %v2344_v43 = vpop.f32.mrf.mxu0  ;;  %v9756_v31 = vld [vmem:[#allocation133_spill] sm:$0xff]  ;;  %v9757_v30 = vld [vmem:[#allocation134_spill] sm:$0xff] }
 0x384   : > { %v2609_v60 = vpop.f32.mrf.mxu3  ;;  %v2345_v18 = vadd.f32 %v2344_v43, %v7360_v29  ;;  %v2433_v1 = vpop.f32.mrf.mxu1  ;;  %v9758_v43 = vld [vmem:[#allocation136_spill] sm:$0xff] }
 0x385   : > { %v7726_v50 = vadd.f32 %v2609_v60, %v2521_v22 }
 0x386   : > { %v2434_v53 = vadd.f32 %v2433_v1, %v2345_v18 }
 0x387   : > { %9753 = vst [vmem:[#allocation114_spill] sm:$0xff] %v7726_v50  ;;  %v9760_v50 = vld [vmem:[#allocation139_spill] sm:$0xff] }
 0x38a   : > { %v2522_v38 = vpop.f32.mrf.mxu2 }
 0x38b   : > { %v2523_v39 = vadd.f32 %v2522_v38, %v2434_v53  ;;  %v2347_v7 = vpop.f32.mrf.mxu0 }
 0x38c   : > { %v2611_v2 = vpop.f32.mrf.mxu3  ;;  %v2348_v19 = vadd.f32 %v2347_v7, %v7360_v29  ;;  %v2436_v34 = vpop.f32.mrf.mxu1 }
 0x38d   : > { %v7729_v24 = vadd.f32 %v2611_v2, %v2523_v39 }
 0x38e   : > { %v2437_v27 = vadd.f32 %v2436_v34, %v2348_v19  ;;  %2662 = vmatmul.bf16.gmra.mxu0 %v9755_v44 }
 0x38f   : > { %9754 = vst [vmem:[#allocation120_spill] sm:$0xff] %v7729_v24  ;;  %2751 = vmatmul.bf16.gmra.mxu1 %v9756_v31  ;;  %2840 = vmatmul.bf16.gmra.mxu2 %v9757_v30 }
 0x391   : > { %2929 = vmatmul.bf16.gmra.mxu3 %v9758_v43 }
 0x392   : > { %v2525_v22 = vpop.f32.mrf.mxu2 }
 0x393   : > { %v2526_v60 = vadd.f32 %v2525_v22, %v2437_v27  ;;  %v2349_v1 = vpop.f32.mrf.mxu0  ;;  %v9761_v27 = vld [vmem:[#allocation141_spill] sm:$0xff]  ;;  %v9762_v22 = vld [vmem:[#allocation142_spill] sm:$0xff] }
 0x394   : > { %v2614_v18 = vpop.f32.mrf.mxu3  ;;  %v2350_v53 = vadd.f32 %v2349_v1, %v7360_v29  ;;  %v2438_v38 = vpop.f32.mrf.mxu1  ;;  %v9763_v1 = vld [vmem:[#allocation144_spill] sm:$0xff] }
 0x395   : > { %v7736_v7 = vadd.f32 %v2614_v18, %v2526_v60 }
 0x396   : > { %v2439_v39 = vadd.f32 %v2438_v38, %v2350_v53 }
 0x39a   : > { %v2527_v2 = vpop.f32.mrf.mxu2 }
 0x39b   : > { %v2528_v19 = vadd.f32 %v2527_v2, %v2439_v39  ;;  %v2352_v44 = vpop.f32.mrf.mxu0 }
 0x39c   : > { %v2616_v34 = vpop.f32.mrf.mxu3  ;;  %v2353_v31 = vadd.f32 %v2352_v44, %v7360_v29  ;;  %v2441_v24 = vpop.f32.mrf.mxu1 }
 0x39d   : > { %v7739_v30 = vadd.f32 %v2616_v34, %v2528_v19 }
 0x39e   : > { %v2442_v43 = vadd.f32 %v2441_v24, %v2353_v31  ;;  %2667 = vmatmul.bf16.gmra.mxu0 %v9760_v50 }
 0x39f   : > { %9759 = vst [vmem:[#allocation123_spill] sm:$0xff] %v7739_v30  ;;  %2756 = vmatmul.bf16.gmra.mxu1 %v9761_v27  ;;  %2845 = vmatmul.bf16.gmra.mxu2 %v9762_v22 }
 0x3a1   : > { %2934 = vmatmul.bf16.gmra.mxu3 %v9763_v1 }
 0x3a2   : > { %v2530_v60 = vpop.f32.mrf.mxu2 }
 0x3a3   : > { %v2531_v18 = vadd.f32 %v2530_v60, %v2442_v43  ;;  %v2354_v38 = vpop.f32.mrf.mxu0  ;;  %v9765_v43 = vld [vmem:[#allocation148_spill] sm:$0xff]  ;;  %v9766_v60 = vld [vmem:[#allocation150_spill] sm:$0xff] }
 0x3a4   : > { %v2619_v53 = vpop.f32.mrf.mxu3  ;;  %v2355_v39 = vadd.f32 %v2354_v38, %v7360_v29  ;;  %v2443_v2 = vpop.f32.mrf.mxu1 }
 0x3a5   : > { %v7746_v44 = vadd.f32 %v2619_v53, %v2531_v18 }
 0x3a6   : > { %v2444_v19 = vadd.f32 %v2443_v2, %v2355_v39 }
 0x3aa   : > { %v2532_v34 = vpop.f32.mrf.mxu2 }
 0x3ab   : > { %v2533_v24 = vadd.f32 %v2532_v34, %v2444_v19  ;;  %v2357_v50 = vpop.f32.mrf.mxu0 }
 0x3ac   : > { %v2621_v31 = vpop.f32.mrf.mxu3  ;;  %v2358_v27 = vadd.f32 %v2357_v50, %v7360_v29  ;;  %v2446_v30 = vpop.f32.mrf.mxu1 }
 0x3ad   : > { %v7749_v22 = vadd.f32 %v2621_v31, %v2533_v24 }
 0x3ae   : > { %v2447_v1 = vadd.f32 %v2446_v30, %v2358_v27  ;;  %2672 = vmatmul.bf16.gmra.mxu0 %v7223_v49 }
 0x3af   : > { %9764 = vst [vmem:[#allocation125_spill] sm:$0xff] %v7749_v22  ;;  %2761 = vmatmul.bf16.gmra.mxu1 %v7231_v54  ;;  %2850 = vmatmul.bf16.gmra.mxu2 %v9765_v43  ;;  %v9768_v22 = vld [vmem:[#allocation153_spill] sm:$0xff] }
 0x3b1   : > { %2939 = vmatmul.bf16.gmra.mxu3 %v9766_v60 }
 0x3b2   : > { %v2535_v18 = vpop.f32.mrf.mxu2 }
 0x3b3   : > { %v2536_v53 = vadd.f32 %v2535_v18, %v2447_v1  ;;  %v2359_v39 = vpop.f32.mrf.mxu0  ;;  %v9769_v1 = vld [vmem:[#allocation155_spill] sm:$0xff]  ;;  %v9770_v18 = vld [vmem:[#allocation156_spill] sm:$0xff] }
 0x3b4   : > { %v2624_v38 = vpop.f32.mrf.mxu3  ;;  %v2360_v2 = vadd.f32 %v2359_v39, %v7360_v29  ;;  %v2448_v19 = vpop.f32.mrf.mxu1  ;;  %v9771_v39 = vld [vmem:[#allocation158_spill] sm:$0xff] }
 0x3b5   : > { %v7756_v34 = vadd.f32 %v2624_v38, %v2536_v53 }
 0x3b6   : > { %v2449_v24 = vadd.f32 %v2448_v19, %v2360_v2 }
 0x3ba   : > { %v2537_v31 = vpop.f32.mrf.mxu2 }
 0x3bb   : > { %v2538_v30 = vadd.f32 %v2537_v31, %v2449_v24  ;;  %v2362_v49 = vpop.f32.mrf.mxu0 }
 0x3bc   : > { %v2626_v50 = vpop.f32.mrf.mxu3  ;;  %v2363_v54 = vadd.f32 %v2362_v49, %v7360_v29  ;;  %v2451_v27 = vpop.f32.mrf.mxu1 }
 0x3bd   : > { %v7759_v43 = vadd.f32 %v2626_v50, %v2538_v30 }
 0x3be   : > { %v2452_v60 = vadd.f32 %v2451_v27, %v2363_v54  ;;  %2677 = vmatmul.bf16.gmra.mxu0 %v9768_v22 }
 0x3bf   : > { %9767 = vst [vmem:[#allocation126_spill] sm:$0xff] %v7759_v43  ;;  %2766 = vmatmul.bf16.gmra.mxu1 %v9769_v1  ;;  %2855 = vmatmul.bf16.gmra.mxu2 %v9770_v18 }
 0x3c1   : > { %2944 = vmatmul.bf16.gmra.mxu3 %v9771_v39 }
 0x3c2   : > { %v2540_v53 = vpop.f32.mrf.mxu2 }
 0x3c3   : > { %v2541_v38 = vadd.f32 %v2540_v53, %v2452_v60  ;;  %v2364_v19 = vpop.f32.mrf.mxu0 }
 0x3c4   : > { %v2629_v2 = vpop.f32.mrf.mxu3  ;;  %v2365_v24 = vadd.f32 %v2364_v19, %v7360_v29  ;;  %v2453_v31 = vpop.f32.mrf.mxu1 }
 0x3c5   : > { %v7766_v49 = vadd.f32 %v2629_v2, %v2541_v38 }
 0x3c6   : > { %v2454_v30 = vadd.f32 %v2453_v31, %v2365_v24 }
 0x3ca   : > { %v2542_v50 = vpop.f32.mrf.mxu2 }
 0x3cb   : > { %v2543_v54 = vadd.f32 %v2542_v50, %v2454_v30  ;;  %v2367_v22 = vpop.f32.mrf.mxu0  ;;  %v9772_v50 = vld [vmem:[#allocation164_spill] sm:$0xff] }
 0x3cc   : > { %v2631_v27 = vpop.f32.mrf.mxu3  ;;  %v2368_v1 = vadd.f32 %v2367_v22, %v7360_v29  ;;  %v2456_v43 = vpop.f32.mrf.mxu1 }
 0x3cd   : > { %v7769_v18 = vadd.f32 %v2631_v27, %v2543_v54 }
 0x3ce   : > { %v2457_v39 = vadd.f32 %v2456_v43, %v2368_v1  ;;  %2682 = vmatmul.bf16.gmra.mxu0 %v7319_v6  ;;  %v7779_v43 = vperm.slane %v9772_v50, 1  ;;  %v9773_v1 = vld [vmem:[#allocation167_spill] sm:$0xff] }
 0x3cf   : > { %2771 = vmatmul.bf16.gmra.mxu1 %v7327_v48  ;;  %2860 = vmatmul.bf16.gmra.mxu2 %v7333_v42 }
 0x3d1   : > { %2949 = vmatmul.bf16.gmra.mxu3 %v7342_v63 }
 0x3d2   : > { %v2545_v60 = vpop.f32.mrf.mxu2 }
 0x3d3   : > { %v2546_v53 = vadd.f32 %v2545_v60, %v2457_v39  ;;  %v2369_v2 = vpop.f32.mrf.mxu0  ;;  %v9775_v39 = vld [vmem:[#allocation169_spill] sm:$0xff] }
 0x3d4   : > { %v2634_v38 = vpop.f32.mrf.mxu3  ;;  %v2370_v19 = vadd.f32 %v2369_v2, %v7360_v29  ;;  %v2458_v24 = vpop.f32.mrf.mxu1  ;;  %v9774_v29 = vld [vmem:[#allocation168_spill] sm:$0xff] }
 0x3d5   : > { %v7776_v31 = vadd.f32 %v2634_v38, %v2546_v53 }
 0x3d6   : > { %v2459_v30 = vadd.f32 %v2458_v24, %v2370_v19 }
 0x3da   : > { %v2547_v6 = vpop.f32.mrf.mxu2 }
 0x3db   : > { %v2548_v54 = vadd.f32 %v2547_v6, %v2459_v30  ;;  %v2648_v27 = vpop.f32.mrf.mxu0 }
 0x3dc   : > { %v2636_v48 = vpop.f32.mrf.mxu3  ;;  %v2737_v42 = vpop.f32.mrf.mxu1  ;;  %v2649_v63 = vadd.f32 %v2648_v27, %v7779_v43 }
 0x3dd   : > { %v7781_v22 = vadd.f32 %v2636_v48, %v2548_v54 }
 0x3de   : > { %2687 = vmatmul.bf16.gmra.mxu0 %v7375_v40  ;;  %v2738_v60 = vadd.f32 %v2737_v42, %v2649_v63  ;;  %v3059_v40 = vld [vmem:[%s9149_s5] sm:$0x3]  ;;  %v5504_v42 = vpop.eup %5503 }
 0x3df   : > { %2776 = vmatmul.bf16.gmra.mxu1 %v9773_v1  ;;  %2865 = vmatmul.bf16.gmra.mxu2 %v9774_v29  ;;  %v7793_v48 = vperm.slane %v3059_v40, 0  ;;  %v7795_v27 = vperm.slane %v3059_v40, 1 }
 0x3e1   : > { %2954 = vmatmul.bf16.gmra.mxu3 %v9775_v39 }
 0x3e2   : > { %v2826_v53 = vpop.f32.mrf.mxu2 }
 0x3e3   : > { %v2827_v38 = vadd.f32 %v2826_v53, %v2738_v60  ;;  %v2650_v19 = vpop.f32.mrf.mxu0 }
 0x3e4   : > { %v2915_v2 = vpop.f32.mrf.mxu3  ;;  %v2739_v24 = vpop.f32.mrf.mxu1  ;;  %v2651_v50 = vadd.f32 %v2650_v19, %v7779_v43 }
 0x3e5   : > { %v2916_v30 = vadd.f32 %v2915_v2, %v2827_v38  ;;  %v3065_v38 = vmul.f32 %v5504_v42, %v7793_v48 }
 0x3e6   : > { %v2740_v6 = vadd.f32 %v2739_v24, %v2651_v50 }
 0x3e7   : > { %5505 = vtanh.f32 %v2916_v30 }
 0x3e8   : > { %5507 = vtanh.f32 %v7419_v26 }
 0x3ea   : > { %v2828_v54 = vpop.f32.mrf.mxu2 }
 0x3eb   : > { %v2829_v63 = vadd.f32 %v2828_v54, %v2740_v6  ;;  %v2653_v29 = vpop.f32.mrf.mxu0 }
 0x3ec   : > { %v2917_v1 = vpop.f32.mrf.mxu3  ;;  %v2742_v39 = vpop.f32.mrf.mxu1  ;;  %v2654_v53 = vadd.f32 %v2653_v29, %v7779_v43 }
 0x3ed   : > { %v5506_v51 = vpop.eup %5505  ;;  %v2918_v60 = vadd.f32 %v2917_v1, %v2829_v63 }
 0x3ee   : > { %2692 = vmatmul.bf16.gmra.mxu0 %v7417_v36  ;;  %v3066_v2 = vmul.f32 %v5506_v51, %v7795_v27  ;;  %v2743_v24 = vadd.f32 %v2742_v39, %v2654_v53  ;;  %v5508_v26 = vpop.eup %5507 }
 0x3ef   : > { %5509 = vtanh.f32 %v2918_v60  ;;  %2781 = vmatmul.bf16.gmra.mxu1 %v7425_v62  ;;  %2870 = vmatmul.bf16.gmra.mxu2 %v7431_v9  ;;  %v3067_v62 = vmul.f32 %v5508_v26, %v7793_v48 }
 0x3f0   : > { %v3129_v19 = vadd.f32 %v3066_v2, %v3065_v38  ;;  %5511 = vtanh.f32 %v7444_v17 }
 0x3f1   : > { %2959 = vmatmul.bf16.gmra.mxu3 %v7438_v13 }
 0x3f2   : > { %v2831_v30 = vpop.f32.mrf.mxu2  ;;  %3130 = vadd.xlane.f32.xlu0 %v3129_v19 }
 0x3f3   : > { %v2832_v50 = vadd.f32 %v2831_v30, %v2743_v24  ;;  %v2655_v6 = vpop.f32.mrf.mxu0  ;;  %v9776_v24 = vld [vmem:[#allocation170_spill] sm:$0xff] }
 0x3f4   : > { %v2920_v40 = vpop.f32.mrf.mxu3  ;;  %v2744_v36 = vpop.f32.mrf.mxu1  ;;  %v2656_v63 = vadd.f32 %v2655_v6, %v7779_v43  ;;  %v9779_v6 = vld [vmem:[#allocation173_spill] sm:$0xff] }
 0x3f5   : > { %v5510_v54 = vpop.eup %5509  ;;  %v2921_v42 = vadd.f32 %v2920_v40, %v2832_v50  ;;  %v9777_v50 = vld [vmem:[#allocation171_spill] sm:$0xff]  ;;  %v9778_v40 = vld [vmem:[#allocation172_spill] sm:$0xff] }
 0x3f6   : > { %v3068_v9 = vmul.f32 %v5510_v54, %v7795_v27  ;;  %v2745_v1 = vadd.f32 %v2744_v36, %v2656_v63  ;;  %v5512_v39 = vpop.eup %5511 }
 0x3f7   : > { %5513 = vtanh.f32 %v2921_v42  ;;  %v3069_v30 = vmul.f32 %v5512_v39, %v7793_v48 }
 0x3f8   : > { %v3132_v13 = vadd.f32 %v3068_v9, %v3067_v62  ;;  %5515 = vtanh.f32 %v7461_v15 }
 0x3fa   : > { %v2833_v29 = vpop.f32.mrf.mxu2  ;;  %3133 = vadd.xlane.f32.xlu0 %v3132_v13 }
 0x3fb   : > { %v2834_v51 = vadd.f32 %v2833_v29, %v2745_v1  ;;  %v2658_v53 = vpop.f32.mrf.mxu0 }
 0x3fc   : > { %v2922_v60 = vpop.f32.mrf.mxu3  ;;  %v2747_v38 = vpop.f32.mrf.mxu1  ;;  %v2659_v19 = vadd.f32 %v2658_v53, %v7779_v43 }
 0x3fd   : > { %v5514_v2 = vpop.eup %5513  ;;  %v2923_v17 = vadd.f32 %v2922_v60, %v2834_v51 }
 0x3fe   : > { %2697 = vmatmul.bf16.gmra.mxu0 %v9776_v24  ;;  %v3070_v26 = vmul.f32 %v5514_v2, %v7795_v27  ;;  %v2748_v54 = vadd.f32 %v2747_v38, %v2659_v19  ;;  %v5516_v15 = vpop.eup %5515 }
 0x3ff   : > { %5517 = vtanh.f32 %v2923_v17  ;;  %2786 = vmatmul.bf16.gmra.mxu1 %v9777_v50  ;;  %2875 = vmatmul.bf16.gmra.mxu2 %v9778_v40  ;;  %v3071_v51 = vmul.f32 %v5516_v15, %v7793_v48 }
 0x400   : > { %v3135_v36 = vadd.f32 %v3070_v26, %v3069_v30  ;;  %5519 = vtanh.f32 %v7486_v41 }
 0x401   : > { %2964 = vmatmul.bf16.gmra.mxu3 %v9779_v6 }
 0x402   : > { %v2836_v42 = vpop.f32.mrf.mxu2  ;;  %3136 = vadd.xlane.f32.xlu1 %v3135_v36 }
 0x403   : > { %v2837_v63 = vadd.f32 %v2836_v42, %v2748_v54  ;;  %v2660_v9 = vpop.f32.mrf.mxu0 }
 0x404   : > { %v2925_v62 = vpop.f32.mrf.mxu3  ;;  %v2749_v13 = vpop.f32.mrf.mxu1  ;;  %v2661_v39 = vadd.f32 %v2660_v9, %v7779_v43 }
 0x405   : > { %v5518_v1 = vpop.eup %5517  ;;  %v2926_v29 = vadd.f32 %v2925_v62, %v2837_v63 }
 0x406   : > { %v3072_v60 = vmul.f32 %v5518_v1, %v7795_v27  ;;  %v2750_v38 = vadd.f32 %v2749_v13, %v2661_v39  ;;  %v5520_v17 = vpop.eup %5519 }
 0x407   : > { %5521 = vtanh.f32 %v2926_v29  ;;  %v3073_v6 = vmul.f32 %v5520_v17, %v7793_v48 }
 0x408   : > { %v3138_v53 = vadd.f32 %v3072_v60, %v3071_v51  ;;  %5523 = vtanh.f32 %v7503_v0 }
 0x40a   : > { %v2838_v2 = vpop.f32.mrf.mxu2  ;;  %3139 = vadd.xlane.f32.xlu1 %v3138_v53 }
 0x40b   : > { %v2839_v19 = vadd.f32 %v2838_v2, %v2750_v38  ;;  %v2663_v30 = vpop.f32.mrf.mxu0 }
 0x40c   : > { %v2927_v24 = vpop.f32.mrf.mxu3  ;;  %v2752_v26 = vpop.f32.mrf.mxu1  ;;  %v2664_v40 = vadd.f32 %v2663_v30, %v7779_v43  ;;  %v9780_v30 = vld [vmem:[#allocation174_spill] sm:$0xff] }
 0x40d   : > { %v5522_v50 = vpop.eup %5521  ;;  %v2928_v41 = vadd.f32 %v2927_v24, %v2839_v19 }
 0x40e   : > { %2702 = vmatmul.bf16.gmra.mxu0 %v7501_v3  ;;  %v3074_v36 = vmul.f32 %v5522_v50, %v7795_v27  ;;  %v2753_v42 = vadd.f32 %v2752_v26, %v2664_v40  ;;  %v5524_v0 = vpop.eup %5523  ;;  %v9782_v40 = vld [vmem:[#allocation176_spill] sm:$0xff] }
 0x40f   : > { %5525 = vtanh.f32 %v2928_v41  ;;  %2791 = vmatmul.bf16.gmra.mxu1 %v7509_v46  ;;  %2880 = vmatmul.bf16.gmra.mxu2 %v7515_v57  ;;  %v3075_v46 = vmul.f32 %v5524_v0, %v7793_v48  ;;  %v9781_v41 = vld [vmem:[#allocation175_spill] sm:$0xff] }
 0x410   : > { %v3141_v54 = vadd.f32 %v3074_v36, %v3073_v6  ;;  %5527 = vtanh.f32 %v7528_v59  ;;  %v9783_v6 = vld [vmem:[#allocation177_spill] sm:$0xff] }
 0x411   : > { %2969 = vmatmul.bf16.gmra.mxu3 %v7522_v25 }
 0x412   : > { %v2841_v15 = vpop.f32.mrf.mxu2  ;;  %3142 = vadd.xlane.f32.xlu2 %v3141_v54 }
 0x413   : > { %v2842_v63 = vadd.f32 %v2841_v15, %v2753_v42  ;;  %v2665_v9 = vpop.f32.mrf.mxu0 }
 0x414   : > { %v2930_v62 = vpop.f32.mrf.mxu3  ;;  %v2754_v3 = vpop.f32.mrf.mxu1  ;;  %v2666_v29 = vadd.f32 %v2665_v9, %v7779_v43 }
 0x415   : > { %v5526_v13 = vpop.eup %5525  ;;  %v2931_v1 = vadd.f32 %v2930_v62, %v2842_v63 }
 0x416   : > { %v3076_v57 = vmul.f32 %v5526_v13, %v7795_v27  ;;  %v2755_v39 = vadd.f32 %v2754_v3, %v2666_v29  ;;  %v5528_v60 = vpop.eup %5527 }
 0x417   : > { %5529 = vtanh.f32 %v2931_v1  ;;  %v3077_v26 = vmul.f32 %v5528_v60, %v7793_v48 }
 0x418   : > { %v3144_v25 = vadd.f32 %v3076_v57, %v3075_v46  ;;  %5531 = vtanh.f32 %v7545_v61 }
 0x41a   : > { %v2843_v51 = vpop.f32.mrf.mxu2  ;;  %3145 = vadd.xlane.f32.xlu2 %v3144_v25 }
 0x41b   : > { %v2844_v53 = vadd.f32 %v2843_v51, %v2755_v39  ;;  %v2668_v2 = vpop.f32.mrf.mxu0 }
 0x41c   : > { %v2932_v38 = vpop.f32.mrf.mxu3  ;;  %v2757_v17 = vpop.f32.mrf.mxu1  ;;  %v2669_v24 = vadd.f32 %v2668_v2, %v7779_v43 }
 0x41d   : > { %v5530_v19 = vpop.eup %5529  ;;  %v2933_v59 = vadd.f32 %v2932_v38, %v2844_v53 }
 0x41e   : > { %2707 = vmatmul.bf16.gmra.mxu0 %v9780_v30  ;;  %v3078_v50 = vmul.f32 %v5530_v19, %v7795_v27  ;;  %v2758_v54 = vadd.f32 %v2757_v17, %v2669_v24  ;;  %v5532_v61 = vpop.eup %5531 }
 0x41f   : > { %5533 = vtanh.f32 %v2933_v59  ;;  %2796 = vmatmul.bf16.gmra.mxu1 %v9781_v41  ;;  %2885 = vmatmul.bf16.gmra.mxu2 %v9782_v40  ;;  %v3079_v1 = vmul.f32 %v5532_v61, %v7793_v48 }
 0x420   : > { %v3147_v36 = vadd.f32 %v3078_v50, %v3077_v26  ;;  %5535 = vtanh.f32 %v7570_v23 }
 0x421   : > { %2974 = vmatmul.bf16.gmra.mxu3 %v9783_v6 }
 0x422   : > { %v2846_v42 = vpop.f32.mrf.mxu2  ;;  %3148 = vadd.xlane.f32.xlu0 %v3147_v36 }
 0x423   : > { %v2847_v15 = vadd.f32 %v2846_v42, %v2758_v54  ;;  %v2670_v63 = vpop.f32.mrf.mxu0 }
 0x424   : > { %v2935_v0 = vpop.f32.mrf.mxu3  ;;  %v2759_v62 = vpop.f32.mrf.mxu1  ;;  %v2671_v13 = vadd.f32 %v2670_v63, %v7779_v43 }
 0x425   : > { %v5534_v9 = vpop.eup %5533  ;;  %v2936_v3 = vadd.f32 %v2935_v0, %v2847_v15 }
 0x426   : > { %v3080_v29 = vmul.f32 %v5534_v9, %v7795_v27  ;;  %v2760_v57 = vadd.f32 %v2759_v62, %v2671_v13  ;;  %v5536_v39 = vpop.eup %5535 }
 0x427   : > { %5537 = vtanh.f32 %v2936_v3  ;;  %v3081_v19 = vmul.f32 %v5536_v39, %v7793_v48 }
 0x428   : > { %v3150_v46 = vadd.f32 %v3080_v29, %v3079_v1  ;;  %5539 = vtanh.f32 %v7587_v28 }
 0x42a   : > { %v2848_v25 = vpop.f32.mrf.mxu2  ;;  %3151 = vadd.xlane.f32.xlu1 %v3150_v46  ;;  %v9784_v46 = vld [vmem:[#allocation178_spill] sm:$0xff] }
 0x42b   : > { %v2849_v51 = vadd.f32 %v2848_v25, %v2760_v57  ;;  %v2673_v53 = vpop.f32.mrf.mxu0  ;;  %v9785_v57 = vld [vmem:[#allocation179_spill] sm:$0xff] }
 0x42c   : > { %v2937_v60 = vpop.f32.mrf.mxu3  ;;  %v2762_v38 = vpop.f32.mrf.mxu1  ;;  %v2674_v17 = vadd.f32 %v2673_v53, %v7779_v43 }
 0x42d   : > { %v5538_v2 = vpop.eup %5537  ;;  %v2938_v23 = vadd.f32 %v2937_v60, %v2849_v51 }
 0x42e   : > { %2712 = vmatmul.bf16.gmra.mxu0 %v7585_v4  ;;  %v3082_v59 = vmul.f32 %v5538_v2, %v7795_v27  ;;  %v2763_v30 = vadd.f32 %v2762_v38, %v2674_v17  ;;  %v5540_v28 = vpop.eup %5539 }
 0x42f   : > { %5541 = vtanh.f32 %v2938_v23  ;;  %2801 = vmatmul.bf16.gmra.mxu1 %v7593_v37  ;;  %2890 = vmatmul.bf16.gmra.mxu2 %v7599_v33  ;;  %v3083_v37 = vmul.f32 %v5540_v28, %v7793_v48 }
 0x430   : > { %v3153_v24 = vadd.f32 %v3082_v59, %v3081_v19  ;;  %5543 = vtanh.f32 %v7612_v12 }
 0x431   : > { %2979 = vmatmul.bf16.gmra.mxu3 %v7606_v58 }
 0x432   : > { %v2851_v26 = vpop.f32.mrf.mxu2  ;;  %3154 = vadd.xlane.f32.xlu2 %v3153_v24 }
 0x433   : > { %v2852_v50 = vadd.f32 %v2851_v26, %v2763_v30  ;;  %v2675_v40 = vpop.f32.mrf.mxu0 }
 0x434   : > { %v2940_v41 = vpop.f32.mrf.mxu3  ;;  %v2764_v4 = vpop.f32.mrf.mxu1  ;;  %v2676_v54 = vadd.f32 %v2675_v40, %v7779_v43 }
 0x435   : > { %v5542_v6 = vpop.eup %5541  ;;  %v2941_v36 = vadd.f32 %v2940_v41, %v2852_v50 }
 0x436   : > { %v3084_v33 = vmul.f32 %v5542_v6, %v7795_v27  ;;  %v2765_v42 = vadd.f32 %v2764_v4, %v2676_v54  ;;  %v5544_v15 = vpop.eup %5543 }
 0x437   : > { %5545 = vtanh.f32 %v2941_v36  ;;  %v3085_v1 = vmul.f32 %v5544_v15, %v7793_v48 }
 0x438   : > { %v3156_v58 = vadd.f32 %v3084_v33, %v3083_v37  ;;  %5547 = vtanh.f32 %v7629_v45 }
 0x43a   : > { %v2853_v61 = vpop.f32.mrf.mxu2  ;;  %3157 = vadd.xlane.f32.xlu0 %v3156_v58 }
 0x43b   : > { %v2854_v0 = vadd.f32 %v2853_v61, %v2765_v42  ;;  %v2678_v62 = vpop.f32.mrf.mxu0 }
 0x43c   : > { %v2942_v63 = vpop.f32.mrf.mxu3  ;;  %v2767_v9 = vpop.f32.mrf.mxu1  ;;  %v2679_v13 = vadd.f32 %v2678_v62, %v7779_v43 }
 0x43d   : > { %v5546_v3 = vpop.eup %5545  ;;  %v2943_v12 = vadd.f32 %v2942_v63, %v2854_v0 }
 0x43e   : > { %2717 = vmatmul.bf16.gmra.mxu0 %v7627_v11  ;;  %v3086_v29 = vmul.f32 %v5546_v3, %v7795_v27  ;;  %v2768_v39 = vadd.f32 %v2767_v9, %v2679_v13  ;;  %v5548_v45 = vpop.eup %5547 }
 0x43f   : > { %5549 = vtanh.f32 %v2943_v12  ;;  %2806 = vmatmul.bf16.gmra.mxu1 %v7635_v52  ;;  %2895 = vmatmul.bf16.gmra.mxu2 %v9784_v46  ;;  %v3087_v52 = vmul.f32 %v5548_v45, %v7793_v48 }
 0x440   : > { %v3159_v25 = vadd.f32 %v3086_v29, %v3085_v1  ;;  %5551 = vtanh.f32 %v7654_v14 }
 0x441   : > { %2984 = vmatmul.bf16.gmra.mxu3 %v9785_v57 }
 0x442   : > { %v2856_v51 = vpop.f32.mrf.mxu2  ;;  %3160 = vadd.xlane.f32.xlu1 %v3159_v25 }
 0x443   : > { %v2857_v60 = vadd.f32 %v2856_v51, %v2768_v39  ;;  %v2680_v38 = vpop.f32.mrf.mxu0 }
 0x444   : > { %v2945_v53 = vpop.f32.mrf.mxu3  ;;  %v2769_v11 = vpop.f32.mrf.mxu1  ;;  %v2681_v17 = vadd.f32 %v2680_v38, %v7779_v43 }
 0x445   : > { %v5550_v2 = vpop.eup %5549  ;;  %v2946_v23 = vadd.f32 %v2945_v53, %v2857_v60 }
 0x446   : > { %v3088_v19 = vmul.f32 %v5550_v2, %v7795_v27  ;;  %v2770_v24 = vadd.f32 %v2769_v11, %v2681_v17  ;;  %v5552_v26 = vpop.eup %5551 }
 0x447   : > { %5553 = vtanh.f32 %v2946_v23  ;;  %v3089_v36 = vmul.f32 %v5552_v26, %v7793_v48 }
 0x448   : > { %v3162_v59 = vadd.f32 %v3088_v19, %v3087_v52  ;;  %5555 = vtanh.f32 %v7671_v21 }
 0x44a   : > { %v2858_v30 = vpop.f32.mrf.mxu2  ;;  %3163 = vadd.xlane.f32.xlu2 %v3162_v59 }
 0x44b   : > { %v2859_v28 = vadd.f32 %v2858_v30, %v2770_v24  ;;  %v2683_v41 = vpop.f32.mrf.mxu0 }
 0x44c   : > { %v2947_v50 = vpop.f32.mrf.mxu3  ;;  %v2772_v40 = vpop.f32.mrf.mxu1  ;;  %v2684_v6 = vadd.f32 %v2683_v41, %v7779_v43 }
 0x44d   : > { %v5554_v4 = vpop.eup %5553  ;;  %v2948_v14 = vadd.f32 %v2947_v50, %v2859_v28 }
 0x44e   : > { %2722 = vmatmul.bf16.gmra.mxu0 %v7669_v35  ;;  %v3090_v54 = vmul.f32 %v5554_v4, %v7795_v27  ;;  %v2773_v33 = vadd.f32 %v2772_v40, %v2684_v6  ;;  %v5556_v21 = vpop.eup %5555 }
 0x44f   : > { %5557 = vtanh.f32 %v2948_v14  ;;  %2811 = vmatmul.bf16.gmra.mxu1 %v7677_v8  ;;  %2900 = vmatmul.bf16.gmra.mxu2 %v7683_v56  ;;  %v3091_v8 = vmul.f32 %v5556_v21, %v7793_v48 }
 0x450   : > { %v3165_v37 = vadd.f32 %v3090_v54, %v3089_v36  ;;  %5559 = vtanh.f32 %v7696_v55 }
 0x451   : > { %2989 = vmatmul.bf16.gmra.mxu3 %v7690_v32 }
 0x452   : > { %v2861_v58 = vpop.f32.mrf.mxu2  ;;  %3166 = vadd.xlane.f32.xlu0 %v3165_v37 }
 0x453   : > { %v2862_v42 = vadd.f32 %v2861_v58, %v2773_v33  ;;  %v2685_v15 = vpop.f32.mrf.mxu0 }
 0x454   : > { %v2950_v61 = vpop.f32.mrf.mxu3  ;;  %v2774_v35 = vpop.f32.mrf.mxu1  ;;  %v2686_v62 = vadd.f32 %v2685_v15, %v7779_v43 }
 0x455   : > { %v5558_v0 = vpop.eup %5557  ;;  %v2951_v63 = vadd.f32 %v2950_v61, %v2862_v42 }
 0x456   : > { %v3092_v56 = vmul.f32 %v5558_v0, %v7795_v27  ;;  %v2775_v9 = vadd.f32 %v2774_v35, %v2686_v62  ;;  %v5560_v12 = vpop.eup %5559 }
 0x457   : > { %5561 = vtanh.f32 %v2951_v63  ;;  %v3093_v39 = vmul.f32 %v5560_v12, %v7793_v48 }
 0x458   : > { %v3168_v32 = vadd.f32 %v3092_v56, %v3091_v8  ;;  %5563 = vtanh.f32 %v7699_v5 }
 0x45a   : > { %v2863_v3 = vpop.f32.mrf.mxu2  ;;  %3169 = vadd.xlane.f32.xlu1 %v3168_v32 }
 0x45b   : > { %v2864_v13 = vadd.f32 %v2863_v3, %v2775_v9  ;;  %v2688_v29 = vpop.f32.mrf.mxu0 }
 0x45c   : > { %v2952_v1 = vpop.f32.mrf.mxu3  ;;  %v2777_v46 = vpop.f32.mrf.mxu1  ;;  %v2689_v25 = vadd.f32 %v2688_v29, %v7779_v43 }
 0x45d   : > { %v5562_v57 = vpop.eup %5561  ;;  %v2953_v55 = vadd.f32 %v2952_v1, %v2864_v13 }
 0x45e   : > { %v3094_v51 = vmul.f32 %v5562_v57, %v7795_v27  ;;  %v2778_v60 = vadd.f32 %v2777_v46, %v2689_v25  ;;  %v5564_v38 = vpop.eup %5563 }
 0x45f   : > { %5565 = vtanh.f32 %v2953_v55  ;;  %v3095_v59 = vmul.f32 %v5564_v38, %v7793_v48 }
 0x460   : > { %v3171_v45 = vadd.f32 %v3094_v51, %v3093_v39  ;;  %5567 = vtanh.f32 %v7706_v20 }
 0x462   : > { %v2866_v53 = vpop.f32.mrf.mxu2  ;;  %3172 = vadd.xlane.f32.xlu2 %v3171_v45 }
 0x463   : > { %v2867_v11 = vadd.f32 %v2866_v53, %v2778_v60  ;;  %v2690_v23 = vpop.f32.mrf.mxu0 }
 0x464   : > { %v2955_v2 = vpop.f32.mrf.mxu3  ;;  %v2779_v17 = vpop.f32.mrf.mxu1  ;;  %v2691_v19 = vadd.f32 %v2690_v23, %v7779_v43 }
 0x465   : > { %v5566_v52 = vpop.eup %5565  ;;  %v2956_v5 = vadd.f32 %v2955_v2, %v2867_v11 }
 0x466   : > { %v3096_v24 = vmul.f32 %v5566_v52, %v7795_v27  ;;  %v2780_v26 = vadd.f32 %v2779_v17, %v2691_v19  ;;  %v5568_v50 = vpop.eup %5567  ;;  %v9786_v52 = vld [vmem:[#allocation114_spill] sm:$0xff] }
 0x467   : > { %5569 = vtanh.f32 %v2956_v5  ;;  %v3097_v54 = vmul.f32 %v5568_v50, %v7793_v48 }
 0x468   : > { %v3174_v30 = vadd.f32 %v3096_v24, %v3095_v59  ;;  %5571 = vtanh.f32 %v7709_v16 }
 0x46a   : > { %v2868_v28 = vpop.f32.mrf.mxu2  ;;  %3175 = vadd.xlane.f32.xlu0 %v3174_v30 }
 0x46b   : > { %v2869_v41 = vadd.f32 %v2868_v28, %v2780_v26  ;;  %v2693_v4 = vpop.f32.mrf.mxu0 }
 0x46c   : > { %v2957_v40 = vpop.f32.mrf.mxu3  ;;  %v2782_v14 = vpop.f32.mrf.mxu1  ;;  %v2694_v36 = vadd.f32 %v2693_v4, %v7779_v43 }
 0x46d   : > { %v5570_v6 = vpop.eup %5569  ;;  %v2958_v20 = vadd.f32 %v2957_v40, %v2869_v41 }
 0x46e   : > { %v3098_v37 = vmul.f32 %v5570_v6, %v7795_v27  ;;  %v2783_v58 = vadd.f32 %v2782_v14, %v2694_v36  ;;  %v5572_v42 = vpop.eup %5571  ;;  %v9787_v6 = vld [vmem:[#allocation120_spill] sm:$0xff] }
 0x46f   : > { %5573 = vtanh.f32 %v2958_v20  ;;  %v3099_v8 = vmul.f32 %v5572_v42, %v7793_v48 }
 0x470   : > { %v3177_v33 = vadd.f32 %v3098_v37, %v3097_v54  ;;  %5575 = vtanh.f32 %v7716_v47 }
 0x472   : > { %v2871_v21 = vpop.f32.mrf.mxu2  ;;  %3178 = vadd.xlane.f32.xlu1 %v3177_v33 }
 0x473   : > { %v2872_v61 = vadd.f32 %v2871_v21, %v2783_v58  ;;  %v2695_v35 = vpop.f32.mrf.mxu0 }
 0x474   : > { %v2960_v15 = vpop.f32.mrf.mxu3  ;;  %v2784_v0 = vpop.f32.mrf.mxu1  ;;  %v2696_v62 = vadd.f32 %v2695_v35, %v7779_v43 }
 0x475   : > { %v5574_v63 = vpop.eup %5573  ;;  %v2961_v16 = vadd.f32 %v2960_v15, %v2872_v61 }
 0x476   : > { %v3100_v56 = vmul.f32 %v5574_v63, %v7795_v27  ;;  %v2785_v9 = vadd.f32 %v2784_v0, %v2696_v62  ;;  %v5576_v12 = vpop.eup %5575 }
 0x477   : > { %5577 = vtanh.f32 %v2961_v16  ;;  %v3101_v25 = vmul.f32 %v5576_v12, %v7793_v48 }
 0x478   : > { %v3180_v32 = vadd.f32 %v3100_v56, %v3099_v8  ;;  %5579 = vtanh.f32 %v7719_v10 }
 0x47a   : > { %v2873_v3 = vpop.f32.mrf.mxu2  ;;  %3181 = vadd.xlane.f32.xlu2 %v3180_v32 }
 0x47b   : > { %v2874_v13 = vadd.f32 %v2873_v3, %v2785_v9  ;;  %v2698_v29 = vpop.f32.mrf.mxu0 }
 0x47c   : > { %v2962_v1 = vpop.f32.mrf.mxu3  ;;  %v2787_v46 = vpop.f32.mrf.mxu1  ;;  %v2699_v55 = vadd.f32 %v2698_v29, %v7779_v43 }
 0x47d   : > { %v5578_v57 = vpop.eup %5577  ;;  %v2963_v47 = vadd.f32 %v2962_v1, %v2874_v13 }
 0x47e   : > { %v3102_v39 = vmul.f32 %v5578_v57, %v7795_v27  ;;  %v2788_v45 = vadd.f32 %v2787_v46, %v2699_v55  ;;  %v5580_v53 = vpop.eup %5579 }
 0x47f   : > { %5581 = vtanh.f32 %v2963_v47  ;;  %v3103_v19 = vmul.f32 %v5580_v53, %v7793_v48  ;;  %v9788_v47 = vld [vmem:[#allocation123_spill] sm:$0xff] }
 0x480   : > { %v3183_v51 = vadd.f32 %v3102_v39, %v3101_v25  ;;  %5583 = vtanh.f32 %v9786_v52 }
 0x482   : > { %v2876_v60 = vpop.f32.mrf.mxu2  ;;  %3184 = vadd.xlane.f32.xlu0 %v3183_v51 }
 0x483   : > { %v2877_v38 = vadd.f32 %v2876_v60, %v2788_v45  ;;  %v2700_v2 = vpop.f32.mrf.mxu0 }
 0x484   : > { %v2965_v11 = vpop.f32.mrf.mxu3  ;;  %v2789_v23 = vpop.f32.mrf.mxu1  ;;  %v2701_v5 = vadd.f32 %v2700_v2, %v7779_v43 }
 0x485   : > { %v5582_v17 = vpop.eup %5581  ;;  %v2966_v10 = vadd.f32 %v2965_v11, %v2877_v38 }
 0x486   : > { %v3104_v59 = vmul.f32 %v5582_v17, %v7795_v27  ;;  %v2790_v30 = vadd.f32 %v2789_v23, %v2701_v5  ;;  %v5584_v28 = vpop.eup %5583 }
 0x487   : > { %5585 = vtanh.f32 %v2966_v10  ;;  %v3105_v54 = vmul.f32 %v5584_v28, %v7793_v48 }
 0x488   : > { %v3186_v24 = vadd.f32 %v3104_v59, %v3103_v19  ;;  %5587 = vtanh.f32 %v9787_v6 }
 0x48a   : > { %v2878_v26 = vpop.f32.mrf.mxu2  ;;  %3187 = vadd.xlane.f32.xlu1 %v3186_v24 }
 0x48b   : > { %v2879_v50 = vadd.f32 %v2878_v26, %v2790_v30  ;;  %v2703_v40 = vpop.f32.mrf.mxu0 }
 0x48c   : > { %v2967_v41 = vpop.f32.mrf.mxu3  ;;  %v2792_v4 = vpop.f32.mrf.mxu1  ;;  %v2704_v36 = vadd.f32 %v2703_v40, %v7779_v43 }
 0x48d   : > { %v5586_v14 = vpop.eup %5585  ;;  %v2968_v20 = vadd.f32 %v2967_v41, %v2879_v50 }
 0x48e   : > { %v3106_v37 = vmul.f32 %v5586_v14, %v7795_v27  ;;  %v2793_v58 = vadd.f32 %v2792_v4, %v2704_v36  ;;  %v5588_v42 = vpop.eup %5587  ;;  %v9789_v14 = vld [vmem:[#allocation125_spill] sm:$0xff] }
 0x48f   : > { %5589 = vtanh.f32 %v2968_v20  ;;  %v3107_v8 = vmul.f32 %v5588_v42, %v7793_v48 }
 0x490   : > { %v3189_v33 = vadd.f32 %v3106_v37, %v3105_v54  ;;  %5591 = vtanh.f32 %v7736_v7 }
 0x492   : > { %v2881_v21 = vpop.f32.mrf.mxu2  ;;  %3190 = vadd.xlane.f32.xlu2 %v3189_v33 }
 0x493   : > { %v2882_v61 = vadd.f32 %v2881_v21, %v2793_v58  ;;  %v2705_v35 = vpop.f32.mrf.mxu0 }
 0x494   : > { %v2970_v15 = vpop.f32.mrf.mxu3  ;;  %v2794_v0 = vpop.f32.mrf.mxu1  ;;  %v2706_v62 = vadd.f32 %v2705_v35, %v7779_v43 }
 0x495   : > { %v5590_v63 = vpop.eup %5589  ;;  %v2971_v16 = vadd.f32 %v2970_v15, %v2882_v61 }
 0x496   : > { %v3108_v56 = vmul.f32 %v5590_v63, %v7795_v27  ;;  %v2795_v9 = vadd.f32 %v2794_v0, %v2706_v62  ;;  %v5592_v12 = vpop.eup %5591 }
 0x497   : > { %5593 = vtanh.f32 %v2971_v16  ;;  %v3109_v25 = vmul.f32 %v5592_v12, %v7793_v48 }
 0x498   : > { %v3192_v32 = vadd.f32 %v3108_v56, %v3107_v8  ;;  %5595 = vtanh.f32 %v9788_v47 }
 0x49a   : > { %v2883_v3 = vpop.f32.mrf.mxu2  ;;  %3193 = vadd.xlane.f32.xlu0 %v3192_v32 }
 0x49b   : > { %v2884_v13 = vadd.f32 %v2883_v3, %v2795_v9  ;;  %v2708_v29 = vpop.f32.mrf.mxu0 }
 0x49c   : > { %v2972_v1 = vpop.f32.mrf.mxu3  ;;  %v2797_v46 = vpop.f32.mrf.mxu1  ;;  %v2709_v55 = vadd.f32 %v2708_v29, %v7779_v43 }
 0x49d   : > { %v5594_v57 = vpop.eup %5593  ;;  %v2973_v7 = vadd.f32 %v2972_v1, %v2884_v13 }
 0x49e   : > { %v3110_v39 = vmul.f32 %v5594_v57, %v7795_v27  ;;  %v2798_v45 = vadd.f32 %v2797_v46, %v2709_v55  ;;  %v5596_v53 = vpop.eup %5595  ;;  %v9790_v46 = vld [vmem:[#allocation126_spill] sm:$0xff] }
 0x49f   : > { %5597 = vtanh.f32 %v2973_v7  ;;  %v3111_v5 = vmul.f32 %v5596_v53, %v7793_v48 }
 0x4a0   : > { %v3195_v51 = vadd.f32 %v3110_v39, %v3109_v25  ;;  %5599 = vtanh.f32 %v7746_v44 }
 0x4a2   : > { %v2886_v60 = vpop.f32.mrf.mxu2  ;;  %3196 = vadd.xlane.f32.xlu1 %v3195_v51 }
 0x4a3   : > { %v2887_v38 = vadd.f32 %v2886_v60, %v2798_v45  ;;  %v2710_v2 = vpop.f32.mrf.mxu0 }
 0x4a4   : > { %v2975_v11 = vpop.f32.mrf.mxu3  ;;  %v2799_v23 = vpop.f32.mrf.mxu1  ;;  %v2711_v10 = vadd.f32 %v2710_v2, %v7779_v43 }
 0x4a5   : > { %v5598_v17 = vpop.eup %5597  ;;  %v2976_v52 = vadd.f32 %v2975_v11, %v2887_v38 }
 0x4a6   : > { %v3112_v19 = vmul.f32 %v5598_v17, %v7795_v27  ;;  %v2800_v24 = vadd.f32 %v2799_v23, %v2711_v10  ;;  %v5600_v26 = vpop.eup %5599 }
 0x4a7   : > { %5601 = vtanh.f32 %v2976_v52  ;;  %v3113_v20 = vmul.f32 %v5600_v26, %v7793_v48 }
 0x4a8   : > { %v3198_v59 = vadd.f32 %v3112_v19, %v3111_v5  ;;  %5603 = vtanh.f32 %v9789_v14 }
 0x4aa   : > { %v2888_v30 = vpop.f32.mrf.mxu2  ;;  %3199 = vadd.xlane.f32.xlu2 %v3198_v59 }
 0x4ab   : > { %v2889_v28 = vadd.f32 %v2888_v30, %v2800_v24  ;;  %v2713_v41 = vpop.f32.mrf.mxu0 }
 0x4ac   : > { %v2977_v50 = vpop.f32.mrf.mxu3  ;;  %v2802_v40 = vpop.f32.mrf.mxu1  ;;  %v2714_v6 = vadd.f32 %v2713_v41, %v7779_v43 }
 0x4ad   : > { %v5602_v4 = vpop.eup %5601  ;;  %v2978_v44 = vadd.f32 %v2977_v50, %v2889_v28 }
 0x4ae   : > { %v3114_v36 = vmul.f32 %v5602_v4, %v7795_v27  ;;  %v2803_v37 = vadd.f32 %v2802_v40, %v2714_v6  ;;  %v5604_v58 = vpop.eup %5603 }
 0x4af   : > { %5605 = vtanh.f32 %v2978_v44  ;;  %v3115_v16 = vmul.f32 %v5604_v58, %v7793_v48 }
 0x4b0   : > { %v3201_v54 = vadd.f32 %v3114_v36, %v3113_v20  ;;  %5607 = vtanh.f32 %v7756_v34 }
 0x4b2   : > { %v2891_v33 = vpop.f32.mrf.mxu2  ;;  %3202 = vadd.xlane.f32.xlu0 %v3201_v54 }
 0x4b3   : > { %v2892_v21 = vadd.f32 %v2891_v33, %v2803_v37  ;;  %v2715_v61 = vpop.f32.mrf.mxu0 }
 0x4b4   : > { %v2980_v42 = vpop.f32.mrf.mxu3  ;;  %v2804_v15 = vpop.f32.mrf.mxu1  ;;  %v2716_v63 = vadd.f32 %v2715_v61, %v7779_v43 }
 0x4b5   : > { %v5606_v35 = vpop.eup %5605  ;;  %v2981_v0 = vadd.f32 %v2980_v42, %v2892_v21 }
 0x4b6   : > { %v3116_v62 = vmul.f32 %v5606_v35, %v7795_v27  ;;  %v2805_v56 = vadd.f32 %v2804_v15, %v2716_v63  ;;  %v5608_v9 = vpop.eup %5607 }
 0x4b7   : > { %5609 = vtanh.f32 %v2981_v0  ;;  %v3117_v47 = vmul.f32 %v5608_v9, %v7793_v48 }
 0x4b8   : > { %v3204_v8 = vadd.f32 %v3116_v62, %v3115_v16  ;;  %5611 = vtanh.f32 %v9790_v46  ;;  %v3143_v46 = vpop.xlane.xlu2 %3142 }
 0x4ba   : > { %v2893_v32 = vpop.f32.mrf.mxu2  ;;  %3205 = vadd.xlane.f32.xlu1 %v3204_v8 }
 0x4bb   : > { %v2894_v3 = vadd.f32 %v2893_v32, %v2805_v56  ;;  %v2718_v13 = vpop.f32.mrf.mxu0 }
 0x4bc   : > { %v2982_v12 = vpop.f32.mrf.mxu3  ;;  %v2807_v1 = vpop.f32.mrf.mxu1  ;;  %v2719_v57 = vadd.f32 %v2718_v13, %v7779_v43 }
 0x4bd   : > { %v5610_v29 = vpop.eup %5609  ;;  %v2983_v34 = vadd.f32 %v2982_v12, %v2894_v3 }
 0x4be   : > { %v3118_v7 = vmul.f32 %v5610_v29, %v7795_v27  ;;  %v2808_v25 = vadd.f32 %v2807_v1, %v2719_v57  ;;  %v5612_v51 = vpop.eup %5611  ;;  %v3131_v29 = vpop.xlane.xlu0 %3130  ;;  %v9440_v57 = vlaneseq }
 0x4bf   : > { %5613 = vtanh.f32 %v2983_v34  ;;  %v3119_v17 = vmul.f32 %v5612_v51, %v7793_v48 }
 0x4c0   : > { %v3207_v55 = vadd.f32 %v3118_v7, %v3117_v47  ;;  %5615 = vtanh.f32 %v7766_v49  ;;  %v3146_v7 = vpop.xlane.xlu2 %3145 }
 0x4c2   : > { %v2896_v39 = vpop.f32.mrf.mxu2  ;;  %3208 = vadd.xlane.f32.xlu2 %v3207_v55  ;;  %v7951_v55 = vshrl.u32 %v9440_v57, 7 }
 0x4c3   : > { %v2897_v45 = vadd.f32 %v2896_v39, %v2808_v25  ;;  %v2720_v53 = vpop.f32.mrf.mxu0 }
 0x4c4   : > { %v2985_v60 = vpop.f32.mrf.mxu3  ;;  %v2809_v38 = vpop.f32.mrf.mxu1  ;;  %v2721_v23 = vadd.f32 %v2720_v53, %v7779_v43  ;;  %v7955_v25 = vadd.s32 8, %v7951_v55  ;;  %v7969_v53 = vadd.s32 24, %v7951_v55 }
 0x4c5   : > { %v5614_v11 = vpop.eup %5613  ;;  %v2986_v2 = vadd.f32 %v2985_v60, %v2897_v45  ;;  %v7964_v45 = vld [vmem:[#allocation5] ss:$0 sm:$0xff] }
 0x4c6   : > { %v3120_v52 = vmul.f32 %v5614_v11, %v7795_v27  ;;  %v2810_v5 = vadd.f32 %v2809_v38, %v2721_v23  ;;  %v5616_v59 = vpop.eup %5615  ;;  %v3134_v34 = vpop.xlane.xlu0 %3133  ;;  %v7976_v23 = vadd.s32 32, %v7951_v55 }
 0x4c7   : > { %5617 = vtanh.f32 %v2986_v2  ;;  %v3121_v40 = vmul.f32 %v5616_v59, %v7793_v48 }
 0x4c8   : > { %v3210_v10 = vadd.f32 %v3120_v52, %v3119_v17  ;;  %5619 = vtanh.f32 %v7769_v18  ;;  %v3155_v38 = vpop.xlane.xlu2 %3154  ;;  %v3230_v17 = vadd.f32 %v7964_v45, %v3134_v34  ;;  %v3229_v52 = vadd.f32 %v7964_v45, %v3131_v29 }
 0x4ca   : > { %v2898_v19 = vpop.f32.mrf.mxu2  ;;  %3211 = vadd.xlane.f32.xlu0 %v3210_v10 }
 0x4cb   : > { %v2899_v24 = vadd.f32 %v2898_v19, %v2810_v5  ;;  %v2723_v26 = vpop.f32.mrf.mxu0  ;;  %v7983_v5 = vadd.s32 40, %v7951_v55 }
 0x4cc   : > { %v2987_v30 = vpop.f32.mrf.mxu3  ;;  %v2724_v50 = vadd.f32 %v2723_v26, %v7779_v43  ;;  %v2812_v41 = vpop.f32.mrf.mxu1 }
 0x4cd   : > { %v5618_v28 = vpop.eup %5617  ;;  %v2988_v49 = vadd.f32 %v2987_v30, %v2899_v24  ;;  %v7989_v30 = vadd.s32 48, %v7951_v55 }
 0x4ce   : > { %v3122_v4 = vmul.f32 %v5618_v28, %v7795_v27  ;;  %v2813_v44 = vadd.f32 %v2812_v41, %v2724_v50  ;;  %v5620_v20 = vpop.eup %5619  ;;  %v3149_v39 = vpop.xlane.xlu0 %3148 }
 0x4cf   : > { %5621 = vtanh.f32 %v2988_v49  ;;  %v3123_v21 = vmul.f32 %v5620_v20, %v7793_v48 }
 0x4d0   : > { %v3213_v14 = vadd.f32 %v3122_v4, %v3121_v40  ;;  %5623 = vtanh.f32 %v7776_v31  ;;  %v7999_v40 = vadd.s32 56, %v7951_v55  ;;  %v3164_v4 = vpop.xlane.xlu2 %3163 }
 0x4d2   : > { %v2901_v6 = vpop.f32.mrf.mxu2  ;;  %3214 = vadd.xlane.f32.xlu1 %v3213_v14 }
 0x4d3   : > { %v2902_v36 = vadd.f32 %v2901_v6, %v2813_v44  ;;  %v2725_v37 = vpop.f32.mrf.mxu0  ;;  %v3233_v44 = vadd.f32 %v7964_v45, %v3143_v46  ;;  %v8051_v46 = vadd.s32 96, %v7951_v55 }
 0x4d4   : > { %v2990_v54 = vpop.f32.mrf.mxu3  ;;  %v2726_v58 = vadd.f32 %v2725_v37, %v7779_v43  ;;  %v2814_v61 = vpop.f32.mrf.mxu1 }
 0x4d5   : > { %v5622_v33 = vpop.eup %5621  ;;  %v2991_v18 = vadd.f32 %v2990_v54, %v2902_v36  ;;  %v8009_v36 = vadd.s32 64, %v7951_v55 }
 0x4d6   : > { %v3124_v42 = vmul.f32 %v5622_v33, %v7795_v27  ;;  %v2815_v35 = vadd.f32 %v2814_v61, %v2726_v58  ;;  %v5624_v63 = vpop.eup %5623  ;;  %v3158_v19 = vpop.xlane.xlu0 %3157  ;;  %v3234_v33 = vadd.f32 %v7964_v45, %v3146_v7 }
 0x4d7   : > { %5625 = vtanh.f32 %v2991_v18  ;;  %v3125_v56 = vmul.f32 %v5624_v63, %v7793_v48  ;;  %v3238_v7 = vadd.f32 %v7964_v45, %v3158_v19  ;;  %v8071_v19 = vadd.s32 112, %v7951_v55 }
 0x4d8   : > { %v3216_v15 = vadd.f32 %v3124_v42, %v3123_v21  ;;  %5627 = vtanh.f32 %v7781_v22  ;;  %v3137_v22 = vpop.xlane.xlu1 %3136  ;;  %v8021_v21 = vadd.s32 72, %v7951_v55 }
 0x4d9   : > { %v3231_v59 = vadd.f32 %v7964_v45, %v3137_v22  ;;  %9791 = vst [vmem:[#allocation128_spill] sm:$0xff] %v8071_v19 }
 0x4da   : > { %v2903_v0 = vpop.f32.mrf.mxu2  ;;  %3217 = vadd.xlane.f32.xlu2 %v3216_v15 }
 0x4db   : > { %v2904_v16 = vadd.f32 %v2903_v0, %v2815_v35  ;;  %v3235_v35 = vadd.f32 %v7964_v45, %v3149_v39 }
 0x4dc   : > { %v2992_v62 = vpop.f32.mrf.mxu3 }
 0x4dd   : > { %v5626_v8 = vpop.eup %5625  ;;  %v2993_v31 = vadd.f32 %v2992_v62, %v2904_v16  ;;  %v8031_v16 = vadd.s32 80, %v7951_v55 }
 0x4de   : > { %v3126_v43 = vmul.f32 %v5626_v8, %v7795_v27  ;;  %v5628_v9 = vpop.eup %5627  ;;  %v3167_v42 = vpop.xlane.xlu0 %3166 }
 0x4df   : > { %5629 = vtanh.f32 %v2993_v31  ;;  %v3127_v12 = vmul.f32 %v5628_v9, %v7793_v48  ;;  %v7959_v48 = vstv %s5259_s22  ;;  %v8041_v9 = vadd.s32 88, %v7951_v55 }
 0x4e0   : > { %v3219_v32 = vadd.f32 %v3126_v43, %v3125_v56  ;;  %v3140_v47 = vpop.xlane.xlu1 %3139  ;;  %v3297_v60 = vadd.s32 %v7959_v48, %v7955_v25  ;;  %v3296_v11 = vadd.s32 %v7959_v48, %v7951_v55  ;;  %v3299_v10 = vadd.s32 %v7959_v48, %v7969_v53 }
 0x4e1   : > { %v3300_v24 = vadd.s32 %v7959_v48, %v7976_v23  ;;  %v3232_v49 = vadd.f32 %v7964_v45, %v3140_v47  ;;  %v3301_v41 = vadd.s32 %v7959_v48, %v7983_v5  ;;  %v3302_v20 = vadd.s32 %v7959_v48, %v7989_v30 }
 0x4e2   : > { %3220 = vadd.xlane.f32.xlu0 %v3219_v32  ;;  %vm3329_vm3 = vcmp.lt.s32.totalorder %v3297_v60, 600  ;;  %vm3328_vm4 = vcmp.lt.s32.totalorder %v3296_v11, 600  ;;  %vm3331_vm7 = vcmp.lt.s32.totalorder %v3299_v10, 600  ;;  %v3303_v58 = vadd.s32 %v7959_v48, %v7999_v40 }
 0x4e3   : > { %v7991_v28 = vsel %vm3329_vm3, %v3230_v17, -1e+30  ;;  %v7994_v50 = vsel %vm3328_vm4, %v3229_v52, -1e+30  ;;  %vm3332_vm8 = vcmp.lt.s32.totalorder %v3300_v24, 600  ;;  %vm3333_vm9 = vcmp.lt.s32.totalorder %v3301_v41, 600 }
 0x4e4   : > { %v3396_v6 = vsel %vm3394_vm6, %v7991_v28, -inf  ;;  %v3395_v54 = vsel %vm3394_vm6, %v7994_v50, -inf  ;;  %v8013_v37 = vsel %vm3331_vm7, %v3232_v49, -1e+30  ;;  %v8023_v15 = vsel %vm3332_vm8, %v3233_v44, -1e+30 }
 0x4e5   : > { %v5630_v3 = vpop.eup %5629  ;;  %v3400_v61 = vmax.f32 %v3395_v54, %v3396_v6  ;;  %v3398_v0 = vsel %vm3394_vm6, %v8013_v37, -inf  ;;  %vm3334_vm10 = vcmp.lt.s32.totalorder %v3302_v20, 600  ;;  %v3304_v63 = vadd.s32 %v7959_v48, %v8009_v36 }
 0x4e6   : > { %v3128_v13 = vmul.f32 %v5630_v3, %v7795_v27  ;;  %v7962_v27 = vadd.s32 16, %v7951_v55  ;;  %v8033_v31 = vsel %vm3333_vm9, %v3234_v33, -1e+30  ;;  %v3399_v43 = vsel %vm3394_vm6, %v8023_v15, -inf  ;;  %v3173_v3 = vpop.xlane.xlu2 %3172 }
 0x4e7   : > { %vm3335_vm11 = vcmp.lt.s32.totalorder %v3303_v58, 600  ;;  %v3305_v32 = vadd.s32 %v7959_v48, %v8021_v21  ;;  %v3401_v29 = vsel %vm3394_vm6, %v8033_v31, -inf  ;;  %vm3336_vm12 = vcmp.lt.s32.totalorder %v3304_v63, 600 }
 0x4e8   : > { %v3222_v1 = vadd.f32 %v3128_v13, %v3127_v12  ;;  %v3152_v51 = vpop.xlane.xlu1 %3151  ;;  %v3298_v2 = vadd.s32 %v7959_v48, %v7962_v27  ;;  %v8043_v13 = vsel %vm3334_vm10, %v3235_v35, -1e+30  ;;  %v3306_v22 = vadd.s32 %v7959_v48, %v8031_v16 }
 0x4e9   : > { %v3236_v56 = vadd.f32 %v7964_v45, %v3152_v51  ;;  %v3403_v39 = vsel %vm3394_vm6, %v8043_v13, -inf  ;;  %vm3337_vm13 = vcmp.lt.s32.totalorder %v3305_v32, 600  ;;  %v3307_v51 = vadd.s32 %v7959_v48, %v8041_v9 }
 0x4ea   : > { %3223 = vadd.xlane.f32.xlu1 %v3222_v1  ;;  %vm3330_vm5 = vcmp.lt.s32.totalorder %v3298_v2, 600  ;;  %v3237_v1 = vadd.f32 %v7964_v45, %v3155_v38  ;;  %v8061_v60 = vadd.s32 104, %v7951_v55  ;;  %v3176_v38 = vpop.xlane.xlu0 %3175  ;;  %vm3338_vm14 = vcmp.lt.s32.totalorder %v3306_v22, 600 }
 0x4eb   : > { %v8001_v14 = vsel %vm3330_vm5, %v3231_v59, -1e+30  ;;  %v8053_v47 = vsel %vm3335_vm11, %v3236_v56, -1e+30  ;;  %v3308_v10 = vadd.s32 %v7959_v48, %v8051_v46  ;;  %v8073_v49 = vsel %vm3337_vm13, %v3238_v7, -1e+30 }
 0x4ec   : > { %v3397_v18 = vsel %vm3394_vm6, %v8001_v14, -inf  ;;  %v8063_v2 = vsel %vm3336_vm12, %v3237_v1, -1e+30  ;;  %v3405_v52 = vsel %vm3394_vm6, %v8053_v47, -inf  ;;  %v3240_v41 = vadd.f32 %v7964_v45, %v3164_v4 }
 0x4ed   : > { %v3402_v8 = vmax.f32 %v3397_v18, %v3400_v61  ;;  %v3407_v44 = vsel %vm3394_vm6, %v8063_v2, -inf  ;;  %vm3339_vm15 = vcmp.lt.s32.totalorder %v3307_v51, 600  ;;  %v8081_v6 = vadd.s32 120, %v7951_v55 }
 0x4ee   : > { %v3182_v20 = vpop.xlane.xlu2 %3181  ;;  %v3241_v18 = vadd.f32 %v7964_v45, %v3167_v42  ;;  %v3409_v58 = vsel %vm3394_vm6, %v8073_v49, -inf  ;;  %vm3340_vm0 = vcmp.lt.s32.totalorder %v3308_v10, 600  ;;  %v3310_v4 = vadd.s32 %v7959_v48, %v8071_v19 }
 0x4ef   : > { %v3404_v12 = vmax.f32 %v3398_v0, %v3402_v8  ;;  %9792 = vst [vmem:[#allocation131_spill] sm:$0xff] %v8081_v6  ;;  %v8091_v61 = vadd.s32 128, %v7951_v55  ;;  %v8093_v0 = vsel %vm3339_vm15, %v3240_v41, -1e+30  ;;  %v3311_v42 = vadd.s32 %v7959_v48, %v8081_v6 }
 0x4f0   : > { %v3161_v26 = vpop.xlane.xlu1 %3160  ;;  %v8101_v56 = vadd.s32 136, %v7951_v55  ;;  %v3243_v1 = vadd.f32 %v7964_v45, %v3173_v3  ;;  %vm3342_vm2 = vcmp.lt.s32.totalorder %v3310_v4, 600  ;;  %v8111_v22 = vadd.s32 144, %v7951_v55 }
 0x4f1   : > { %v3406_v34 = vmax.f32 %v3399_v43, %v3404_v12  ;;  %v3239_v17 = vadd.f32 %v7964_v45, %v3161_v26  ;;  %v3309_v26 = vadd.s32 %v7959_v48, %v8061_v60  ;;  %9793 = vst [vmem:[#allocation133_spill] sm:$0xff] %v8091_v61  ;;  %v8103_v12 = vsel %vm3340_vm0, %v3241_v18, -1e+30 }
 0x4f2   : > { %9794 = vst [vmem:[#allocation134_spill] sm:$0xff] %v8101_v56  ;;  %v3244_v51 = vadd.f32 %v7964_v45, %v3176_v38  ;;  %vm3343_vm3 = vcmp.lt.s32.totalorder %v3311_v42, 600  ;;  %v3313_v3 = vadd.s32 %v7959_v48, %v8101_v56  ;;  %v3314_v38 = vadd.s32 %v7959_v48, %v8111_v22 }
 0x4f3   : > { %v3408_v11 = vmax.f32 %v3401_v29, %v3406_v34  ;;  %v8083_v33 = vsel %vm3338_vm14, %v3239_v17, -1e+30  ;;  %vm3341_vm1 = vcmp.lt.s32.totalorder %v3309_v26, 600  ;;  %v3413_v29 = vsel %vm3394_vm6, %v8093_v0, -inf  ;;  %9795 = vst [vmem:[#allocation136_spill] sm:$0xff] %v8111_v22 }
 0x4f4   : > { %v3411_v8 = vsel %vm3394_vm6, %v8083_v33, -inf  ;;  %v8121_v17 = vadd.s32 152, %v7951_v55  ;;  %v8131_v26 = vadd.s32 160, %v7951_v55  ;;  %v8133_v18 = vsel %vm3343_vm3, %v3244_v51, -1e+30 }
 0x4f5   : > { %v3410_v24 = vmax.f32 %v3403_v39, %v3408_v11  ;;  %v3185_v43 = vpop.xlane.xlu0 %3184  ;;  %v3415_v11 = vsel %vm3394_vm6, %v8103_v12, -inf  ;;  %vm3345_vm5 = vcmp.lt.s32.totalorder %v3313_v3, 600  ;;  %vm3346_vm7 = vcmp.lt.s32.totalorder %v3314_v38, 600 }
 0x4f6   : > { %9796 = vst [vmem:[#allocation139_spill] sm:$0xff] %v8121_v17 }
 0x4f7   : > { %v3412_v54 = vmax.f32 %v3405_v52, %v3410_v24  ;;  %v8123_v24 = vsel %vm3342_vm2, %v3243_v1, -1e+30  ;;  %9797 = vst [vmem:[#allocation141_spill] sm:$0xff] %v8131_v26  ;;  %v3421_v1 = vsel %vm3394_vm6, %v8133_v18, -inf }
 0x4f8   : > { %v3170_v62 = vpop.xlane.xlu1 %3169  ;;  %v3419_v4 = vsel %vm3394_vm6, %v8123_v24, -inf }
 0x4f9   : > { %v3414_v35 = vmax.f32 %v3407_v44, %v3412_v54  ;;  %v3242_v63 = vadd.f32 %v7964_v45, %v3170_v62  ;;  %v3312_v62 = vadd.s32 %v7959_v48, %v8091_v61 }
 0x4fb   : > { %v3416_v32 = vmax.f32 %v3409_v58, %v3414_v35  ;;  %v8113_v39 = vsel %vm3341_vm1, %v3242_v63, -1e+30  ;;  %vm3344_vm4 = vcmp.lt.s32.totalorder %v3312_v62, 600  ;;  %v3246_v58 = vadd.f32 %v7964_v45, %v3182_v20 }
 0x4fc   : > { %v3417_v44 = vsel %vm3394_vm6, %v8113_v39, -inf  ;;  %v8141_v35 = vadd.s32 168, %v7951_v55  ;;  %v3316_v20 = vadd.s32 %v7959_v48, %v8131_v26 }
 0x4fd   : > { %v3418_v7 = vmax.f32 %v3411_v8, %v3416_v32  ;;  %v3247_v32 = vadd.f32 %v7964_v45, %v3185_v43  ;;  %v8153_v51 = vsel %vm3345_vm5, %v3246_v58, -1e+30  ;;  %vm3638_vm5 = vcmask 0  }
 0x4fe   : > { %9798 = vst [vmem:[#allocation142_spill] sm:$0xff] %v8141_v35  ;;  %v3317_v43 = vadd.s32 %v7959_v48, %v8141_v35  ;;  %v3425_v58 = vsel %vm3394_vm6, %v8153_v51, -inf  ;;  %vm3348_vm9 = vcmp.lt.s32.totalorder %v3316_v20, 600  ;;  %v8181_v20 = vadd.s32 200, %v7951_v55 }
 0x4ff   : > { %v3420_v10 = vmax.f32 %v3413_v29, %v3418_v7  ;;  %v8151_v29 = vadd.s32 176, %v7951_v55  ;;  %v8163_v38 = vsel %vm3346_vm7, %v3247_v32, -1e+30 }
 0x500   : > { %v3179_v59 = vpop.xlane.xlu1 %3178  ;;  %v3427_v32 = vsel %vm3394_vm6, %v8163_v38, -inf  ;;  %vm3349_vm10 = vcmp.lt.s32.totalorder %v3317_v43, 600  ;;  %9802 = vst [vmem:[#allocation153_spill] sm:$0xff] %v8181_v20 }
 0x501   : > { %v3245_v41 = vadd.f32 %v7964_v45, %v3179_v59  ;;  %v3422_v54 = vmax.f32 %v3415_v11, %v3420_v10  ;;  %v3315_v59 = vadd.s32 %v7959_v48, %v8121_v17  ;;  %9799 = vst [vmem:[#allocation144_spill] sm:$0xff] %v8151_v29  ;;  %v8161_v10 = vadd.s32 184, %v7951_v55 }
 0x503   : > { %v3424_v8 = vmax.f32 %v3417_v44, %v3422_v54  ;;  %v8143_v42 = vsel %vm3344_vm4, %v3245_v41, -1e+30  ;;  %vm3347_vm8 = vcmp.lt.s32.totalorder %v3315_v59, 600  ;;  %9800 = vst [vmem:[#allocation148_spill] sm:$0xff] %v8161_v10 }
 0x504   : > { %v3423_v3 = vsel %vm3394_vm6, %v8143_v42, -inf }
 0x505   : > { %v3191_v52 = vpop.xlane.xlu2 %3190  ;;  %v3426_v7 = vmax.f32 %v3419_v4, %v3424_v8  ;;  %v8171_v4 = vadd.s32 192, %v7951_v55 }
 0x506   : > { %v3249_v54 = vadd.f32 %v7964_v45, %v3191_v52  ;;  %v3319_v52 = vadd.s32 %v7959_v48, %v8161_v10 }
 0x507   : > { %v3428_v44 = vmax.f32 %v3421_v1, %v3426_v7  ;;  %9801 = vst [vmem:[#allocation150_spill] sm:$0xff] %v8171_v4 }
 0x508   : > { %v3188_v34 = vpop.xlane.xlu1 %3187  ;;  %vm3351_vm12 = vcmp.lt.s32.totalorder %v3319_v52, 600  ;;  %v8211_v52 = vadd.s32 224, %v7951_v55 }
 0x509   : > { %v3248_v11 = vadd.f32 %v7964_v45, %v3188_v34  ;;  %v3318_v34 = vadd.s32 %v7959_v48, %v8151_v29  ;;  %v3430_v59 = vmax.f32 %v3423_v3, %v3428_v44  ;;  %v8183_v29 = vsel %vm3348_vm9, %v3249_v54, -1e+30 }
 0x50a   : > { %v8191_v44 = vadd.s32 208, %v7951_v55  ;;  %v3431_v54 = vsel %vm3394_vm6, %v8183_v29, -inf  ;;  %9805 = vst [vmem:[#allocation158_spill] sm:$0xff] %v8211_v52 }
 0x50b   : > { %v8173_v8 = vsel %vm3347_vm8, %v3248_v11, -1e+30  ;;  %v3432_v7 = vmax.f32 %v3425_v58, %v3430_v59  ;;  %vm3350_vm11 = vcmp.lt.s32.totalorder %v3318_v34, 600  ;;  %v8201_v59 = vadd.s32 216, %v7951_v55 }
 0x50c   : > { %v3429_v11 = vsel %vm3394_vm6, %v8173_v8, -inf  ;;  %9803 = vst [vmem:[#allocation155_spill] sm:$0xff] %v8191_v44 }
 0x50d   : > { %v3194_v63 = vpop.xlane.xlu0 %3193  ;;  %v3434_v10 = vmax.f32 %v3427_v32, %v3432_v7  ;;  %9804 = vst [vmem:[#allocation156_spill] sm:$0xff] %v8201_v59 }
 0x50e   : > { %v3250_v57 = vadd.f32 %v7964_v45, %v3194_v63  ;;  %v3320_v63 = vadd.s32 %v7959_v48, %v8171_v4 }
 0x50f   : > { %v3436_v4 = vmax.f32 %v3429_v11, %v3434_v10  ;;  %v8221_v11 = vadd.s32 232, %v7951_v55 }
 0x510   : > { %v8193_v35 = vsel %vm3349_vm10, %v3250_v57, -1e+30  ;;  %vm3352_vm13 = vcmp.lt.s32.totalorder %v3320_v63, 600 }
 0x511   : > { %v3433_v57 = vsel %vm3394_vm6, %v8193_v35, -inf  ;;  %v3438_v7 = vmax.f32 %v3431_v54, %v3436_v4  ;;  %9806 = vst [vmem:[#allocation164_spill] sm:$0xff] %v8221_v11 }
 0x513   : > { %v3440_v63 = vmax.f32 %v3433_v57, %v3438_v7 }
 0x515   : > { %v3197_v62 = vpop.xlane.xlu1 %3196 }
 0x516   : > { %v3251_v3 = vadd.f32 %v7964_v45, %v3197_v62  ;;  %v3321_v62 = vadd.s32 %v7959_v48, %v8181_v20 }
 0x518   : > { %v8203_v26 = vsel %vm3350_vm11, %v3251_v3, -1e+30  ;;  %vm3353_vm14 = vcmp.lt.s32.totalorder %v3321_v62, 600  ;;  %v8231_v62 = vadd.s32 240, %v7951_v55 }
 0x519   : > { %v3435_v10 = vsel %vm3394_vm6, %v8203_v26, -inf }
 0x51a   : > { %9807 = vst [vmem:[#allocation167_spill] sm:$0xff] %v8231_v62 }
 0x51d   : > { %v3200_v41 = vpop.xlane.xlu2 %3199 }
 0x51e   : > { %v3252_v58 = vadd.f32 %v7964_v45, %v3200_v41  ;;  %v3322_v41 = vadd.s32 %v7959_v48, %v8191_v44 }
 0x520   : > { %v8213_v20 = vsel %vm3351_vm12, %v3252_v58, -1e+30  ;;  %vm3354_vm15 = vcmp.lt.s32.totalorder %v3322_v41, 600 }
 0x521   : > { %v3437_v58 = vsel %vm3394_vm6, %v8213_v20, -inf }
 0x525   : > { %v3203_v1 = vpop.xlane.xlu0 %3202 }
 0x526   : > { %v3253_v32 = vadd.f32 %v7964_v45, %v3203_v1  ;;  %v3323_v1 = vadd.s32 %v7959_v48, %v8201_v59  ;;  %v3442_v59 = vmax.f32 %v3435_v10, %v3440_v63 }
 0x528   : > { %v8223_v44 = vsel %vm3352_vm13, %v3253_v32, -1e+30  ;;  %vm3355_vm0 = vcmp.lt.s32.totalorder %v3323_v1, 600  ;;  %v3444_v7 = vmax.f32 %v3437_v58, %v3442_v59 }
 0x529   : > { %v3439_v32 = vsel %vm3394_vm6, %v8223_v44, -inf }
 0x52d   : > { %v3206_v43 = vpop.xlane.xlu1 %3205 }
 0x52e   : > { %v3254_v17 = vadd.f32 %v7964_v45, %v3206_v43  ;;  %v3324_v43 = vadd.s32 %v7959_v48, %v8211_v52 }
 0x530   : > { %v8233_v22 = vsel %vm3353_vm14, %v3254_v17, -1e+30  ;;  %vm3356_vm1 = vcmp.lt.s32.totalorder %v3324_v43, 600  ;;  %v3326_v17 = vadd.s32 %v7959_v48, %v8231_v62 }
 0x531   : > { %v3441_v10 = vsel %vm3394_vm6, %v8233_v22, -inf }
 0x532   : > { %vm3358_vm3 = vcmp.lt.s32.totalorder %v3326_v17, 600 }
 0x535   : > { %v3209_v34 = vpop.xlane.xlu2 %3208 }
 0x536   : > { %v3255_v4 = vadd.f32 %v7964_v45, %v3209_v34  ;;  %v3325_v34 = vadd.s32 %v7959_v48, %v8221_v11 }
 0x538   : > { %v8240_v56 = vsel %vm3354_vm15, %v3255_v4, -1e+30  ;;  %vm3357_vm2 = vcmp.lt.s32.totalorder %v3325_v34, 600  ;;  %v8253_v4 = vadd.s32 248, %v7951_v55 }
 0x539   : > { %v3443_v11 = vsel %vm3394_vm6, %v8240_v56, -inf }
 0x53a   : > { %9808 = vst [vmem:[#allocation168_spill] sm:$0xff] %v8253_v4  ;;  %v3327_v34 = vadd.s32 %v7959_v48, %v8253_v4 }
 0x53c   : > { %vm3359_vm4 = vcmp.lt.s32.totalorder %v3327_v34, 600 }
 0x53d   : > { %v3212_v3 = vpop.xlane.xlu0 %3211 }
 0x53e   : > { %v3256_v57 = vadd.f32 %v7964_v45, %v3212_v3  ;;  %v3446_v3 = vmax.f32 %v3439_v32, %v3444_v7 }
 0x540   : > { %v8247_v63 = vsel %vm3355_vm0, %v3256_v57, -1e+30  ;;  %v3448_v58 = vmax.f32 %v3441_v10, %v3446_v3 }
 0x541   : > { %v3445_v32 = vsel %vm3394_vm6, %v8247_v63, -inf }
 0x542   : > { %v3450_v57 = vmax.f32 %v3443_v11, %v3448_v58 }
 0x544   : > { %v3455_v62 = vmax.f32 %v3445_v32, %v3450_v57 }
 0x545   : > { %v3215_v54 = vpop.xlane.xlu1 %3214 }
 0x546   : > { %v3257_v52 = vadd.f32 %v7964_v45, %v3215_v54 }
 0x548   : > { %v8255_v54 = vsel %vm3356_vm1, %v3257_v52, -1e+30 }
 0x54d   : > { %v3218_v41 = vpop.xlane.xlu2 %3217 }
 0x54e   : > { %v3258_v1 = vadd.f32 %v7964_v45, %v3218_v41  ;;  %v3447_v41 = vsel %vm3394_vm6, %v8255_v54, -inf }
 0x54f   : > { %v3452_v10 = vmax.f32 %v3447_v41, %v3455_v62  ;;  %v8277_v41 = vld [vmem:[#allocation2] sm:$0x1] }
 0x550   : > { %v8260_v7 = vsel %vm3357_vm2, %v3258_v1, -1e+30 }
 0x551   : > { %v3449_v52 = vsel %vm3394_vm6, %v8260_v7, -inf }
 0x552   : > { %v3454_v17 = vmax.f32 %v3449_v52, %v3452_v10 }
 0x555   : > { %v3221_v59 = vpop.xlane.xlu0 %3220 }
 0x556   : > { %v3259_v43 = vadd.f32 %v7964_v45, %v3221_v59 }
 0x558   : > { %v8266_v61 = vsel %vm3358_vm3, %v3259_v43, -1e+30 }
 0x559   : > { %v3451_v3 = vsel %vm3394_vm6, %v8266_v61, -inf }
 0x55a   : > { %v3456_v59 = vmax.f32 %v3451_v3, %v3454_v17 }
 0x55d   : > { %v3224_v11 = vpop.xlane.xlu1 %3223 }
 0x55e   : > { %v3260_v1 = vadd.f32 %v7964_v45, %v3224_v11 }
 0x560   : > { %v8273_v58 = vsel %vm3359_vm4, %v3260_v1, -1e+30 }
 0x561   : > { %v3453_v48 = vsel %vm3394_vm6, %v8273_v58, -inf }
 0x562   : > { %v3457_v43 = vmax.f32 %v3453_v48, %v3456_v59 }
 0x564   : > { %v3458_v32 = vrot.slane %v3457_v43, 4 }
 0x566   : > { %v3459_v57 = vmax.f32 %v3457_v43, %v3458_v32 }
 0x568   : > { %v3460_v4 = vrot.slane %v3459_v57, 2 }
 0x56a   : > { %v3461_v6 = vmax.f32 %v3459_v57, %v3460_v4 }
 0x56c   : > { %v3462_v62 = vrot.slane %v3461_v6, 1 }
 0x56e   : > { %v3463_v19 = vmax.f32 %v3461_v6, %v3462_v62 }
 0x570   : > { %v8280_v34 = vmax.f32 %v8277_v41, %v3463_v19 }
 0x572   : > { %4104 = vst.msk [vmem:[#allocation2] sm:$0x1] %vm3638_vm5, %v8280_v34  ;;  %v8285_v45 = vperm.slane %v8280_v34, 0 }
 0x574   : > { %v3471_v52 = vsub.f32 %v7994_v50, %v8285_v45  ;;  %v3472_v4 = vsub.f32 %v7991_v28, %v8285_v45  ;;  %v3473_v10 = vsub.f32 %v8001_v14, %v8285_v45  ;;  %v3474_v6 = vsub.f32 %v8013_v37, %v8285_v45 }
 0x575   : > { %v3475_v19 = vsub.f32 %v8023_v15, %v8285_v45  ;;  %v3476_v1 = vsub.f32 %v8033_v31, %v8285_v45  ;;  %v3477_v28 = vsub.f32 %v8043_v13, %v8285_v45  ;;  %v3478_v37 = vsub.f32 %v8053_v47, %v8285_v45 }
 0x576   : > { %v3503_v3 = vmul.f32 1.442695, %v3471_v52  ;;  %v3505_v11 = vmul.f32 1.442695, %v3472_v4  ;;  %v3507_v17 = vmul.f32 1.442695, %v3473_v10  ;;  %v3479_v48 = vsub.f32 %v8063_v2, %v8285_v45 }
 0x577   : > { %v3509_v50 = vmul.f32 1.442695, %v3474_v6  ;;  %v3511_v14 = vmul.f32 1.442695, %v3475_v19  ;;  %v3513_v59 = vmul.f32 1.442695, %v3476_v1  ;;  %v3480_v57 = vsub.f32 %v8073_v49, %v8285_v45 }
 0x578   : > { %5631 = vpow2.f32 %v3503_v3  ;;  %v3515_v43 = vmul.f32 1.442695, %v3477_v28  ;;  %v3517_v13 = vmul.f32 1.442695, %v3478_v37  ;;  %v3481_v4 = vsub.f32 %v8083_v33, %v8285_v45 }
 0x579   : > { %5633 = vpow2.f32 %v3505_v11  ;;  %v3519_v2 = vmul.f32 1.442695, %v3479_v48  ;;  %v5869_v6 = vmov 0   ;;  %v3482_v3 = vsub.f32 %v8093_v0, %v8285_v45 }
 0x57a   : > { %5635 = vpow2.f32 %v3507_v17  ;;  %5499 = vset.pattern.permute.xlu2 %v5869_v6  ;;  %5501 = vset.pattern.permute.xlu1 %v5869_v6  ;;  %v3521_v11 = vmul.f32 1.442695, %v3480_v57  ;;  %v3523_v28 = vmul.f32 1.442695, %v3481_v4  ;;  %v3484_v0 = vsub.f32 %v8113_v39, %v8285_v45 }
 0x57b   : > { %5637 = vpow2.f32 %v3509_v50  ;;  %5500 = vset.pattern.permute.xlu0 %v5869_v6  ;;  %v3483_v50 = vsub.f32 %v8103_v12, %v8285_v45  ;;  %v3525_v48 = vmul.f32 1.442695, %v3482_v3  ;;  %v3485_v57 = vsub.f32 %v8123_v24, %v8285_v45 }
 0x57c   : > { %5639 = vpow2.f32 %v3511_v14  ;;  %v3486_v39 = vsub.f32 %v8133_v18, %v8285_v45  ;;  %v3529_v4 = vmul.f32 1.442695, %v3484_v0  ;;  %v3487_v24 = vsub.f32 %v8143_v42, %v8285_v45 }
 0x57d   : > { %5641 = vpow2.f32 %v3513_v59  ;;  %v3527_v12 = vmul.f32 1.442695, %v3483_v50  ;;  %v3465_v50 = vsub.f32 %v8277_v41, %v8280_v34  ;;  %v3489_v42 = vsub.f32 %v8163_v38, %v8285_v45 }
 0x57e   : > { %v5632_v15 = vpop.eup %5631  ;;  %5643 = vpow2.f32 %v3515_v43  ;;  %v3491_v38 = vsub.f32 %v8183_v29, %v8285_v45  ;;  %v3493_v29 = vsub.f32 %v8203_v26, %v8285_v45 }
 0x57f   : > { %v5634_v31 = vpop.eup %5633  ;;  %v3568_v62 = vsel %vm3394_vm6, %v5632_v15, 0.0  ;;  %5645 = vpow2.f32 %v3517_v13  ;;  %3650 = vperm.xlu0 %5500, %v5632_v15   ;;  %v3466_v34 = vmul.f32 1.442695, %v3465_v50  ;;  %v3495_v50 = vsub.f32 %v8223_v44, %v8285_v45 }
 0x580   : > { %v8305_v32 = vpop.eup %5635  ;;  %v3569_v47 = vsel %vm3394_vm6, %v5634_v31, 0.0  ;;  %3655 = vperm.xlu1 %5501, %v5634_v31   ;;  %5647 = vpow2.f32 %v3519_v2  ;;  %v3497_v44 = vsub.f32 %v8240_v56, %v8285_v45  ;;  %v3499_v56 = vsub.f32 %v8255_v54, %v8285_v45 }
 0x581   : > { %v8311_v52 = vpop.eup %5637  ;;  %v3570_v10 = vadd.f32 %v3569_v47, %v3568_v62  ;;  %v3571_v49 = vsel %vm3394_vm6, %v8305_v32, 0.0  ;;  %5649 = vpow2.f32 %v3521_v11  ;;  %v3501_v54 = vsub.f32 %v8266_v61, %v8285_v45 }
 0x582   : > { %v5640_v19 = vpop.eup %5639  ;;  %v3573_v33 = vsel %vm3394_vm6, %v8311_v52, 0.0  ;;  %5651 = vpow2.f32 %v3523_v28 }
 0x583   : > { %v3572_v17 = vadd.f32 %v3571_v49, %v3570_v10  ;;  %v8321_v1 = vpop.eup %5641  ;;  %v3575_v37 = vsel %vm3394_vm6, %v5640_v19, 0.0  ;;  %5653 = vpow2.f32 %v3525_v48  ;;  %v3531_v49 = vmul.f32 1.442695, %v3485_v57 }
 0x584   : > { %v5644_v59 = vpop.eup %5643  ;;  %v3577_v43 = vsel %vm3394_vm6, %v8321_v1, 0.0  ;;  %5655 = vpow2.f32 %v3527_v12  ;;  %v3539_v12 = vmul.f32 1.442695, %v3489_v42  ;;  %v3563_v61 = vmul.f32 1.442695, %v3501_v54 }
 0x585   : > { %v3574_v14 = vadd.f32 %v3573_v33, %v3572_v17  ;;  %v5646_v31 = vpop.eup %5645  ;;  %v3579_v62 = vsel %vm3394_vm6, %v5644_v59, 0.0  ;;  %5657 = vpow2.f32 %v3529_v4  ;;  %v3533_v17 = vmul.f32 1.442695, %v3486_v39 }
 0x586   : > { %v8333_v47 = vpop.eup %5647  ;;  %v3581_v10 = vsel %vm3394_vm6, %v5646_v31, 0.0  ;;  %5659 = vpow2.f32 %v3531_v49 }
 0x587   : > { %v3576_v15 = vadd.f32 %v3575_v37, %v3574_v14  ;;  %3685 = vperm.xlu0 %5500, %v5646_v31   ;;  %v5650_v6 = vpop.eup %5649  ;;  %v3583_v11 = vsel %vm3394_vm6, %v8333_v47, 0.0  ;;  %v3535_v37 = vmul.f32 1.442695, %v3487_v24  ;;  %5661 = vpow2.f32 %v3533_v17 }
 0x588   : > { %3670 = vperm.xlu1 %5501, %v5640_v19   ;;  %v3488_v19 = vsub.f32 %v8153_v51, %v8285_v45  ;;  %v5652_v18 = vpop.eup %5651  ;;  %v3585_v28 = vsel %vm3394_vm6, %v5650_v6, 0.0  ;;  %v3543_v24 = vmul.f32 1.442695, %v3491_v38 }
 0x589   : > { %v3578_v13 = vadd.f32 %v3577_v43, %v3576_v15  ;;  %v8347_v14 = vpop.eup %5653  ;;  %v3587_v48 = vsel %vm3394_vm6, %v5652_v18, 0.0  ;;  %v3490_v43 = vsub.f32 %v8173_v8, %v8285_v45  ;;  %5663 = vpow2.f32 %v3535_v37 }
 0x58a   : > { %v3537_v0 = vmul.f32 1.442695, %v3488_v19  ;;  %v5656_v15 = vpop.eup %5655  ;;  %v3589_v31 = vsel %vm3394_vm6, %v8347_v14, 0.0  ;;  %v3492_v8 = vsub.f32 %v8193_v35, %v8285_v45  ;;  %v3494_v35 = vsub.f32 %v8213_v20, %v8285_v45 }
 0x58b   : > { %v3580_v2 = vadd.f32 %v3579_v62, %v3578_v13  ;;  %v5658_v57 = vpop.eup %5657  ;;  %v3541_v39 = vmul.f32 1.442695, %v3490_v43  ;;  %v3496_v37 = vsub.f32 %v8233_v22, %v8285_v45  ;;  %v3498_v22 = vsub.f32 %v8247_v63, %v8285_v45 }
 0x58c   : > { %5665 = vpow2.f32 %v3537_v0  ;;  %v8359_v62 = vpop.eup %5659  ;;  %v3500_v63 = vsub.f32 %v8260_v7, %v8285_v45  ;;  %v3502_v7 = vsub.f32 %v8273_v58, %v8285_v45 }
 0x58d   : > { %v3582_v3 = vadd.f32 %v3581_v10, %v3580_v2  ;;  %5667 = vpow2.f32 %v3466_v34  ;;  %v3593_v2 = vsel %vm3394_vm6, %v5658_v57, 0.0  ;;  %v5662_v10 = vpop.eup %5661  ;;  %v3553_v38 = vmul.f32 1.442695, %v3496_v37 }
 0x58e   : > { %5669 = vpow2.f32 %v3539_v12 }
 0x58f   : > { %v3584_v33 = vadd.f32 %v3583_v11, %v3582_v3  ;;  %3700 = vperm.xlu0 %5500, %v5652_v18   ;;  %v3595_v3 = vsel %vm3394_vm6, %v8359_v62, 0.0  ;;  %v5664_v19 = vpop.eup %5663  ;;  %5671 = vpow2.f32 %v3541_v39  ;;  %v3545_v11 = vmul.f32 1.442695, %v3492_v8 }
 0x590   : > { %3680 = vperm.xlu1 %5501, %v5644_v59   ;;  %v3591_v59 = vsel %vm3394_vm6, %v5656_v15, 0.0  ;;  %5673 = vpow2.f32 %v3543_v24  ;;  %v3599_v42 = vsel %vm3394_vm6, %v5664_v19, 0.0  ;;  %v3555_v8 = vmul.f32 1.442695, %v3497_v44 }
 0x591   : > { %v3586_v51 = vadd.f32 %v3585_v28, %v3584_v33  ;;  %v3597_v33 = vsel %vm3394_vm6, %v5662_v10, 0.0  ;;  %v3547_v28 = vmul.f32 1.442695, %v3493_v29  ;;  %5675 = vpow2.f32 %v3545_v11 }
 0x592   : > { %v8370_v17 = vpop.eup %5665  ;;  %v3561_v11 = vmul.f32 1.442695, %v3500_v63 }
 0x593   : > { %v3588_v41 = vadd.f32 %v3587_v48, %v3586_v51  ;;  %v8373_v26 = vpop.eup %5667  ;;  %v3549_v51 = vmul.f32 1.442695, %v3494_v35  ;;  %v3601_v48 = vsel %vm3394_vm6, %v8370_v17, 0.0  ;;  %5677 = vpow2.f32 %v3547_v28 }
 0x594   : > { %3643 = vperm.xlu2 %5499, %v8373_v26   ;;  %v5670_v20 = vpop.eup %5669 }
 0x595   : > { %v3590_v13 = vadd.f32 %v3589_v31, %v3588_v41  ;;  %v5672_v43 = vpop.eup %5671  ;;  %v3551_v41 = vmul.f32 1.442695, %v3495_v50  ;;  %v3603_v31 = vsel %vm3394_vm6, %v5670_v20, 0.0  ;;  %5679 = vpow2.f32 %v3549_v51 }
 0x597   : > { %v3592_v4 = vadd.f32 %v3591_v59, %v3590_v13  ;;  %3715 = vperm.xlu0 %5500, %v5658_v57   ;;  %v8386_v57 = vpop.eup %5673  ;;  %v3605_v13 = vsel %vm3394_vm6, %v5672_v43, 0.0  ;;  %5681 = vpow2.f32 %v3551_v41 }
 0x598   : > { %3695 = vperm.xlu1 %5501, %v5650_v6   ;;  %v5676_v59 = vpop.eup %5675  ;;  %5683 = vpow2.f32 %v3553_v38 }
 0x599   : > { %v3594_v49 = vadd.f32 %v3593_v2, %v3592_v4  ;;  %v5678_v4 = vpop.eup %5677  ;;  %v3557_v2 = vmul.f32 1.442695, %v3498_v22  ;;  %v3609_v24 = vsel %vm3394_vm6, %v5676_v59, 0.0  ;;  %5685 = vpow2.f32 %v3555_v8 }
 0x59a   : > { %v3611_v35 = vsel %vm3394_vm6, %v5678_v4, 0.0 }
 0x59b   : > { %v3596_v18 = vadd.f32 %v3595_v3, %v3594_v49  ;;  %v8399_v49 = vpop.eup %5679  ;;  %v3559_v3 = vmul.f32 1.442695, %v3499_v56  ;;  %5687 = vpow2.f32 %v3557_v2  ;;  %v3393_v2 = vld [vmem:[#allocation3] sm:$0x1] }
 0x59c   : > { %3660 = vperm.xlu2 %5499, %v8305_v32  }
 0x59d   : > { %v3598_v6 = vadd.f32 %v3597_v33, %v3596_v18  ;;  %v5682_v32 = vpop.eup %5681  ;;  %v3613_v33 = vsel %vm3394_vm6, %v8399_v49, 0.0  ;;  %5689 = vpow2.f32 %v3559_v3  ;;  %v9809_v3 = vlaneseq }
 0x59e   : > { %v5684_v50 = vpop.eup %5683  ;;  %5691 = vpow2.f32 %v3561_v11 }
 0x59f   : > { %v3600_v0 = vadd.f32 %v3599_v42, %v3598_v6  ;;  %3730 = vperm.xlu0 %5500, %v5664_v19   ;;  %v3615_v6 = vsel %vm3394_vm6, %v5682_v32, 0.0  ;;  %v3565_v42 = vmul.f32 1.442695, %v3502_v7  ;;  %v3617_v58 = vsel %vm3394_vm6, %v5684_v50, 0.0 }
 0x5a0   : > { %3710 = vperm.xlu1 %5501, %v5656_v15   ;;  %v3607_v15 = vsel %vm3394_vm6, %v8386_v57, 0.0  ;;  %5693 = vpow2.f32 %v3563_v61  ;;  %vm8435_vm7 = vcmp.lt.s32.totalorder %v9809_v3, 768  ;;  %v9814_v61 = vld [vmem:[#allocation21_spill] sm:$0xff] }
 0x5a1   : > { %v3602_v34 = vadd.f32 %v3601_v48, %v3600_v0  ;;  %5695 = vpow2.f32 %v3565_v42 }
 0x5a3   : > { %v3604_v12 = vadd.f32 %v3603_v31, %v3602_v34 }
 0x5a4   : > { %3665 = vperm.xlu2 %5499, %v8311_v52  }
 0x5a5   : > { %v3606_v39 = vadd.f32 %v3605_v13, %v3604_v12 }
 0x5a7   : > { %v3608_v29 = vadd.f32 %v3607_v15, %v3606_v39  ;;  %3745 = vperm.xlu0 %5500, %v5672_v43  }
 0x5a8   : > { %3725 = vperm.xlu1 %5501, %v5662_v10   ;;  %v5686_v10 = vpop.eup %5685 }
 0x5a9   : > { %v3610_v19 = vadd.f32 %v3609_v24, %v3608_v29  ;;  %v5688_v45 = vpop.eup %5687  ;;  %v3619_v0 = vsel %vm3394_vm6, %v5686_v10, 0.0 }
 0x5aa   : > { %v5690_v48 = vpop.eup %5689  ;;  %v3621_v44 = vsel %vm3394_vm6, %v5688_v45, 0.0 }
 0x5ab   : > { %v3612_v18 = vadd.f32 %v3611_v35, %v3610_v19  ;;  %v5692_v41 = vpop.eup %5691  ;;  %v3623_v34 = vsel %vm3394_vm6, %v5690_v48, 0.0  ;;  %v4310_v19 = vld [vmem:[#allocation12] sm:$0x3f] }
 0x5ac   : > { %3675 = vperm.xlu2 %5499, %v8321_v1   ;;  %v5694_v31 = vpop.eup %5693  ;;  %v3625_v38 = vsel %vm3394_vm6, %v5692_v41, 0.0 }
 0x5ad   : > { %v3614_v28 = vadd.f32 %v3613_v33, %v3612_v18  ;;  %v5696_v12 = vpop.eup %5695 }
 0x5ae   : > { %v3629_v8 = vsel %vm3394_vm6, %v5696_v12, 0.0 }
 0x5af   : > { %v3616_v37 = vadd.f32 %v3615_v6, %v3614_v28  ;;  %3760 = vperm.xlu0 %5500, %v5678_v4   ;;  %v9816_v6 = vld [vmem:[#allocation84_spill] sm:$0xff] }
 0x5b0   : > { %3740 = vperm.xlu1 %5501, %v5670_v20   ;;  %v3627_v20 = vsel %vm3394_vm6, %v5694_v31, 0.0 }
 0x5b1   : > { %v3618_v51 = vadd.f32 %v3617_v58, %v3616_v37  ;;  %v9818_v37 = vld [vmem:[#allocation85_spill] sm:$0xff] }
 0x5b2   : > { %v9819_v58 = vmax.f32 %v9818_v37, 0.0 }
 0x5b3   : > { %v3620_v43 = vadd.f32 %v3619_v0, %v3618_v51  ;;  %v9820_v0 = vld [vmem:[#allocation18_spill] sm:$0xff] }
 0x5b4   : > { %3690 = vperm.xlu2 %5499, %v8333_v47  }
 0x5b5   : > { %v3622_v52 = vadd.f32 %v3621_v44, %v3620_v43 }
 0x5b7   : > { %v3624_v22 = vadd.f32 %v3623_v34, %v3622_v52  ;;  %3775 = vperm.xlu0 %5500, %v5684_v50   ;;  %v9824_v52 = vld [vmem:[#allocation82_spill] sm:$0xff] }
 0x5b8   : > { %3755 = vperm.xlu1 %5501, %v5676_v59   ;;  %v3567_v59 = vmul.f32 %v8373_v26, %v3393_v2  ;;  %v8427_v26 = vand.u32 127, %v9809_v3  ;;  %v9825_v34 = vmax.f32 %v9824_v52, 0.0 }
 0x5b9   : > { %v3626_v13 = vadd.f32 %v3625_v38, %v3624_v22  ;;  %v9826_v22 = vld [vmem:[#allocation83_spill] sm:$0xff] }
 0x5ba   : > { %vm4110_vm6 = vcmp.eq.s32.totalorder %v7955_v25, %v8427_v26  ;;  %vm4108_vm8 = vcmp.eq.s32.totalorder %v7951_v55, %v8427_v26  ;;  %vm4112_vm9 = vcmp.eq.s32.totalorder %v7962_v27, %v8427_v26  ;;  %v9812_v25 = vld [vmem:[#allocation20_spill] sm:$0xff]  ;;  %v9815_v55 = vmax.f32 %v9814_v61, 0.0  ;;  %v9822_v27 = vld [vmem:[#allocation19_spill] sm:$0xff] }
 0x5bb   : > { %v3628_v56 = vadd.f32 %v3627_v20, %v3626_v13  ;;  %v9813_v11 = vmax.f32 %v9812_v25, 0.0  ;;  %v9823_v44 = vmax.f32 %v9822_v27, 0.0  ;;  %v9827_v38 = vmax.f32 %v9826_v22, 0.0  ;;  %v9836_v25 = vld [vmem:[#allocation26_spill] sm:$0xff]  ;;  %v9838_v61 = vld [vmem:[#allocation27_spill] sm:$0xff] }
 0x5bc   : > { %3705 = vperm.xlu2 %5499, %v8347_v14   ;;  %vm4116_vm10 = vcmp.eq.s32.totalorder %v7976_v23, %v8427_v26  ;;  %vm4114_vm11 = vcmp.eq.s32.totalorder %v7969_v53, %v8427_v26  ;;  %v9844_v27 = vld [vmem:[#allocation91_spill] sm:$0xff]  ;;  %vm4118_vm12 = vcmp.eq.s32.totalorder %v7983_v5, %v8427_v26  ;;  %vm4120_vm13 = vcmp.eq.s32.totalorder %v7989_v30, %v8427_v26  ;;  %v9872_v5 = vld [vmem:[#allocation96_spill] sm:$0xff] }
 0x5bd   : > { %v3630_v39 = vadd.f32 %v3629_v8, %v3628_v56  ;;  %vm4122_vm14 = vcmp.eq.s32.totalorder %v7999_v40, %v8427_v26  ;;  %vm4124_vm15 = vcmp.eq.s32.totalorder %v8009_v36, %v8427_v26  ;;  %vm4126_vm0 = vcmp.eq.s32.totalorder %v8021_v21, %v8427_v26 }
 0x5be   : > { %vm4128_vm1 = vcmp.eq.s32.totalorder %v8031_v16, %v8427_v26  ;;  %vm4130_vm2 = vcmp.eq.s32.totalorder %v8041_v9, %v8427_v26  ;;  %vm4132_vm3 = vcmp.eq.s32.totalorder %v8051_v46, %v8427_v26  ;;  %vm4134_vm4 = vcmp.eq.s32.totalorder %v8061_v60, %v8427_v26  ;;  %v9932_v60 = vld [vmem:[#allocation113_spill] sm:$0xff] }
 0x5bf   : > { %v3631_v15 = vrot.slane %v3630_v39, 4  ;;  %3790 = vperm.xlu0 %5500, %v5690_v48   ;;  %v9821_v48 = vmax.f32 %v9820_v0, 0.0 }
 0x5c0   : > { %3770 = vperm.xlu1 %5501, %v5682_v32  }
 0x5c1   : > { %v3632_v4 = vadd.f32 %v3631_v15, %v3630_v39 }
 0x5c3   : > { %v3633_v1 = vrot.slane %v3632_v4, 2 }
 0x5c4   : > { %3720 = vperm.xlu2 %5499, %v8359_v62  }
 0x5c5   : > { %v3634_v63 = vadd.f32 %v3633_v1, %v3632_v4  ;;  %v9828_v1 = vld [vmem:[#allocation22_spill] sm:$0xff] }
 0x5c7   : > { %v3635_v29 = vrot.slane %v3634_v63, 1  ;;  %3805 = vperm.xlu0 %5500, %v5696_v12  }
 0x5c8   : > { %3785 = vperm.xlu1 %5501, %v5688_v45  }
 0x5c9   : > { %v3636_v24 = vadd.f32 %v3635_v29, %v3634_v63  ;;  %v9829_v63 = vmax.f32 %v9828_v1, 0.0  ;;  %v9830_v29 = vld [vmem:[#allocation23_spill] sm:$0xff] }
 0x5cb   : > { %v3637_v54 = vadd.f32 %v3636_v24, %v3567_v59  ;;  %v9831_v24 = vmax.f32 %v9830_v29, 0.0 }
 0x5cc   : > { %3735 = vperm.xlu2 %5499, %v8370_v17  }
 0x5cd   : > { %3639 = vst.msk [vmem:[#allocation3] sm:$0x1] %vm3638_vm5, %v3637_v54  ;;  %v9832_v54 = vld [vmem:[#allocation86_spill] sm:$0xff] }
 0x5d0   : > { %3800 = vperm.xlu1 %5501, %v5694_v31  }
 0x5d4   : > { %3750 = vperm.xlu2 %5499, %v8386_v57  }
 0x5dc   : > { %3765 = vperm.xlu2 %5499, %v8399_v49  }
 0x5e4   : > { %3780 = vperm.xlu2 %5499, %v5686_v10   ;;  %v9817_v10 = vmax.f32 %v9816_v6, 0.0 }
 0x5ec   : > { %3795 = vperm.xlu2 %5499, %v5692_v41  }
 0x5ee   : > { %v8429_v35 = vpop.permute.xlu2 %3643 }
 0x5ef   : > { %v3646_v32 = vperm.slane %v8429_v35, 0 }
 0x5f1   : > { %v3651_v14 = vpop.permute.xlu0 %3650  ;;  %v4311_v17 = vmul.f32 %v4310_v19, %v3646_v32 }
 0x5f2   : > { %v3656_v47 = vpop.permute.xlu1 %3655  ;;  %v4172_v7 = vsel %vm4108_vm8, %v3651_v14, 0.0  ;;  %v3808_v43 = vmul.f32 %v3651_v14, %v9821_v48  ;;  %v3809_v41 = vmul.f32 %v3651_v14, %v9823_v44  ;;  %v3810_v31 = vmul.f32 %v3651_v14, %v9825_v34  ;;  %v9846_v34 = vld [vmem:[#allocation25_spill] sm:$0xff] }
 0x5f3   : > { %4314 = vst.msk [vmem:[#allocation12] sm:$0x3f] %vm8435_vm7, %v4311_v17  ;;  %v4174_v49 = vsel %vm4110_vm6, %v3656_v47, 0.0  ;;  %v3812_v18 = vmul.f32 %v3656_v47, %v9813_v11  ;;  %v3813_v28 = vmul.f32 %v3656_v47, %v9815_v55  ;;  %v3814_v42 = vmul.f32 %v3656_v47, %v9817_v10 }
 0x5f4   : > { %v3815_v45 = vmul.f32 %v3656_v47, %v9819_v58  ;;  %v4236_v51 = vadd.f32 %v4174_v49, %v4172_v7  ;;  %v3811_v12 = vmul.f32 %v3651_v14, %v9827_v38  ;;  %v9833_v47 = vmax.f32 %v9832_v54, 0.0  ;;  %v9834_v14 = vld [vmem:[#allocation87_spill] sm:$0xff]  ;;  %v9848_v38 = vld [vmem:[#allocation88_spill] sm:$0xff] }
 0x5f5   : > { %v3936_v8 = vadd.f32 %v3812_v18, %v3808_v43  ;;  %v3973_v39 = vadd.f32 %v3813_v28, %v3809_v41  ;;  %v4010_v15 = vadd.f32 %v3814_v42, %v3810_v31  ;;  %v9835_v17 = vmax.f32 %v9834_v14, 0.0 }
 0x5f6   : > { %v3661_v50 = vpop.permute.xlu2 %3660  ;;  %v4047_v4 = vadd.f32 %v3815_v45, %v3811_v12  ;;  %v9837_v11 = vmax.f32 %v9836_v25, 0.0  ;;  %v9839_v55 = vmax.f32 %v9838_v61, 0.0  ;;  %v9840_v45 = vld [vmem:[#allocation24_spill] sm:$0xff]  ;;  %v9845_v44 = vmax.f32 %v9844_v27, 0.0  ;;  %v9866_v27 = vld [vmem:[#allocation93_spill] sm:$0xff] }
 0x5f7   : > { %v4176_v13 = vsel %vm4112_vm9, %v3661_v50, 0.0  ;;  %v3816_v2 = vmul.f32 %v3661_v50, %v9829_v63  ;;  %v3817_v59 = vmul.f32 %v3661_v50, %v9831_v24  ;;  %v3818_v19 = vmul.f32 %v3661_v50, %v9833_v47 }
 0x5f8   : > { %v4237_v20 = vadd.f32 %v4236_v51, %v4176_v13  ;;  %v3819_v49 = vmul.f32 %v3661_v50, %v9835_v17  ;;  %v9841_v51 = vmax.f32 %v9840_v45, 0.0  ;;  %v9842_v50 = vld [vmem:[#allocation90_spill] sm:$0xff]  ;;  %v9847_v31 = vmax.f32 %v9846_v34, 0.0  ;;  %v9868_v34 = vld [vmem:[#allocation32_spill] sm:$0xff] }
 0x5f9   : > { %v8449_v33 = vpop.permute.xlu0 %3685  ;;  %v3937_v6 = vadd.f32 %v3936_v8, %v3816_v2  ;;  %v3974_v10 = vadd.f32 %v3973_v39, %v3817_v59  ;;  %v4011_v42 = vadd.f32 %v4010_v15, %v3818_v19  ;;  %v9843_v48 = vmax.f32 %v9842_v50, 0.0  ;;  %v9850_v8 = vld [vmem:[#allocation89_spill] sm:$0xff]  ;;  %v9852_v19 = vld [vmem:[#allocation30_spill] sm:$0xff]  ;;  %v9864_v50 = vld [vmem:[#allocation92_spill] sm:$0xff] }
 0x5fa   : > { %v3671_v57 = vpop.permute.xlu1 %3670  ;;  %v4048_v37 = vadd.f32 %v4047_v4, %v3819_v49  ;;  %v9849_v12 = vmax.f32 %v9848_v38, 0.0  ;;  %v9851_v39 = vmax.f32 %v9850_v8, 0.0  ;;  %v9853_v14 = vmax.f32 %v9852_v19, 0.0  ;;  %v9854_v49 = vld [vmem:[#allocation31_spill] sm:$0xff] }
 0x5fb   : > { %v3824_v18 = vmul.f32 %v3671_v57, %v9837_v11  ;;  %v3825_v28 = vmul.f32 %v3671_v57, %v9839_v55  ;;  %v3826_v43 = vmul.f32 %v3671_v57, %v9843_v48  ;;  %v3827_v41 = vmul.f32 %v3671_v57, %v9845_v44  ;;  %v9856_v11 = vld [vmem:[#allocation94_spill] sm:$0xff] }
 0x5fc   : > { %v4180_v52 = vsel %vm4116_vm10, %v3671_v57, 0.0  ;;  %v9857_v61 = vmax.f32 %v9856_v11, 0.0  ;;  %v9865_v48 = vmax.f32 %v9864_v50, 0.0  ;;  %v9867_v44 = vmax.f32 %v9866_v27, 0.0  ;;  %v9884_v50 = vld [vmem:[#allocation34_spill] sm:$0xff]  ;;  %v9886_v27 = vld [vmem:[#allocation35_spill] sm:$0xff] }
 0x5fe   : > { %v3666_v7 = vpop.permute.xlu2 %3665 }
 0x5ff   : > { %v3820_v0 = vmul.f32 %v3666_v7, %v9841_v51  ;;  %v3821_v22 = vmul.f32 %v3666_v7, %v9847_v31  ;;  %v3822_v13 = vmul.f32 %v3666_v7, %v9849_v12  ;;  %v3823_v15 = vmul.f32 %v3666_v7, %v9851_v39 }
 0x600   : > { %v4178_v4 = vsel %vm4114_vm11, %v3666_v7, 0.0  ;;  %v9855_v7 = vmax.f32 %v9854_v49, 0.0  ;;  %v9869_v31 = vmax.f32 %v9868_v34, 0.0 }
 0x601   : > { %v8481_v58 = vpop.permute.xlu0 %3700  ;;  %v4238_v1 = vadd.f32 %v4237_v20, %v4178_v4  ;;  %v3938_v2 = vadd.f32 %v3937_v6, %v3820_v0  ;;  %v3975_v29 = vadd.f32 %v3974_v10, %v3821_v22  ;;  %v4012_v24 = vadd.f32 %v4011_v42, %v3822_v13  ;;  %v9858_v6 = vld [vmem:[#allocation95_spill] sm:$0xff]  ;;  %v9870_v4 = vld [vmem:[#allocation33_spill] sm:$0xff] }
 0x602   : > { %v3681_v56 = vpop.permute.xlu1 %3680  ;;  %v4049_v23 = vadd.f32 %v4048_v37, %v3823_v15  ;;  %v9859_v10 = vmax.f32 %v9858_v6, 0.0  ;;  %v9860_v37 = vld [vmem:[#allocation28_spill] sm:$0xff]  ;;  %v3836_v22 = vmul.f32 %v8449_v33, %v9869_v31 }
 0x603   : > { %v4239_v57 = vadd.f32 %v4238_v1, %v4180_v52  ;;  %v3939_v53 = vadd.f32 %v3938_v2, %v3824_v18  ;;  %v3976_v20 = vadd.f32 %v3975_v29, %v3825_v28  ;;  %v4013_v59 = vadd.f32 %v4012_v24, %v3826_v43  ;;  %v9862_v18 = vld [vmem:[#allocation29_spill] sm:$0xff] }
 0x604   : > { %v4050_v54 = vadd.f32 %v4049_v23, %v3827_v41  ;;  %v3832_v17 = vmul.f32 %v3681_v56, %v9853_v14  ;;  %v3833_v25 = vmul.f32 %v3681_v56, %v9855_v7  ;;  %v3834_v55 = vmul.f32 %v3681_v56, %v9857_v61  ;;  %v9874_v23 = vld [vmem:[#allocation97_spill] sm:$0xff]  ;;  %v9876_v7 = vld [vmem:[#allocation36_spill] sm:$0xff] }
 0x605   : > { %v3835_v42 = vmul.f32 %v3681_v56, %v9859_v10  ;;  %v9861_v45 = vmax.f32 %v9860_v37, 0.0  ;;  %v9863_v28 = vmax.f32 %v9862_v18, 0.0  ;;  %v4184_v38 = vsel %vm4120_vm13, %v3681_v56, 0.0 }
 0x606   : > { %v3676_v47 = vpop.permute.xlu2 %3675  ;;  %v9871_v1 = vmax.f32 %v9870_v4, 0.0  ;;  %v9873_v29 = vmax.f32 %v9872_v5, 0.0  ;;  %v4186_v14 = vsel %vm4122_vm14, %v8449_v33, 0.0  ;;  %v9877_v11 = vmax.f32 %v9876_v7, 0.0 }
 0x607   : > { %v3828_v51 = vmul.f32 %v3676_v47, %v9861_v45  ;;  %v3829_v0 = vmul.f32 %v3676_v47, %v9863_v28  ;;  %v3830_v43 = vmul.f32 %v3676_v47, %v9865_v48  ;;  %v3831_v41 = vmul.f32 %v3676_v47, %v9867_v44 }
 0x608   : > { %v4182_v52 = vsel %vm4118_vm12, %v3676_v47, 0.0  ;;  %v3837_v2 = vmul.f32 %v8449_v33, %v9871_v1  ;;  %v3838_v24 = vmul.f32 %v8449_v33, %v9873_v29  ;;  %v9875_v47 = vmax.f32 %v9874_v23, 0.0  ;;  %v9894_v23 = vld [vmem:[#allocation39_spill] sm:$0xff] }
 0x609   : > { %v3940_v12 = vadd.f32 %v3939_v53, %v3828_v51  ;;  %v3977_v13 = vadd.f32 %v3976_v20, %v3829_v0  ;;  %v4014_v8 = vadd.f32 %v4013_v59, %v3830_v43  ;;  %v4051_v39 = vadd.f32 %v4050_v54, %v3831_v41  ;;  %v8536_v15 = vpop.permute.xlu0 %3715  ;;  %v9880_v51 = vld [vmem:[#allocation100_spill] sm:$0xff] }
 0x60a   : > { %v3696_v63 = vpop.permute.xlu1 %3695  ;;  %v3839_v19 = vmul.f32 %v8449_v33, %v9875_v47  ;;  %v4240_v30 = vadd.f32 %v4239_v57, %v4182_v52  ;;  %v9881_v18 = vmax.f32 %v9880_v51, 0.0  ;;  %v9882_v33 = vld [vmem:[#allocation101_spill] sm:$0xff]  ;;  %v9885_v48 = vmax.f32 %v9884_v50, 0.0  ;;  %v9888_v52 = vld [vmem:[#allocation98_spill] sm:$0xff] }
 0x60b   : > { %v3941_v53 = vadd.f32 %v3940_v12, %v3832_v17  ;;  %v3978_v20 = vadd.f32 %v3977_v13, %v3833_v25  ;;  %v4015_v59 = vadd.f32 %v4014_v8, %v3834_v55  ;;  %v4052_v54 = vadd.f32 %v4051_v39, %v3835_v42  ;;  %v9878_v42 = vld [vmem:[#allocation37_spill] sm:$0xff]  ;;  %v9892_v8 = vld [vmem:[#allocation38_spill] sm:$0xff] }
 0x60c   : > { %v4241_v49 = vadd.f32 %v4240_v30, %v4184_v38  ;;  %v3844_v61 = vmul.f32 %v3696_v63, %v9877_v11  ;;  %v9879_v37 = vmax.f32 %v9878_v42, 0.0  ;;  %v3846_v40 = vmul.f32 %v3696_v63, %v9881_v18  ;;  %v9896_v30 = vld [vmem:[#allocation102_spill] sm:$0xff] }
 0x60d   : > { %v3942_v57 = vadd.f32 %v3941_v53, %v3836_v22  ;;  %v3979_v17 = vadd.f32 %v3978_v20, %v3837_v2  ;;  %v4016_v25 = vadd.f32 %v4015_v59, %v3838_v24  ;;  %v4053_v55 = vadd.f32 %v4052_v54, %v3839_v19  ;;  %v9890_v22 = vld [vmem:[#allocation99_spill] sm:$0xff]  ;;  %v9905_v50 = vld [vmem:[#allocation106_spill] sm:$0xff] }
 0x60e   : > { %v3691_v6 = vpop.permute.xlu2 %3690  ;;  %v4242_v10 = vadd.f32 %v4241_v49, %v4186_v14  ;;  %v3845_v45 = vmul.f32 %v3696_v63, %v9879_v37  ;;  %v9883_v28 = vmax.f32 %v9882_v33, 0.0  ;;  %v9887_v44 = vmax.f32 %v9886_v27, 0.0  ;;  %v9898_v20 = vld [vmem:[#allocation103_spill] sm:$0xff] }
 0x60f   : > { %v3840_v43 = vmul.f32 %v3691_v6, %v9885_v48  ;;  %v9889_v34 = vmax.f32 %v9888_v52, 0.0  ;;  %v9891_v38 = vmax.f32 %v9890_v22, 0.0  ;;  %v4188_v13 = vsel %vm4124_vm15, %v3691_v6, 0.0  ;;  %v9903_v33 = vld [vmem:[#allocation43_spill] sm:$0xff] }
 0x610   : > { %v3847_v0 = vmul.f32 %v3696_v63, %v9883_v28  ;;  %v3841_v41 = vmul.f32 %v3691_v6, %v9887_v44  ;;  %v9893_v39 = vmax.f32 %v9892_v8, 0.0  ;;  %v4190_v1 = vsel %vm4126_vm0, %v3696_v63, 0.0  ;;  %v9909_v44 = vld [vmem:[#allocation40_spill] sm:$0xff]  ;;  %v9915_v8 = vld [vmem:[#allocation105_spill] sm:$0xff] }
 0x611   : > { %v3842_v31 = vmul.f32 %v3691_v6, %v9889_v34  ;;  %v3843_v12 = vmul.f32 %v3691_v6, %v9891_v38  ;;  %v3943_v2 = vadd.f32 %v3942_v57, %v3840_v43  ;;  %v9895_v47 = vmax.f32 %v9894_v23, 0.0  ;;  %v8591_v57 = vpop.permute.xlu0 %3730  ;;  %v9911_v34 = vld [vmem:[#allocation41_spill] sm:$0xff]  ;;  %v9913_v38 = vld [vmem:[#allocation104_spill] sm:$0xff] }
 0x612   : > { %v3711_v56 = vpop.permute.xlu1 %3710  ;;  %v3848_v4 = vmul.f32 %v8481_v58, %v9893_v39  ;;  %v3980_v5 = vadd.f32 %v3979_v17, %v3841_v41  ;;  %v9897_v53 = vmax.f32 %v9896_v30, 0.0  ;;  %v9899_v59 = vmax.f32 %v9898_v20, 0.0 }
 0x613   : > { %v4017_v29 = vadd.f32 %v4016_v25, %v3842_v31  ;;  %v4054_v24 = vadd.f32 %v4053_v55, %v3843_v12  ;;  %v3849_v19 = vmul.f32 %v8481_v58, %v9895_v47  ;;  %v4243_v14 = vadd.f32 %v4242_v10, %v4188_v13  ;;  %v9900_v55 = vld [vmem:[#allocation42_spill] sm:$0xff]  ;;  %v9902_v10 = vld [vmem:[#allocation128_spill] sm:$0xff] }
 0x614   : > { %v3850_v36 = vmul.f32 %v8481_v58, %v9897_v53  ;;  %v3851_v54 = vmul.f32 %v8481_v58, %v9899_v59  ;;  %v3944_v21 = vadd.f32 %v3943_v2, %v3844_v61  ;;  %v3981_v63 = vadd.f32 %v3980_v5, %v3845_v45  ;;  %v9918_v5 = vld [vmem:[#allocation44_spill] sm:$0xff] }
 0x615   : > { %v4018_v7 = vadd.f32 %v4017_v29, %v3846_v40  ;;  %v4055_v11 = vadd.f32 %v4054_v24, %v3847_v0  ;;  %v4192_v17 = vsel %vm4128_vm1, %v8481_v58, 0.0  ;;  %v4244_v25 = vadd.f32 %v4243_v14, %v4190_v1  ;;  %v9907_v58 = vld [vmem:[#allocation107_spill] sm:$0xff] }
 0x616   : > { %v9901_v6 = vmax.f32 %v9900_v55, 0.0  ;;  %vm4136_vm5 = vcmp.eq.s32.totalorder %v9902_v10, %v8427_v26  ;;  %v3945_v61 = vadd.f32 %v3944_v21, %v3848_v4  ;;  %v3982_v37 = vadd.f32 %v3981_v63, %v3849_v19  ;;  %v3706_v18 = vpop.permute.xlu2 %3705  ;;  %v9917_v1 = vld [vmem:[#allocation131_spill] sm:$0xff]  ;;  %v9924_v21 = vld [vmem:[#allocation109_spill] sm:$0xff] }
 0x617   : > { %v4019_v45 = vadd.f32 %v4018_v7, %v3850_v36  ;;  %v4056_v51 = vadd.f32 %v4055_v11, %v3851_v54  ;;  %v4245_v40 = vadd.f32 %v4244_v25, %v4192_v17  ;;  %v9904_v28 = vmax.f32 %v9903_v33, 0.0  ;;  %v9920_v36 = vld [vmem:[#allocation45_spill] sm:$0xff]  ;;  %v9922_v54 = vld [vmem:[#allocation108_spill] sm:$0xff] }
 0x618   : > { %v3856_v42 = vmul.f32 %v3711_v56, %v9901_v6  ;;  %v9906_v48 = vmax.f32 %v9905_v50, 0.0  ;;  %v9908_v43 = vmax.f32 %v9907_v58, 0.0  ;;  %v9910_v41 = vmax.f32 %v9909_v44, 0.0 }
 0x619   : > { %v3857_v0 = vmul.f32 %v3711_v56, %v9904_v28  ;;  %v9912_v31 = vmax.f32 %v9911_v34, 0.0  ;;  %v9914_v12 = vmax.f32 %v9913_v38, 0.0  ;;  %v9916_v39 = vmax.f32 %v9915_v8, 0.0  ;;  %v9934_v34 = vld [vmem:[#allocation46_spill] sm:$0xff]  ;;  %v9936_v38 = vld [vmem:[#allocation47_spill] sm:$0xff] }
 0x61a   : > { %v3726_v49 = vpop.permute.xlu1 %3725  ;;  %v3858_v16 = vmul.f32 %v3711_v56, %v9906_v48  ;;  %v3859_v27 = vmul.f32 %v3711_v56, %v9908_v43  ;;  %v3852_v52 = vmul.f32 %v3706_v18, %v9910_v41  ;;  %vm4138_vm6 = vcmp.eq.s32.totalorder %v9917_v1, %v8427_v26  ;;  %v9938_v8 = vld [vmem:[#allocation110_spill] sm:$0xff] }
 0x61b   : > { %v3853_v22 = vmul.f32 %v3706_v18, %v9912_v31  ;;  %v3854_v13 = vmul.f32 %v3706_v18, %v9914_v12  ;;  %v3855_v4 = vmul.f32 %v3706_v18, %v9916_v39  ;;  %v4194_v2 = vsel %vm4130_vm2, %v3706_v18, 0.0 }
 0x61c   : > { %v9919_v29 = vmax.f32 %v9918_v5, 0.0  ;;  %v4196_v23 = vsel %vm4132_vm3, %v3711_v56, 0.0  ;;  %v3946_v47 = vadd.f32 %v3945_v61, %v3852_v52  ;;  %v9921_v20 = vmax.f32 %v9920_v36, 0.0 }
 0x61d   : > { %v3983_v19 = vadd.f32 %v3982_v37, %v3853_v22  ;;  %v4020_v30 = vadd.f32 %v4019_v45, %v3854_v13  ;;  %v4057_v53 = vadd.f32 %v4056_v51, %v3855_v4  ;;  %v9923_v14 = vmax.f32 %v9922_v54, 0.0  ;;  %v9926_v45 = vld [vmem:[#allocation48_spill] sm:$0xff] }
 0x61e   : > { %v3860_v24 = vmul.f32 %v8536_v15, %v9919_v29  ;;  %v3861_v59 = vmul.f32 %v8536_v15, %v9921_v20  ;;  %v9925_v63 = vmax.f32 %v9924_v21, 0.0  ;;  %v4246_v11 = vadd.f32 %v4245_v40, %v4194_v2  ;;  %v9940_v2 = vld [vmem:[#allocation111_spill] sm:$0xff] }
 0x61f   : > { %v3862_v9 = vmul.f32 %v8536_v15, %v9923_v14  ;;  %v3947_v46 = vadd.f32 %v3946_v47, %v3856_v42  ;;  %v3984_v56 = vadd.f32 %v3983_v19, %v3857_v0  ;;  %v4021_v25 = vadd.f32 %v4020_v30, %v3858_v16  ;;  %v8646_v42 = vpop.permute.xlu0 %3745  ;;  %v3721_v0 = vpop.permute.xlu2 %3720  ;;  %v9928_v16 = vld [vmem:[#allocation49_spill] sm:$0xff] }
 0x620   : > { %v3863_v7 = vmul.f32 %v8536_v15, %v9925_v63  ;;  %v4058_v55 = vadd.f32 %v4057_v53, %v3859_v27  ;;  %v8638_v6 = vadd.s32 128, %v8427_v26  ;;  %v4198_v61 = vsel %vm4134_vm4, %v8536_v15, 0.0  ;;  %v9930_v27 = vld [vmem:[#allocation112_spill] sm:$0xff] }
 0x621   : > { %v4247_v37 = vadd.f32 %v4246_v11, %v4196_v23  ;;  %v9927_v51 = vmax.f32 %v9926_v45, 0.0  ;;  %v3948_v33 = vadd.f32 %v3947_v46, %v3860_v24  ;;  %v3985_v28 = vadd.f32 %v3984_v56, %v3861_v59  ;;  %v9942_v24 = vld [vmem:[#allocation133_spill] sm:$0xff]  ;;  %v9943_v23 = vld [vmem:[#allocation134_spill] sm:$0xff] }
 0x622   : > { %v3741_v17 = vpop.permute.xlu1 %3740  ;;  %v4022_v40 = vadd.f32 %v4021_v25, %v3862_v9  ;;  %v4059_v50 = vadd.f32 %v4058_v55, %v3863_v7  ;;  %v9929_v58 = vmax.f32 %v9928_v16, 0.0  ;;  %v9931_v44 = vmax.f32 %v9930_v27, 0.0  ;;  %v9944_v59 = vld [vmem:[#allocation50_spill] sm:$0xff]  ;;  %v9946_v9 = vld [vmem:[#allocation51_spill] sm:$0xff]  ;;  %v9950_v55 = vld [vmem:[#allocation136_spill] sm:$0xff] }
 0x623   : > { %v3868_v18 = vmul.f32 %v3726_v49, %v9927_v51  ;;  %v4248_v48 = vadd.f32 %v4247_v37, %v4198_v61  ;;  %v9933_v15 = vmax.f32 %v9932_v60, 0.0  ;;  %v9935_v31 = vmax.f32 %v9934_v34, 0.0  ;;  %v9948_v7 = vld [vmem:[#allocation115_spill] sm:$0xff]  ;;  %v9952_v37 = vld [vmem:[#allocation116_spill] sm:$0xff] }
 0x624   : > { %v3869_v43 = vmul.f32 %v3726_v49, %v9929_v58  ;;  %v3870_v41 = vmul.f32 %v3726_v49, %v9931_v44  ;;  %v9937_v12 = vmax.f32 %v9936_v38, 0.0  ;;  %v9939_v39 = vmax.f32 %v9938_v8, 0.0  ;;  %v9951_v61 = vld [vmem:[#allocation139_spill] sm:$0xff] }
 0x625   : > { %v3871_v52 = vmul.f32 %v3726_v49, %v9933_v15  ;;  %v3864_v22 = vmul.f32 %v3721_v0, %v9935_v31  ;;  %v9941_v5 = vmax.f32 %v9940_v2, 0.0  ;;  %vm4141_vm8 = vcmp.eq.s32.totalorder %v9942_v24, %v8638_v6 }
 0x626   : > { %v3865_v13 = vmul.f32 %v3721_v0, %v9937_v12  ;;  %v3866_v4 = vmul.f32 %v3721_v0, %v9939_v39  ;;  %vm4143_vm9 = vcmp.eq.s32.totalorder %v9943_v23, %v8638_v6  ;;  %v4200_v47 = vsel %vm4136_vm5, %v3721_v0, 0.0  ;;  %v9975_v23 = vld [vmem:[#allocation57_spill] sm:$0xff] }
 0x627   : > { %v3867_v29 = vmul.f32 %v3721_v0, %v9941_v5  ;;  %v4202_v19 = vsel %vm4138_vm6, %v3726_v49, 0.0  ;;  %v3949_v30 = vadd.f32 %v3948_v33, %v3864_v22  ;;  %v9945_v54 = vmax.f32 %v9944_v59, 0.0  ;;  %v9962_v22 = vld [vmem:[#allocation53_spill] sm:$0xff]  ;;  %v9972_v59 = vld [vmem:[#allocation144_spill] sm:$0xff] }
 0x628   : > { %v3986_v53 = vadd.f32 %v3985_v28, %v3865_v13  ;;  %v4023_v36 = vadd.f32 %v4022_v40, %v3866_v4  ;;  %v9947_v21 = vmax.f32 %v9946_v9, 0.0  ;;  %v9949_v11 = vmax.f32 %v9948_v7, 0.0  ;;  %v9954_v28 = vld [vmem:[#allocation141_spill] sm:$0xff]  ;;  %v9966_v4 = vld [vmem:[#allocation119_spill] sm:$0xff] }
 0x629   : > { %v4060_v20 = vadd.f32 %v4059_v50, %v3867_v29  ;;  %v3872_v14 = vmul.f32 %v8591_v57, %v9945_v54  ;;  %v4249_v46 = vadd.f32 %v4248_v48, %v4200_v47  ;;  %v3950_v56 = vadd.f32 %v3949_v30, %v3868_v18  ;;  %v9955_v18 = vld [vmem:[#allocation142_spill] sm:$0xff]  ;;  %v3736_v48 = vpop.permute.xlu2 %3735  ;;  %v9964_v13 = vld [vmem:[#allocation117_spill] sm:$0xff] }
 0x62a   : > { %v3873_v63 = vmul.f32 %v8591_v57, %v9947_v21  ;;  %v3874_v10 = vmul.f32 %v8591_v57, %v9949_v11  ;;  %v3987_v26 = vadd.f32 %v3986_v53, %v3869_v43  ;;  %v4024_v49 = vadd.f32 %v4023_v36, %v3870_v41  ;;  %v3756_v25 = vpop.permute.xlu1 %3755  ;;  %v9956_v43 = vld [vmem:[#allocation54_spill] sm:$0xff]  ;;  %v9958_v41 = vld [vmem:[#allocation55_spill] sm:$0xff]  ;;  %v9970_v30 = vld [vmem:[#allocation121_spill] sm:$0xff] }
 0x62b   : > { %v4061_v1 = vadd.f32 %v4060_v20, %v3871_v52  ;;  %vm4145_vm10 = vcmp.eq.s32.totalorder %v9950_v55, %v8638_v6  ;;  %vm4147_vm11 = vcmp.eq.s32.totalorder %v9951_v61, %v8638_v6  ;;  %v9953_v45 = vmax.f32 %v9952_v37, 0.0  ;;  %v9960_v52 = vld [vmem:[#allocation52_spill] sm:$0xff]  ;;  %v9968_v29 = vld [vmem:[#allocation118_spill] sm:$0xff] }
 0x62c   : > { %v8688_v33 = vadd.f32 %v4249_v46, %v4202_v19  ;;  %vm4149_vm12 = vcmp.eq.s32.totalorder %v9954_v28, %v8638_v6  ;;  %vm4151_vm13 = vcmp.eq.s32.totalorder %v9955_v18, %v8638_v6  ;;  %v3951_v40 = vadd.f32 %v3950_v56, %v3872_v14  ;;  %v9977_v56 = vld [vmem:[#allocation122_spill] sm:$0xff]  ;;  %v10005_v28 = vld [vmem:[#allocation137_spill] sm:$0xff] }
 0x62d   : > { %v3875_v51 = vmul.f32 %v8591_v57, %v9953_v45  ;;  %v3988_v50 = vadd.f32 %v3987_v26, %v3873_v63  ;;  %v4025_v0 = vadd.f32 %v4024_v49, %v3874_v10  ;;  %v4205_v16 = vsel %vm4141_vm8, %v8591_v57, 0.0  ;;  %v3761_v57 = vpop.permute.xlu0 %3760  ;;  %v9973_v63 = vld [vmem:[#allocation56_spill] sm:$0xff] }
 0x62e   : > { %v9957_v27 = vmax.f32 %v9956_v43, 0.0  ;;  %v9959_v60 = vmax.f32 %v9958_v41, 0.0  ;;  %v9961_v34 = vmax.f32 %v9960_v52, 0.0  ;;  %v9963_v38 = vmax.f32 %v9962_v22, 0.0  ;;  %v9983_v41 = vld [vmem:[#allocation148_spill] sm:$0xff]  ;;  %v9984_v22 = vld [vmem:[#allocation61_spill] sm:$0xff] }
 0x62f   : > { %v4062_v58 = vadd.f32 %v4061_v1, %v3875_v51  ;;  %v9965_v8 = vmax.f32 %v9964_v13, 0.0  ;;  %v9967_v2 = vmax.f32 %v9966_v4, 0.0  ;;  %v9969_v24 = vmax.f32 %v9968_v29, 0.0  ;;  %v9979_v51 = vld [vmem:[#allocation124_spill] sm:$0xff]  ;;  %v9986_v13 = vld [vmem:[#allocation130_spill] sm:$0xff] }
 0x630   : > { %v3880_v44 = vmul.f32 %v3741_v17, %v9957_v27  ;;  %v3881_v15 = vmul.f32 %v3741_v17, %v9959_v60  ;;  %v3876_v31 = vmul.f32 %v3736_v48, %v9961_v34  ;;  %v3877_v12 = vmul.f32 %v3736_v48, %v9963_v38 }
 0x631   : > { %v3878_v39 = vmul.f32 %v3736_v48, %v9965_v8  ;;  %v3882_v5 = vmul.f32 %v3741_v17, %v9967_v2  ;;  %v3879_v47 = vmul.f32 %v3736_v48, %v9969_v24  ;;  %v4207_v19 = vsel %vm4143_vm9, %v3736_v48, 0.0  ;;  %v3751_v34 = vpop.permute.xlu2 %3750  ;;  %v9988_v8 = vld [vmem:[#allocation132_spill] sm:$0xff]  ;;  %v9990_v2 = vld [vmem:[#allocation58_spill] sm:$0xff]  ;;  %v9992_v24 = vld [vmem:[#allocation59_spill] sm:$0xff] }
 0x632   : > { %v9971_v53 = vmax.f32 %v9970_v30, 0.0  ;;  %v4209_v20 = vsel %vm4145_vm10, %v3741_v17, 0.0  ;;  %vm4153_vm14 = vcmp.eq.s32.totalorder %v9972_v59, %v8638_v6  ;;  %v4289_v54 = vadd.f32 %v4207_v19, %v4205_v16  ;;  %v9981_v16 = vld [vmem:[#allocation60_spill] sm:$0xff]  ;;  %v3771_v52 = vpop.permute.xlu1 %3770  ;;  %v9994_v30 = vld [vmem:[#allocation127_spill] sm:$0xff] }
 0x633   : > { %v3952_v14 = vadd.f32 %v3951_v40, %v3876_v31  ;;  %v3989_v9 = vadd.f32 %v3988_v50, %v3877_v12  ;;  %v4026_v21 = vadd.f32 %v4025_v0, %v3878_v39  ;;  %v9974_v7 = vmax.f32 %v9973_v63, 0.0  ;;  %v9999_v63 = vld [vmem:[#allocation62_spill] sm:$0xff] }
 0x634   : > { %v3883_v36 = vmul.f32 %v3741_v17, %v9971_v53  ;;  %v9976_v10 = vmax.f32 %v9975_v23, 0.0  ;;  %v9978_v26 = vmax.f32 %v9977_v56, 0.0  ;;  %v4063_v17 = vadd.f32 %v4062_v58, %v3879_v47 }
 0x635   : > { %v3884_v11 = vmul.f32 %v8646_v42, %v9974_v7  ;;  %v3953_v1 = vadd.f32 %v3952_v14, %v3880_v44  ;;  %v3990_v55 = vadd.f32 %v3989_v9, %v3881_v15  ;;  %v4027_v37 = vadd.f32 %v4026_v21, %v3882_v5  ;;  %v9998_v9 = vld [vmem:[#allocation150_spill] sm:$0xff] }
 0x636   : > { %v3885_v46 = vmul.f32 %v8646_v42, %v9976_v10  ;;  %v3886_v49 = vmul.f32 %v8646_v42, %v9978_v26  ;;  %v4290_v45 = vadd.f32 %v4289_v54, %v4209_v20  ;;  %v9980_v40 = vmax.f32 %v9979_v51, 0.0  ;;  %v9996_v20 = vld [vmem:[#allocation129_spill] sm:$0xff] }
 0x637   : > { %v4211_v0 = vsel %vm4147_vm11, %v8646_v42, 0.0  ;;  %v4064_v48 = vadd.f32 %v4063_v17, %v3883_v36  ;;  %v9982_v43 = vmax.f32 %v9981_v16, 0.0  ;;  %vm4155_vm15 = vcmp.eq.s32.totalorder %v9983_v41, %v8638_v6  ;;  %v10001_v17 = vld [vmem:[#allocation63_spill] sm:$0xff] }
 0x638   : > { %v3887_v50 = vmul.f32 %v8646_v42, %v9980_v40  ;;  %v3954_v58 = vadd.f32 %v3953_v1, %v3884_v11  ;;  %v3991_v44 = vadd.f32 %v3990_v55, %v3885_v46  ;;  %v4028_v60 = vadd.f32 %v4027_v37, %v3886_v49  ;;  %v3776_v49 = vpop.permute.xlu0 %3775  ;;  %v10003_v37 = vld [vmem:[#allocation135_spill] sm:$0xff] }
 0x639   : > { %v3892_v27 = vmul.f32 %v3756_v25, %v9982_v43  ;;  %v4291_v15 = vadd.f32 %v4290_v45, %v4211_v0  ;;  %v9985_v38 = vmax.f32 %v9984_v22, 0.0  ;;  %v9987_v61 = vmax.f32 %v9986_v13, 0.0  ;;  %v10010_v22 = vld [vmem:[#allocation155_spill] sm:$0xff]  ;;  %v3766_v13 = vpop.permute.xlu2 %3765 }
 0x63a   : > { %v4065_v31 = vadd.f32 %v4064_v48, %v3887_v50  ;;  %v9989_v39 = vmax.f32 %v9988_v8, 0.0  ;;  %v9991_v5 = vmax.f32 %v9990_v2, 0.0  ;;  %v9993_v47 = vmax.f32 %v9992_v24, 0.0  ;;  %v10017_v24 = vld [vmem:[#allocation64_spill] sm:$0xff] }
 0x63b   : > { %v3893_v12 = vmul.f32 %v3756_v25, %v9985_v38  ;;  %v3894_v42 = vmul.f32 %v3756_v25, %v9987_v61  ;;  %v9995_v53 = vmax.f32 %v9994_v30, 0.0  ;;  %v9997_v54 = vmax.f32 %v9996_v20, 0.0  ;;  %v10019_v30 = vld [vmem:[#allocation65_spill] sm:$0xff]  ;;  %v10021_v20 = vld [vmem:[#allocation138_spill] sm:$0xff] }
 0x63c   : > { %v3895_v4 = vmul.f32 %v3756_v25, %v9989_v39  ;;  %v3888_v29 = vmul.f32 %v3751_v34, %v9991_v5  ;;  %v3889_v19 = vmul.f32 %v3751_v34, %v9993_v47  ;;  %vm4157_vm0 = vcmp.eq.s32.totalorder %v9998_v9, %v8638_v6 }
 0x63d   : > { %v3890_v36 = vmul.f32 %v3751_v34, %v9995_v53  ;;  %v3891_v14 = vmul.f32 %v3751_v34, %v9997_v54  ;;  %v4213_v21 = vsel %vm4149_vm12, %v3751_v34, 0.0  ;;  %v10000_v7 = vmax.f32 %v9999_v63, 0.0 }
 0x63e   : > { %v4215_v23 = vsel %vm4151_vm13, %v3756_v25, 0.0  ;;  %v3955_v10 = vadd.f32 %v3954_v58, %v3888_v29  ;;  %v3992_v46 = vadd.f32 %v3991_v44, %v3889_v19  ;;  %v10002_v1 = vmax.f32 %v10001_v17, 0.0  ;;  %v10007_v25 = vld [vmem:[#allocation153_spill] sm:$0xff] }
 0x63f   : > { %v3896_v11 = vmul.f32 %v3761_v57, %v10000_v7  ;;  %v4029_v56 = vadd.f32 %v4028_v60, %v3890_v36  ;;  %v4066_v26 = vadd.f32 %v4065_v31, %v3891_v14  ;;  %v10004_v45 = vmax.f32 %v10003_v37, 0.0  ;;  %v10008_v60 = vld [vmem:[#allocation66_spill] sm:$0xff] }
 0x640   : > { %v3897_v55 = vmul.f32 %v3761_v57, %v10002_v1  ;;  %v10006_v40 = vmax.f32 %v10005_v28, 0.0  ;;  %v4292_v0 = vadd.f32 %v4291_v15, %v4213_v21  ;;  %v3956_v48 = vadd.f32 %v3955_v10, %v3892_v27  ;;  %v10023_v21 = vld [vmem:[#allocation140_spill] sm:$0xff]  ;;  %v3791_v9 = vpop.permute.xlu0 %3790 }
 0x641   : > { %v3898_v51 = vmul.f32 %v3761_v57, %v10004_v45  ;;  %v3993_v16 = vadd.f32 %v3992_v46, %v3893_v12  ;;  %v4030_v43 = vadd.f32 %v4029_v56, %v3894_v42  ;;  %v4067_v18 = vadd.f32 %v4066_v26, %v3895_v4  ;;  %v10011_v42 = vld [vmem:[#allocation67_spill] sm:$0xff]  ;;  %v10026_v46 = vld [vmem:[#allocation68_spill] sm:$0xff] }
 0x642   : > { %v3899_v50 = vmul.f32 %v3761_v57, %v10006_v40  ;;  %vm4159_vm1 = vcmp.eq.s32.totalorder %v10007_v25, %v8638_v6  ;;  %v4217_v58 = vsel %vm4153_vm14, %v3761_v57, 0.0  ;;  %v4293_v44 = vadd.f32 %v4292_v0, %v4215_v23  ;;  %v10013_v4 = vld [vmem:[#allocation143_spill] sm:$0xff]  ;;  %v10015_v57 = vld [vmem:[#allocation145_spill] sm:$0xff]  ;;  %v10025_v23 = vld [vmem:[#allocation156_spill] sm:$0xff] }
 0x643   : > { %v10009_v34 = vmax.f32 %v10008_v60, 0.0  ;;  %vm4161_vm2 = vcmp.eq.s32.totalorder %v10010_v22, %v8638_v6  ;;  %v3957_v38 = vadd.f32 %v3956_v48, %v3896_v11  ;;  %v3994_v15 = vadd.f32 %v3993_v16, %v3897_v55  ;;  %v3786_v11 = vpop.permute.xlu1 %3785  ;;  %v10032_v16 = vld [vmem:[#allocation147_spill] sm:$0xff] }
 0x644   : > { %v4031_v27 = vadd.f32 %v4030_v43, %v3898_v51  ;;  %v4068_v12 = vadd.f32 %v4067_v18, %v3899_v50  ;;  %v4294_v61 = vadd.f32 %v4293_v44, %v4217_v58  ;;  %v10012_v8 = vmax.f32 %v10011_v42, 0.0  ;;  %v10028_v51 = vld [vmem:[#allocation69_spill] sm:$0xff]  ;;  %v10030_v50 = vld [vmem:[#allocation146_spill] sm:$0xff]  ;;  %v10037_v42 = vld [vmem:[#allocation164_spill] sm:$0xff] }
 0x645   : > { %v3904_v31 = vmul.f32 %v3771_v52, %v10009_v34  ;;  %v10014_v2 = vmax.f32 %v10013_v4, 0.0  ;;  %v10016_v5 = vmax.f32 %v10015_v57, 0.0  ;;  %v10018_v47 = vmax.f32 %v10017_v24, 0.0  ;;  %v3781_v4 = vpop.permute.xlu2 %3780  ;;  %v10058_v22 = vld [vmem:[#allocation159_spill] sm:$0xff] }
 0x646   : > { %v3905_v39 = vmul.f32 %v3771_v52, %v10012_v8  ;;  %v10020_v53 = vmax.f32 %v10019_v30, 0.0  ;;  %v10022_v54 = vmax.f32 %v10021_v20, 0.0  ;;  %v10024_v63 = vmax.f32 %v10023_v21, 0.0  ;;  %v10044_v30 = vld [vmem:[#allocation70_spill] sm:$0xff]  ;;  %v10046_v20 = vld [vmem:[#allocation71_spill] sm:$0xff]  ;;  %v10048_v21 = vld [vmem:[#allocation149_spill] sm:$0xff] }
 0x647   : > { %v3906_v59 = vmul.f32 %v3771_v52, %v10014_v2  ;;  %v3907_v29 = vmul.f32 %v3771_v52, %v10016_v5  ;;  %v3900_v19 = vmul.f32 %v3766_v13, %v10018_v47  ;;  %vm4163_vm3 = vcmp.eq.s32.totalorder %v10025_v23, %v8638_v6 }
 0x648   : > { %v3901_v36 = vmul.f32 %v3766_v13, %v10020_v53  ;;  %v3902_v14 = vmul.f32 %v3766_v13, %v10022_v54  ;;  %v3903_v7 = vmul.f32 %v3766_v13, %v10024_v63  ;;  %v4219_v10 = vsel %vm4155_vm15, %v3766_v13, 0.0 }
 0x649   : > { %v10027_v56 = vmax.f32 %v10026_v46, 0.0  ;;  %v4221_v17 = vsel %vm4157_vm0, %v3771_v52, 0.0  ;;  %v3958_v1 = vadd.f32 %v3957_v38, %v3900_v19  ;;  %v10029_v28 = vmax.f32 %v10028_v51, 0.0  ;;  %v10034_v52 = vld [vmem:[#allocation158_spill] sm:$0xff] }
 0x64a   : > { %v3995_v55 = vadd.f32 %v3994_v15, %v3901_v36  ;;  %v4032_v37 = vadd.f32 %v4031_v27, %v3902_v14  ;;  %v4069_v45 = vadd.f32 %v4068_v12, %v3903_v7  ;;  %v10031_v0 = vmax.f32 %v10030_v50, 0.0  ;;  %v10035_v27 = vld [vmem:[#allocation72_spill] sm:$0xff] }
 0x64b   : > { %v3908_v26 = vmul.f32 %v3776_v49, %v10027_v56  ;;  %v3909_v40 = vmul.f32 %v3776_v49, %v10029_v28  ;;  %v10033_v41 = vmax.f32 %v10032_v16, 0.0  ;;  %v4295_v18 = vadd.f32 %v4294_v61, %v4219_v10  ;;  %v10050_v10 = vld [vmem:[#allocation151_spill] sm:$0xff] }
 0x64c   : > { %v3910_v48 = vmul.f32 %v3776_v49, %v10031_v0  ;;  %v3959_v58 = vadd.f32 %v3958_v1, %v3904_v31  ;;  %v3996_v44 = vadd.f32 %v3995_v55, %v3905_v39  ;;  %v4033_v60 = vadd.f32 %v4032_v37, %v3906_v59  ;;  %v10038_v59 = vld [vmem:[#allocation73_spill] sm:$0xff]  ;;  %v10052_v1 = vld [vmem:[#allocation74_spill] sm:$0xff]  ;;  %v3801_v0 = vpop.permute.xlu1 %3800 }
 0x64d   : > { %v3911_v43 = vmul.f32 %v3776_v49, %v10033_v41  ;;  %v4070_v34 = vadd.f32 %v4069_v45, %v3907_v29  ;;  %vm4165_vm4 = vcmp.eq.s32.totalorder %v10034_v52, %v8638_v6  ;;  %v4223_v38 = vsel %vm4159_vm1, %v3776_v49, 0.0  ;;  %v10040_v29 = vld [vmem:[#allocation152_spill] sm:$0xff]  ;;  %v10042_v49 = vld [vmem:[#allocation154_spill] sm:$0xff] }
 0x64e   : > { %v4296_v15 = vadd.f32 %v4295_v18, %v4221_v17  ;;  %v10036_v12 = vmax.f32 %v10035_v27, 0.0  ;;  %vm4167_vm5 = vcmp.eq.s32.totalorder %v10037_v42, %v8638_v6  ;;  %v3960_v61 = vadd.f32 %v3959_v58, %v3908_v26 }
 0x64f   : > { %v3997_v31 = vadd.f32 %v3996_v44, %v3909_v40  ;;  %v4034_v8 = vadd.f32 %v4033_v60, %v3910_v48  ;;  %v4071_v39 = vadd.f32 %v4070_v34, %v3911_v43  ;;  %v10039_v57 = vmax.f32 %v10038_v59, 0.0  ;;  %v10054_v48 = vld [vmem:[#allocation75_spill] sm:$0xff]  ;;  %v10056_v43 = vld [vmem:[#allocation157_spill] sm:$0xff] }
 0x650   : > { %v3916_v13 = vmul.f32 %v3786_v11, %v10036_v12  ;;  %v4297_v2 = vadd.f32 %v4296_v15, %v4223_v38  ;;  %v10041_v24 = vmax.f32 %v10040_v29, 0.0  ;;  %v10043_v47 = vmax.f32 %v10042_v49, 0.0  ;;  %v10065_v49 = vld [vmem:[#allocation162_spill] sm:$0xff] }
 0x651   : > { %v3917_v5 = vmul.f32 %v3786_v11, %v10039_v57  ;;  %v10045_v53 = vmax.f32 %v10044_v30, 0.0  ;;  %v10047_v54 = vmax.f32 %v10046_v20, 0.0  ;;  %v10049_v63 = vmax.f32 %v10048_v21, 0.0 }
 0x652   : > { %v3918_v25 = vmul.f32 %v3786_v11, %v10041_v24  ;;  %v3919_v19 = vmul.f32 %v3786_v11, %v10043_v47  ;;  %v10051_v46 = vmax.f32 %v10050_v10, 0.0  ;;  %v4267_v26 = vrot.slane %v8688_v33, 4 }
 0x653   : > { %v3912_v36 = vmul.f32 %v3781_v4, %v10045_v53  ;;  %v3913_v14 = vmul.f32 %v3781_v4, %v10047_v54  ;;  %v3914_v7 = vmul.f32 %v3781_v4, %v10049_v63  ;;  %v4225_v17 = vsel %vm4161_vm2, %v3781_v4, 0.0 }
 0x654   : > { %v3915_v56 = vmul.f32 %v3781_v4, %v10051_v46  ;;  %v10053_v55 = vmax.f32 %v10052_v1, 0.0  ;;  %v4227_v45 = vsel %vm4163_vm3, %v3786_v11, 0.0  ;;  %v10055_v16 = vmax.f32 %v10054_v48, 0.0  ;;  %v3806_v4 = vpop.permute.xlu0 %3805 }
 0x655   : > { %v3961_v51 = vadd.f32 %v3960_v61, %v3912_v36  ;;  %v3998_v28 = vadd.f32 %v3997_v31, %v3913_v14  ;;  %v4035_v40 = vadd.f32 %v4034_v8, %v3914_v7  ;;  %v10057_v18 = vmax.f32 %v10056_v43, 0.0  ;;  %v10060_v61 = vld [vmem:[#allocation167_spill] sm:$0xff]  ;;  %v10061_v31 = vld [vmem:[#allocation78_spill] sm:$0xff]  ;;  %v10069_v36 = vld [vmem:[#allocation76_spill] sm:$0xff] }
 0x656   : > { %v3920_v37 = vmul.f32 %v3791_v9, %v10053_v55  ;;  %v4072_v50 = vadd.f32 %v4071_v39, %v3915_v56  ;;  %v3921_v41 = vmul.f32 %v3791_v9, %v10055_v16  ;;  %v10059_v44 = vmax.f32 %v10058_v22, 0.0  ;;  %v10071_v14 = vld [vmem:[#allocation77_spill] sm:$0xff]  ;;  %v10073_v7 = vld [vmem:[#allocation160_spill] sm:$0xff] }
 0x657   : > { %v3922_v58 = vmul.f32 %v3791_v9, %v10057_v18  ;;  %v4298_v34 = vadd.f32 %v4297_v2, %v4225_v17  ;;  %v3962_v38 = vadd.f32 %v3961_v51, %v3916_v13  ;;  %v3999_v15 = vadd.f32 %v3998_v28, %v3917_v5  ;;  %v3796_v13 = vpop.permute.xlu2 %3795  ;;  %v10063_v5 = vld [vmem:[#allocation79_spill] sm:$0xff]  ;;  %v10075_v56 = vld [vmem:[#allocation161_spill] sm:$0xff] }
 0x658   : > { %v3923_v60 = vmul.f32 %v3791_v9, %v10059_v44  ;;  %v4036_v27 = vadd.f32 %v4035_v40, %v3918_v25  ;;  %v4073_v23 = vadd.f32 %v4072_v50, %v3919_v19  ;;  %v4229_v11 = vsel %vm4165_vm4, %v3791_v9, 0.0  ;;  %v10067_v9 = vld [vmem:[#allocation163_spill] sm:$0xff]  ;;  %v10080_v43 = vld [vmem:[#allocation81_spill] sm:$0xff] }
 0x659   : > { %v4299_v12 = vadd.f32 %v4298_v34, %v4227_v45  ;;  %vm4169_vm6 = vcmp.eq.s32.totalorder %v10060_v61, %v8638_v6  ;;  %v10062_v8 = vmax.f32 %v10061_v31, 0.0  ;;  %v3963_v59 = vadd.f32 %v3962_v38, %v3920_v37  ;;  %v10077_v37 = vld [vmem:[#allocation168_spill] sm:$0xff]  ;;  %v10082_v22 = vld [vmem:[#allocation165_spill] sm:$0xff] }
 0x65a   : > { %v4000_v57 = vadd.f32 %v3999_v15, %v3921_v41  ;;  %v4037_v29 = vadd.f32 %v4036_v27, %v3922_v58  ;;  %v4074_v2 = vadd.f32 %v4073_v23, %v3923_v60  ;;  %v10064_v24 = vmax.f32 %v10063_v5, 0.0  ;;  %v10078_v45 = vld [vmem:[#allocation80_spill] sm:$0xff]  ;;  %v10084_v60 = vld [vmem:[#allocation166_spill] sm:$0xff] }
 0x65b   : > { %v3928_v39 = vmul.f32 %v3801_v0, %v10062_v8  ;;  %v10066_v47 = vmax.f32 %v10065_v49, 0.0  ;;  %v10068_v19 = vmax.f32 %v10067_v9, 0.0  ;;  %v4300_v53 = vadd.f32 %v4299_v12, %v4229_v11 }
 0x65c   : > { %v3929_v25 = vmul.f32 %v3801_v0, %v10064_v24  ;;  %v10070_v20 = vmax.f32 %v10069_v36, 0.0  ;;  %v10072_v21 = vmax.f32 %v10071_v14, 0.0  ;;  %v10074_v10 = vmax.f32 %v10073_v7, 0.0 }
 0x65d   : > { %v3930_v52 = vmul.f32 %v3801_v0, %v10066_v47  ;;  %v3931_v30 = vmul.f32 %v3801_v0, %v10068_v19  ;;  %v10076_v17 = vmax.f32 %v10075_v56, 0.0  ;;  %v4231_v55 = vsel %vm4167_vm5, %v3796_v13, 0.0 }
 0x65e   : > { %v3924_v54 = vmul.f32 %v3796_v13, %v10070_v20  ;;  %v3925_v63 = vmul.f32 %v3796_v13, %v10072_v21  ;;  %v3926_v46 = vmul.f32 %v3796_v13, %v10074_v10  ;;  %vm4171_vm8 = vcmp.eq.s32.totalorder %v10077_v37, %v8638_v6 }
 0x65f   : > { %v3927_v1 = vmul.f32 %v3796_v13, %v10076_v17  ;;  %v10079_v51 = vmax.f32 %v10078_v45, 0.0  ;;  %v4233_v40 = vsel %vm4169_vm6, %v3801_v0, 0.0  ;;  %v10081_v18 = vmax.f32 %v10080_v43, 0.0 }
 0x660   : > { %v3964_v50 = vadd.f32 %v3963_v59, %v3924_v54  ;;  %v4001_v48 = vadd.f32 %v4000_v57, %v3925_v63  ;;  %v4038_v16 = vadd.f32 %v4037_v29, %v3926_v46  ;;  %v10083_v42 = vmax.f32 %v10082_v22, 0.0 }
 0x661   : > { %v3932_v28 = vmul.f32 %v3806_v4, %v10079_v51  ;;  %v4075_v41 = vadd.f32 %v4074_v2, %v3927_v1  ;;  %v3933_v58 = vmul.f32 %v3806_v4, %v10081_v18  ;;  %v10085_v34 = vmax.f32 %v10084_v60, 0.0  ;;  %v3640_v51 = vld [vmem:[#allocation4] sm:$0xf] }
 0x662   : > { %v3934_v44 = vmul.f32 %v3806_v4, %v10083_v42  ;;  %v4301_v15 = vadd.f32 %v4300_v53, %v4231_v55  ;;  %v3965_v27 = vadd.f32 %v3964_v50, %v3928_v39  ;;  %v4002_v23 = vadd.f32 %v4001_v48, %v3929_v25 }
 0x663   : > { %v3935_v38 = vmul.f32 %v3806_v4, %v10085_v34  ;;  %v4039_v11 = vadd.f32 %v4038_v16, %v3930_v52  ;;  %v4076_v12 = vadd.f32 %v4075_v41, %v3931_v30  ;;  %v4268_v0 = vadd.f32 %v4267_v26, %v8688_v33 }
 0x664   : > { %v4235_v61 = vsel %vm4171_vm8, %v3806_v4, 0.0  ;;  %v4302_v31 = vadd.f32 %v4301_v15, %v4233_v40  ;;  %v3966_v8 = vadd.f32 %v3965_v27, %v3932_v28  ;;  %v4003_v59 = vadd.f32 %v4002_v23, %v3933_v58 }
 0x665   : > { %v4040_v57 = vadd.f32 %v4039_v11, %v3934_v44  ;;  %v4077_v29 = vadd.f32 %v4076_v12, %v3935_v38  ;;  %v4269_v39 = vrot.slane %v4268_v0, 2  ;;  %vm4091_vm9 = vcmask 1040384  }
 0x666   : > { %v4303_v2 = vadd.f32 %v4302_v31, %v4235_v61  ;;  %v3967_v13 = vrot.slane %v3966_v8, 4  ;;  %v4004_v5 = vrot.slane %v4003_v59, 4  ;;  %vm4093_vm10 = vcmask 1042434  }
 0x667   : > { %v4041_v24 = vrot.slane %v4040_v57, 4  ;;  %v4078_v49 = vrot.slane %v4077_v29, 4  ;;  %v4270_v53 = vadd.f32 %v4269_v39, %v4268_v0  ;;  %vm4095_vm11 = vcmask 1041408  }
 0x668   : > { %v4304_v25 = vrot.slane %v4303_v2, 4  ;;  %v3968_v47 = vadd.f32 %v3967_v13, %v3966_v8  ;;  %v4005_v52 = vadd.f32 %v4004_v5, %v4003_v59  ;;  %vm4323_vm12 = vcmp.lt.s32.totalorder %v9809_v3, 256 }
 0x669   : > { %v4042_v9 = vadd.f32 %v4041_v24, %v4040_v57  ;;  %v4079_v33 = vadd.f32 %v4078_v49, %v4077_v29  ;;  %v4271_v17 = vrot.slane %v4270_v53, 1  ;;  %v3647_v18 = vmul.f32 %v3646_v32, %v3640_v51 }
 0x66a   : > { %v4305_v26 = vadd.f32 %v4304_v25, %v4303_v2  ;;  %v3969_v19 = vrot.slane %v3968_v47, 2  ;;  %v4006_v6 = vrot.slane %v4005_v52, 2  ;;  %vm4101_vm13 = vcmp.lt.s32.totalorder %v9809_v3, 512 }
 0x66b   : > { %v4043_v4 = vrot.slane %v4042_v9, 2  ;;  %v4080_v30 = vrot.slane %v4079_v33, 2  ;;  %v4272_v41 = vadd.f32 %v4271_v17, %v4270_v53 }
 0x66c   : > { %v4306_v36 = vrot.slane %v4305_v26, 2  ;;  %v3970_v20 = vadd.f32 %v3969_v19, %v3968_v47  ;;  %v4007_v54 = vadd.f32 %v4006_v6, %v4005_v52 }
 0x66d   : > { %v4044_v14 = vadd.f32 %v4043_v4, %v4042_v9  ;;  %v4081_v21 = vadd.f32 %v4080_v30, %v4079_v33 }
 0x66e   : > { %v4307_v63 = vadd.f32 %v4306_v36, %v4305_v26  ;;  %v3971_v7 = vrot.slane %v3970_v20, 1  ;;  %v4008_v10 = vrot.slane %v4007_v54, 1 }
 0x66f   : > { %v4045_v46 = vrot.slane %v4044_v14, 1  ;;  %v4082_v56 = vrot.slane %v4081_v21, 1 }
 0x670   : > { %v4308_v1 = vrot.slane %v4307_v63, 1  ;;  %v4009_v55 = vadd.f32 %v4008_v10, %v4007_v54  ;;  %v3972_v40 = vadd.f32 %v3971_v7, %v3970_v20 }
 0x671   : > { %v4046_v37 = vadd.f32 %v4045_v46, %v4044_v14  ;;  %v4083_v45 = vadd.f32 %v4082_v56, %v4081_v21 }
 0x672   : > { %v4309_v28 = vadd.f32 %v4308_v1, %v4307_v63  ;;  %v4088_v50 = vrot.slane %v4009_v55, 7 }
 0x673   : > { %v4089_v48 = vrot.slane %v4046_v37, 6  ;;  %v4090_v16 = vrot.slane %v4083_v45, 5 }
 0x674   : > { %v4317_v43 = vrot.slane %v4309_v28, 7  ;;  %v4092_v58 = vsel %vm4091_vm9, %v3972_v40, %v4088_v50 }
 0x675   : > { %v4094_v22 = vsel %vm4093_vm10, %v4089_v48, %v4090_v16  ;;  %4329 = sbr.rel (%p5260_p1) target bundleno = 1935 (0x78f), region = 72 }
 0x676   : > { %v4096_v42 = vsel %vm4095_vm11, %v4092_v58, %v4094_v22  ;;  %v4318_v44 = vsel %vm4091_vm9, %v4272_v41, %v4317_v43 }
 0x677   : > { %v4098_v60 = vadd.f32 %v4096_v42, %v3647_v18  ;;  %4325 = vst.msk [vmem:[%s4322_s29] sm:$0x3] %vm4323_vm12, %v4318_v44 }
 0x679   : > { %4103 = vst.msk [vmem:[#allocation4] sm:$0xf] %vm4101_vm13, %v4098_v60 }
 0x67a   : > { %v8899_v34 = vld [vmem:[#allocation3] sm:$0x1]  ;;  %v4372_v35 = vld [vmem:[%s9151_s7 + $0x78] sm:$0xff]  ;;  %v5870_v32 = vmov 0   ;;  %v4371_v27 = vld [vmem:[%s9151_s7 + $0x70] sm:$0xff] }
 0x67b   : > { %v4388_v3 = vld [vmem:[%s9151_s7 + $0xf8] sm:$0xff]  ;;  %5697 = vset.pattern.permute.xlu0 %v5870_v32  ;;  %5698 = vrcp.f32 %v8899_v34  ;;  %4431 = vmatpush.msra.mxu0 %v4372_v35  ;;  %v4387_v23 = vld [vmem:[%s9151_s7 + $0xf0] sm:$0xff]  ;;  %v4370_v0 = vld [vmem:[%s9151_s7 + $0x68] sm:$0xff]  ;;  %v4342_v52 = vand.u32 2147483648, %v8899_v34  ;;  %vm4336_vm14 = vweird.f32 %v8899_v34  ;;  %v4340_v19 = vand.u32 2147483647, %v8899_v34 }
 0x67c   : > { %v4404_v38 = vld [vmem:[%s9151_s7 + $0x178] sm:$0xff]  ;;  %4451 = vmatpush.msra.mxu1 %v4388_v3  ;;  %v4403_v11 = vld [vmem:[%s9151_s7 + $0x170] sm:$0xff]  ;;  %v4386_v61 = vld [vmem:[%s9151_s7 + $0xe8] sm:$0xff] }
 0x67d   : > { %v4420_v15 = vld [vmem:[%s9151_s7 + $0x1f8] sm:$0xff]  ;;  %4471 = vmatpush.msra.mxu2 %v4404_v38  ;;  %v4419_v12 = vld [vmem:[%s9151_s7 + $0x1f0] sm:$0xff]  ;;  %4432 = vmatpush.msra.mxu0 %v4371_v27  ;;  %v4402_v31 = vld [vmem:[%s9151_s7 + $0x168] sm:$0xff]  ;;  %v4343_v21 = vor.u32 1.1754944e-38, %v4342_v52  ;;  %vm4341_vm1 = vcmp.eq.f32.partialorder %v4340_v19, 8.507059e+37 }
 0x67e   : > { %4491 = vmatpush.msra.mxu3 %v4420_v15  ;;  %4452 = vmatpush.msra.mxu1 %v4387_v23  ;;  %v4418_v8 = vld [vmem:[%s9151_s7 + $0x1e8] sm:$0xff]  ;;  %v4369_v59 = vld [vmem:[%s9151_s7 + $0x60] sm:$0xff]  ;;  %v4368_v13 = vld [vmem:[%s9151_s7 + $0x58] sm:$0xff] }
 0x67f   : > { %4472 = vmatpush.msra.mxu2 %v4403_v11  ;;  %4433 = vmatpush.msra.mxu0 %v4370_v0  ;;  %v4385_v57 = vld [vmem:[%s9151_s7 + $0xe0] sm:$0xff]  ;;  %v4384_v24 = vld [vmem:[%s9151_s7 + $0xd8] sm:$0xff]  ;;  %v4367_v47 = vld [vmem:[%s9151_s7 + $0x50] sm:$0xff] }
 0x680   : > { %4492 = vmatpush.msra.mxu3 %v4419_v12  ;;  %v4401_v29 = vld [vmem:[%s9151_s7 + $0x160] sm:$0xff]  ;;  %4453 = vmatpush.msra.mxu1 %v4386_v61  ;;  %v4400_v49 = vld [vmem:[%s9151_s7 + $0x158] sm:$0xff]  ;;  %v4383_v9 = vld [vmem:[%s9151_s7 + $0xd0] sm:$0xff] }
 0x681   : > { %4473 = vmatpush.msra.mxu2 %v4402_v31  ;;  %v4417_v2 = vld [vmem:[%s9151_s7 + $0x1e0] sm:$0xff]  ;;  %v5699_v5 = vpop.eup %5698  ;;  %4434 = vmatpush.msra.mxu0 %v4369_v59  ;;  %v4416_v25 = vld [vmem:[%s9151_s7 + $0x1d8] sm:$0xff]  ;;  %v4399_v33 = vld [vmem:[%s9151_s7 + $0x150] sm:$0xff] }
 0x682   : > { %4493 = vmatpush.msra.mxu3 %v4418_v8  ;;  %v4332_v39 = vmul.f32 %v5699_v5, %v8899_v34  ;;  %4454 = vmatpush.msra.mxu1 %v4385_v57  ;;  %vm4337_vm15 = vweird.f32 %v5699_v5  ;;  %v4415_v6 = vld [vmem:[%s9151_s7 + $0x1d0] sm:$0xff]  ;;  %v4366_v4 = vld [vmem:[%s9151_s7 + $0x48] sm:$0xff]  ;;  %v4365_v54 = vld [vmem:[%s9151_s7 + $0x40] sm:$0xff] }
 0x683   : > { %4474 = vmatpush.msra.mxu2 %v4401_v29  ;;  %4435 = vmatpush.msra.mxu0 %v4368_v13  ;;  %v4382_v30 = vld [vmem:[%s9151_s7 + $0xc8] sm:$0xff]  ;;  %vm8996_vm0 = vmor %vm4336_vm14, %vm4337_vm15  ;;  %v4381_v63 = vld [vmem:[%s9151_s7 + $0xc0] sm:$0xff] }
 0x684   : > { %4494 = vmatpush.msra.mxu3 %v4417_v2  ;;  %v4333_v26 = vsub.f32 1.0, %v4332_v39  ;;  %4455 = vmatpush.msra.mxu1 %v4384_v24  ;;  %v4398_v53 = vld [vmem:[%s9151_s7 + $0x148] sm:$0xff]  ;;  %v4397_v7 = vld [vmem:[%s9151_s7 + $0x140] sm:$0xff]  ;;  %v4364_v56 = vld [vmem:[%s9151_s7 + $0x38] sm:$0xff] }
 0x685   : > { %4475 = vmatpush.msra.mxu2 %v4400_v49  ;;  %4436 = vmatpush.msra.mxu0 %v4367_v47  ;;  %v4414_v20 = vld [vmem:[%s9151_s7 + $0x1c8] sm:$0xff]  ;;  %v4413_v46 = vld [vmem:[%s9151_s7 + $0x1c0] sm:$0xff]  ;;  %v4380_v17 = vld [vmem:[%s9151_s7 + $0xb8] sm:$0xff] }
 0x686   : > { %4495 = vmatpush.msra.mxu3 %v4416_v25  ;;  %v4334_v36 = vmul.f32 %v5699_v5, %v4333_v26  ;;  %4456 = vmatpush.msra.mxu1 %v4383_v9  ;;  %v4396_v55 = vld [vmem:[%s9151_s7 + $0x138] sm:$0xff]  ;;  %v4363_v51 = vld [vmem:[%s9151_s7 + $0x30] sm:$0xff]  ;;  %v4362_v48 = vld [vmem:[%s9151_s7 + $0x28] sm:$0xff] }
 0x687   : > { %4476 = vmatpush.msra.mxu2 %v4399_v33  ;;  %4437 = vmatpush.msra.mxu0 %v4366_v4  ;;  %v4412_v37 = vld [vmem:[%s9151_s7 + $0x1b8] sm:$0xff]  ;;  %v4379_v28 = vld [vmem:[%s9151_s7 + $0xb0] sm:$0xff]  ;;  %v4378_v16 = vld [vmem:[%s9151_s7 + $0xa8] sm:$0xff] }
 0x688   : > { %4496 = vmatpush.msra.mxu3 %v4415_v6  ;;  %v4335_v10 = vadd.f32 %v5699_v5, %v4334_v36  ;;  %4457 = vmatpush.msra.mxu1 %v4382_v30  ;;  %v4395_v40 = vld [vmem:[%s9151_s7 + $0x130] sm:$0xff]  ;;  %v4394_v41 = vld [vmem:[%s9151_s7 + $0x128] sm:$0xff]  ;;  %v4361_v18 = vld [vmem:[%s9151_s7 + $0x20] sm:$0xff] }
 0x689   : > { %4477 = vmatpush.msra.mxu2 %v4398_v53  ;;  %4438 = vmatpush.msra.mxu0 %v4365_v54  ;;  %v4411_v50 = vld [vmem:[%s9151_s7 + $0x1b0] sm:$0xff]  ;;  %v4410_v43 = vld [vmem:[%s9151_s7 + $0x1a8] sm:$0xff]  ;;  %v4377_v58 = vld [vmem:[%s9151_s7 + $0xa0] sm:$0xff] }
 0x68a   : > { %4497 = vmatpush.msra.mxu3 %v4414_v20  ;;  %v4339_v1 = vsel %vm8996_vm0, %v5699_v5, %v4335_v10  ;;  %4458 = vmatpush.msra.mxu1 %v4381_v63  ;;  %v4393_v22 = vld [vmem:[%s9151_s7 + $0x120] sm:$0xff]  ;;  %v4360_v44 = vld [vmem:[%s9151_s7 + $0x18] sm:$0xff]  ;;  %v4359_v3 = vld [vmem:[%s9151_s7 + $0x10] sm:$0xff] }
 0x68b   : > { %4478 = vmatpush.msra.mxu2 %v4397_v7  ;;  %v4344_v45 = vsel %vm4341_vm1, %v4343_v21, %v4339_v1  ;;  %4439 = vmatpush.msra.mxu0 %v4364_v56  ;;  %v4409_v42 = vld [vmem:[%s9151_s7 + $0x1a0] sm:$0xff]  ;;  %v4376_v60 = vld [vmem:[%s9151_s7 + $0x98] sm:$0xff]  ;;  %v4375_v32 = vld [vmem:[%s9151_s7 + $0x90] sm:$0xff] }
 0x68c   : > { %4498 = vmatpush.msra.mxu3 %v4413_v46  ;;  %4349 = vperm.xlu0 %5697, %v4344_v45   ;;  %v4392_v34 = vld [vmem:[%s9151_s7 + $0x118] sm:$0xff]  ;;  %v4391_v38 = vld [vmem:[%s9151_s7 + $0x110] sm:$0xff]  ;;  %v4358_v27 = vld [vmem:[%s9151_s7 + $0x8] sm:$0xff] }
 0x68d   : > { %4459 = vmatpush.msra.mxu1 %v4380_v17  ;;  %4479 = vmatpush.msra.mxu2 %v4396_v55  ;;  %v4408_v35 = vld [vmem:[%s9151_s7 + $0x198] sm:$0xff]  ;;  %v4407_v15 = vld [vmem:[%s9151_s7 + $0x190] sm:$0xff]  ;;  %v4374_v23 = vld [vmem:[%s9151_s7 + $0x88] sm:$0xff] }
 0x68e   : > { %4499 = vmatpush.msra.mxu3 %v4412_v37  ;;  %4440 = vmatpush.msra.mxu0 %v4363_v51  ;;  %v4390_v11 = vld [vmem:[%s9151_s7 + $0x108] sm:$0xff]  ;;  %v4357_v0 = vld [vmem:[%s9151_s7] sm:$0xff] }
 0x68f   : > { %4460 = vmatpush.msra.mxu1 %v4379_v28  ;;  %4480 = vmatpush.msra.mxu2 %v4395_v40  ;;  %v4406_v12 = vld [vmem:[%s9151_s7 + $0x188] sm:$0xff]  ;;  %v4373_v61 = vld [vmem:[%s9151_s7 + $0x80] sm:$0xff] }
 0x690   : > { %4500 = vmatpush.msra.mxu3 %v4411_v50  ;;  %4441 = vmatpush.msra.mxu0 %v4362_v48  ;;  %v4389_v31 = vld [vmem:[%s9151_s7 + $0x100] sm:$0xff]  ;;  %v4346_v59 = vld [vmem:[#allocation12] sm:$0x3f] }
 0x691   : > { %4461 = vmatpush.msra.mxu1 %v4378_v16  ;;  %4481 = vmatpush.msra.mxu2 %v4394_v41  ;;  %v4405_v8 = vld [vmem:[%s9151_s7 + $0x180] sm:$0xff] }
 0x692   : > { %4501 = vmatpush.msra.mxu3 %v4410_v43  ;;  %4442 = vmatpush.msra.mxu0 %v4361_v18  ;;  %v4355_v57 = vld [vmem:[#allocation4] sm:$0xf]  ;;  %v4421_v47 = vld [vmem:[%s9152_s8] sm:$0x1] }
 0x693   : > { %4462 = vmatpush.msra.mxu1 %v4377_v58  ;;  %4482 = vmatpush.msra.mxu2 %v4393_v22 }
 0x694   : > { %4502 = vmatpush.msra.mxu3 %v4409_v42  ;;  %4443 = vmatpush.msra.mxu0 %v4360_v44 }
 0x695   : > { %4463 = vmatpush.msra.mxu1 %v4376_v60  ;;  %4483 = vmatpush.msra.mxu2 %v4392_v34 }
 0x696   : > { %4503 = vmatpush.msra.mxu3 %v4408_v35  ;;  %4444 = vmatpush.msra.mxu0 %v4359_v3 }
 0x697   : > { %4464 = vmatpush.msra.mxu1 %v4375_v32  ;;  %4484 = vmatpush.msra.mxu2 %v4391_v38 }
 0x698   : > { %4504 = vmatpush.msra.mxu3 %v4407_v15  ;;  %4445 = vmatpush.msra.mxu0 %v4358_v27 }
 0x699   : > { %4465 = vmatpush.msra.mxu1 %v4374_v23  ;;  %4485 = vmatpush.msra.mxu2 %v4390_v11 }
 0x69a   : > { %4505 = vmatpush.msra.mxu3 %v4406_v12  ;;  %4446 = vmatpush.msra.mxu0 %v4357_v0 }
 0x69b   : > { %4466 = vmatpush.msra.mxu1 %v4373_v61  ;;  %4486 = vmatpush.msra.mxu2 %v4389_v31 }
 0x69c   : > { %4506 = vmatpush.msra.mxu3 %v4405_v8 }
 0x6fe   : > { %v4350_v29 = vpop.permute.xlu0 %4349 }
 0x6ff   : > { %v4352_v2 = vperm.slane %v4350_v29, 0 }
 0x701   : > { %v4353_v13 = vmul.f32 %v4352_v2, %v4346_v59  ;;  %v4356_v5 = vmul.f32 %v4355_v57, %v4352_v2 }
 0x703   : > { %4354 = vst.msk [vmem:[#allocation12] sm:$0x3f] %vm8435_vm7, %v4353_v13  ;;  %v4423_v24 = vperm.slane %v4356_v5, 0  ;;  %v4424_v49 = vperm.slane %v4356_v5, 1  ;;  %v4425_v39 = vperm.slane %v4356_v5, 2  ;;  %v4426_v25 = vperm.slane %v4356_v5, 3 }
 0x704   : > { %vm4511_vm7 = vcmask 16384  }
 0x705   : > { %4447 = vmatmul.f32.vlgmr.msra.gmra.mxu0 %v4423_v24  ;;  %4467 = vmatmul.f32.vlgmr.msra.gmra.mxu1 %v4424_v49 }
 0x706   : > { %4487 = vmatmul.f32.vlgmr.msra.gmra.mxu2 %v4425_v39  ;;  %4507 = vmatmul.f32.vlgmr.msra.gmra.mxu3 %v4426_v25 }
 0x782   : > { %v4448_v52 = vpop.f32.mrf.mxu0  ;;  %v4468_v33 = vpop.f32.mrf.mxu1 }
 0x783   : > { %v4449_v9 = vadd.f32 %v4448_v52, %v4421_v47 }
 0x785   : > { %v4469_v26 = vadd.f32 %v4468_v33, %v4449_v9 }
 0x789   : > { %v4488_v19 = vpop.f32.mrf.mxu2  ;;  %v4508_v62 = vpop.f32.mrf.mxu3 }
 0x78a   : > { %v4489_v6 = vadd.f32 %v4488_v19, %v4469_v26 }
 0x78c   : > { %v4509_v4 = vadd.f32 %v4508_v62, %v4489_v6 }
 0x78e   : > { %4512 = vst.msk [vmem:[#allocation11] sm:$0x1] %vm4511_vm7, %v4509_v4 }
 0x78f PF: > { %p5454_p4 = scmp.eq.s32.totalorder %s5950_s6, 2  ;;  %s5871_s20 = smov [#allocation11]  }
 0x790   : > { %s4519_s12 = sshll.u32 %s5871_s20, 4  ;;  %s4521_s3 = sshll.u32 %s9153_s9, 4  ;;  %s4520_s12 = int_to_ptr.vmem [resolvable:$true] %s4519_s12  ;;  %s4522_s3 = int_to_ptr.hbm [resolvable:$true] %s4521_s3 }
 0x791   : > { %5436 = dma.vmem_to_hbm [thread:$0]  (%p5454_p4), %s4520_s12, 16, %s4522_s3, [#allocation8]  }
 0x792   : > { %s10088_s18 = sld [smem:[#allocation181_spill]]  ;;  %s5872_s27 = smov [#allocation12]  }
 0x793   : > { %s4531_s28 = sshll.u32 %s5872_s27, 4  ;;  %s4532_s28 = int_to_ptr.vmem [resolvable:$true] %s4531_s28 }
 0x798   : > { %s4533_s23 = sshll.u32 %s10088_s18, 4  ;;  %s4534_s23 = int_to_ptr.hbm [resolvable:$true] %s4533_s23 }
 0x799   : > { %5438 = dma.vmem_to_hbm [thread:$0]  (%p5454_p4), %s4532_s28, 96, %s4534_s23, [#allocation13]  }
 0x79a   : > { %5841 = dma.done.wait (%p5454_p4), [#allocation8], 16  }
 0x79b   : > { %5843 = vsyncadd (%p5454_p4), [#allocation8], 4294967280 }
 0x79c   : > { %5845 = dma.done.wait (%p5454_p4), [#allocation13], 96  }
 0x79d   : > { %5847 = vsyncadd (%p5454_p4), [#allocation13], 4294967200 }
 0x79e PF: > { %p26_p5 = scmp.ge.s32.totalorder %s5975_s26, 5   ;;  %s10089_s15 = smov %s5854_s16 }
 0x79f   : > { %s10090_s16 = smov %s5858_s17  ;;  %s10091_s17 = smov %s5988_s11 }
 0x7a0   : > { %s10092_s18 = smov %s5975_s26  ;;  %28 = sbr.rel (!%p26_p5) target bundleno = 9 (0x9), region = 114 }
 0x7a5   :  { %4552 = vsyncpa [#allocation7], 1 }
 0x7a6   :  { %4554 = vsyncpa [#allocation7 + $0x1], 1 }
 0x7a7   :  { %4555 = vsyncpa [#allocation10], 1 }
 0x7a8   :  { %4556 = vsyncpa [#allocation8], 1 }
 0x7a9   :  { %4558 = vsyncpa [#allocation8 + $0x1], 1 }
 0x7aa   :  { %4559 = vsyncpa [#allocation13], 1 }

</bundles_post_ra>
